<compile_context>
chip_gen: v5e
topology: v5e:2x2
jax: 0.10.0
libtpu: 0.0.40
codegen_flags: <defaults>
</compile_context>

<pallas_src>
import functools
import math

import jax
import jax.numpy as jnp
from jax.experimental import pallas as pl
from jax.experimental.pallas import tpu as pltpu


def _round_up(x, m):
    return (x + m - 1) // m * m


def _i32(v):
    """Python int -> wrapped int32 constant (hash multipliers)."""
    v &= 0xFFFFFFFF
    return jnp.int32(v - (1 << 32) if v >= (1 << 31) else v)


# --------------------------------------------------------------------------- #
# Fused kernel: one (TM, *) row tile per grid step
# --------------------------------------------------------------------------- #
def _gumbel_quantizer_kernel(seed_ref,                      # scalar prefetch (SMEM int32[1])
                             z_ref, w_ref, b_ref, e_ref,    # inputs (VMEM tiles)
                             zq_ref, idx_ref, kl_ref,       # outputs
                             *, tau, codebook_size, hard):
    tm = z_ref.shape[0]
    kp = w_ref.shape[1]

    # ---- 1x1 conv (projection): bf16 MXU matmul, f32 accumulation ------------
    logits = jnp.dot(z_ref[...], w_ref[...],
                     preferred_element_type=jnp.float32) + b_ref[...]

    # ---- shared softmax statistics (f32) --------------------------------------
    lmax = jnp.max(logits, axis=-1, keepdims=True)
    centered = logits - lmax                       # <= 0 ; padded cols ~ -1e9
    ex = jnp.exp(centered)                         # padded cols underflow to 0
    s = jnp.sum(ex, axis=-1, keepdims=True)        # >= 1

    # ---- KL(q || uniform), log-sum-exp form (exact; one log + one div per row)
    #   sum_i qy_i*log(qy_i*K) = (sum_i ex_i*centered_i)/s - log(s) + log(K)
    kl_ref[...] = (jnp.sum(ex * centered, axis=-1, keepdims=True) / s
                   - jnp.log(s) + math.log(codebook_size))

    # ---- Gumbel/exponential noise from an in-kernel counter hash --------------
    # (integer splitmix/lowbias32 finalizer of (global_row, lane, seed); pure VPU
    #  int32 ops, so it lowers on every backend — unlike pltpu.prng_*.)
    lane = jax.lax.broadcasted_iota(jnp.int32, (tm, kp), 1)
    row = (jax.lax.broadcasted_iota(jnp.int32, (tm, kp), 0)
           + pl.program_id(0) * tm)
    h = (row * _i32(0x9E3779B1) + lane * _i32(0x85EBCA77)
         + seed_ref[0] * _i32(0x27D4EB2F))
    h = h ^ ((h >> 16) & 0xFFFF)                   # masked arith-shift == logical shift
    h = h * _i32(0x7FEB352D)
    h = h ^ ((h >> 15) & 0x1FFFF)
    h = h * _i32(0x846CA68B)
    h = h ^ ((h >> 16) & 0xFFFF)
    u = ((h >> 8) & 0xFFFFFF).astype(jnp.float32) * (1.0 / (1 << 24))  # U[0, 1)
    e_noise = -jnp.log(u + 1e-9)                   # Exp(1);  Gumbel g = -log(e_noise)

    if hard:
        # Exponential-race argmax: argmax_i(logits_i + g_i) == argmax_i(ex_i / E_i).
        # Reuses ex; tau drops out (argmax is invariant to positive scaling).
        score = ex * pl.reciprocal(e_noise, approx=True)
        smax = jnp.max(score, axis=-1, keepdims=True)
        idx = jnp.min(jnp.where(score == smax, lane, kp), axis=-1, keepdims=True)
        idx_ref[...] = idx
        one_hot = (lane == idx).astype(jnp.bfloat16)
        zq_ref[...] = jnp.dot(one_hot, e_ref[...],
                              preferred_element_type=jnp.float32).astype(zq_ref.dtype)
    else:
        # Soft (training, straight_through=False) path: full Gumbel-softmax.
        y = (logits - jnp.log(e_noise)) * (1.0 / tau)
        ymax = jnp.max(y, axis=-1, keepdims=True)
        ey = jnp.exp(y - ymax)
        soft = ey * pl.reciprocal(jnp.sum(ey, axis=-1, keepdims=True), approx=True)
        idx_ref[...] = jnp.min(jnp.where(y == ymax, lane, kp), axis=-1, keepdims=True)
        zq_ref[...] = jnp.dot(soft.astype(jnp.bfloat16), e_ref[...],
                              preferred_element_type=jnp.float32).astype(zq_ref.dtype)


# --------------------------------------------------------------------------- #
# Parameters (mirrors GumbelQuantizer.__init__)
# --------------------------------------------------------------------------- #
def init_gumbel_quantizer(key, codebook_size, emb_dim, num_hiddens,
                          straight_through=False, kl_weight=5e-4, temp_init=1.0):
    kw, kb, ke = jax.random.split(key, 3)
    bound = 1.0 / (num_hiddens ** 0.5)                       # Conv2d default init
    proj_w = jax.random.uniform(kw, (num_hiddens, codebook_size), jnp.float32,
                                -bound, bound)
    proj_b = jax.random.uniform(kb, (codebook_size,), jnp.float32, -bound, bound)
    embed_w = jax.random.normal(ke, (codebook_size, emb_dim), jnp.float32)  # nn.Embedding
    return {
        "codebook_size": codebook_size, "emb_dim": emb_dim, "num_hiddens": num_hiddens,
        "straight_through": straight_through, "kl_weight": kl_weight,
        "temperature": temp_init,
        "proj_w": proj_w, "proj_b": proj_b, "embed_w": embed_w,
    }


# --------------------------------------------------------------------------- #
# Forward wrapper (NCHW in / NCHW out, like the PyTorch module; z_q is bf16)
# --------------------------------------------------------------------------- #
def gumbel_quantizer_forward(params, z, seed, *, training=False, tile_rows=512):
    # hard = straight_through if training else True   (same rule as PyTorch forward)
    hard = bool(params["straight_through"]) if training else True
    # TODO(synk): straight-through gradient trick (y_hard - y_soft.detach() + y_soft) is a
    # backward-pass concern only; forward values are identical and no custom VJP is defined.
    tau = float(params["temperature"])
    K = int(params["codebook_size"])
    D = int(params["emb_dim"])

    B, Ch, H, W = z.shape
    M = B * H * W

    # Row tile: a multiple of 128, capped so the grid has >= 2 "parallel" tiles
    # whenever possible (both v7x TensorCores stay busy; v5e/v6e are single-TC).
    tile_rows = _round_up(int(tile_rows), 128)
    TM = min(tile_rows, max(128, _round_up((M + 1) // 2, 128)))
    Mp = _round_up(max(M, TM), TM)
    Kp = _round_up(K, 128)
    Dp = _round_up(D, 128)

    # NCHW -> (rows, channels) in bf16 (layout round trip + DMA at half the bytes).
    z2d = jnp.transpose(z.astype(jnp.bfloat16), (0, 2, 3, 1)).reshape(M, Ch)
    if Mp > M:
        z2d = jnp.pad(z2d, ((0, Mp - M), (0, 0)))

    w = params["proj_w"]
    b = params["proj_b"].astype(jnp.float32)
    e = params["embed_w"]
    if Kp > K:                                   # pad codebook dim to a lane multiple
        w = jnp.pad(w, ((0, 0), (0, Kp - K)))
        b = jnp.pad(b, ((0, Kp - K),), constant_values=-1e9)   # padded codes never win
        e = jnp.pad(e, ((0, Kp - K), (0, 0)))
    if Dp > D:                                   # pad embedding dim to a lane multiple
        e = jnp.pad(e, ((0, 0), (0, Dp - D)))
    w_bf = w.astype(jnp.bfloat16)
    e_bf = e.astype(jnp.bfloat16)
    b2d = b.reshape(1, Kp)

    seed_arr = jnp.asarray([seed], dtype=jnp.int32)

    kernel = functools.partial(_gumbel_quantizer_kernel,
                               tau=tau, codebook_size=K, hard=hard)

    grid = (Mp // TM,)
    grid_spec = pltpu.PrefetchScalarGridSpec(
        num_scalar_prefetch=1,
        grid=grid,
        in_specs=[
            pl.BlockSpec((TM, Ch), lambda i, seed_ref: (i, 0)),   # activations (row tile)
            pl.BlockSpec((Ch, Kp), lambda i, seed_ref: (0, 0)),   # proj weight (resident)
            pl.BlockSpec((1, Kp), lambda i, seed_ref: (0, 0)),    # proj bias
            pl.BlockSpec((Kp, Dp), lambda i, seed_ref: (0, 0)),   # codebook (resident)
        ],
        out_specs=[
            pl.BlockSpec((TM, Dp), lambda i, seed_ref: (i, 0)),   # z_q (bf16, lane-dense)
            pl.BlockSpec((TM, 1), lambda i, seed_ref: (i, 0)),    # indices
            pl.BlockSpec((TM, 1), lambda i, seed_ref: (i, 0)),    # per-row KL term
        ],
    )

    flops = 2 * Mp * (Ch * Kp + Kp * Dp)
    transcendentals = 3 * Mp * Kp                 # exp + log + approx-rcp per element
    bytes_accessed = (Mp * Ch * 2 + Mp * Dp * 2 + Mp * 8
                      + (Ch * Kp + Kp * Dp) * 2 + Kp * 4)

    zq_p, idx_p, kl_p = pl.pallas_call(
        kernel,
        out_shape=(
            jax.ShapeDtypeStruct((Mp, Dp), jnp.bfloat16),
            jax.ShapeDtypeStruct((Mp, 1), jnp.int32),
            jax.ShapeDtypeStruct((Mp, 1), jnp.float32),
        ),
        grid_spec=grid_spec,
        compiler_params=pltpu.CompilerParams(
            dimension_semantics=("parallel",),
            vmem_limit_bytes=32 * 1024 * 1024,
        ),
        cost_estimate=pl.CostEstimate(
            flops=flops, transcendentals=transcendentals,
            bytes_accessed=bytes_accessed),
    )(seed_arr, z2d, w_bf, b2d, e_bf)

    z_q = zq_p[:M, :D].reshape(B, H, W, D).transpose(0, 3, 1, 2)   # bf16, (B, D, H, W)
    indices = idx_p[:M, 0].reshape(B, H, W)
    diff = params["kl_weight"] * jnp.mean(kl_p[:M, 0])
    return z_q, diff, {"min_encoding_indices": indices}


# --------------------------------------------------------------------------- #
if __name__ == "__main__":
    key = jax.random.PRNGKey(0)
    k_params, k_z = jax.random.split(key)

    codebook_size = 256
    emb_dim = 64
    num_hiddens = 64
    B, H, W = 2, 16, 16

    params = init_gumbel_quantizer(k_params, codebook_size, emb_dim, num_hiddens)
    z = jax.random.normal(k_z, (B, num_hiddens, H, W), jnp.float32)

    # ---- eval path (hard one-hot) --------------------------------------------
    z_q, diff, extra = gumbel_quantizer_forward(params, z, seed=0, training=False)
    z_q, diff, idx = jax.block_until_ready((z_q, diff, extra["min_encoding_indices"]))

    assert z_q.shape == (B, emb_dim, H, W) and z_q.dtype == jnp.bfloat16, (z_q.shape, z_q.dtype)
    assert idx.shape == (B, H, W), idx.shape
    assert bool(jnp.all(jnp.isfinite(z_q.astype(jnp.float32)))) and bool(jnp.isfinite(diff))
    assert int(idx.min()) >= 0 and int(idx.max()) < codebook_size

    # hard=True (eval) => each z_q pixel must be exactly the selected bf16 codebook row.
    gathered = params["embed_w"].astype(jnp.bfloat16)[idx]                 # (B,H,W,D)
    assert bool(jnp.allclose(z_q.astype(jnp.float32),
                             jnp.transpose(gathered, (0, 3, 1, 2)).astype(jnp.float32),
                             atol=1e-5))

    # KL term does not depend on the noise: compare to a pure-JAX reference built from
    # the same bf16-rounded operands the kernel feeds to the MXU.
    zf = jnp.transpose(z, (0, 2, 3, 1)).reshape(-1, num_hiddens)
    zf_bf = zf.astype(jnp.bfloat16).astype(jnp.float32)
    w_ref = params["proj_w"].astype(jnp.bfloat16).astype(jnp.float32)
    logits_ref = jnp.dot(zf_bf, w_ref, precision=jax.lax.Precision.HIGHEST) + params["proj_b"]
    qy_ref = jax.nn.softmax(logits_ref, axis=-1)
    diff_ref = params["kl_weight"] * jnp.mean(
        jnp.sum(qy_ref * jnp.log(qy_ref * codebook_size + 1e-10), axis=-1))
    assert bool(jnp.allclose(diff, diff_ref, rtol=5e-2, atol=1e-6)), (float(diff), float(diff_ref))

    # ---- training path (soft gumbel-softmax) just has to run and be sane ------
    z_q_s, diff_s, extra_s = gumbel_quantizer_forward(params, z, seed=1, training=True)
    z_q_s, diff_s, idx_s = jax.block_until_ready(
        (z_q_s, diff_s, extra_s["min_encoding_indices"]))
    assert z_q_s.shape == (B, emb_dim, H, W)
    assert bool(jnp.all(jnp.isfinite(z_q_s.astype(jnp.float32)))) and bool(jnp.isfinite(diff_s))
    assert int(idx_s.min()) >= 0 and int(idx_s.max()) < codebook_size

    print("KERNEL_OK")
</pallas_src>

<mosaic_0001>
module attributes {stable_mosaic.version = 11 : i64} {
  func.func @_gumbel_quantizer_kernel(%arg0: i32, %arg1: memref<1xi32, #tpu.memory_space<smem>>, %arg2: memref<256x64xbf16, #tpu.memory_space<vmem>>, %arg3: memref<64x256xbf16, #tpu.memory_space<vmem>>, %arg4: memref<1x256xf32, #tpu.memory_space<vmem>>, %arg5: memref<256x128xbf16, #tpu.memory_space<vmem>>, %arg6: memref<256x128xbf16, #tpu.memory_space<vmem>>, %arg7: memref<256x1xi32, #tpu.memory_space<vmem>>, %arg8: memref<256x1xf32, #tpu.memory_space<vmem>>) attributes {dimension_semantics = [#tpu.dimension_semantics<parallel>], iteration_bounds = array<i64: 2>, scalar_prefetch = 1 : i64, scratch_operands = 0 : i64, tpu.core_type = #tpu.core_type<tc>, window_params = [{transform_indices = @transform_0, window_bounds = array<i64: 256, 64>}, {pipeline_mode = #tpu.pipeline_mode<synchronous>, transform_indices = @transform_1, window_bounds = array<i64: 64, 256>}, {pipeline_mode = #tpu.pipeline_mode<synchronous>, transform_indices = @transform_2, window_bounds = array<i64: 1, 256>}, {pipeline_mode = #tpu.pipeline_mode<synchronous>, transform_indices = @transform_3, window_bounds = array<i64: 256, 128>}, {transform_indices = @transform_4, window_bounds = array<i64: 256, 128>}, {transform_indices = @transform_5, window_bounds = array<i64: 256, 1>}, {transform_indices = @transform_6, window_bounds = array<i64: 256, 1>}]} {
    %c0 = arith.constant 0 : index
    %c0_0 = arith.constant 0 : index
    %0 = vector.load %arg2[%c0, %c0_0] : memref<256x64xbf16, #tpu.memory_space<vmem>>, vector<256x64xbf16>
    %c0_1 = arith.constant 0 : index
    %c0_2 = arith.constant 0 : index
    %1 = vector.load %arg3[%c0_1, %c0_2] : memref<64x256xbf16, #tpu.memory_space<vmem>>, vector<64x256xbf16>
    %cst = arith.constant dense<0.000000e+00> : vector<256x256xf32>
    %2 = tpu.matmul %0, %1, %cst {dimension_numbers = #tpu.dot_dimension_numbers<[1], [0], [0], [1], [0, 0, 1, 1], [], []>} : vector<256x64xbf16>, vector<64x256xbf16>, vector<256x256xf32> -> vector<256x256xf32>
    %c0_3 = arith.constant 0 : index
    %c0_4 = arith.constant 0 : index
    %3 = vector.load %arg4[%c0_3, %c0_4] : memref<1x256xf32, #tpu.memory_space<vmem>>, vector<1x256xf32>
    %4 = vector.broadcast %3 : vector<1x256xf32> to vector<256x256xf32>
    %5 = arith.addf %2, %4 : vector<256x256xf32>
    %cst_5 = arith.constant dense<0xFF800000> : vector<256xf32>
    %6 = vector.multi_reduction <maximumf>, %5, %cst_5 [1] : vector<256x256xf32> to vector<256xf32>
    %7 = vector.shape_cast %6 : vector<256xf32> to vector<256x1xf32>
    %8 = vector.broadcast %7 : vector<256x1xf32> to vector<256x256xf32>
    %9 = arith.subf %5, %8 : vector<256x256xf32>
    %10 = math.exp %9 : vector<256x256xf32>
    %cst_6 = arith.constant dense<0.000000e+00> : vector<256xf32>
    %11 = vector.multi_reduction <add>, %10, %cst_6 [1] : vector<256x256xf32> to vector<256xf32>
    %12 = vector.shape_cast %11 : vector<256xf32> to vector<256x1xf32>
    %13 = arith.mulf %10, %9 : vector<256x256xf32>
    %cst_7 = arith.constant dense<0.000000e+00> : vector<256xf32>
    %14 = vector.multi_reduction <add>, %13, %cst_7 [1] : vector<256x256xf32> to vector<256xf32>
    %15 = vector.shape_cast %14 : vector<256xf32> to vector<256x1xf32>
    %16 = arith.divf %15, %12 : vector<256x1xf32>
    %17 = math.log %12 : vector<256x1xf32>
    %18 = arith.subf %16, %17 : vector<256x1xf32>
    %cst_8 = arith.constant 5.54517746 : f32
    %19 = vector.broadcast %cst_8 : f32 to vector<256x1xf32>
    %20 = arith.addf %18, %19 : vector<256x1xf32>
    %c0_9 = arith.constant 0 : index
    %c0_10 = arith.constant 0 : index
    %21 = vector.load %arg8[%c0_9, %c0_10] : memref<256x1xf32, #tpu.memory_space<vmem>>, vector<256x1xf32>
    tpu.vector_store %arg8[%c0_9, %c0_10], %20 {strides = array<i32>} : memref<256x1xf32, #tpu.memory_space<vmem>>, vector<256x1xf32>,
    %22 = tpu.iota {dimensions = array<i32: 1>} : vector<256x256xi32>
    %23 = tpu.iota {dimensions = array<i32: 0>} : vector<256x256xi32>
    %c256_i32 = arith.constant 256 : i32
    %24 = arith.muli %arg0, %c256_i32 : i32
    %25 = vector.broadcast %24 : i32 to vector<256x256xi32>
    %26 = arith.addi %23, %25 : vector<256x256xi32>
    %c-1640531535_i32 = arith.constant -1640531535 : i32
    %27 = vector.broadcast %c-1640531535_i32 : i32 to vector<256x256xi32>
    %28 = arith.muli %26, %27 : vector<256x256xi32>
    %c-2048144777_i32 = arith.constant -2048144777 : i32
    %29 = vector.broadcast %c-2048144777_i32 : i32 to vector<256x256xi32>
    %30 = arith.muli %22, %29 : vector<256x256xi32>
    %31 = arith.addi %28, %30 : vector<256x256xi32>
    %c0_11 = arith.constant 0 : index
    %32 = memref.load %arg1[%c0_11] : memref<1xi32, #tpu.memory_space<smem>>
    %c668265263_i32 = arith.constant 668265263 : i32
    %33 = arith.muli %32, %c668265263_i32 : i32
    %34 = vector.broadcast %33 : i32 to vector<256x256xi32>
    %35 = arith.addi %31, %34 : vector<256x256xi32>
    %c16_i32 = arith.constant 16 : i32
    %36 = vector.broadcast %c16_i32 : i32 to vector<256x256xi32>
    %37 = arith.shrsi %35, %36 : vector<256x256xi32>
    %c65535_i32 = arith.constant 65535 : i32
    %38 = vector.broadcast %c65535_i32 : i32 to vector<256x256xi32>
    %39 = arith.andi %37, %38 : vector<256x256xi32>
    %40 = arith.xori %35, %39 : vector<256x256xi32>
    %c2146121005_i32 = arith.constant 2146121005 : i32
    %41 = vector.broadcast %c2146121005_i32 : i32 to vector<256x256xi32>
    %42 = arith.muli %40, %41 : vector<256x256xi32>
    %c15_i32 = arith.constant 15 : i32
    %43 = vector.broadcast %c15_i32 : i32 to vector<256x256xi32>
    %44 = arith.shrsi %42, %43 : vector<256x256xi32>
    %c131071_i32 = arith.constant 131071 : i32
    %45 = vector.broadcast %c131071_i32 : i32 to vector<256x256xi32>
    %46 = arith.andi %44, %45 : vector<256x256xi32>
    %47 = arith.xori %42, %46 : vector<256x256xi32>
    %c-2073254261_i32 = arith.constant -2073254261 : i32
    %48 = vector.broadcast %c-2073254261_i32 : i32 to vector<256x256xi32>
    %49 = arith.muli %47, %48 : vector<256x256xi32>
    %c16_i32_12 = arith.constant 16 : i32
    %50 = vector.broadcast %c16_i32_12 : i32 to vector<256x256xi32>
    %51 = arith.shrsi %49, %50 : vector<256x256xi32>
    %c65535_i32_13 = arith.constant 65535 : i32
    %52 = vector.broadcast %c65535_i32_13 : i32 to vector<256x256xi32>
    %53 = arith.andi %51, %52 : vector<256x256xi32>
    %54 = arith.xori %49, %53 : vector<256x256xi32>
    %c8_i32 = arith.constant 8 : i32
    %55 = vector.broadcast %c8_i32 : i32 to vector<256x256xi32>
    %56 = arith.shrsi %54, %55 : vector<256x256xi32>
    %c16777215_i32 = arith.constant 16777215 : i32
    %57 = vector.broadcast %c16777215_i32 : i32 to vector<256x256xi32>
    %58 = arith.andi %56, %57 : vector<256x256xi32>
    %59 = arith.sitofp %58 : vector<256x256xi32> to vector<256x256xf32>
    %cst_14 = arith.constant 5.96046448E-8 : f32
    %60 = vector.broadcast %cst_14 : f32 to vector<256x256xf32>
    %61 = arith.mulf %59, %60 : vector<256x256xf32>
    %cst_15 = arith.constant 9.99999971E-10 : f32
    %62 = vector.broadcast %cst_15 : f32 to vector<256x256xf32>
    %63 = arith.addf %61, %62 : vector<256x256xf32>
    %64 = math.log %63 : vector<256x256xf32>
    %cst_16 = arith.constant 0.000000e+00 : f32
    %65 = vector.broadcast %cst_16 : f32 to vector<256x256xf32>
    %66 = arith.subf %65, %64 : vector<256x256xf32>
    %67 = tpu.reciprocal %66 {approx = true} : vector<256x256xf32> -> vector<256x256xf32>
    %68 = arith.mulf %10, %67 : vector<256x256xf32>
    %cst_17 = arith.constant dense<0xFF800000> : vector<256xf32>
    %69 = vector.multi_reduction <maximumf>, %68, %cst_17 [1] : vector<256x256xf32> to vector<256xf32>
    %70 = vector.shape_cast %69 : vector<256xf32> to vector<256x1xf32>
    %71 = vector.broadcast %70 : vector<256x1xf32> to vector<256x256xf32>
    %72 = arith.cmpf oeq, %68, %71 : vector<256x256xf32>
    %c256_i32_18 = arith.constant 256 : i32
    %73 = vector.broadcast %c256_i32_18 : i32 to vector<256x256xi32>
    %74 = arith.select %72, %22, %73 : vector<256x256xi1>, vector<256x256xi32>
    %cst_19 = arith.constant dense<2147483647> : vector<256xi32>
    %75 = vector.multi_reduction <minsi>, %74, %cst_19 [1] : vector<256x256xi32> to vector<256xi32>
    %76 = vector.shape_cast %75 : vector<256xi32> to vector<256x1xi32>
    %c0_20 = arith.constant 0 : index
    %c0_21 = arith.constant 0 : index
    %77 = vector.load %arg7[%c0_20, %c0_21] : memref<256x1xi32, #tpu.memory_space<vmem>>, vector<256x1xi32>
    tpu.vector_store %arg7[%c0_20, %c0_21], %76 {strides = array<i32>} : memref<256x1xi32, #tpu.memory_space<vmem>>, vector<256x1xi32>,
    %78 = vector.broadcast %76 : vector<256x1xi32> to vector<256x256xi32>
    %79 = arith.cmpi eq, %22, %78 : vector<256x256xi32>
    %80 = arith.extui %79 : vector<256x256xi1> to vector<256x256xi32>
    %81 = arith.sitofp %80 : vector<256x256xi32> to vector<256x256xf32>
    %82 = arith.truncf %81 : vector<256x256xf32> to vector<256x256xbf16>
    %c0_22 = arith.constant 0 : index
    %c0_23 = arith.constant 0 : index
    %83 = vector.load %arg5[%c0_22, %c0_23] : memref<256x128xbf16, #tpu.memory_space<vmem>>, vector<256x128xbf16>
    %cst_24 = arith.constant dense<0.000000e+00> : vector<256x128xf32>
    %84 = tpu.matmul %82, %83, %cst_24 {dimension_numbers = #tpu.dot_dimension_numbers<[1], [0], [0], [1], [0, 0, 1, 1], [], []>} : vector<256x256xbf16>, vector<256x128xbf16>, vector<256x128xf32> -> vector<256x128xf32>
    %85 = arith.truncf %84 : vector<256x128xf32> to vector<256x128xbf16>
    %c0_25 = arith.constant 0 : index
    %c0_26 = arith.constant 0 : index
    %86 = vector.load %arg6[%c0_25, %c0_26] : memref<256x128xbf16, #tpu.memory_space<vmem>>, vector<256x128xbf16>
    tpu.vector_store %arg6[%c0_25, %c0_26], %85 {strides = array<i32>} : memref<256x128xbf16, #tpu.memory_space<vmem>>, vector<256x128xbf16>,
    return
  }
  func.func @transform_0(%arg0: i32, %arg1: memref<1xi32, #tpu.memory_space<smem>>) -> (i32, i32) {
    %c0_i32 = arith.constant 0 : i32
    %c0_i32_0 = arith.constant 0 : i32
    return %arg0, %c0_i32 : i32, i32
  }
  func.func @transform_1(%arg0: i32, %arg1: memref<1xi32, #tpu.memory_space<smem>>) -> (i32, i32) {
    %c0_i32 = arith.constant 0 : i32
    %c0_i32_0 = arith.constant 0 : i32
    %c0_i32_1 = arith.constant 0 : i32
    return %c0_i32, %c0_i32_0 : i32, i32
  }
  func.func @transform_2(%arg0: i32, %arg1: memref<1xi32, #tpu.memory_space<smem>>) -> (i32, i32) {
    %c0_i32 = arith.constant 0 : i32
    %c0_i32_0 = arith.constant 0 : i32
    %c0_i32_1 = arith.constant 0 : i32
    return %c0_i32, %c0_i32_0 : i32, i32
  }
  func.func @transform_3(%arg0: i32, %arg1: memref<1xi32, #tpu.memory_space<smem>>) -> (i32, i32) {
    %c0_i32 = arith.constant 0 : i32
    %c0_i32_0 = arith.constant 0 : i32
    %c0_i32_1 = arith.constant 0 : i32
    return %c0_i32, %c0_i32_0 : i32, i32
  }
  func.func @transform_4(%arg0: i32, %arg1: memref<1xi32, #tpu.memory_space<smem>>) -> (i32, i32) {
    %c0_i32 = arith.constant 0 : i32
    %c0_i32_0 = arith.constant 0 : i32
    return %arg0, %c0_i32 : i32, i32
  }
  func.func @transform_5(%arg0: i32, %arg1: memref<1xi32, #tpu.memory_space<smem>>) -> (i32, i32) {
    %c0_i32 = arith.constant 0 : i32
    %c0_i32_0 = arith.constant 0 : i32
    return %arg0, %c0_i32 : i32, i32
  }
  func.func @transform_6(%arg0: i32, %arg1: memref<1xi32, #tpu.memory_space<smem>>) -> (i32, i32) {
    %c0_i32 = arith.constant 0 : i32
    %c0_i32_0 = arith.constant 0 : i32
    return %arg0, %c0_i32 : i32, i32
  }
}

</mosaic_0001>

<bundles_post_ra>
// kernel: tpu_custom_call.1
= control target key start
LH: loop header
LB: loop body
LE: loop exit
PB: predicated region body
PF: predicated region fallthrough
CT: control target
= control target key end

     0   :  { %s9849_s0 = inlined_call_operand.<no memory space> [shape: s32[1], index: 0, kind: input, shape index: {}]   ;;  %s9850_s1 = inlined_call_operand.vmem [shape: bf16[512,64], index: 1, kind: input, shape index: {}]   ;;  %s9851_s2 = inlined_call_operand.vmem [shape: bf16[64,256], index: 2, kind: input, shape index: {}]   ;;  %s9852_s3 = inlined_call_operand.vmem [shape: f32[1,256], index: 3, kind: input, shape index: {}]   ;;  %s9853_s4 = inlined_call_operand.vmem [shape: bf16[256,128], index: 4, kind: input, shape index: {}]   ;;  %s9854_s5 = inlined_call_operand.hbm [shape: bf16[512,128], index: 5, kind: output, shape index: {0}]   ;;  %s9855_s6 = inlined_call_operand.vmem [shape: s32[512,1], index: 6, kind: output, shape index: {1}]   ;;  %s9856_s7 = inlined_call_operand.vmem [shape: f32[512,1], index: 7, kind: output, shape index: {2}]  }
   0x1   :  { %13 = sst [smem:[#allocation3]] %s9849_s0 }
   0x2   :  { %14 = vsyncpa [#allocation5], 0 }
   0x3   :  { %16 = vsyncpa [#allocation5 + $0x1], 0  ;;  %s6341_s26 = smov 0   ;;  %s6343_s27 = smov 0  }
   0x4   :  { %s6345_s28 = smov 0   ;;  %s6347_s29 = smov 0  }
   0x5 LB: > { %s6362_s0 = sadd.s32 4294967295, %s6293_s29   ;;  %s4948_s30 = sadd.s32 4294967294, %s6293_s29   ;;  %s6293_s29 = sphi %s6347_s29, %s10808_s29   ;;  %s6289_s28 = sphi %s6345_s28, %s10807_s28   ;;  %s6285_s27 = sphi %s6343_s27, %s10806_s27   ;;  %s6281_s26 = sphi %s6341_s26, %s10805_s26  }
   0x6   : > { %s6366_s8 = sadd.s32 1, %s6293_s29   ;;  %s118_s9 = sadd.s32 1, %s6289_s28 }
   0x7   : > { %s115_s10 = ssub.s32 %s6293_s29, %s6366_s8  ;;  %p128_p0 = scmp.ne.s32.totalorder %s6289_s28, %s6285_s27 }
   0x8   : > { %p116_p1 = scmp.eq.s32.totalorder %s115_s10, 0  ;;  %p129_p2 = scmp.eq.s32.totalorder %s6362_s0, 1 }
   0x9   : > { %p134_p3 = scmp.ne.s32.totalorder %s6285_s27, %s6281_s26  ;;  %p135_p4 = scmp.eq.s32.totalorder %s4948_s30, 1 }
   0xa   : > { %s6377_s11 = scalar_select %p116_p1, %s6289_s28, %s118_s9  }
   0xb   : > { %p6379_p5 = por %p129_p2, %p128_p0  ;;  %p6383_p6 = por %p135_p4, %p134_p3 }
   0xc   : > { %p4951_p7 = scmp.ge.s32.totalorder %s6293_s29, 1  ;;  %p223_p8 = scmp.lt.s32.totalorder %s6293_s29, 3 }
   0xe   : > { %p224_p9 = pnand %p4951_p7, %p223_p8 }
  0x10   : > { %227 = sbr.rel (%p224_p9) target bundleno = 1418 (0x58a), region = 36 }
  0x15   : > { %v5049_v0 = vld [vmem:[%s9851_s2 + $0x30] sm:$0xf]  ;;  %v5564_v1 = vld [vmem:[%s9851_s2 + $0x34] sm:$0xf0]  ;;  %v5563_v2 = vld [vmem:[%s9851_s2 + $0x34] sm:$0xf] }
  0x16   : > { %v5050_v3 = vor.u32 %v5564_v1, %v5049_v0  ;;  %v5051_v4 = vld [vmem:[%s9851_s2 + $0x38] sm:$0xf0]  ;;  %v5041_v5 = vld [vmem:[%s9851_s2 + $0x20] sm:$0xf]  ;;  %v5562_v6 = vld [vmem:[%s9851_s2 + $0x24] sm:$0xf0] }
  0x17   : > { %v5054_v7 = vor.u32 %v5563_v2, %v5051_v4  ;;  %v5561_v8 = vld [vmem:[%s9851_s2 + $0x24] sm:$0xf]  ;;  %v5043_v9 = vld [vmem:[%s9851_s2 + $0x28] sm:$0xf0]  ;;  %v5042_v10 = vor.u32 %v5562_v6, %v5041_v5  ;;  %v5033_v12 = vld [vmem:[%s9851_s2 + $0x10] sm:$0xf]  ;;  %v1861_v6 = vlaneseq }
  0x18   : > { %502 = vmatpush.bf16.msra.mxu0 %v5050_v3  ;;  %v5046_v11 = vor.u32 %v5561_v8, %v5043_v9  ;;  %v5560_v13 = vld [vmem:[%s9851_s2 + $0x14] sm:$0xf0]  ;;  %v5559_v14 = vld [vmem:[%s9851_s2 + $0x14] sm:$0xf]  ;;  %v5035_v15 = vld [vmem:[%s9851_s2 + $0x18] sm:$0xf0] }
  0x19   : > { %591 = vmatpush.bf16.msra.mxu1 %v5054_v7  ;;  %s4953_s23 = sshll.u32 %s6362_s0, 5  ;;  %v5034_v16 = vor.u32 %v5560_v13, %v5033_v12  ;;  %v5038_v17 = vor.u32 %v5559_v14, %v5035_v15  ;;  %v5025_v18 = vld [vmem:[%s9851_s2] sm:$0xf]  ;;  %v5558_v19 = vld [vmem:[%s9851_s2 + $0x4] sm:$0xf0]  ;;  %vm449_vm0 = vcmask 523264  }
  0x1a   : > { %p264_p10 = scmp.lt.s32.totalorder %s4953_s23, 63  ;;  %v5557_v20 = vld [vmem:[%s9851_s2 + $0x4] sm:$0xf]  ;;  %v5027_v21 = vld [vmem:[%s9851_s2 + $0x8] sm:$0xf0]  ;;  %v5026_v22 = vor.u32 %v5558_v19, %v5025_v18  ;;  %s2029_s24 = sld [smem:[#allocation3]] }
  0x1b   : > { %v5030_v23 = vor.u32 %v5557_v20, %v5027_v21  ;;  %v323_v32 = vld [vmem:[%s9852_s3] sm:$0x3]  ;;  %s5087_s25 = sshll.u32 %s6362_s0, 8 }
  0x1c   : > { %503 = vmatpush.bf16.msra.mxu0 %v5042_v10  ;;  %s10810_s23 = smov (!%p264_p10, %s4953_s23), 63  ;;  %v6473_v33 = vperm.slane %v323_v32, 0  ;;  %v6475_v34 = vperm.slane %v323_v32, 1  ;;  %v6542_v10 = vand.u32 127, %v1861_v6  ;;  %v6547_v12 = vstv %s5087_s25 }
  0x1d   : > { %592 = vmatpush.bf16.msra.mxu1 %v5046_v11  ;;  %s4954_s17 = sshll.u32 %s10810_s23, 2  ;;  %v6544_v11 = vshrl.u32 %v1861_v6, 7  ;;  %10180 = vst [vmem:[#allocation10_spill] sm:$0xff] %v6547_v12  ;;  %s4956_s16 = sshll.u32 %s10810_s23, 3 }
  0x1e   : > { %s6444_s20 = scalar_lea.vmem %s9850_s1, %s4954_s17  ;;  %10177 = vst [vmem:[#allocation7_spill] sm:$0xff] %v6473_v33  ;;  %v6553_v14 = vadd.s32 128, %v6542_v10  ;;  %s7824_s19 = scalar_lea.vmem %s9855_s6, %s4956_s16 }
  0x1f   : > { %v5541_v24 = vld [vmem:[%s6444_s20] sm:$0xff]  ;;  %v5542_v25 = vld [vmem:[%s6444_s20 + $0x8] sm:$0xff]  ;;  %v5543_v26 = vld [vmem:[%s6444_s20 + $0x10] sm:$0xff]  ;;  %10178 = vst [vmem:[#allocation8_spill] sm:$0xff] %v6475_v34  ;;  %v1899_v15 = vadd.s32 %v6547_v12, %v6544_v11  ;;  %s5581_s23 = sshll.u32 %s6362_s0, 7 }
  0x20   : > { %504 = vmatpush.bf16.msra.mxu0 %v5034_v16  ;;  %v5544_v27 = vld [vmem:[%s6444_s20 + $0x18] sm:$0xff]  ;;  %v5545_v28 = vld [vmem:[%s6444_s20 + $0x20] sm:$0xff]  ;;  %v5546_v29 = vld [vmem:[%s6444_s20 + $0x28] sm:$0xff]  ;;  %10179 = vst [vmem:[#allocation9_spill] sm:$0xff] %v6544_v11  ;;  %s2030_s30 = smul.u32 668265263, %s2029_s24  ;;  %s9770_s10 = scalar_lea.hbm %s9854_s5, %s5581_s23 }
  0x21   : > { %593 = vmatpush.bf16.msra.mxu1 %v5038_v17  ;;  %v5547_v30 = vld [vmem:[%s6444_s20 + $0x30] sm:$0xff]  ;;  %v5548_v31 = vld [vmem:[%s6444_s20 + $0x38] sm:$0xff]  ;;  %v5549_v35 = vld [vmem:[%s6444_s20 + $0x40] sm:$0xff]  ;;  %10181 = vst [vmem:[#allocation11_spill] sm:$0xff] %v6553_v14  ;;  %v1931_v16 = vmul.u32 2654435761, %v1899_v15 }
  0x22   : > { %v5550_v46 = vld [vmem:[%s6444_s20 + $0x48] sm:$0xff]  ;;  %v5551_v57 = vld [vmem:[%s6444_s20 + $0x50] sm:$0xff]  ;;  %v5552_v4 = vld [vmem:[%s6444_s20 + $0x58] sm:$0xff]  ;;  %v6558_v17 = vmul.u32 2246822519, %v6542_v10  ;;  %s4827_s15 = sshll.u32 %s9770_s10, 4  ;;  %s9796_s15 = int_to_ptr.hbm [resolvable:$true] %s4827_s15 }
  0x23   : > { %v6561_v18 = vmul.u32 2246822519, %v6553_v14  ;;  %s6245_s17 = sshra.s32 %s9796_s15, 4  ;;  %s6246_s17 = int_to_ptr.hbm [resolvable:$true] %s6245_s17 }
  0x24   : > { %505 = vmatpush.bf16.msra.mxu0 %v5026_v22  ;;  %10182 = vst [vmem:[#allocation12_spill] sm:$0xff] %v6558_v17  ;;  %v1965_v20 = vadd.s32 %v6558_v17, %v1931_v16  ;;  %s6247_s18 = scalar_lea.hbm %s6246_s17, 128  ;;  %p6252_p0 = scmp.lt.s32.totalorder %s6246_s17, %s9854_s5 }
  0x25   : > { %594 = vmatpush.bf16.msra.mxu1 %v5030_v23  ;;  %10183 = vst [vmem:[#allocation13_spill] sm:$0xff] %v6561_v18  ;;  %v1966_v21 = vadd.s32 %v6561_v18, %v1931_v16  ;;  %p6248_p11 = scmp.ne.s32.totalorder %s6246_s17, %s6247_s18 }
  0x27   : > { %5055 = vmatmul.msk.bf16.vlgmr.msra.gmra.mxu0 %vm449_vm0, %v5541_v24  ;;  %p6249_p12 = pnand %p6248_p11, %p6379_p5 }
  0x28   : > { %5071 = vmatmul.msk.bf16.vlgmr.msra.gmra.mxu1 %vm449_vm0, %v5541_v24  ;;  %v6568_v24 = vstv %s2030_s30  ;;  %s9274_s30 = scalar_lea.vmem %s9856_s7, %s4956_s16 }
  0x29   : > { %10184 = vst [vmem:[#allocation14_spill] sm:$0xff] %v6568_v24  ;;  %p6250_p13 = pneg %p6249_p12 }
  0x37   : > { %5056 = vmatmul.msk.bf16.gmra.mxu0 %vm449_vm0, %v5542_v25 }
  0x38   : > { %5072 = vmatmul.msk.bf16.gmra.mxu1 %vm449_vm0, %v5542_v25 }
  0x47   : > { %5057 = vmatmul.msk.bf16.gmra.mxu0 %vm449_vm0, %v5543_v26 }
  0x48   : > { %5073 = vmatmul.msk.bf16.gmra.mxu1 %vm449_vm0, %v5543_v26  ;;  %v2032_v26 = vadd.s32 %v6568_v24, %v1965_v20 }
  0x57   : > { %5058 = vmatmul.msk.bf16.gmra.mxu0 %vm449_vm0, %v5544_v27 }
  0x58   : > { %5074 = vmatmul.msk.bf16.gmra.mxu1 %vm449_vm0, %v5544_v27  ;;  %v2033_v27 = vadd.s32 %v6568_v24, %v1966_v21 }
  0x67   : > { %5059 = vmatmul.msk.bf16.gmra.mxu0 %vm449_vm0, %v5545_v28 }
  0x68   : > { %5075 = vmatmul.msk.bf16.gmra.mxu1 %vm449_vm0, %v5545_v28  ;;  %v1866_v28 = vadd.s32 8, %v6544_v11 }
  0x6a   : > { %v1900_v32 = vadd.s32 %v6547_v12, %v1866_v28 }
  0x77   : > { %5060 = vmatmul.msk.bf16.gmra.mxu0 %vm449_vm0, %v5546_v29 }
  0x78   : > { %5076 = vmatmul.msk.bf16.gmra.mxu1 %vm449_vm0, %v5546_v29 }
  0x87   : > { %5061 = vmatmul.msk.bf16.gmra.mxu0 %vm449_vm0, %v5547_v30 }
  0x88   : > { %5077 = vmatmul.msk.bf16.gmra.mxu1 %vm449_vm0, %v5547_v30  ;;  %v5088_v30 = vshrl.u32 %v2032_v26, 16 }
  0x97   : > { %5062 = vmatmul.msk.bf16.gmra.mxu0 %vm449_vm0, %v5548_v31 }
  0x98   : > { %5078 = vmatmul.msk.bf16.gmra.mxu1 %vm449_vm0, %v5548_v31  ;;  %v5089_v31 = vshrl.u32 %v2033_v27, 16 }
  0xa4   : > { %v507_v36 = vpop.f32.mrf.mxu0 }
  0xa5   : > { %v6479_v37 = vadd.f32 %v507_v36, %v6473_v33  ;;  %v596_v38 = vpop.f32.mrf.mxu1  ;;  %v2225_v36 = vxor.u32 %v5089_v31, %v2033_v27 }
  0xa6   : > { %v6482_v39 = vadd.f32 %v596_v38, %v6475_v34  ;;  %v1932_v38 = vmul.u32 2654435761, %v1900_v32 }
  0xa7   : > { %5063 = vmatmul.msk.bf16.gmra.mxu0 %vm449_vm0, %v5549_v35 }
  0xa8   : > { %5079 = vmatmul.msk.bf16.gmra.mxu1 %vm449_vm0, %v5549_v35  ;;  %v676_v40 = vmax.f32 %v6479_v37, %v6482_v39  ;;  %v2224_v35 = vxor.u32 %v5088_v30, %v2032_v26 }
  0xaa   : > { %677 = vmax.xlane.f32.xlu0 %v676_v40  ;;  %v5553_v40 = vld [vmem:[%s6444_s20 + $0x60] sm:$0xff] }
  0xac   : > { %v509_v41 = vpop.f32.mrf.mxu0 }
  0xad   : > { %v6489_v42 = vadd.f32 %v509_v41, %v6473_v33  ;;  %v598_v43 = vpop.f32.mrf.mxu1 }
  0xae   : > { %v6492_v44 = vadd.f32 %v598_v43, %v6475_v34  ;;  %v2288_v43 = vmul.u32 2146121005, %v2224_v35 }
  0xb0   : > { %v679_v45 = vmax.f32 %v6489_v42, %v6492_v44 }
  0xb2   : > { %680 = vmax.xlane.f32.xlu0 %v679_v45  ;;  %v2289_v45 = vmul.u32 2146121005, %v2225_v36 }
  0xb4   : > { %v512_v47 = vpop.f32.mrf.mxu0 }
  0xb5   : > { %v6498_v48 = vadd.f32 %v512_v47, %v6473_v33  ;;  %v601_v49 = vpop.f32.mrf.mxu1  ;;  %v1968_v47 = vadd.s32 %v6561_v18, %v1932_v38 }
  0xb6   : > { %v6501_v50 = vadd.f32 %v601_v49, %v6475_v34 }
  0xb7   : > { %5064 = vmatmul.msk.bf16.gmra.mxu0 %vm449_vm0, %v5550_v46 }
  0xb8   : > { %5080 = vmatmul.msk.bf16.gmra.mxu1 %vm449_vm0, %v5550_v46  ;;  %v682_v51 = vmax.f32 %v6498_v48, %v6501_v50  ;;  %v1967_v46 = vadd.s32 %v6558_v17, %v1932_v38 }
  0xba   : > { %683 = vmax.xlane.f32.xlu1 %v682_v51 }
  0xbc   : > { %v514_v52 = vpop.f32.mrf.mxu0 }
  0xbd   : > { %v6508_v53 = vadd.f32 %v514_v52, %v6473_v33  ;;  %v603_v54 = vpop.f32.mrf.mxu1 }
  0xbe   : > { %v6511_v55 = vadd.f32 %v603_v54, %v6475_v34  ;;  %v5152_v54 = vshrl.u32 %v2288_v43, 15 }
  0xc0   : > { %v685_v56 = vmax.f32 %v6508_v53, %v6511_v55 }
  0xc2   : > { %686 = vmax.xlane.f32.xlu1 %v685_v56  ;;  %v5153_v56 = vshrl.u32 %v2289_v45, 15 }
  0xc4   : > { %v517_v58 = vpop.f32.mrf.mxu0 }
  0xc5   : > { %v6517_v59 = vadd.f32 %v517_v58, %v6473_v33  ;;  %v606_v60 = vpop.f32.mrf.mxu1  ;;  %v2035_v58 = vadd.s32 %v6568_v24, %v1968_v47 }
  0xc6   : > { %v6520_v61 = vadd.f32 %v606_v60, %v6475_v34  ;;  %v1867_v60 = vadd.s32 16, %v6544_v11 }
  0xc7   : > { %5065 = vmatmul.msk.bf16.gmra.mxu0 %vm449_vm0, %v5551_v57 }
  0xc8   : > { %5081 = vmatmul.msk.bf16.gmra.mxu1 %vm449_vm0, %v5551_v57  ;;  %v688_v62 = vmax.f32 %v6517_v59, %v6520_v61  ;;  %v2034_v57 = vadd.s32 %v6568_v24, %v1967_v46 }
  0xca   : > { %689 = vmax.xlane.f32.xlu2 %v688_v62 }
  0xcc   : > { %v519_v63 = vpop.f32.mrf.mxu0 }
  0xcd   : > { %v6527_v0 = vadd.f32 %v519_v63, %v6473_v33  ;;  %v608_v1 = vpop.f32.mrf.mxu1  ;;  %v2480_v63 = vxor.u32 %v5152_v54, %v2288_v43  ;;  %v1868_v43 = vadd.s32 24, %v6544_v11 }
  0xce   : > { %v6530_v2 = vadd.f32 %v608_v1, %v6475_v34  ;;  %v2481_v1 = vxor.u32 %v5153_v56, %v2289_v45 }
  0xcf   : > { %v2544_v6 = vmul.u32 2221713035, %v2480_v63  ;;  %v5554_v63 = vld [vmem:[%s6444_s20 + $0x68] sm:$0xff] }
  0xd0   : > { %v691_v3 = vmax.f32 %v6527_v0, %v6530_v2 }
  0xd1   : > { %v5216_v20 = vshrl.u32 %v2544_v6, 16 }
  0xd2   : > { %692 = vmax.xlane.f32.xlu2 %v691_v3  ;;  %v5090_v3 = vshrl.u32 %v2034_v57, 16 }
  0xd3   : > { %v2736_v32 = vxor.u32 %v5216_v20, %v2544_v6 }
  0xd4   : > { %v522_v5 = vpop.f32.mrf.mxu0 }
  0xd5   : > { %v6537_v7 = vadd.f32 %v522_v5, %v6473_v33  ;;  %v611_v8 = vpop.f32.mrf.mxu1  ;;  %v1901_v5 = vadd.s32 %v6547_v12, %v1867_v60  ;;  %v5280_v46 = vshrl.u32 %v2736_v32, 8 }
  0xd6   : > { %v6540_v9 = vadd.f32 %v611_v8, %v6475_v34  ;;  %v2545_v8 = vmul.u32 2221713035, %v2481_v1 }
  0xd7   : > { %5066 = vmatmul.msk.bf16.gmra.mxu0 %vm449_vm0, %v5552_v4  ;;  %v1933_v16 = vmul.u32 2654435761, %v1901_v5  ;;  %v2928_v60 = vcvt.s32.f32 %v5280_v46 }
  0xd8   : > { %5082 = vmatmul.msk.bf16.gmra.mxu1 %vm449_vm0, %v5552_v4  ;;  %v694_v13 = vmax.f32 %v6537_v7, %v6540_v9  ;;  %v5091_v4 = vshrl.u32 %v2035_v58, 16  ;;  %v5217_v21 = vshrl.u32 %v2545_v8, 16 }
  0xd9   : > { %v1970_v30 = vadd.s32 %v6561_v18, %v1933_v16 }
  0xda   : > { %695 = vmax.xlane.f32.xlu0 %v694_v13  ;;  %v2226_v13 = vxor.u32 %v5090_v3, %v2034_v57  ;;  %v2227_v15 = vxor.u32 %v5091_v4, %v2035_v58  ;;  %v2737_v35 = vxor.u32 %v5217_v21, %v2545_v8  ;;  %v1902_v58 = vadd.s32 %v6547_v12, %v1868_v43 }
  0xdc   : > { %v524_v19 = vpop.f32.mrf.mxu0  ;;  %v2291_v28 = vmul.u32 2146121005, %v2227_v15  ;;  %v5281_v47 = vshrl.u32 %v2737_v35, 8  ;;  %v1934_v5 = vmul.u32 2654435761, %v1902_v58 }
  0xdd   : > { %v6566_v22 = vadd.f32 %v524_v19, %v6473_v33  ;;  %v613_v23 = vpop.f32.mrf.mxu1 }
  0xde   : > { %v6571_v25 = vadd.f32 %v613_v23, %v6475_v34  ;;  %v2290_v23 = vmul.u32 2146121005, %v2226_v13  ;;  %v5155_v38 = vshrl.u32 %v2291_v28, 15  ;;  %v2929_v8 = vcvt.s32.f32 %v5281_v47 }
  0xdf   : > { %v2992_v13 = vmul.f32 5.9604645e-08, %v2928_v60  ;;  %v1972_v43 = vadd.s32 %v6561_v18, %v1934_v5 }
  0xe0   : > { %v697_v29 = vmax.f32 %v6566_v22, %v6571_v25  ;;  %v5154_v36 = vshrl.u32 %v2290_v23, 15  ;;  %v2483_v54 = vxor.u32 %v5155_v38, %v2291_v28 }
  0xe1   : > { %v3056_v28 = vadd.f32 1e-09, %v2992_v13 }
  0xe2   : > { %698 = vmax.xlane.f32.xlu1 %v697_v29  ;;  %v1969_v29 = vadd.s32 %v6558_v17, %v1933_v16  ;;  %v2547_v1 = vmul.u32 2221713035, %v2483_v54 }
  0xe3   : > { %5719 = vlog2.f32 %v3056_v28 }
  0xe4   : > { %v527_v41 = vpop.f32.mrf.mxu0  ;;  %v5219_v20 = vshrl.u32 %v2547_v1, 16 }
  0xe5   : > { %v6583_v49 = vadd.f32 %v527_v41, %v6473_v33  ;;  %v616_v51 = vpop.f32.mrf.mxu1  ;;  %v2037_v41 = vadd.s32 %v6568_v24, %v1970_v30 }
  0xe6   : > { %v6586_v52 = vadd.f32 %v616_v51, %v6475_v34  ;;  %v2482_v51 = vxor.u32 %v5154_v36, %v2290_v23  ;;  %v2739_v30 = vxor.u32 %v5219_v20, %v2547_v1  ;;  %v1971_v36 = vadd.s32 %v6558_v17, %v1934_v5 }
  0xe7   : > { %5067 = vmatmul.msk.bf16.gmra.mxu0 %vm449_vm0, %v5553_v40  ;;  %v5093_v57 = vshrl.u32 %v2037_v41, 16 }
  0xe8   : > { %5083 = vmatmul.msk.bf16.gmra.mxu1 %vm449_vm0, %v5553_v40  ;;  %v700_v62 = vmax.f32 %v6583_v49, %v6586_v52  ;;  %v2036_v40 = vadd.s32 %v6568_v24, %v1969_v29  ;;  %v2038_v54 = vadd.s32 %v6568_v24, %v1971_v36 }
  0xe9   : > { %v2229_v4 = vxor.u32 %v5093_v57, %v2037_v41  ;;  %v1869_v57 = vadd.s32 32, %v6544_v11  ;;  %v5720_v28 = vpop.eup %5719 }
  0xea   : > { %701 = vmax.xlane.f32.xlu2 %v700_v62  ;;  %v5092_v56 = vshrl.u32 %v2036_v40, 16  ;;  %v2546_v62 = vmul.u32 2221713035, %v2482_v51 }
  0xeb   : > { %v2293_v23 = vmul.u32 2146121005, %v2229_v4 }
  0xec   : > { %v529_v19 = vpop.f32.mrf.mxu0  ;;  %v2228_v3 = vxor.u32 %v5092_v56, %v2036_v40  ;;  %v5218_v15 = vshrl.u32 %v2546_v62, 16  ;;  %v2993_v40 = vmul.f32 5.9604645e-08, %v2929_v8  ;;  %v2039_v56 = vadd.s32 %v6568_v24, %v1972_v43 }
  0xed   : > { %v6597_v26 = vadd.f32 %v529_v19, %v6473_v33  ;;  %v618_v27 = vpop.f32.mrf.mxu1  ;;  %v5157_v35 = vshrl.u32 %v2293_v23, 15 }
  0xee   : > { %v6602_v31 = vadd.f32 %v618_v27, %v6475_v34  ;;  %v2292_v21 = vmul.u32 2146121005, %v2228_v3  ;;  %v2738_v29 = vxor.u32 %v5218_v15, %v2546_v62  ;;  %v3057_v1 = vadd.f32 1e-09, %v2993_v40 }
  0xef   : > { %v2485_v47 = vxor.u32 %v5157_v35, %v2293_v23  ;;  %v5094_v3 = vshrl.u32 %v2038_v54, 16  ;;  %v5095_v4 = vshrl.u32 %v2039_v56, 16  ;;  %v1903_v23 = vadd.s32 %v6547_v12, %v1869_v57 }
  0xf0   : > { %v703_v45 = vmax.f32 %v6597_v26, %v6602_v31  ;;  %v5156_v32 = vshrl.u32 %v2292_v21, 15  ;;  %v5282_v41 = vshrl.u32 %v2738_v29, 8  ;;  %5721 = vlog2.f32 %v3057_v1 }
  0xf1   : > { %v2549_v62 = vmul.u32 2221713035, %v2485_v47  ;;  %v2230_v20 = vxor.u32 %v5094_v3, %v2038_v54  ;;  %v6636_v47 = vmul.f32 0.6931472, %v5720_v28  ;;  %v1870_v28 = vadd.s32 40, %v6544_v11 }
  0xf2   : > { %704 = vmax.xlane.f32.xlu0 %v703_v45  ;;  %v5283_v45 = vshrl.u32 %v2739_v30, 8  ;;  %v2484_v46 = vxor.u32 %v5156_v32, %v2292_v21  ;;  %v2930_v51 = vcvt.s32.f32 %v5282_v41  ;;  %v2231_v21 = vxor.u32 %v5095_v4, %v2039_v56 }
  0xf3   : > { %v5221_v15 = vshrl.u32 %v2549_v62, 16  ;;  %v2294_v36 = vmul.u32 2146121005, %v2230_v20 }
  0xf4   : > { %v532_v6 = vpop.f32.mrf.mxu0  ;;  %v2931_v58 = vcvt.s32.f32 %v5283_v45  ;;  %v2548_v60 = vmul.u32 2221713035, %v2484_v46  ;;  %v2994_v8 = vmul.f32 5.9604645e-08, %v2930_v51  ;;  %v2295_v41 = vmul.u32 2146121005, %v2231_v21  ;;  %v5555_v46 = vld [vmem:[%s6444_s20 + $0x70] sm:$0xff] }
  0xf5   : > { %v6612_v16 = vadd.f32 %v532_v6, %v6473_v33  ;;  %v621_v19 = vpop.f32.mrf.mxu1  ;;  %v2741_v35 = vxor.u32 %v5221_v15, %v2549_v62  ;;  %v5158_v43 = vshrl.u32 %v2294_v36, 15  ;;  %v1935_v45 = vmul.u32 2654435761, %v1903_v23 }
  0xf6   : > { %v6615_v27 = vadd.f32 %v621_v19, %v6475_v34  ;;  %v5220_v13 = vshrl.u32 %v2548_v60, 16  ;;  %v2995_v29 = vmul.f32 5.9604645e-08, %v2931_v58  ;;  %v5159_v58 = vshrl.u32 %v2295_v41, 15  ;;  %v5722_v20 = vpop.eup %5721 }
  0xf7   : > { %5068 = vmatmul.msk.bf16.gmra.mxu0 %vm449_vm0, %v5554_v63  ;;  %v5285_v57 = vshrl.u32 %v2741_v35, 8  ;;  %v1974_v4 = vadd.s32 %v6561_v18, %v1935_v45 }
  0xf8   : > { %5084 = vmatmul.msk.bf16.gmra.mxu1 %vm449_vm0, %v5554_v63  ;;  %v706_v38 = vmax.f32 %v6612_v16, %v6615_v27  ;;  %v2740_v30 = vxor.u32 %v5220_v13, %v2548_v60  ;;  %v3059_v51 = vadd.f32 1e-09, %v2995_v29  ;;  %v2486_v60 = vxor.u32 %v5158_v43, %v2294_v36 }
  0xf9   : > { %v2041_v23 = vadd.s32 %v6568_v24, %v1974_v4 }
  0xfa   : > { %707 = vmax.xlane.f32.xlu1 %v706_v38  ;;  %v3058_v38 = vadd.f32 1e-09, %v2994_v8  ;;  %v5284_v40 = vshrl.u32 %v2740_v30, 8  ;;  %v2487_v8 = vxor.u32 %v5159_v58, %v2295_v41  ;;  %v2550_v13 = vmul.u32 2221713035, %v2486_v60 }
  0xfb   : > { %v2933_v30 = vcvt.s32.f32 %v5285_v57  ;;  %v3248_v58 = vsub.f32 0.0, %v6636_v47 }
  0xfc   : > { %v534_v63 = vpop.f32.mrf.mxu0  ;;  %v2932_v54 = vcvt.s32.f32 %v5284_v40  ;;  %5723 = vlog2.f32 %v3058_v38  ;;  %v5222_v35 = vshrl.u32 %v2550_v13, 16  ;;  %v5097_v38 = vshrl.u32 %v2041_v23, 16 }
  0xfd   : > { %v6627_v5 = vadd.f32 %v534_v63, %v6473_v33  ;;  %v623_v6 = vpop.f32.mrf.mxu1  ;;  %v1973_v63 = vadd.s32 %v6558_v17, %v1935_v45  ;;  %5725 = vlog2.f32 %v3059_v51  ;;  %v6653_v40 = vmul.f32 0.6931472, %v5722_v20 }
  0xfe   : > { %v6630_v19 = vadd.f32 %v623_v6, %v6475_v34  ;;  %v2996_v3 = vmul.f32 5.9604645e-08, %v2932_v54  ;;  %v2742_v43 = vxor.u32 %v5222_v35, %v2550_v13  ;;  %v2233_v54 = vxor.u32 %v5097_v38, %v2041_v23 }
  0xff   : > { %v2040_v15 = vadd.s32 %v6568_v24, %v1973_v63  ;;  %v2997_v60 = vmul.f32 5.9604645e-08, %v2933_v30  ;;  %v1871_v63 = vadd.s32 48, %v6544_v11 }
 0x100   : > { %v709_v32 = vmax.f32 %v6627_v5, %v6630_v19  ;;  %v3060_v21 = vadd.f32 1e-09, %v2996_v3  ;;  %v2297_v20 = vmul.u32 2146121005, %v2233_v54 }
 0x101   : > { %v5096_v36 = vshrl.u32 %v2040_v15, 16 }
 0x102   : > { %710 = vmax.xlane.f32.xlu2 %v709_v32  ;;  %v2551_v32 = vmul.u32 2221713035, %v2487_v8  ;;  %5727 = vlog2.f32 %v3060_v21  ;;  %v5724_v45 = vpop.eup %5723  ;;  %v3249_v21 = vsub.f32 0.0, %v6653_v40  ;;  %v5161_v30 = vshrl.u32 %v2297_v20, 15 }
 0x103   : > { %v2232_v51 = vxor.u32 %v5096_v36, %v2040_v15  ;;  %v3125_v23 = vmul.f32 0.6931472, %v5724_v45  ;;  %5729 = vrcp.f32 %v3248_v58 }
 0x104   : > { %v537_v56 = vpop.f32.mrf.mxu0  ;;  %v5223_v41 = vshrl.u32 %v2551_v32, 16 }
 0x105   : > { %v6640_v62 = vadd.f32 %v537_v56, %v6473_v33  ;;  %v626_v1 = vpop.f32.mrf.mxu1  ;;  %v1904_v56 = vadd.s32 %v6547_v12, %v1870_v28  ;;  %v2296_v8 = vmul.u32 2146121005, %v2232_v51  ;;  %v5286_v28 = vshrl.u32 %v2742_v43, 8 }
 0x106   : > { %v6644_v6 = vadd.f32 %v626_v1, %v6475_v34  ;;  %v2743_v57 = vxor.u32 %v5223_v41, %v2551_v32  ;;  %v5726_v1 = vpop.eup %5725  ;;  %v3061_v41 = vadd.f32 1e-09, %v2997_v60  ;;  %v1905_v51 = vadd.s32 %v6547_v12, %v1871_v63 }
 0x107   : > { %10185 = vst [vmem:[#allocation15_spill] sm:$0xff] %v6640_v62  ;;  %5069 = vmatmul.msk.bf16.gmra.mxu0 %vm449_vm0, %v5555_v46  ;;  %v1936_v13 = vmul.u32 2654435761, %v1904_v56  ;;  %v3127_v38 = vmul.f32 0.6931472, %v5726_v1  ;;  %v2934_v45 = vcvt.s32.f32 %v5286_v28 }
 0x108   : > { %10186 = vst [vmem:[#allocation16_spill] sm:$0xff] %v6644_v6  ;;  %5085 = vmatmul.msk.bf16.gmra.mxu1 %vm449_vm0, %v5555_v46  ;;  %v712_v29 = vmax.f32 %v6640_v62, %v6644_v6  ;;  %v5728_v47 = vpop.eup %5727  ;;  %v5287_v54 = vshrl.u32 %v2743_v57, 8  ;;  %v3250_v6 = vsub.f32 0.0, %v3125_v23  ;;  %5731 = vlog2.f32 %v3061_v41 }
 0x109   : > { %v1975_v32 = vadd.s32 %v6558_v17, %v1936_v13  ;;  %v1976_v35 = vadd.s32 %v6561_v18, %v1936_v13  ;;  %v3129_v43 = vmul.f32 0.6931472, %v5728_v47  ;;  %v3251_v1 = vsub.f32 0.0, %v3127_v38  ;;  %v6679_v41 = vpop.eup %5729 }
 0x10a   : > { %713 = vmax.xlane.f32.xlu0 %v712_v29  ;;  %v5160_v29 = vshrl.u32 %v2296_v8, 15  ;;  %v1937_v63 = vmul.u32 2654435761, %v1905_v51  ;;  %v2998_v47 = vmul.f32 5.9604645e-08, %v2934_v45  ;;  %5733 = vrcp.f32 %v3249_v21 }
 0x10b   : > { %v2042_v40 = vadd.s32 %v6568_v24, %v1975_v32  ;;  %v3252_v32 = vsub.f32 0.0, %v3129_v43  ;;  %5735 = vrcp.f32 %v3250_v6 }
 0x10c   : > { %v539_v46 = vpop.f32.mrf.mxu0  ;;  %v2488_v56 = vxor.u32 %v5160_v29, %v2296_v8  ;;  %v1977_v38 = vadd.s32 %v6558_v17, %v1937_v63  ;;  %5737 = vrcp.f32 %v3251_v1 }
 0x10d   : > { %v6659_v3 = vadd.f32 %v539_v46, %v6473_v33  ;;  %v628_v4 = vpop.f32.mrf.mxu1  ;;  %v2489_v46 = vxor.u32 %v5161_v30, %v2297_v20  ;;  %v5098_v14 = vshrl.u32 %v2042_v40, 16  ;;  %v2935_v20 = vcvt.s32.f32 %v5287_v54 }
 0x10e   : > { %v6662_v15 = vadd.f32 %v628_v4, %v6475_v34  ;;  %v2043_v4 = vadd.s32 %v6568_v24, %v1976_v35  ;;  %v2552_v13 = vmul.u32 2221713035, %v2488_v56  ;;  %v1978_v56 = vadd.s32 %v6561_v18, %v1937_v63 }
 0x10f   : > { %v2553_v62 = vmul.u32 2221713035, %v2489_v46  ;;  %v2234_v23 = vxor.u32 %v5098_v14, %v2042_v40  ;;  %v2044_v14 = vadd.s32 %v6568_v24, %v1977_v38  ;;  %v5732_v40 = vpop.eup %5731  ;;  %5739 = vrcp.f32 %v3252_v32 }
 0x110   : > { %10187 = vst [vmem:[#allocation17_spill] sm:$0xff] %v6662_v15  ;;  %v715_v36 = vmax.f32 %v6659_v3, %v6662_v15  ;;  %v5099_v60 = vshrl.u32 %v2043_v4, 16  ;;  %v5224_v29 = vshrl.u32 %v2552_v13, 16  ;;  %v2045_v45 = vadd.s32 %v6568_v24, %v1978_v56  ;;  %v6699_v32 = vpop.eup %5733 }
 0x111   : > { %v5225_v58 = vshrl.u32 %v2553_v62, 16  ;;  %v2298_v51 = vmul.u32 2146121005, %v2234_v23 }
 0x112   : > { %716 = vmax.xlane.f32.xlu1 %v715_v36  ;;  %v2235_v30 = vxor.u32 %v5099_v60, %v2043_v4  ;;  %v2744_v35 = vxor.u32 %v5224_v29, %v2552_v13  ;;  %v2999_v4 = vmul.f32 5.9604645e-08, %v2935_v20  ;;  %v3062_v13 = vadd.f32 1e-09, %v2998_v47 }
 0x113   : > { %v2745_v36 = vxor.u32 %v5225_v58, %v2553_v62  ;;  %v5162_v62 = vshrl.u32 %v2298_v51, 15  ;;  %v5100_v60 = vshrl.u32 %v2044_v14, 16  ;;  %v5101_v6 = vshrl.u32 %v2045_v45, 16 }
 0x114   : > { %v542_v15 = vpop.f32.mrf.mxu0  ;;  %v2299_v54 = vmul.u32 2146121005, %v2235_v30  ;;  %v5288_v46 = vshrl.u32 %v2744_v35, 8  ;;  %v1872_v47 = vadd.s32 56, %v6544_v11  ;;  %v3063_v56 = vadd.f32 1e-09, %v2999_v4 }
 0x115   : > { %v6673_v57 = vadd.f32 %v542_v15, %v6473_v33  ;;  %v631_v8 = vpop.f32.mrf.mxu1  ;;  %v2490_v35 = vxor.u32 %v5162_v62, %v2298_v51  ;;  %5741 = vlog2.f32 %v3062_v13  ;;  %v2236_v51 = vxor.u32 %v5100_v60, %v2044_v14  ;;  %v5556_v60 = vld [vmem:[%s6444_s20 + $0x78] sm:$0xff]  ;;  %s246_s20 = sand.u32 1, %s6285_s27  }
 0x116   : > { %v6676_v28 = vadd.f32 %v631_v8, %v6475_v34  ;;  %v5289_v8 = vshrl.u32 %v2745_v36, 8  ;;  %v5163_v43 = vshrl.u32 %v2299_v54, 15  ;;  %v2936_v58 = vcvt.s32.f32 %v5288_v46  ;;  %s8407_s21 = sshll.u32 %s246_s20, 7  ;;  %s4803_s16 = scalar_lea.sflag [#allocation5], %s246_s20 }
 0x117   : > { %10188 = vst [vmem:[#allocation18_spill] sm:$0xff] %v6673_v57  ;;  %v2300_v14 = vmul.u32 2146121005, %v2236_v51  ;;  %v1906_v13 = vadd.s32 %v6547_v12, %v1872_v47  ;;  %5070 = vmatmul.msk.bf16.gmra.mxu0 %vm449_vm0, %v5556_v60  ;;  %s8435_s22 = scalar_lea.vmem [#allocation4], %s8407_s21 }
 0x118   : > { %10189 = vst [vmem:[#allocation19_spill] sm:$0xff] %v6676_v28  ;;  %v718_v15 = vmax.f32 %v6673_v57, %v6676_v28  ;;  %v2937_v63 = vcvt.s32.f32 %v5289_v8  ;;  %v2491_v36 = vxor.u32 %v5163_v43, %v2299_v54  ;;  %v6703_v54 = vpop.eup %5735  ;;  %v3000_v8 = vmul.f32 5.9604645e-08, %v2936_v58  ;;  %5086 = vmatmul.msk.bf16.gmra.mxu1 %vm449_vm0, %v5556_v60  ;;  %s4825_s14 = sshll.u32 %s8435_s22, 4  ;;  %s9794_s14 = int_to_ptr.vmem [resolvable:$true] %s4825_s14 }
 0x119   : > { %v6709_v62 = vpop.eup %5737 }
 0x11a   : > { %719 = vmax.xlane.f32.xlu2 %v718_v15  ;;  %v6701_v15 = vmul.f32 0.6931472, %v5732_v40  ;;  %v3001_v43 = vmul.f32 5.9604645e-08, %v2937_v63  ;;  %v2555_v40 = vmul.u32 2221713035, %v2491_v36  ;;  %v6711_v4 = vpop.eup %5739 }
 0x11b   : > { %v3064_v63 = vadd.f32 1e-09, %v3000_v8  ;;  %v5742_v36 = vpop.eup %5741 }
 0x11c   : > { %v544_v29 = vpop.f32.mrf.mxu0  ;;  %v3253_v58 = vsub.f32 0.0, %v6701_v15  ;;  %v3065_v47 = vadd.f32 1e-09, %v3001_v43 }
 0x11d   : > { %v6687_v21 = vadd.f32 %v544_v29, %v6473_v33  ;;  %v633_v23 = vpop.f32.mrf.mxu1  ;;  %v678_v30 = vpop.xlane.xlu0 %677  ;;  %v2554_v29 = vmul.u32 2221713035, %v2490_v35  ;;  %v5164_v35 = vshrl.u32 %v2300_v14, 15 }
 0x11e   : > { %v6690_v38 = vadd.f32 %v633_v23, %v6475_v34  ;;  %v6693_v1 = vsub.f32 %v6479_v37, %v678_v30  ;;  %v6696_v20 = vsub.f32 %v6482_v39, %v678_v30  ;;  %v2237_v23 = vxor.u32 %v5101_v6, %v2045_v45 }
 0x11f   : > { %10190 = vst [vmem:[#allocation20_spill] sm:$0xff] %v6687_v21  ;;  %v5226_v30 = vshrl.u32 %v2554_v29, 16  ;;  %v2492_v28 = vxor.u32 %v5164_v35, %v2300_v14 }
 0x120   : > { %10191 = vst [vmem:[#allocation21_spill] sm:$0xff] %v6690_v38  ;;  %v836_v46 = vmul.f32 1.442695, %v6693_v1  ;;  %v838_v37 = vmul.f32 1.442695, %v6696_v20  ;;  %v721_v39 = vmax.f32 %v6687_v21, %v6690_v38 }
 0x121   : > { %10192 = vst [vmem:[#allocation22_spill] sm:$0xff] %v6693_v1  ;;  %v2301_v1 = vmul.u32 2146121005, %v2237_v23  ;;  %v2746_v51 = vxor.u32 %v5226_v30, %v2554_v29 }
 0x122   : > { %10193 = vst [vmem:[#allocation23_spill] sm:$0xff] %v6696_v20  ;;  %5743 = vpow2.f32 %v836_v46  ;;  %722 = vmax.xlane.f32.xlu0 %v721_v39  ;;  %v5227_v20 = vshrl.u32 %v2555_v40, 16 }
 0x123   : > { %5745 = vpow2.f32 %v838_v37  ;;  %v5290_v8 = vshrl.u32 %v2746_v51, 8  ;;  %v5165_v21 = vshrl.u32 %v2301_v1, 15 }
 0x124   : > { %v547_v38 = vpop.f32.mrf.mxu0  ;;  %5747 = vlog2.f32 %v3063_v56  ;;  %v2747_v37 = vxor.u32 %v5227_v20, %v2555_v40  ;;  %v3133_v40 = vmul.f32 0.6931472, %v5742_v36  ;;  %v2556_v36 = vmul.u32 2221713035, %v2492_v28 }
 0x125   : > { %v6717_v45 = vadd.f32 %v547_v38, %v6473_v33  ;;  %v636_v6 = vpop.f32.mrf.mxu1  ;;  %v681_v46 = vpop.xlane.xlu0 %680  ;;  %v1938_v38 = vmul.u32 2654435761, %v1906_v13  ;;  %5749 = vlog2.f32 %v3064_v63  ;;  %v2493_v14 = vxor.u32 %v5165_v21, %v2301_v1 }
 0x126   : > { %v6722_v39 = vadd.f32 %v636_v6, %v6475_v34  ;;  %v6725_v15 = vsub.f32 %v6489_v42, %v681_v46  ;;  %v6728_v56 = vsub.f32 %v6492_v44, %v681_v46  ;;  %v5291_v23 = vshrl.u32 %v2747_v37, 8 }
 0x127   : > { %10194 = vst [vmem:[#allocation24_spill] sm:$0xff] %v6717_v45  ;;  %5751 = vlog2.f32 %v3065_v47  ;;  %v2938_v44 = vcvt.s32.f32 %v5290_v8  ;;  %v1979_v30 = vadd.s32 %v6558_v17, %v1938_v38  ;;  %v1980_v35 = vadd.s32 %v6561_v18, %v1938_v38 }
 0x128   : > { %10195 = vst [vmem:[#allocation25_spill] sm:$0xff] %v6722_v39  ;;  %v6730_v57 = vpop.eup %5743  ;;  %v840_v43 = vmul.f32 1.442695, %v6725_v15  ;;  %v842_v20 = vmul.f32 1.442695, %v6728_v56  ;;  %v724_v29 = vmax.f32 %v6717_v45, %v6722_v39  ;;  %v2939_v13 = vcvt.s32.f32 %v5291_v23 }
 0x129   : > { %10196 = vst [vmem:[#allocation26_spill] sm:$0xff] %v6725_v15  ;;  %v6736_v42 = vpop.eup %5745  ;;  %v6742_v6 = vmul.f32 %v6730_v57, %v6679_v41  ;;  %v3002_v47 = vmul.f32 5.9604645e-08, %v2938_v44  ;;  %v2557_v51 = vmul.u32 2221713035, %v2493_v14  ;;  %v3254_v8 = vsub.f32 0.0, %v3133_v40 }
 0x12a   : > { %10197 = vst [vmem:[#allocation27_spill] sm:$0xff] %v6728_v56  ;;  %v5748_v60 = vpop.eup %5747  ;;  %5753 = vpow2.f32 %v840_v43  ;;  %725 = vmax.xlane.f32.xlu1 %v724_v29  ;;  %v6746_v63 = vmul.f32 %v6736_v42, %v6699_v32  ;;  %v3003_v23 = vmul.f32 5.9604645e-08, %v2939_v13  ;;  %v5228_v44 = vshrl.u32 %v2556_v36, 16 }
 0x12b   : > { %10198 = vst [vmem:[#allocation28_spill] sm:$0xff] %v6730_v57  ;;  %5755 = vpow2.f32 %v842_v20  ;;  %v3135_v38 = vmul.f32 0.6931472, %v5748_v60  ;;  %v5750_v43 = vpop.eup %5749  ;;  %v5229_v60 = vshrl.u32 %v2557_v51, 16  ;;  %v2047_v40 = vadd.s32 %v6568_v24, %v1980_v35 }
 0x12c   : > { %10199 = vst [vmem:[#allocation29_spill] sm:$0xff] %v6736_v42  ;;  %v549_v46 = vpop.f32.mrf.mxu0  ;;  %5757 = vrcp.f32 %v3253_v58  ;;  %v2046_v58 = vadd.s32 %v6568_v24, %v1979_v30  ;;  %v3440_v29 = vmax.f32 %v6742_v6, %v6746_v63  ;;  %v2748_v56 = vxor.u32 %v5228_v44, %v2556_v36 }
 0x12d   : > { %v6749_v21 = vadd.f32 %v549_v46, %v6473_v33  ;;  %v638_v1 = vpop.f32.mrf.mxu1  ;;  %v684_v37 = vpop.xlane.xlu1 %683  ;;  %v3066_v46 = vadd.f32 1e-09, %v3002_v47  ;;  %v3255_v30 = vsub.f32 0.0, %v3135_v38  ;;  %5759 = vrcp.f32 %v3254_v8 }
 0x12e   : > { %v6752_v41 = vadd.f32 %v638_v1, %v6475_v34  ;;  %v6755_v32 = vsub.f32 %v6498_v48, %v684_v37  ;;  %v6758_v28 = vsub.f32 %v6501_v50, %v684_v37  ;;  %v5752_v20 = vpop.eup %5751  ;;  %v3067_v37 = vadd.f32 1e-09, %v3003_v23 }
 0x12f   : > { %10200 = vst [vmem:[#allocation30_spill] sm:$0xff] %v6749_v21  ;;  %v5292_v47 = vshrl.u32 %v2748_v56, 8  ;;  %v5102_v42 = vshrl.u32 %v2046_v58, 16  ;;  %v5103_v38 = vshrl.u32 %v2047_v40, 16  ;;  %v3137_v23 = vmul.f32 0.6931472, %v5750_v43 }
 0x130   : > { %10201 = vst [vmem:[#allocation31_spill] sm:$0xff] %v6752_v41  ;;  %v6764_v13 = vpop.eup %5753  ;;  %v844_v14 = vmul.f32 1.442695, %v6755_v32  ;;  %v846_v48 = vmul.f32 1.442695, %v6758_v28  ;;  %v727_v50 = vmax.f32 %v6749_v21, %v6752_v41 }
 0x131   : > { %10202 = vst [vmem:[#allocation32_spill] sm:$0xff] %v6755_v32  ;;  %v6770_v1 = vpop.eup %5755  ;;  %v6774_v35 = vmul.f32 %v6764_v13, %v6703_v54  ;;  %v2749_v32 = vxor.u32 %v5229_v60, %v2557_v51  ;;  %v3139_v36 = vmul.f32 0.6931472, %v5752_v20  ;;  %v2239_v57 = vxor.u32 %v5103_v38, %v2047_v40 }
 0x132   : > { %10203 = vst [vmem:[#allocation33_spill] sm:$0xff] %v6758_v28  ;;  %v5758_v15 = vpop.eup %5757  ;;  %5761 = vpow2.f32 %v844_v14  ;;  %728 = vmax.xlane.f32.xlu2 %v727_v50  ;;  %3441 = vmax.xlane.f32.xlu1 %v3440_v29  ;;  %v6778_v28 = vmul.f32 %v6770_v1, %v6709_v62  ;;  %v2940_v50 = vcvt.s32.f32 %v5292_v47 }
 0x133   : > { %10204 = vst [vmem:[#allocation34_spill] sm:$0xff] %v6764_v13  ;;  %5763 = vpow2.f32 %v846_v48  ;;  %v5293_v44 = vshrl.u32 %v2749_v32, 8  ;;  %v2238_v13 = vxor.u32 %v5102_v42, %v2046_v58  ;;  %v5760_v43 = vpop.eup %5759  ;;  %v2303_v48 = vmul.u32 2146121005, %v2239_v57 }
 0x134   : > { %10205 = vst [vmem:[#allocation35_spill] sm:$0xff] %v6770_v1  ;;  %v552_v8 = vpop.f32.mrf.mxu0  ;;  %5765 = vlog2.f32 %v3066_v46  ;;  %v3443_v32 = vmax.f32 %v6774_v35, %v6778_v28  ;;  %v3004_v40 = vmul.f32 5.9604645e-08, %v2940_v50  ;;  %v3257_v38 = vsub.f32 0.0, %v3139_v36 }
 0x135   : > { %v6781_v29 = vadd.f32 %v552_v8, %v6473_v33  ;;  %v641_v14 = vpop.f32.mrf.mxu1  ;;  %v687_v54 = vpop.xlane.xlu1 %686  ;;  %5767 = vlog2.f32 %v3067_v37  ;;  %v2941_v20 = vcvt.s32.f32 %v5293_v44  ;;  %v2302_v60 = vmul.u32 2146121005, %v2238_v13 }
 0x136   : > { %v6784_v62 = vadd.f32 %v641_v14, %v6475_v34  ;;  %v6787_v56 = vsub.f32 %v6508_v53, %v687_v54  ;;  %v6790_v51 = vsub.f32 %v6511_v55, %v687_v54  ;;  %5769 = vrcp.f32 %v3255_v30 }
 0x137   : > { %10206 = vst [vmem:[#allocation36_spill] sm:$0xff] %v6781_v29  ;;  %v3005_v37 = vmul.f32 5.9604645e-08, %v2941_v20  ;;  %v3256_v13 = vsub.f32 0.0, %v3137_v23  ;;  %v5166_v57 = vshrl.u32 %v2302_v60, 15  ;;  %v5167_v8 = vshrl.u32 %v2303_v48, 15 }
 0x138   : > { %10207 = vst [vmem:[#allocation37_spill] sm:$0xff] %v6784_v62  ;;  %v6794_v46 = vpop.eup %5761  ;;  %v848_v42 = vmul.f32 1.442695, %v6787_v56  ;;  %v850_v58 = vmul.f32 1.442695, %v6790_v51  ;;  %v730_v53 = vmax.f32 %v6781_v29, %v6784_v62  ;;  %v1873_v23 = vadd.s32 64, %v6544_v11 }
 0x139   : > { %10208 = vst [vmem:[#allocation38_spill] sm:$0xff] %v6787_v56  ;;  %v6800_v55 = vpop.eup %5763  ;;  %v6804_v54 = vmul.f32 %v6794_v46, %v6711_v4  ;;  %v3068_v30 = vadd.f32 1e-09, %v3004_v40  ;;  %v2494_v20 = vxor.u32 %v5166_v57, %v2302_v60 }
 0x13a   : > { %10209 = vst [vmem:[#allocation39_spill] sm:$0xff] %v6790_v51  ;;  %v5766_v47 = vpop.eup %5765  ;;  %5771 = vpow2.f32 %v848_v42  ;;  %731 = vmax.xlane.f32.xlu0 %v730_v53  ;;  %3444 = vmax.xlane.f32.xlu2 %v3443_v32  ;;  %v6807_v50 = vmul.f32 %v6800_v55, %v5758_v15  ;;  %v3069_v53 = vadd.f32 1e-09, %v3005_v37  ;;  %v2495_v32 = vxor.u32 %v5167_v8, %v2303_v48 }
 0x13b   : > { %10210 = vst [vmem:[#allocation40_spill] sm:$0xff] %v6794_v46  ;;  %5773 = vpow2.f32 %v850_v58  ;;  %v5768_v44 = vpop.eup %5767  ;;  %v3141_v4 = vmul.f32 0.6931472, %v5766_v47 }
 0x13c   : > { %10211 = vst [vmem:[#allocation41_spill] sm:$0xff] %v6800_v55  ;;  %v554_v14 = vpop.f32.mrf.mxu0  ;;  %5775 = vrcp.f32 %v3256_v13  ;;  %v5770_v56 = vpop.eup %5769  ;;  %v3143_v15 = vmul.f32 0.6931472, %v5768_v44  ;;  %v2558_v55 = vmul.u32 2221713035, %v2494_v20  ;;  %v1907_v20 = vadd.s32 %v6547_v12, %v1873_v23 }
 0x13d   : > { %v643_v51 = vpop.f32.mrf.mxu1  ;;  %v690_v42 = vpop.xlane.xlu2 %689  ;;  %5777 = vrcp.f32 %v3257_v38  ;;  %v2559_v40 = vmul.u32 2221713035, %v2495_v32 }
 0x13e   : > { %v6811_v36 = vsub.f32 %v6517_v59, %v690_v42  ;;  %v6814_v58 = vsub.f32 %v6520_v61, %v690_v42  ;;  %v3446_v59 = vmax.f32 %v6804_v54, %v6807_v50  ;;  %5779 = vlog2.f32 %v3068_v30 }
 0x13f   : > { %5781 = vlog2.f32 %v3069_v53  ;;  %v5230_v47 = vshrl.u32 %v2558_v55, 16  ;;  %v5231_v13 = vshrl.u32 %v2559_v40, 16  ;;  %v6832_v30 = vadd.f32 %v554_v14, %v6473_v33 }
 0x140   : > { %10212 = vst [vmem:[#allocation42_spill] sm:$0xff] %v6811_v36  ;;  %v6816_v60 = vpop.eup %5771  ;;  %v852_v37 = vmul.f32 1.442695, %v6811_v36  ;;  %v854_v48 = vmul.f32 1.442695, %v6814_v58 }
 0x141   : > { %10213 = vst [vmem:[#allocation43_spill] sm:$0xff] %v6814_v58  ;;  %v6822_v57 = vpop.eup %5773  ;;  %v6825_v61 = vmul.f32 %v6816_v60, %v5760_v43  ;;  %v2750_v8 = vxor.u32 %v5230_v47, %v2558_v55  ;;  %v2751_v44 = vxor.u32 %v5231_v13, %v2559_v40  ;;  %v6835_v43 = vadd.f32 %v643_v51, %v6475_v34 }
 0x142   : > { %10214 = vst [vmem:[#allocation44_spill] sm:$0xff] %v6816_v60  ;;  %5783 = vpow2.f32 %v852_v37  ;;  %3447 = vmax.xlane.f32.xlu0 %v3446_v59  ;;  %v6828_v38 = vmul.f32 %v6822_v57, %v5770_v56  ;;  %v5776_v42 = vpop.eup %5775  ;;  %v3258_v37 = vsub.f32 0.0, %v3141_v4 }
 0x143   : > { %10215 = vst [vmem:[#allocation45_spill] sm:$0xff] %v6822_v57  ;;  %5785 = vpow2.f32 %v854_v48  ;;  %v5778_v59 = vpop.eup %5777  ;;  %v3259_v48 = vsub.f32 0.0, %v3143_v15  ;;  %v5294_v55 = vshrl.u32 %v2750_v8, 8  ;;  %v5295_v40 = vshrl.u32 %v2751_v44, 8 }
 0x144   : > { %10216 = vst [vmem:[#allocation46_spill] sm:$0xff] %v6832_v30  ;;  %v557_v53 = vpop.f32.mrf.mxu0  ;;  %v3449_v32 = vmax.f32 %v6825_v61, %v6828_v38  ;;  %v5780_v47 = vpop.eup %5779  ;;  %v1939_v15 = vmul.u32 2654435761, %v1907_v20  ;;  %5787 = vrcp.f32 %v3258_v37 }
 0x145   : > { %10217 = vst [vmem:[#allocation47_spill] sm:$0xff] %v6835_v43  ;;  %v646_v56 = vpop.f32.mrf.mxu1  ;;  %v693_v58 = vpop.xlane.xlu2 %692  ;;  %v6840_v23 = vadd.f32 %v557_v53, %v6473_v33  ;;  %v2942_v36 = vcvt.s32.f32 %v5294_v55  ;;  %v2943_v57 = vcvt.s32.f32 %v5295_v40  ;;  %5789 = vrcp.f32 %v3259_v48 }
 0x146   : > { %v6843_v14 = vadd.f32 %v646_v56, %v6475_v34  ;;  %v6846_v51 = vsub.f32 %v6527_v0, %v693_v58  ;;  %v6849_v13 = vsub.f32 %v6530_v2, %v693_v58  ;;  %3450 = vmax.xlane.f32.xlu1 %v3449_v32  ;;  %v5782_v4 = vpop.eup %5781  ;;  %v733_v56 = vmax.f32 %v6832_v30, %v6835_v43 }
 0x147   : > { %10218 = vst [vmem:[#allocation48_spill] sm:$0xff] %v6840_v23  ;;  %v3006_v58 = vmul.f32 5.9604645e-08, %v2942_v36  ;;  %v3007_v55 = vmul.f32 5.9604645e-08, %v2943_v57  ;;  %v3145_v40 = vmul.f32 0.6931472, %v5780_v47  ;;  %v1981_v36 = vadd.s32 %v6558_v17, %v1939_v15 }
 0x148   : > { %10219 = vst [vmem:[#allocation49_spill] sm:$0xff] %v6843_v14  ;;  %v6851_v8 = vpop.eup %5783  ;;  %v856_v44 = vmul.f32 1.442695, %v6846_v51  ;;  %v858_v53 = vmul.f32 1.442695, %v6849_v13  ;;  %v736_v20 = vmax.f32 %v6840_v23, %v6843_v14 }
 0x149   : > { %10220 = vst [vmem:[#allocation50_spill] sm:$0xff] %v6846_v51  ;;  %v6857_v0 = vpop.eup %5785  ;;  %v6860_v2 = vmul.f32 %v6851_v8, %v5776_v42  ;;  %v3147_v42 = vmul.f32 0.6931472, %v5782_v4 }
 0x14a   : > { %10221 = vst [vmem:[#allocation51_spill] sm:$0xff] %v6849_v13  ;;  %5791 = vpow2.f32 %v856_v44  ;;  %734 = vmax.xlane.f32.xlu0 %v733_v56  ;;  %v6865_v32 = vmul.f32 %v6857_v0, %v5778_v59  ;;  %v3070_v13 = vadd.f32 1e-09, %v3006_v58  ;;  %v5788_v56 = vpop.eup %5787 }
 0x14b   : > { %10222 = vst [vmem:[#allocation52_spill] sm:$0xff] %v6851_v8  ;;  %5793 = vpow2.f32 %v858_v53  ;;  %v3071_v8 = vadd.f32 1e-09, %v3007_v55  ;;  %v5790_v47 = vpop.eup %5789  ;;  %v3260_v53 = vsub.f32 0.0, %v3145_v40  ;;  %v3261_v55 = vsub.f32 0.0, %v3147_v42 }
 0x14c   : > { %10223 = vst [vmem:[#allocation53_spill] sm:$0xff] %v6857_v0  ;;  %v559_v37 = vpop.f32.mrf.mxu0  ;;  %v3452_v51 = vmax.f32 %v6860_v2, %v6865_v32  ;;  %5795 = vlog2.f32 %v3070_v13  ;;  %v1982_v13 = vadd.s32 %v6561_v18, %v1939_v15 }
 0x14d   : > { %v648_v48 = vpop.f32.mrf.mxu1  ;;  %v696_v44 = vpop.xlane.xlu0 %695  ;;  %v6871_v60 = vadd.f32 %v559_v37, %v6473_v33  ;;  %5797 = vlog2.f32 %v3071_v8  ;;  %v2048_v37 = vadd.s32 %v6568_v24, %v1981_v36  ;;  %v1874_v8 = vadd.s32 72, %v6544_v11 }
 0x14e   : > { %v6874_v57 = vadd.f32 %v648_v48, %v6475_v34  ;;  %737 = vmax.xlane.f32.xlu1 %v736_v20  ;;  %3453 = vmax.xlane.f32.xlu2 %v3452_v51  ;;  %v6877_v59 = vsub.f32 %v6537_v7, %v696_v44  ;;  %v6880_v4 = vsub.f32 %v6540_v9, %v696_v44  ;;  %5799 = vrcp.f32 %v3260_v53 }
 0x14f   : > { %10224 = vst [vmem:[#allocation54_spill] sm:$0xff] %v6871_v60  ;;  %v2049_v42 = vadd.s32 %v6568_v24, %v1982_v13  ;;  %5801 = vrcp.f32 %v3261_v55 }
 0x150   : > { %10225 = vst [vmem:[#allocation55_spill] sm:$0xff] %v6874_v57  ;;  %v6883_v58 = vpop.eup %5791  ;;  %v860_v51 = vmul.f32 1.442695, %v6877_v59  ;;  %v739_v15 = vmax.f32 %v6871_v60, %v6874_v57  ;;  %v862_v40 = vmul.f32 1.442695, %v6880_v4 }
 0x151   : > { %10226 = vst [vmem:[#allocation56_spill] sm:$0xff] %v6877_v59  ;;  %v6886_v48 = vpop.eup %5793  ;;  %v6890_v7 = vmul.f32 %v6883_v58, %v5788_v56 }
 0x152   : > { %10227 = vst [vmem:[#allocation57_spill] sm:$0xff] %v6880_v4  ;;  %v6894_v9 = vmul.f32 %v6886_v48, %v5790_v47  ;;  %v5796_v20 = vpop.eup %5795  ;;  %5803 = vpow2.f32 %v860_v51  ;;  %v1908_v4 = vadd.s32 %v6547_v12, %v1874_v8 }
 0x153   : > { %10228 = vst [vmem:[#allocation58_spill] sm:$0xff] %v6883_v58  ;;  %v5798_v36 = vpop.eup %5797  ;;  %v3149_v59 = vmul.f32 0.6931472, %v5796_v20  ;;  %v5104_v58 = vshrl.u32 %v2048_v37, 16  ;;  %5805 = vpow2.f32 %v862_v40  ;;  %v5105_v20 = vshrl.u32 %v2049_v42, 16 }
 0x154   : > { %10229 = vst [vmem:[#allocation59_spill] sm:$0xff] %v6886_v48  ;;  %v562_v44 = vpop.f32.mrf.mxu0  ;;  %v3455_v56 = vmax.f32 %v6890_v7, %v6894_v9  ;;  %v3151_v60 = vmul.f32 0.6931472, %v5798_v36  ;;  %v1940_v46 = vmul.u32 2654435761, %v1908_v4 }
 0x155   : > { %v6903_v47 = vadd.f32 %v562_v44, %v6473_v33  ;;  %v651_v48 = vpop.f32.mrf.mxu1  ;;  %v699_v57 = vpop.xlane.xlu1 %698  ;;  %v3262_v55 = vsub.f32 0.0, %v3149_v59  ;;  %v2240_v8 = vxor.u32 %v5104_v58, %v2048_v37 }
 0x156   : > { %v6907_v53 = vadd.f32 %v651_v48, %v6475_v34  ;;  %v6910_v13 = vsub.f32 %v6566_v22, %v699_v57  ;;  %v6913_v0 = vsub.f32 %v6571_v25, %v699_v57  ;;  %3456 = vmax.xlane.f32.xlu0 %v3455_v56  ;;  %740 = vmax.xlane.f32.xlu2 %v739_v15  ;;  %v3263_v51 = vsub.f32 0.0, %v3151_v60  ;;  %v5800_v48 = vpop.eup %5799 }
 0x157   : > { %10230 = vst [vmem:[#allocation60_spill] sm:$0xff] %v6903_v47  ;;  %5807 = vrcp.f32 %v3262_v55  ;;  %v1875_v22 = vadd.s32 80, %v6544_v11  ;;  %v5802_v1 = vpop.eup %5801  ;;  %v2241_v60 = vxor.u32 %v5105_v20, %v2049_v42  ;;  %v2304_v15 = vmul.u32 2146121005, %v2240_v8 }
 0x158   : > { %10231 = vst [vmem:[#allocation61_spill] sm:$0xff] %v6907_v53  ;;  %v864_v44 = vmul.f32 1.442695, %v6910_v13  ;;  %v866_v36 = vmul.f32 1.442695, %v6913_v0  ;;  %5809 = vrcp.f32 %v3263_v51  ;;  %v742_v25 = vmax.f32 %v6903_v47, %v6907_v53  ;;  %v6920_v57 = vpop.eup %5803 }
 0x159   : > { %10232 = vst [vmem:[#allocation62_spill] sm:$0xff] %v6910_v13  ;;  %v6922_v40 = vpop.eup %5805  ;;  %v1983_v4 = vadd.s32 %v6558_v17, %v1940_v46  ;;  %v1909_v56 = vadd.s32 %v6547_v12, %v1875_v22  ;;  %v1984_v42 = vadd.s32 %v6561_v18, %v1940_v46  ;;  %v5168_v22 = vshrl.u32 %v2304_v15, 15 }
 0x15a   : > { %10233 = vst [vmem:[#allocation63_spill] sm:$0xff] %v6913_v0  ;;  %5811 = vpow2.f32 %v864_v44  ;;  %v6941_v53 = vmul.f32 %v6922_v40, %v5802_v1  ;;  %v1876_v0 = vadd.s32 88, %v6544_v11 }
 0x15b   : > { %10234 = vst [vmem:[#allocation64_spill] sm:$0xff] %v6920_v57  ;;  %5813 = vpow2.f32 %v866_v36  ;;  %v2305_v36 = vmul.u32 2146121005, %v2241_v60  ;;  %v2051_v46 = vadd.s32 %v6568_v24, %v1984_v42 }
 0x15c   : > { %v564_v59 = vpop.f32.mrf.mxu0  ;;  %10235 = vst [vmem:[#allocation65_spill] sm:$0xff] %v6922_v40 }
 0x15d   : > { %v6925_v58 = vadd.f32 %v564_v59, %v6473_v33  ;;  %v653_v37 = vpop.f32.mrf.mxu1  ;;  %v5808_v55 = vpop.eup %5807  ;;  %v6938_v59 = vmul.f32 %v6920_v57, %v5800_v48  ;;  %10240 = vst [vmem:[#allocation70_spill] sm:$0xff] %v6941_v53  ;;  %v5169_v60 = vshrl.u32 %v2305_v36, 15  ;;  %v5107_v14 = vshrl.u32 %v2051_v46, 16 }
 0x15e   : > { %v6930_v51 = vadd.f32 %v653_v37, %v6475_v34  ;;  %743 = vmax.xlane.f32.xlu2 %v742_v25  ;;  %v5810_v44 = vpop.eup %5809  ;;  %v2050_v25 = vadd.s32 %v6568_v24, %v1983_v4  ;;  %v1941_v37 = vmul.u32 2654435761, %v1909_v56 }
 0x15f   : > { %10236 = vst [vmem:[#allocation66_spill] sm:$0xff] %v6925_v58  ;;  %v3458_v48 = vmax.f32 %v6938_v59, %v6941_v53  ;;  %v2497_v57 = vxor.u32 %v5169_v60, %v2305_v36 }
 0x160   : > { %10237 = vst [vmem:[#allocation67_spill] sm:$0xff] %v6930_v51  ;;  %v6933_v20 = vpop.eup %5811  ;;  %v745_v8 = vmax.f32 %v6925_v58, %v6930_v51  ;;  %v2496_v58 = vxor.u32 %v5168_v22, %v2304_v15  ;;  %v1985_v42 = vadd.s32 %v6558_v17, %v1941_v37 }
 0x161   : > { %10238 = vst [vmem:[#allocation68_spill] sm:$0xff] %v6933_v20  ;;  %v6943_v47 = vpop.eup %5813  ;;  %v6951_v51 = vmul.f32 %v6933_v20, %v5808_v55  ;;  %v1986_v55 = vadd.s32 %v6561_v18, %v1941_v37  ;;  %v1910_v20 = vadd.s32 %v6547_v12, %v1876_v0 }
 0x162   : > { %10239 = vst [vmem:[#allocation69_spill] sm:$0xff] %v6938_v59  ;;  %746 = vmax.xlane.f32.xlu0 %v745_v8  ;;  %v6954_v1 = vmul.f32 %v6943_v47, %v5810_v44  ;;  %v5106_v8 = vshrl.u32 %v2050_v25, 16  ;;  %v2560_v44 = vmul.u32 2221713035, %v2496_v58 }
 0x163   : > { %10241 = vst [vmem:[#allocation71_spill] sm:$0xff] %v6943_v47  ;;  %v2052_v47 = vadd.s32 %v6568_v24, %v1985_v42  ;;  %v2053_v36 = vadd.s32 %v6568_v24, %v1986_v55  ;;  %v1942_v60 = vmul.u32 2654435761, %v1910_v20 }
 0x164   : > { %v567_v13 = vpop.f32.mrf.mxu0  ;;  %v3461_v15 = vmax.f32 %v6951_v51, %v6954_v1  ;;  %v2242_v22 = vxor.u32 %v5106_v8, %v2050_v25  ;;  %v5232_v23 = vshrl.u32 %v2560_v44, 16 }
 0x165   : > { %v6957_v4 = vadd.f32 %v567_v13, %v6473_v33  ;;  %v656_v56 = vpop.f32.mrf.mxu1  ;;  %v5108_v62 = vshrl.u32 %v2052_v47, 16  ;;  %v5109_v42 = vshrl.u32 %v2053_v36, 16 }
 0x166   : > { %v6961_v40 = vadd.f32 %v656_v56, %v6475_v34  ;;  %3459 = vmax.xlane.f32.xlu2 %v3458_v48  ;;  %v2561_v56 = vmul.u32 2221713035, %v2497_v57  ;;  %v2243_v48 = vxor.u32 %v5107_v14, %v2051_v46  ;;  %v2306_v30 = vmul.u32 2146121005, %v2242_v22 }
 0x167   : > { %10242 = vst [vmem:[#allocation72_spill] sm:$0xff] %v6957_v4  ;;  %v1987_v57 = vadd.s32 %v6558_v17, %v1942_v60  ;;  %v2752_v20 = vxor.u32 %v5232_v23, %v2560_v44  ;;  %v1878_v46 = vadd.s32 104, %v6544_v11 }
 0x168   : > { %10243 = vst [vmem:[#allocation73_spill] sm:$0xff] %v6961_v40  ;;  %v748_v13 = vmax.f32 %v6957_v4, %v6961_v40  ;;  %v5233_v25 = vshrl.u32 %v2561_v56, 16  ;;  %v2307_v8 = vmul.u32 2146121005, %v2243_v48  ;;  %v5170_v55 = vshrl.u32 %v2306_v30, 15 }
 0x169   : > { %v2054_v40 = vadd.s32 %v6568_v24, %v1987_v57  ;;  %v5296_v4 = vshrl.u32 %v2752_v20, 8  ;;  %v1912_v59 = vadd.s32 %v6547_v12, %v1878_v46 }
 0x16a   : > { %3462 = vmax.xlane.f32.xlu0 %v3461_v15  ;;  %749 = vmax.xlane.f32.xlu1 %v748_v13  ;;  %v2244_v15 = vxor.u32 %v5108_v62, %v2052_v47  ;;  %v1988_v13 = vadd.s32 %v6561_v18, %v1942_v60  ;;  %v2753_v22 = vxor.u32 %v5233_v25, %v2561_v56 }
 0x16b   : > { %v5110_v47 = vshrl.u32 %v2054_v40, 16  ;;  %v1944_v20 = vmul.u32 2654435761, %v1912_v59  ;;  %v2944_v46 = vcvt.s32.f32 %v5296_v4 }
 0x16c   : > { %v569_v37 = vpop.f32.mrf.mxu0  ;;  %v2055_v53 = vadd.s32 %v6568_v24, %v1988_v13  ;;  %v2308_v62 = vmul.u32 2146121005, %v2244_v15  ;;  %v5297_v56 = vshrl.u32 %v2753_v22, 8 }
 0x16d   : > { %v6972_v0 = vadd.f32 %v569_v37, %v6473_v33  ;;  %v658_v43 = vpop.f32.mrf.mxu1  ;;  %v5171_v37 = vshrl.u32 %v2307_v8, 15 }
 0x16e   : > { %v6975_v58 = vadd.f32 %v658_v43, %v6475_v34  ;;  %v2245_v43 = vxor.u32 %v5109_v42, %v2053_v36  ;;  %v5111_v42 = vshrl.u32 %v2055_v53, 16 }
 0x16f   : > { %10244 = vst [vmem:[#allocation74_spill] sm:$0xff] %v6972_v0  ;;  %v2499_v36 = vxor.u32 %v5171_v37, %v2307_v8 }
 0x170   : > { %10245 = vst [vmem:[#allocation75_spill] sm:$0xff] %v6975_v58  ;;  %v751_v14 = vmax.f32 %v6972_v0, %v6975_v58  ;;  %v2498_v58 = vxor.u32 %v5170_v55, %v2306_v30  ;;  %v2309_v25 = vmul.u32 2146121005, %v2245_v43  ;;  %v2247_v0 = vxor.u32 %v5111_v42, %v2055_v53 }
 0x171   : > { %v2945_v30 = vcvt.s32.f32 %v5297_v56  ;;  %v2563_v55 = vmul.u32 2221713035, %v2499_v36  ;;  %v3008_v43 = vmul.f32 5.9604645e-08, %v2944_v46  ;;  %v1992_v53 = vadd.s32 %v6561_v18, %v1944_v20 }
 0x172   : > { %752 = vmax.xlane.f32.xlu1 %v751_v14  ;;  %v2246_v14 = vxor.u32 %v5110_v47, %v2054_v40  ;;  %v2562_v13 = vmul.u32 2221713035, %v2498_v58  ;;  %v5173_v15 = vshrl.u32 %v2309_v25, 15  ;;  %v2311_v4 = vmul.u32 2146121005, %v2247_v0  ;;  %v702_v58 = vpop.xlane.xlu2 %701 }
 0x173   : > { %v3009_v47 = vmul.f32 5.9604645e-08, %v2945_v30  ;;  %v5235_v56 = vshrl.u32 %v2563_v55, 16  ;;  %v7009_v30 = vsub.f32 %v6586_v52, %v702_v58 }
 0x174   : > { %v572_v48 = vpop.f32.mrf.mxu0  ;;  %v2310_v22 = vmul.u32 2146121005, %v2246_v14  ;;  %v2501_v36 = vxor.u32 %v5173_v15, %v2309_v25  ;;  %v3072_v14 = vadd.f32 1e-09, %v3008_v43  ;;  %v5175_v0 = vshrl.u32 %v2311_v4, 15 }
 0x175   : > { %v6986_v23 = vadd.f32 %v572_v48, %v6473_v33  ;;  %v661_v44 = vpop.f32.mrf.mxu1  ;;  %v5172_v48 = vshrl.u32 %v2308_v62, 15  ;;  %10251 = vst [vmem:[#allocation81_spill] sm:$0xff] %v7009_v30  ;;  %v3073_v25 = vadd.f32 1e-09, %v3009_v47  ;;  %v2755_v15 = vxor.u32 %v5235_v56, %v2563_v55 }
 0x176   : > { %v6989_v60 = vadd.f32 %v661_v44, %v6475_v34  ;;  %v1991_v44 = vadd.s32 %v6558_v17, %v1944_v20  ;;  %v2059_v20 = vadd.s32 %v6568_v24, %v1992_v53  ;;  %5815 = vlog2.f32 %v3072_v14 }
 0x177   : > { %10246 = vst [vmem:[#allocation76_spill] sm:$0xff] %v6986_v23  ;;  %v2500_v40 = vxor.u32 %v5172_v48, %v2308_v62  ;;  %v7005_v62 = vsub.f32 %v6583_v49, %v702_v58  ;;  %v2503_v58 = vxor.u32 %v5175_v0, %v2311_v4  ;;  %v870_v47 = vmul.f32 1.442695, %v7009_v30 }
 0x178   : > { %10247 = vst [vmem:[#allocation77_spill] sm:$0xff] %v6989_v60  ;;  %v754_v57 = vmax.f32 %v6986_v23, %v6989_v60  ;;  %v5234_v60 = vshrl.u32 %v2562_v13, 16  ;;  %v2058_v42 = vadd.s32 %v6568_v24, %v1991_v44  ;;  %v2565_v44 = vmul.u32 2221713035, %v2501_v36  ;;  %v705_v36 = vpop.xlane.xlu0 %704 }
 0x179   : > { %v2564_v23 = vmul.u32 2221713035, %v2500_v40  ;;  %10250 = vst [vmem:[#allocation80_spill] sm:$0xff] %v7005_v62  ;;  %v868_v53 = vmul.f32 1.442695, %v7005_v62  ;;  %5817 = vlog2.f32 %v3073_v25  ;;  %v7024_v0 = vsub.f32 %v6597_v26, %v705_v36 }
 0x17a   : > { %755 = vmax.xlane.f32.xlu2 %v754_v57  ;;  %v5174_v57 = vshrl.u32 %v2310_v22, 15  ;;  %v2754_v46 = vxor.u32 %v5234_v60, %v2562_v13  ;;  %v5114_v48 = vshrl.u32 %v2058_v42, 16  ;;  %v1877_v60 = vadd.s32 96, %v6544_v11 }
 0x17b   : > { %v5236_v40 = vshrl.u32 %v2564_v23, 16  ;;  %v5237_v56 = vshrl.u32 %v2565_v44, 16  ;;  %5819 = vpow2.f32 %v868_v53  ;;  %10254 = vst [vmem:[#allocation84_spill] sm:$0xff] %v7024_v0 }
 0x17c   : > { %v574_v29 = vpop.f32.mrf.mxu0  ;;  %v5298_v43 = vshrl.u32 %v2754_v46, 8  ;;  %v2250_v55 = vxor.u32 %v5114_v48, %v2058_v42  ;;  %v1911_v46 = vadd.s32 %v6547_v12, %v1877_v60  ;;  %v5816_v42 = vpop.eup %5815  ;;  %5821 = vpow2.f32 %v870_v47 }
 0x17d   : > { %v6995_v8 = vadd.f32 %v574_v29, %v6473_v33  ;;  %v663_v37 = vpop.f32.mrf.mxu1  ;;  %v2756_v62 = vxor.u32 %v5236_v40, %v2564_v23  ;;  %v2757_v25 = vxor.u32 %v5237_v56, %v2565_v44  ;;  %v7027_v60 = vsub.f32 %v6602_v31, %v705_v36  ;;  %v708_v23 = vpop.xlane.xlu1 %707 }
 0x17e   : > { %v6998_v59 = vadd.f32 %v663_v37, %v6475_v34  ;;  %v2314_v4 = vmul.u32 2146121005, %v2250_v55  ;;  %v3153_v44 = vmul.f32 0.6931472, %v5816_v42  ;;  %v872_v36 = vmul.f32 1.442695, %v7024_v0 }
 0x17f   : > { %10248 = vst [vmem:[#allocation78_spill] sm:$0xff] %v6995_v8  ;;  %v5301_v56 = vshrl.u32 %v2757_v25, 8  ;;  %v874_v42 = vmul.f32 1.442695, %v7027_v60  ;;  %v7047_v0 = vsub.f32 %v6612_v16, %v708_v23 }
 0x180   : > { %10249 = vst [vmem:[#allocation79_spill] sm:$0xff] %v6998_v59  ;;  %v757_v29 = vmax.f32 %v6995_v8, %v6998_v59  ;;  %v2502_v59 = vxor.u32 %v5174_v57, %v2310_v22  ;;  %v5115_v8 = vshrl.u32 %v2059_v20, 16  ;;  %v5299_v22 = vshrl.u32 %v2755_v15, 8 }
 0x181   : > { %10255 = vst [vmem:[#allocation85_spill] sm:$0xff] %v7027_v60  ;;  %5823 = vpow2.f32 %v872_v36 }
 0x182   : > { %758 = vmax.xlane.f32.xlu0 %v757_v29  ;;  %v2566_v57 = vmul.u32 2221713035, %v2502_v59  ;;  %v2251_v14 = vxor.u32 %v5115_v8, %v2059_v20  ;;  %v2947_v48 = vcvt.s32.f32 %v5299_v22  ;;  %v5178_v59 = vshrl.u32 %v2314_v4, 15  ;;  %v5818_v20 = vpop.eup %5817  ;;  %10260 = vst [vmem:[#allocation90_spill] sm:$0xff] %v7047_v0 }
 0x183   : > { %v1943_v8 = vmul.u32 2654435761, %v1911_v46  ;;  %v7036_v31 = vpop.eup %5819 }
 0x184   : > { %v577_v37 = vpop.f32.mrf.mxu0  ;;  %v5238_v30 = vshrl.u32 %v2566_v57, 16  ;;  %v3011_v22 = vmul.f32 5.9604645e-08, %v2947_v48  ;;  %10258 = vst [vmem:[#allocation88_spill] sm:$0xff] %v7036_v31 }
 0x185   : > { %v7013_v13 = vadd.f32 %v577_v37, %v6473_v33  ;;  %v666_v49 = vpop.f32.mrf.mxu1  ;;  %v2946_v37 = vcvt.s32.f32 %v5298_v43 }
 0x186   : > { %v7017_v52 = vadd.f32 %v666_v49, %v6475_v34  ;;  %v2567_v49 = vmul.u32 2221713035, %v2503_v58  ;;  %v5300_v58 = vshrl.u32 %v2756_v62, 8  ;;  %v2758_v62 = vxor.u32 %v5238_v30, %v2566_v57 }
 0x187   : > { %10252 = vst [vmem:[#allocation82_spill] sm:$0xff] %v7013_v13  ;;  %v3010_v53 = vmul.f32 5.9604645e-08, %v2946_v37  ;;  %v3155_v37 = vmul.f32 0.6931472, %v5818_v20  ;;  %v2949_v20 = vcvt.s32.f32 %v5301_v56  ;;  %v1879_v30 = vadd.s32 112, %v6544_v11 }
 0x188   : > { %10253 = vst [vmem:[#allocation83_spill] sm:$0xff] %v7017_v52  ;;  %v760_v29 = vmax.f32 %v7013_v13, %v7017_v52  ;;  %v2315_v52 = vmul.u32 2146121005, %v2251_v14  ;;  %v5239_v55 = vshrl.u32 %v2567_v49, 16  ;;  %v1989_v14 = vadd.s32 %v6558_v17, %v1943_v8 }
 0x189   : > { %v2948_v13 = vcvt.s32.f32 %v5300_v58  ;;  %v5302_v57 = vshrl.u32 %v2758_v62, 8  ;;  %v3013_v56 = vmul.f32 5.9604645e-08, %v2949_v20  ;;  %v1913_v36 = vadd.s32 %v6547_v12, %v1879_v30 }
 0x18a   : > { %761 = vmax.xlane.f32.xlu1 %v760_v29  ;;  %v5179_v47 = vshrl.u32 %v2315_v52, 15  ;;  %v2506_v29 = vxor.u32 %v5178_v59, %v2314_v4  ;;  %v2759_v4 = vxor.u32 %v5239_v55, %v2567_v49  ;;  %v1990_v59 = vadd.s32 %v6561_v18, %v1943_v8  ;;  %v7051_v49 = vpop.xlane.xlu1 %716 }
 0x18b   : > { %v2056_v41 = vadd.s32 %v6568_v24, %v1989_v14  ;;  %v3264_v55 = vsub.f32 0.0, %v3153_v44  ;;  %v3265_v8 = vsub.f32 0.0, %v3155_v37  ;;  %v2950_v62 = vcvt.s32.f32 %v5302_v57 }
 0x18c   : > { %v579_v15 = vpop.f32.mrf.mxu0  ;;  %v2507_v48 = vxor.u32 %v5179_v47, %v2315_v52  ;;  %v2570_v25 = vmul.u32 2221713035, %v2506_v29  ;;  %v711_v52 = vpop.xlane.xlu2 %710  ;;  %v3012_v47 = vmul.f32 5.9604645e-08, %v2948_v13  ;;  %v5303_v29 = vshrl.u32 %v2759_v4, 8 }
 0x18d   : > { %v7030_v43 = vadd.f32 %v579_v15, %v6473_v33  ;;  %v668_v40 = vpop.f32.mrf.mxu1  ;;  %v7041_v15 = vpop.eup %5821  ;;  %v5112_v58 = vshrl.u32 %v2056_v41, 16  ;;  %v3014_v57 = vmul.f32 5.9604645e-08, %v2950_v62 }
 0x18e   : > { %v7033_v26 = vadd.f32 %v668_v40, %v6475_v34  ;;  %10259 = vst [vmem:[#allocation89_spill] sm:$0xff] %v7041_v15  ;;  %v3074_v40 = vadd.f32 1e-09, %v3010_v53  ;;  %v2057_v53 = vadd.s32 %v6568_v24, %v1990_v59  ;;  %v5242_v16 = vshrl.u32 %v2570_v25, 16  ;;  %v7058_v4 = vpop.eup %5823 }
 0x18f   : > { %10256 = vst [vmem:[#allocation86_spill] sm:$0xff] %v7030_v43  ;;  %v7056_v59 = vsub.f32 %v6615_v27, %v708_v23  ;;  %v3076_v44 = vadd.f32 1e-09, %v3012_v47  ;;  %v2951_v13 = vcvt.s32.f32 %v5303_v29 }
 0x190   : > { %10257 = vst [vmem:[#allocation87_spill] sm:$0xff] %v7033_v26  ;;  %v763_v46 = vmax.f32 %v7030_v43, %v7033_v26  ;;  %v3075_v26 = vadd.f32 1e-09, %v3011_v22  ;;  %v2571_v43 = vmul.u32 2221713035, %v2507_v48  ;;  %5825 = vlog2.f32 %v3074_v40 }
 0x191   : > { %v5113_v14 = vshrl.u32 %v2057_v53, 16  ;;  %5827 = vpow2.f32 %v874_v42  ;;  %v876_v22 = vmul.f32 1.442695, %v7047_v0  ;;  %10261 = vst [vmem:[#allocation91_spill] sm:$0xff] %v7056_v59  ;;  %v2762_v37 = vxor.u32 %v5242_v16, %v2570_v25 }
 0x192   : > { %764 = vmax.xlane.f32.xlu0 %v763_v46  ;;  %v2248_v46 = vxor.u32 %v5112_v58, %v2056_v41  ;;  %5829 = vlog2.f32 %v3075_v26  ;;  %v5243_v48 = vshrl.u32 %v2571_v43, 16  ;;  %10262 = vst [vmem:[#allocation92_spill] sm:$0xff] %v7058_v4  ;;  %v3077_v42 = vadd.f32 1e-09, %v3013_v56  ;;  %v7060_v26 = vpop.xlane.xlu0 %713 }
 0x193   : > { %5831 = vrcp.f32 %v3264_v55  ;;  %v2249_v40 = vxor.u32 %v5113_v14, %v2057_v53  ;;  %v1945_v0 = vmul.u32 2654435761, %v1913_v36  ;;  %v878_v23 = vmul.f32 1.442695, %v7056_v59 }
 0x194   : > { %5833 = vrcp.f32 %v3265_v8  ;;  %v2312_v20 = vmul.u32 2146121005, %v2248_v46  ;;  %v2763_v58 = vxor.u32 %v5243_v48, %v2571_v43  ;;  %v7065_v55 = vpop.xlane.xlu2 %719  ;;  %v3015_v47 = vmul.f32 5.9604645e-08, %v2951_v13 }
 0x195   : > { %5835 = vpow2.f32 %v876_v22  ;;  %v2313_v30 = vmul.u32 2146121005, %v2249_v40  ;;  %v5306_v29 = vshrl.u32 %v2762_v37, 8  ;;  %v1993_v14 = vadd.s32 %v6558_v17, %v1945_v0 }
 0x196   : > { %v5826_v41 = vpop.eup %5825  ;;  %5837 = vlog2.f32 %v3076_v44  ;;  %v5176_v53 = vshrl.u32 %v2312_v20, 15  ;;  %v1994_v46 = vadd.s32 %v6561_v18, %v1945_v0  ;;  %v3078_v48 = vadd.f32 1e-09, %v3014_v57 }
 0x197   : > { %v7062_v27 = vpop.eup %5827  ;;  %v5177_v16 = vshrl.u32 %v2313_v30, 15  ;;  %v3157_v43 = vmul.f32 0.6931472, %v5826_v41  ;;  %5839 = vlog2.f32 %v3077_v42  ;;  %v5307_v36 = vshrl.u32 %v2763_v58, 8 }
 0x198   : > { %10263 = vst [vmem:[#allocation93_spill] sm:$0xff] %v7062_v27  ;;  %v5830_v8 = vpop.eup %5829  ;;  %v2504_v56 = vxor.u32 %v5176_v53, %v2312_v20  ;;  %v2060_v59 = vadd.s32 %v6568_v24, %v1993_v14  ;;  %v7075_v13 = vsub.f32 %v6627_v5, %v711_v52  ;;  %v7078_v37 = vsub.f32 %v6630_v19, %v711_v52 }
 0x199   : > { %v5832_v22 = vpop.eup %5831  ;;  %v2505_v40 = vxor.u32 %v5177_v16, %v2313_v30  ;;  %v3159_v60 = vmul.f32 0.6931472, %v5830_v8  ;;  %5841 = vpow2.f32 %v878_v23  ;;  %v3079_v42 = vadd.f32 1e-09, %v3015_v47 }
 0x19a   : > { %v5834_v62 = vpop.eup %5833  ;;  %10265 = vst [vmem:[#allocation95_spill] sm:$0xff] %v7075_v13  ;;  %v2568_v41 = vmul.u32 2221713035, %v2504_v56  ;;  %v2954_v20 = vcvt.s32.f32 %v5306_v29  ;;  %v7081_v57 = vmul.f32 %v5832_v22, %v7036_v31  ;;  %v2061_v5 = vadd.s32 %v6568_v24, %v1994_v46  ;;  %v7087_v16 = vpop.xlane.xlu0 %722 }
 0x19b   : > { %v7072_v44 = vpop.eup %5835  ;;  %10266 = vst [vmem:[#allocation96_spill] sm:$0xff] %v7078_v37  ;;  %v2569_v0 = vmul.u32 2221713035, %v2505_v40  ;;  %v7084_v58 = vmul.f32 %v5834_v62, %v7041_v15  ;;  %v3266_v19 = vsub.f32 0.0, %v3157_v43  ;;  %5843 = vlog2.f32 %v3078_v48  ;;  %v10268_v48 = vld [vmem:[#allocation11_spill] sm:$0xff] }
 0x19c   : > { %10264 = vst [vmem:[#allocation94_spill] sm:$0xff] %v7072_v44  ;;  %v5838_v53 = vpop.eup %5837  ;;  %v5240_v30 = vshrl.u32 %v2568_v41, 16  ;;  %v2955_v52 = vcvt.s32.f32 %v5307_v36  ;;  %v5116_v8 = vshrl.u32 %v2060_v59, 16  ;;  %v880_v47 = vmul.f32 1.442695, %v7075_v13 }
 0x19d   : > { %v7067_v25 = vpop.xlane.xlu1 %725  ;;  %v5840_v23 = vpop.eup %5839  ;;  %v882_v29 = vmul.f32 1.442695, %v7078_v37  ;;  %v3267_v56 = vsub.f32 0.0, %v3159_v60  ;;  %v5241_v62 = vshrl.u32 %v2569_v0, 16  ;;  %5845 = vlog2.f32 %v3079_v42 }
 0x19e   : > { %v3018_v46 = vmul.f32 5.9604645e-08, %v2954_v20  ;;  %v2760_v40 = vxor.u32 %v5240_v30, %v2568_v41  ;;  %v5117_v15 = vshrl.u32 %v2061_v5, 16  ;;  %5847 = vrcp.f32 %v3266_v19 }
 0x19f   : > { %v7097_v13 = vpop.eup %5841  ;;  %v3019_v37 = vmul.f32 5.9604645e-08, %v2955_v52  ;;  %v2252_v31 = vxor.u32 %v5116_v8, %v2060_v59  ;;  %v3161_v21 = vmul.f32 0.6931472, %v5838_v53  ;;  %5849 = vrcp.f32 %v3267_v56 }
 0x1a0   : > { %10269 = vst [vmem:[#allocation11_spill] sm:$0xff] %v7097_v13  ;;  %v3082_v20 = vadd.f32 1e-09, %v3018_v46  ;;  %v3464_v41 = vmax.f32 %v7081_v57, %v7084_v58  ;;  %v5304_v30 = vshrl.u32 %v2760_v40, 8  ;;  %v2253_v39 = vxor.u32 %v5117_v15, %v2061_v5 }
 0x1a1   : > { %5851 = vpow2.f32 %v880_v47  ;;  %v3083_v59 = vadd.f32 1e-09, %v3019_v37  ;;  %v2316_v52 = vmul.u32 2146121005, %v2252_v31  ;;  %v3268_v8 = vsub.f32 0.0, %v3161_v21 }
 0x1a2   : > { %5853 = vpow2.f32 %v882_v29  ;;  %v2952_v15 = vcvt.s32.f32 %v5304_v30  ;;  %v2317_v47 = vmul.u32 2146121005, %v2253_v39  ;;  %v10274_v39 = vld [vmem:[#allocation15_spill] sm:$0xff] }
 0x1a3   : > { %5855 = vlog2.f32 %v3082_v20 }
 0x1a4   : > { %5857 = vlog2.f32 %v3083_v59  ;;  %v5181_v30 = vshrl.u32 %v2317_v47, 15 }
 0x1a5   : > { %v7091_v14 = vpop.xlane.xlu2 %728  ;;  %v3442_v22 = vpop.xlane.xlu1 %3441  ;;  %5859 = vrcp.f32 %v3268_v8 }
 0x1a6   : > { %10267 = vst [vmem:[#allocation97_spill] sm:$0xff] %v7091_v14  ;;  %vm3536_vm1 = vcmp.eq.f32.partialorder %v6742_v6, %v3442_v22  ;;  %vm3537_vm2 = vcmp.eq.f32.partialorder %v6746_v63, %v3442_v22  ;;  %v3163_v6 = vmul.f32 0.6931472, %v5840_v23  ;;  %v2761_v14 = vxor.u32 %v5241_v62, %v2569_v0  ;;  %v5844_v63 = vpop.eup %5843 }
 0x1a7   : > { %v3600_v43 = vsel %vm3536_vm1, %v6542_v10, 256  ;;  %v3601_v36 = vsel %vm3537_vm2, %v10268_v48, 256  ;;  %v5846_v45 = vpop.eup %5845  ;;  %v3165_v56 = vmul.f32 0.6931472, %v5844_v63 }
 0x1a8   : > { %vm3664_vm3 = vcmp.lt.s32.totalorder %v3600_v43, %v3601_v36  ;;  %v5305_v22 = vshrl.u32 %v2761_v14, 8  ;;  %v3269_v23 = vsub.f32 0.0, %v3163_v6  ;;  %v5848_v62 = vpop.eup %5847  ;;  %v3167_v21 = vmul.f32 0.6931472, %v5846_v45 }
 0x1a9   : > { %v7099_v60 = vsel %vm3664_vm3, %v3600_v43, %v3601_v36  ;;  %v5850_v29 = vpop.eup %5849  ;;  %v5180_v14 = vshrl.u32 %v2316_v52, 15  ;;  %v3270_v36 = vsub.f32 0.0, %v3165_v56  ;;  %v7127_v6 = vsub.f32 %v10274_v39, %v7060_v26 }
 0x1aa   : > { %v3667_v42 = vshra.s32 %v7099_v60, 16  ;;  %v2953_v37 = vcvt.s32.f32 %v5305_v22  ;;  %v7123_v40 = vpop.eup %5851  ;;  %v7131_v63 = vmul.f32 %v5848_v62, %v7058_v4  ;;  %5861 = vrcp.f32 %v3269_v23 }
 0x1ab   : > { %10273 = vst [vmem:[#allocation99_spill] sm:$0xff] %v7123_v40  ;;  %v2508_v56 = vxor.u32 %v5180_v14, %v2316_v52  ;;  %5863 = vrcp.f32 %v3270_v36 }
 0x1ac   : > { %v7104_v19 = vcvt.s32.f32 %v3667_v42  ;;  %10275 = vst [vmem:[#allocation15_spill] sm:$0xff] %v7127_v6  ;;  %v7133_v42 = vpop.eup %5853  ;;  %v3017_v20 = vmul.f32 5.9604645e-08, %v2953_v37 }
 0x1ad   : > { %v3445_v53 = vpop.xlane.xlu2 %3444  ;;  %v7106_v0 = vpop.xlane.xlu0 %731  ;;  %10276 = vst [vmem:[#allocation100_spill] sm:$0xff] %v7133_v42  ;;  %v2572_v37 = vmul.u32 2221713035, %v2508_v56 }
 0x1ae   : > { %vm3538_vm4 = vcmp.eq.f32.partialorder %v6774_v35, %v3445_v53  ;;  %vm3539_vm5 = vcmp.eq.f32.partialorder %v6778_v28, %v3445_v53  ;;  %3670 = vmin.xlane.f32.xlu1 %v7104_v19  ;;  %v7115_v35 = vsub.f32 %v6659_v3, %v7051_v49  ;;  %v10271_v28 = vld [vmem:[#allocation17_spill] sm:$0xff]  ;;  %v3016_v3 = vmul.f32 5.9604645e-08, %v2952_v15  ;;  %v5856_v22 = vpop.eup %5855 }
 0x1af   : > { %v3602_v5 = vsel %vm3538_vm4, %v6542_v10, 256  ;;  %v3603_v31 = vsel %vm3539_vm5, %v10268_v48, 256  ;;  %v7119_v46 = vsub.f32 %v10271_v28, %v7051_v49  ;;  %v7136_v49 = vmul.f32 %v5850_v29, %v7062_v27  ;;  %v5858_v28 = vpop.eup %5857 }
 0x1b0   : > { %vm3680_vm6 = vcmp.lt.s32.totalorder %v3602_v5, %v3603_v31  ;;  %10270 = vst [vmem:[#allocation98_spill] sm:$0xff] %v7115_v35  ;;  %v3271_v53 = vsub.f32 0.0, %v3167_v21  ;;  %v2509_v15 = vxor.u32 %v5181_v30, %v2317_v47  ;;  %v3080_v8 = vadd.f32 1e-09, %v3016_v3 }
 0x1b1   : > { %10272 = vst [vmem:[#allocation17_spill] sm:$0xff] %v7119_v46  ;;  %v7121_v43 = vsel %vm3680_vm6, %v3602_v5, %v3603_v31  ;;  %v888_v5 = vmul.f32 1.442695, %v7115_v35  ;;  %v890_v62 = vmul.f32 1.442695, %v7119_v46  ;;  %v3467_v14 = vmax.f32 %v7131_v63, %v7136_v49 }
 0x1b2   : > { %v3683_v45 = vshra.s32 %v7121_v43, 16  ;;  %v3081_v29 = vadd.f32 1e-09, %v3017_v20  ;;  %v2573_v21 = vmul.u32 2221713035, %v2509_v15  ;;  %5865 = vrcp.f32 %v3271_v53  ;;  %v671_v15 = vpop.f32.mrf.mxu1 }
 0x1b3   : > { %v5244_v47 = vshrl.u32 %v2572_v37, 16  ;;  %v3175_v39 = vmul.f32 0.6931472, %v5858_v28  ;;  %5867 = vlog2.f32 %v3080_v8 }
 0x1b4   : > { %v7138_v59 = vcvt.s32.f32 %v3683_v45  ;;  %v5245_v45 = vshrl.u32 %v2573_v21, 16  ;;  %5869 = vlog2.f32 %v3081_v29  ;;  %v7171_v29 = vadd.f32 %v671_v15, %v6475_v34 }
 0x1b5   : > { %v3448_v31 = vpop.xlane.xlu0 %3447  ;;  %5871 = vpow2.f32 %v888_v5  ;;  %v1880_v5 = vadd.s32 120, %v6544_v11 }
 0x1b6   : > { %vm3540_vm7 = vcmp.eq.f32.partialorder %v6804_v54, %v3448_v31  ;;  %vm3541_vm8 = vcmp.eq.f32.partialorder %v6807_v50, %v3448_v31  ;;  %3465 = vmax.xlane.f32.xlu1 %v3464_v41  ;;  %3686 = vmin.xlane.f32.xlu2 %v7138_v59  ;;  %v5860_v54 = vpop.eup %5859  ;;  %v3173_v41 = vmul.f32 0.6931472, %v5856_v22  ;;  %v582_v31 = vpop.f32.mrf.mxu0  ;;  %10278 = vst [vmem:[#allocation102_spill] sm:$0xff] %v7171_v29  ;;  %5873 = vpow2.f32 %v890_v62 }
 0x1b7   : > { %v3604_v23 = vsel %vm3540_vm7, %v6542_v10, 256  ;;  %v3605_v52 = vsel %vm3541_vm8, %v10268_v48, 256  ;;  %v5862_v3 = vpop.eup %5861  ;;  %v7159_v28 = vmul.f32 %v5860_v54, %v7072_v44 }
 0x1b8   : > { %vm3696_vm9 = vcmp.lt.s32.totalorder %v3604_v23, %v3605_v52  ;;  %v5864_v30 = vpop.eup %5863  ;;  %v7164_v8 = vmul.f32 %v5862_v3, %v7097_v13  ;;  %v10279_v3 = vld [vmem:[#allocation16_spill] sm:$0xff] }
 0x1b9   : > { %v3451_v36 = vpop.xlane.xlu1 %3450  ;;  %v7149_v50 = vsel %vm3696_vm9, %v3604_v23, %v3605_v52  ;;  %v2764_v23 = vxor.u32 %v5244_v47, %v2572_v37  ;;  %v3274_v52 = vsub.f32 0.0, %v3173_v41  ;;  %v5866_v46 = vpop.eup %5865  ;;  %v7168_v37 = vadd.f32 %v582_v31, %v6473_v33 }
 0x1ba   : > { %vm3542_vm10 = vcmp.eq.f32.partialorder %v6825_v61, %v3451_v36  ;;  %vm3543_vm11 = vcmp.eq.f32.partialorder %v6828_v38, %v3451_v36  ;;  %v3699_v20 = vshra.s32 %v7149_v50, 16  ;;  %v2765_v61 = vxor.u32 %v5245_v45, %v2573_v21  ;;  %v5868_v45 = vpop.eup %5867 }
 0x1bb   : > { %v3606_v56 = vsel %vm3542_vm10, %v6542_v10, 256  ;;  %v3607_v53 = vsel %vm3543_vm11, %v10268_v48, 256  ;;  %v3275_v36 = vsub.f32 0.0, %v3175_v39  ;;  %10277 = vst [vmem:[#allocation101_spill] sm:$0xff] %v7168_v37  ;;  %v5308_v21 = vshrl.u32 %v2764_v23, 8  ;;  %v5870_v39 = vpop.eup %5869 }
 0x1bc   : > { %v7156_v22 = vcvt.s32.f32 %v3699_v20  ;;  %vm3712_vm12 = vcmp.lt.s32.totalorder %v3606_v56, %v3607_v53  ;;  %v5309_v54 = vshrl.u32 %v2765_v61, 8  ;;  %v7176_v41 = vsub.f32 %v10279_v3, %v7060_v26  ;;  %v7199_v34 = vpop.eup %5871 }
 0x1bd   : > { %v7161_v38 = vsel %vm3712_vm12, %v3606_v56, %v3607_v53  ;;  %v884_v20 = vmul.f32 1.442695, %v7127_v6  ;;  %v7181_v56 = vpop.xlane.xlu0 %734  ;;  %v3470_v31 = vmax.f32 %v7159_v28, %v7164_v8  ;;  %5875 = vrcp.f32 %v3274_v52  ;;  %10281 = vst [vmem:[#allocation103_spill] sm:$0xff] %v7199_v34 }
 0x1be   : > { %3468 = vmax.xlane.f32.xlu2 %v3467_v14  ;;  %3702 = vmin.xlane.f32.xlu0 %v7156_v22  ;;  %v3715_v47 = vshra.s32 %v7161_v38, 16  ;;  %10280 = vst [vmem:[#allocation16_spill] sm:$0xff] %v7176_v41  ;;  %v766_v26 = vmax.f32 %v7168_v37, %v7171_v29  ;;  %5877 = vrcp.f32 %v3275_v36  ;;  %v2956_v62 = vcvt.s32.f32 %v5308_v21  ;;  %v7202_v21 = vpop.eup %5873 }
 0x1bf   : > { %v3169_v23 = vmul.f32 0.6931472, %v5868_v45  ;;  %v2957_v61 = vcvt.s32.f32 %v5309_v54  ;;  %v7194_v52 = vmul.f32 %v5864_v30, %v7123_v40  ;;  %v3171_v3 = vmul.f32 0.6931472, %v5870_v39  ;;  %10282 = vst [vmem:[#allocation104_spill] sm:$0xff] %v7202_v21 }
 0x1c0   : > { %v7178_v14 = vcvt.s32.f32 %v3715_v47  ;;  %v886_v36 = vmul.f32 1.442695, %v7176_v41  ;;  %v3020_v54 = vmul.f32 5.9604645e-08, %v2956_v62  ;;  %v1914_v45 = vadd.s32 %v6547_v12, %v1880_v5 }
 0x1c1   : > { %v3454_v53 = vpop.xlane.xlu2 %3453  ;;  %v3021_v29 = vmul.f32 5.9604645e-08, %v2957_v61  ;;  %5879 = vpow2.f32 %v884_v20  ;;  %v3273_v33 = vsub.f32 0.0, %v3171_v3 }
 0x1c2   : > { %vm3544_vm13 = vcmp.eq.f32.partialorder %v6860_v2, %v3454_v53  ;;  %3718 = vmin.xlane.f32.xlu1 %v7178_v14  ;;  %vm3545_vm14 = vcmp.eq.f32.partialorder %v6865_v32, %v3454_v53  ;;  %v7197_v2 = vmul.f32 %v5866_v46, %v7133_v42  ;;  %v3272_v53 = vsub.f32 0.0, %v3169_v23 }
 0x1c3   : > { %v3608_v15 = vsel %vm3544_vm13, %v6542_v10, 256  ;;  %v3609_v47 = vsel %vm3545_vm14, %v10268_v48, 256  ;;  %v5876_v30 = vpop.eup %5875  ;;  %5881 = vpow2.f32 %v886_v36  ;;  %v3084_v5 = vadd.f32 1e-09, %v3020_v54 }
 0x1c4   : > { %vm3728_vm15 = vcmp.lt.s32.totalorder %v3608_v15, %v3609_v47  ;;  %v5878_v46 = vpop.eup %5877  ;;  %v3473_v39 = vmax.f32 %v7194_v52, %v7197_v2  ;;  %5883 = vrcp.f32 %v3272_v53  ;;  %v3085_v62 = vadd.f32 1e-09, %v3021_v29 }
 0x1c5   : > { %v7204_v32 = vsel %vm3728_vm15, %v3608_v15, %v3609_v47  ;;  %v7220_v61 = vmul.f32 %v5878_v46, %v7202_v21  ;;  %5885 = vrcp.f32 %v3273_v33  ;;  %v10286_v46 = vld [vmem:[#allocation18_spill] sm:$0xff] }
 0x1c6   : > { %767 = vmax.xlane.f32.xlu2 %v766_v26  ;;  %3471 = vmax.xlane.f32.xlu0 %v3470_v31  ;;  %v3731_v37 = vshra.s32 %v7204_v32, 16  ;;  %v7212_v31 = vmul.f32 %v5876_v30, %v7199_v34  ;;  %v1946_v26 = vmul.u32 2654435761, %v1914_v45  ;;  %5887 = vlog2.f32 %v3084_v5 }
 0x1c7   : > { %5889 = vlog2.f32 %v3085_v62 }
 0x1c8   : > { %v7217_v23 = vcvt.s32.f32 %v3731_v37  ;;  %v3479_v37 = vmax.f32 %v7212_v31, %v7220_v61  ;;  %v1995_v29 = vadd.s32 %v6558_v17, %v1946_v26  ;;  %v1996_v36 = vadd.s32 %v6561_v18, %v1946_v26 }
 0x1c9   : > { %v3457_v35 = vpop.xlane.xlu0 %3456 }
 0x1ca   : > { %vm3546_vm0 = vcmp.eq.f32.partialorder %v6890_v7, %v3457_v35  ;;  %3474 = vmax.xlane.f32.xlu1 %v3473_v39  ;;  %vm3547_vm1 = vcmp.eq.f32.partialorder %v6894_v9, %v3457_v35  ;;  %v7222_v7 = vpop.eup %5879  ;;  %v2062_v30 = vadd.s32 %v6568_v24, %v1995_v29  ;;  %v7240_v39 = vsub.f32 %v10286_v46, %v7065_v55 }
 0x1cb   : > { %v3610_v20 = vsel %vm3546_vm0, %v6542_v10, 256  ;;  %v3611_v15 = vsel %vm3547_vm1, %v10268_v48, 256  ;;  %10283 = vst [vmem:[#allocation105_spill] sm:$0xff] %v7222_v7  ;;  %v7227_v9 = vpop.eup %5881  ;;  %v2063_v26 = vadd.s32 %v6568_v24, %v1996_v36  ;;  %v1882_v29 = vadd.s32 136, %v6544_v11 }
 0x1cc   : > { %vm3744_vm2 = vcmp.lt.s32.totalorder %v3610_v20, %v3611_v15  ;;  %10284 = vst [vmem:[#allocation106_spill] sm:$0xff] %v7227_v9  ;;  %v5884_v3 = vpop.eup %5883  ;;  %v5118_v46 = vshrl.u32 %v2062_v30, 16  ;;  %v892_v34 = vmul.f32 1.442695, %v7240_v39 }
 0x1cd   : > { %v7225_v47 = vsel %vm3744_vm2, %v3610_v20, %v3611_v15  ;;  %v5886_v54 = vpop.eup %5885  ;;  %10287 = vst [vmem:[#allocation18_spill] sm:$0xff] %v7240_v39  ;;  %v7245_v20 = vmul.f32 %v5884_v3, %v7222_v7  ;;  %v10291_v15 = vld [vmem:[#allocation19_spill] sm:$0xff]  ;;  %v5119_v41 = vshrl.u32 %v2063_v26, 16 }
 0x1ce   : > { %3734 = vmin.xlane.f32.xlu2 %v7217_v23  ;;  %v3747_v35 = vshra.s32 %v7225_v47, 16  ;;  %v5888_v45 = vpop.eup %5887  ;;  %v7248_v62 = vmul.f32 %v5886_v54, %v7227_v9  ;;  %v1881_v54 = vadd.s32 128, %v6544_v11  ;;  %5891 = vpow2.f32 %v892_v34 }
 0x1cf   : > { %v5890_v53 = vpop.eup %5889  ;;  %10289 = vst [vmem:[#allocation109_spill] sm:$0xff] %v7245_v20 }
 0x1d0   : > { %v7233_v33 = vcvt.s32.f32 %v3747_v35  ;;  %10290 = vst [vmem:[#allocation110_spill] sm:$0xff] %v7248_v62  ;;  %v7253_v35 = vsub.f32 %v10291_v15, %v7065_v55  ;;  %v3179_v21 = vmul.f32 0.6931472, %v5890_v53  ;;  %v3476_v3 = vmax.f32 %v7245_v20, %v7248_v62 }
 0x1d1   : > { %v1916_v55 = vadd.s32 %v6547_v12, %v1882_v29  ;;  %v2255_v53 = vxor.u32 %v5119_v41, %v2063_v26  ;;  %v1915_v6 = vadd.s32 %v6547_v12, %v1881_v54 }
 0x1d2   : > { %10285 = vst [vmem:[#allocation107_spill] sm:$0xff] %v7233_v33  ;;  %3480 = vmax.xlane.f32.xlu1 %v3479_v37  ;;  %3750 = vmin.xlane.f32.xlu0 %v7233_v33  ;;  %v3177_v37 = vmul.f32 0.6931472, %v5888_v45  ;;  %v894_v9 = vmul.f32 1.442695, %v7253_v35  ;;  %v3277_v15 = vsub.f32 0.0, %v3179_v21  ;;  %v2254_v45 = vxor.u32 %v5118_v46, %v2062_v30 }
 0x1d3   : > { %10292 = vst [vmem:[#allocation19_spill] sm:$0xff] %v7253_v35  ;;  %v1948_v35 = vmul.u32 2654435761, %v1916_v55  ;;  %v2319_v21 = vmul.u32 2146121005, %v2255_v53  ;;  %v1884_v55 = vadd.s32 152, %v6544_v11 }
 0x1d4   : > { %v3276_v36 = vsub.f32 0.0, %v3177_v37  ;;  %5893 = vpow2.f32 %v894_v9  ;;  %v2318_v29 = vmul.u32 2146121005, %v2254_v45  ;;  %v1947_v34 = vmul.u32 2654435761, %v1915_v6  ;;  %v7269_v41 = vpop.eup %5891 }
 0x1d5   : > { %v7242_v5 = vpop.xlane.xlu0 %746  ;;  %10294 = vst [vmem:[#allocation112_spill] sm:$0xff] %v7269_v41  ;;  %v2000_v26 = vadd.s32 %v6561_v18, %v1948_v35  ;;  %v5183_v54 = vshrl.u32 %v2319_v21, 15  ;;  %v1918_v40 = vadd.s32 %v6547_v12, %v1884_v55 }
 0x1d6   : > { %10288 = vst [vmem:[#allocation108_spill] sm:$0xff] %v7242_v5  ;;  %5895 = vrcp.f32 %v3276_v36  ;;  %v1997_v36 = vadd.s32 %v6558_v17, %v1947_v34 }
 0x1d7   : > { %5897 = vrcp.f32 %v3277_v15  ;;  %v2067_v53 = vadd.s32 %v6568_v24, %v2000_v26 }
 0x1d8   : > { %v2064_v42 = vadd.s32 %v6568_v24, %v1997_v36 }
 0x1d9   : > { %v5123_v27 = vshrl.u32 %v2067_v53, 16 }
 0x1da   : > { %3477 = vmax.xlane.f32.xlu0 %v3476_v3  ;;  %v5120_v26 = vshrl.u32 %v2064_v42, 16 }
 0x1db   : > { %v2259_v36 = vxor.u32 %v5123_v27, %v2067_v53 }
 0x1dc   : > { %v2256_v55 = vxor.u32 %v5120_v26, %v2064_v42 }
 0x1dd   : > { %v3463_v7 = vpop.xlane.xlu0 %3462 }
 0x1de   : > { %vm3550_vm3 = vcmp.eq.f32.partialorder %v6951_v51, %v3463_v7  ;;  %vm3551_vm4 = vcmp.eq.f32.partialorder %v6954_v1, %v3463_v7  ;;  %v1999_v51 = vadd.s32 %v6558_v17, %v1948_v35  ;;  %v7273_v1 = vpop.eup %5893  ;;  %v5182_v7 = vshrl.u32 %v2318_v29, 15 }
 0x1df   : > { %v3614_v39 = vsel %vm3550_vm3, %v6542_v10, 256  ;;  %v3615_v37 = vsel %vm3551_vm4, %v10268_v48, 256  ;;  %10295 = vst [vmem:[#allocation113_spill] sm:$0xff] %v7273_v1  ;;  %v5896_v46 = vpop.eup %5895 }
 0x1e0   : > { %vm3776_vm5 = vcmp.lt.s32.totalorder %v3614_v39, %v3615_v37  ;;  %v5898_v6 = vpop.eup %5897  ;;  %v2066_v15 = vadd.s32 %v6568_v24, %v1999_v51  ;;  %v2510_v45 = vxor.u32 %v5182_v7, %v2318_v29  ;;  %v7285_v35 = vmul.f32 %v5896_v46, %v7269_v41 }
 0x1e1   : > { %v7267_v30 = vsel %vm3776_vm5, %v3614_v39, %v3615_v37  ;;  %v1998_v39 = vadd.s32 %v6561_v18, %v1947_v34  ;;  %v7288_v37 = vmul.f32 %v5898_v6, %v7273_v1  ;;  %v1883_v29 = vadd.s32 144, %v6544_v11 }
 0x1e2   : > { %10293 = vst [vmem:[#allocation111_spill] sm:$0xff] %v7267_v30  ;;  %v3779_v9 = vshra.s32 %v7267_v30, 16  ;;  %v5122_v13 = vshrl.u32 %v2066_v15, 16  ;;  %v2574_v44 = vmul.u32 2221713035, %v2510_v45 }
 0x1e3   : > { %10297 = vst [vmem:[#allocation115_spill] sm:$0xff] %v7285_v35  ;;  %v2065_v34 = vadd.s32 %v6568_v24, %v1998_v39  ;;  %v3482_v51 = vmax.f32 %v7285_v35, %v7288_v37  ;;  %v1950_v6 = vmul.u32 2654435761, %v1918_v40  ;;  %v1917_v39 = vadd.s32 %v6547_v12, %v1883_v29 }
 0x1e4   : > { %v7276_v3 = vcvt.s32.f32 %v3779_v9  ;;  %10298 = vst [vmem:[#allocation116_spill] sm:$0xff] %v7288_v37  ;;  %v2511_v9 = vxor.u32 %v5183_v54, %v2319_v21  ;;  %v2258_v21 = vxor.u32 %v5122_v13, %v2066_v15  ;;  %v5246_v54 = vshrl.u32 %v2574_v44, 16 }
 0x1e5   : > { %v5121_v46 = vshrl.u32 %v2065_v34, 16  ;;  %v2003_v45 = vadd.s32 %v6558_v17, %v1950_v6  ;;  %v2004_v5 = vadd.s32 %v6561_v18, %v1950_v6  ;;  %v2323_v37 = vmul.u32 2146121005, %v2259_v36 }
 0x1e6   : > { %10296 = vst [vmem:[#allocation114_spill] sm:$0xff] %v7276_v3  ;;  %3782 = vmin.xlane.f32.xlu0 %v7276_v3  ;;  %v2575_v7 = vmul.u32 2221713035, %v2511_v9  ;;  %v2322_v4 = vmul.u32 2146121005, %v2258_v21  ;;  %v2766_v3 = vxor.u32 %v5246_v54, %v2574_v44 }
 0x1e7   : > { %v2257_v41 = vxor.u32 %v5121_v46, %v2065_v34  ;;  %v1949_v9 = vmul.u32 2654435761, %v1917_v39  ;;  %v2320_v30 = vmul.u32 2146121005, %v2256_v55  ;;  %v2070_v13 = vadd.s32 %v6568_v24, %v2003_v45  ;;  %v7305_v55 = vpop.xlane.xlu1 %737 }
 0x1e8   : > { %v5247_v1 = vshrl.u32 %v2575_v7, 16  ;;  %v5186_v15 = vshrl.u32 %v2322_v4, 15  ;;  %v2071_v27 = vadd.s32 %v6568_v24, %v2004_v5  ;;  %v5310_v53 = vshrl.u32 %v2766_v3, 8 }
 0x1e9   : > { %v2321_v40 = vmul.u32 2146121005, %v2257_v41  ;;  %v5187_v29 = vshrl.u32 %v2323_v37, 15  ;;  %v2001_v42 = vadd.s32 %v6558_v17, %v1949_v9  ;;  %v2002_v26 = vadd.s32 %v6561_v18, %v1949_v9 }
 0x1ea   : > { %v2767_v35 = vxor.u32 %v5247_v1, %v2575_v7  ;;  %v5126_v44 = vshrl.u32 %v2070_v13, 16  ;;  %v2514_v6 = vxor.u32 %v5186_v15, %v2322_v4  ;;  %v5127_v21 = vshrl.u32 %v2071_v27, 16 }
 0x1eb   : > { %v5185_v46 = vshrl.u32 %v2321_v40, 15  ;;  %v2958_v1 = vcvt.s32.f32 %v5310_v53  ;;  %v2515_v7 = vxor.u32 %v5187_v29, %v2323_v37  ;;  %v2068_v41 = vadd.s32 %v6568_v24, %v2001_v42 }
 0x1ec   : > { %v5311_v34 = vshrl.u32 %v2767_v35, 8  ;;  %v2069_v5 = vadd.s32 %v6568_v24, %v2002_v26  ;;  %v2262_v39 = vxor.u32 %v5126_v44, %v2070_v13  ;;  %v2578_v35 = vmul.u32 2221713035, %v2514_v6 }
 0x1ed   : > { %v2513_v3 = vxor.u32 %v5185_v46, %v2321_v40  ;;  %v2263_v45 = vxor.u32 %v5127_v21, %v2071_v27  ;;  %v1885_v9 = vadd.s32 160, %v6544_v11  ;;  %v3022_v62 = vmul.f32 5.9604645e-08, %v2958_v1  ;;  %v7309_v40 = vpop.xlane.xlu2 %740 }
 0x1ee   : > { %3483 = vmax.xlane.f32.xlu0 %v3482_v51  ;;  %v5184_v51 = vshrl.u32 %v2320_v30, 15  ;;  %v2959_v54 = vcvt.s32.f32 %v5311_v34  ;;  %v2579_v20 = vmul.u32 2221713035, %v2515_v7  ;;  %v5124_v4 = vshrl.u32 %v2068_v41, 16  ;;  %10299 = vst [vmem:[#allocation117_spill] sm:$0xff] %v7309_v40 }
 0x1ef   : > { %v5125_v37 = vshrl.u32 %v2069_v5, 16  ;;  %v2577_v29 = vmul.u32 2221713035, %v2513_v3  ;;  %v2326_v42 = vmul.u32 2146121005, %v2262_v39  ;;  %v5250_v34 = vshrl.u32 %v2578_v35, 16 }
 0x1f0   : > { %v2512_v36 = vxor.u32 %v5184_v51, %v2320_v30  ;;  %v3023_v15 = vmul.f32 5.9604645e-08, %v2959_v54  ;;  %v2327_v30 = vmul.u32 2146121005, %v2263_v45  ;;  %v1919_v51 = vadd.s32 %v6547_v12, %v1885_v9  ;;  %v7311_v54 = vpop.xlane.xlu1 %749 }
 0x1f1   : > { %v3086_v13 = vadd.f32 1e-09, %v3022_v62  ;;  %v5251_v26 = vshrl.u32 %v2579_v20, 16  ;;  %v2260_v46 = vxor.u32 %v5124_v4, %v2068_v41  ;;  %v2261_v6 = vxor.u32 %v5125_v37, %v2069_v5  ;;  %10300 = vst [vmem:[#allocation118_spill] sm:$0xff] %v7311_v54  ;;  %v10301_v5 = vld [vmem:[#allocation20_spill] sm:$0xff] }
 0x1f2   : > { %v2576_v53 = vmul.u32 2221713035, %v2512_v36  ;;  %v3087_v27 = vadd.f32 1e-09, %v3023_v15  ;;  %v5249_v21 = vshrl.u32 %v2577_v29, 16  ;;  %v5190_v1 = vshrl.u32 %v2326_v42, 15 }
 0x1f3   : > { %v1951_v7 = vmul.u32 2654435761, %v1919_v51  ;;  %v2770_v36 = vxor.u32 %v5250_v34, %v2578_v35  ;;  %v5191_v3 = vshrl.u32 %v2327_v30, 15  ;;  %5899 = vlog2.f32 %v3086_v13 }
 0x1f4   : > { %v5248_v44 = vshrl.u32 %v2576_v53, 16  ;;  %v2771_v39 = vxor.u32 %v5251_v26, %v2579_v20  ;;  %v2324_v45 = vmul.u32 2146121005, %v2260_v46  ;;  %5901 = vlog2.f32 %v3087_v27 }
 0x1f5   : > { %v2325_v33 = vmul.u32 2146121005, %v2261_v6  ;;  %v2769_v40 = vxor.u32 %v5249_v21, %v2577_v29  ;;  %v2518_v62 = vxor.u32 %v5190_v1, %v2326_v42  ;;  %v2005_v41 = vadd.s32 %v6558_v17, %v1951_v7  ;;  %v7323_v29 = vpop.xlane.xlu2 %743 }
 0x1f6   : > { %v2768_v9 = vxor.u32 %v5248_v44, %v2576_v53  ;;  %v5314_v4 = vshrl.u32 %v2770_v36, 8  ;;  %v2519_v15 = vxor.u32 %v5191_v3, %v2327_v30  ;;  %v7316_v37 = vsub.f32 %v10301_v5, %v7087_v16  ;;  %v10303_v53 = vld [vmem:[#allocation21_spill] sm:$0xff]  ;;  %10305 = vst [vmem:[#allocation119_spill] sm:$0xff] %v7323_v29  ;;  %v10306_v44 = vld [vmem:[#allocation24_spill] sm:$0xff] }
 0x1f7   : > { %v5315_v51 = vshrl.u32 %v2771_v39, 8  ;;  %v5188_v54 = vshrl.u32 %v2324_v45, 15  ;;  %v5189_v34 = vshrl.u32 %v2325_v33, 15  ;;  %v2006_v20 = vadd.s32 %v6561_v18, %v1951_v7 }
 0x1f8   : > { %10302 = vst [vmem:[#allocation20_spill] sm:$0xff] %v7316_v37  ;;  %v5312_v35 = vshrl.u32 %v2768_v9, 8  ;;  %v7321_v26 = vsub.f32 %v10303_v53, %v7087_v16  ;;  %v5313_v42 = vshrl.u32 %v2769_v40, 8  ;;  %v2582_v46 = vmul.u32 2221713035, %v2518_v62  ;;  %v7332_v9 = vpop.xlane.xlu1 %752 }
 0x1f9   : > { %v5900_v13 = vpop.eup %5899  ;;  %v2072_v30 = vadd.s32 %v6568_v24, %v2005_v41  ;;  %v7328_v6 = vsub.f32 %v10306_v44, %v7067_v25  ;;  %v2962_v21 = vcvt.s32.f32 %v5314_v4  ;;  %v2583_v1 = vmul.u32 2221713035, %v2519_v15  ;;  %10308 = vst [vmem:[#allocation120_spill] sm:$0xff] %v7332_v9 }
 0x1fa   : > { %10304 = vst [vmem:[#allocation21_spill] sm:$0xff] %v7321_v26  ;;  %v5902_v27 = vpop.eup %5901  ;;  %v2073_v7 = vadd.s32 %v6568_v24, %v2006_v20  ;;  %v896_v36 = vmul.f32 1.442695, %v7316_v37  ;;  %v2963_v3 = vcvt.s32.f32 %v5315_v51  ;;  %v2516_v16 = vxor.u32 %v5188_v54, %v2324_v45 }
 0x1fb   : > { %10307 = vst [vmem:[#allocation24_spill] sm:$0xff] %v7328_v6  ;;  %v5128_v39 = vshrl.u32 %v2072_v30, 16  ;;  %v3181_v40 = vmul.f32 0.6931472, %v5900_v13  ;;  %v2960_v62 = vcvt.s32.f32 %v5312_v35  ;;  %v2517_v5 = vxor.u32 %v5189_v34, %v2325_v33 }
 0x1fc   : > { %v5129_v41 = vshrl.u32 %v2073_v7, 16  ;;  %v898_v53 = vmul.f32 1.442695, %v7321_v26  ;;  %v3183_v29 = vmul.f32 0.6931472, %v5902_v27  ;;  %v2961_v44 = vcvt.s32.f32 %v5313_v42  ;;  %v10309_v27 = vld [vmem:[#allocation25_spill] sm:$0xff] }
 0x1fd   : > { %v5254_v18 = vshrl.u32 %v2582_v46, 16  ;;  %v900_v4 = vmul.f32 1.442695, %v7328_v6  ;;  %v3026_v15 = vmul.f32 5.9604645e-08, %v2962_v21  ;;  %v5255_v20 = vshrl.u32 %v2583_v1, 16  ;;  %v10311_v26 = vld [vmem:[#allocation97_spill] sm:$0xff] }
 0x1fe   : > { %5903 = vpow2.f32 %v896_v36  ;;  %v3027_v37 = vmul.f32 5.9604645e-08, %v2963_v3  ;;  %v2580_v51 = vmul.u32 2221713035, %v2516_v16  ;;  %v2264_v54 = vxor.u32 %v5128_v39, %v2072_v30  ;;  %v10312_v36 = vld [vmem:[#allocation30_spill] sm:$0xff]  ;;  %v3460_v30 = vpop.xlane.xlu2 %3459 }
 0x1ff   : > { %v3278_v45 = vsub.f32 0.0, %v3181_v40  ;;  %v3024_v24 = vmul.f32 5.9604645e-08, %v2960_v62  ;;  %v2581_v9 = vmul.u32 2221713035, %v2517_v5  ;;  %v2265_v13 = vxor.u32 %v5129_v41, %v2073_v7  ;;  %v10316_v41 = vld [vmem:[#allocation31_spill] sm:$0xff] }
 0x200   : > { %5905 = vpow2.f32 %v898_v53  ;;  %v3279_v33 = vsub.f32 0.0, %v3183_v29  ;;  %v3025_v35 = vmul.f32 5.9604645e-08, %v2961_v44  ;;  %v2774_v34 = vxor.u32 %v5254_v18, %v2582_v46  ;;  %v7344_v7 = vpop.xlane.xlu1 %761 }
 0x201   : > { %v7338_v42 = vsub.f32 %v10309_v27, %v7067_v25  ;;  %5907 = vpow2.f32 %v900_v4  ;;  %v3090_v6 = vadd.f32 1e-09, %v3026_v15  ;;  %v2775_v21 = vxor.u32 %v5255_v20, %v2583_v1  ;;  %10314 = vst [vmem:[#allocation30_spill] sm:$0xff] %v7344_v7 }
 0x202   : > { %v7342_v3 = vsub.f32 %v10312_v36, %v10311_v26  ;;  %v3091_v16 = vadd.f32 1e-09, %v3027_v37  ;;  %v5252_v39 = vshrl.u32 %v2580_v51, 16  ;;  %v2328_v40 = vmul.u32 2146121005, %v2264_v54  ;;  %v10323_v36 = vld [vmem:[#allocation70_spill] sm:$0xff] }
 0x203   : > { %10310 = vst [vmem:[#allocation25_spill] sm:$0xff] %v7338_v42  ;;  %5909 = vrcp.f32 %v3278_v45  ;;  %v3088_v29 = vadd.f32 1e-09, %v3024_v24  ;;  %v5253_v18 = vshrl.u32 %v2581_v9, 16  ;;  %v2329_v46 = vmul.u32 2146121005, %v2265_v13 }
 0x204   : > { %10313 = vst [vmem:[#allocation97_spill] sm:$0xff] %v7342_v3  ;;  %v7346_v62 = vpop.eup %5903  ;;  %5911 = vrcp.f32 %v3279_v33  ;;  %v3089_v25 = vadd.f32 1e-09, %v3025_v35  ;;  %v5318_v5 = vshrl.u32 %v2774_v34, 8  ;;  %v902_v1 = vmul.f32 1.442695, %v7338_v42 }
 0x205   : > { %10315 = vst [vmem:[#allocation121_spill] sm:$0xff] %v7346_v62  ;;  %v7351_v53 = vsub.f32 %v10316_v41, %v10311_v26  ;;  %5913 = vlog2.f32 %v3090_v6  ;;  %v5319_v37 = vshrl.u32 %v2775_v21, 8  ;;  %v904_v4 = vmul.f32 1.442695, %v7342_v3  ;;  %v10320_v33 = vld [vmem:[#allocation36_spill] sm:$0xff]  ;;  %v10322_v21 = vld [vmem:[#allocation69_spill] sm:$0xff] }
 0x206   : > { %v7353_v44 = vpop.eup %5905  ;;  %5915 = vlog2.f32 %v3091_v16  ;;  %v2772_v24 = vxor.u32 %v5252_v39, %v2580_v51  ;;  %v5192_v15 = vshrl.u32 %v2328_v40, 15  ;;  %v3666_v54 = vand.u32 65535, %v7099_v60  ;;  %v7366_v60 = vpop.xlane.xlu2 %755 }
 0x207   : > { %10317 = vst [vmem:[#allocation31_spill] sm:$0xff] %v7351_v53  ;;  %v7356_v20 = vpop.eup %5907  ;;  %5917 = vlog2.f32 %v3088_v29  ;;  %v2773_v45 = vxor.u32 %v5253_v18, %v2581_v9  ;;  %v5193_v13 = vshrl.u32 %v2329_v46, 15  ;;  %v7361_v26 = vsub.f32 %v10320_v33, %v7106_v0  ;;  %v7370_v29 = vpop.xlane.xlu0 %758 }
 0x208   : > { %10318 = vst [vmem:[#allocation122_spill] sm:$0xff] %v7353_v44  ;;  %5919 = vlog2.f32 %v3089_v25  ;;  %v2966_v6 = vcvt.s32.f32 %v5318_v5  ;;  %v906_v34 = vmul.f32 1.442695, %v7351_v53  ;;  %v2967_v27 = vcvt.s32.f32 %v5319_v37 }
 0x209   : > { %10319 = vst [vmem:[#allocation123_spill] sm:$0xff] %v7356_v20  ;;  %v5910_v35 = vpop.eup %5909  ;;  %5921 = vpow2.f32 %v902_v1  ;;  %vm3548_vm6 = vcmp.eq.f32.partialorder %v10322_v21, %v3460_v30  ;;  %vm3549_vm7 = vcmp.eq.f32.partialorder %v10323_v36, %v3460_v30  ;;  %v5316_v9 = vshrl.u32 %v2772_v24, 8 }
 0x20a   : > { %10321 = vst [vmem:[#allocation36_spill] sm:$0xff] %v7361_v26  ;;  %v5912_v51 = vpop.eup %5911  ;;  %v7368_v16 = vxor.u32 %v5192_v15, %v2328_v40  ;;  %5923 = vpow2.f32 %v904_v4  ;;  %v3668_v25 = vcvt.s32.f32 %v3666_v54  ;;  %v5317_v5 = vshrl.u32 %v2773_v45, 8 }
 0x20b   : > { %10324 = vst [vmem:[#allocation69_spill] sm:$0xff] %v7366_v60  ;;  %v5914_v39 = vpop.eup %5913  ;;  %v2521_v1 = vxor.u32 %v5193_v13, %v2329_v46  ;;  %v908_v37 = vmul.f32 1.442695, %v7361_v26  ;;  %v3682_v33 = vand.u32 65535, %v7121_v43  ;;  %v3030_v24 = vmul.f32 5.9604645e-08, %v2966_v6  ;;  %v10396_v60 = vld [vmem:[#allocation54_spill] sm:$0xff] }
 0x20c   : > { %10325 = vst [vmem:[#allocation70_spill] sm:$0xff] %v7370_v29  ;;  %v5916_v41 = vpop.eup %5915  ;;  %v3612_v4 = vsel %vm3548_vm6, %v6542_v10, 256  ;;  %v3613_v15 = vsel %vm3549_vm7, %v10268_v48, 256  ;;  %v3031_v46 = vmul.f32 5.9604645e-08, %v2967_v27  ;;  %v7385_v13 = vmul.f32 %v5910_v35, %v7346_v62  ;;  %v10327_v27 = vld [vmem:[#allocation37_spill] sm:$0xff] }
 0x20d   : > { %v5918_v40 = vpop.eup %5917  ;;  %v2964_v7 = vcvt.s32.f32 %v5316_v9  ;;  %v2584_v43 = vmul.u32 2221713035, %v7368_v16  ;;  %v7391_v21 = vmul.f32 %v5912_v51, %v7353_v44  ;;  %v3191_v29 = vmul.f32 0.6931472, %v5916_v41 }
 0x20e   : > { %v5920_v45 = vpop.eup %5919  ;;  %v2965_v26 = vcvt.s32.f32 %v5317_v5  ;;  %v2585_v30 = vmul.u32 2221713035, %v2521_v1  ;;  %5925 = vpow2.f32 %v906_v34  ;;  %v7395_v36 = vsub.f32 %v10327_v27, %v7106_v0 }
 0x20f   : > { %v7388_v6 = vpop.eup %5921  ;;  %v3094_v35 = vadd.f32 1e-09, %v3030_v24  ;;  %5927 = vpow2.f32 %v908_v37  ;;  %vm3760_vm9 = vcmp.lt.s32.totalorder %v3612_v4, %v3613_v15  ;;  %v3187_v9 = vmul.f32 0.6931472, %v5920_v45  ;;  %v7399_v41 = vpop.xlane.xlu0 %764 }
 0x210   : > { %10326 = vst [vmem:[#allocation124_spill] sm:$0xff] %v7388_v6  ;;  %v3095_v16 = vadd.f32 1e-09, %v3031_v46  ;;  %v3028_v51 = vmul.f32 5.9604645e-08, %v2964_v7  ;;  %v5256_v3 = vshrl.u32 %v2584_v43, 16  ;;  %v3485_v0 = vmax.f32 %v7385_v13, %v7391_v21  ;;  %v10331_v7 = vld [vmem:[#allocation46_spill] sm:$0xff] }
 0x211   : > { %10328 = vst [vmem:[#allocation37_spill] sm:$0xff] %v7395_v36  ;;  %v3283_v34 = vsub.f32 0.0, %v3191_v29  ;;  %v3029_v1 = vmul.f32 5.9604645e-08, %v2965_v26  ;;  %v5257_v24 = vshrl.u32 %v2585_v30, 16  ;;  %v7407_v37 = vsel %vm3760_vm9, %v3612_v4, %v3613_v15 }
 0x212   : > { %10330 = vst [vmem:[#allocation126_spill] sm:$0xff] %v7399_v41  ;;  %5929 = vlog2.f32 %v3094_v35  ;;  %v3281_v45 = vsub.f32 0.0, %v3187_v9  ;;  %v3698_v26 = vand.u32 65535, %v7149_v50  ;;  %v3092_v29 = vadd.f32 1e-09, %v3028_v51 }
 0x213   : > { %5931 = vlog2.f32 %v3095_v16  ;;  %v3763_v27 = vshra.s32 %v7407_v37, 16  ;;  %v2777_v35 = vxor.u32 %v5257_v24, %v2585_v30  ;;  %v910_v9 = vmul.f32 1.442695, %v7395_v36  ;;  %v10335_v16 = vld [vmem:[#allocation47_spill] sm:$0xff] }
 0x215   : > { %v7428_v30 = vcvt.s32.f32 %v3763_v27 }
 0x221   : > { %v7372_v18 = vpop.xlane.xlu1 %3670 }
 0x222   : > { %vm3672_vm8 = vcmp.eq.f32.partialorder %v7104_v19, %v7372_v18  ;;  %v3189_v19 = vmul.f32 0.6931472, %v5914_v39  ;;  %v3684_v39 = vcvt.s32.f32 %v3682_v33  ;;  %v7411_v33 = vsub.f32 %v10331_v7, %v7181_v56 }
 0x223   : > { %v3673_v54 = vsel %vm3672_vm8, %v3668_v25, inf  ;;  %v3185_v25 = vmul.f32 0.6931472, %v5918_v40 }
 0x224   : > { %3674 = vmin.xlane.f32.xlu1 %v3673_v54  ;;  %v7397_v54 = vpop.eup %5923  ;;  %v3282_v53 = vsub.f32 0.0, %v3189_v19  ;;  %10332 = vst [vmem:[#allocation46_spill] sm:$0xff] %v7411_v33 }
 0x225   : > { %10329 = vst [vmem:[#allocation125_spill] sm:$0xff] %v7397_v54  ;;  %v3280_v40 = vsub.f32 0.0, %v3185_v25  ;;  %v7413_v19 = vpop.eup %5925  ;;  %v3093_v25 = vadd.f32 1e-09, %v3029_v1  ;;  %v5321_v1 = vshrl.u32 %v2777_v35, 8 }
 0x226   : > { %10333 = vst [vmem:[#allocation127_spill] sm:$0xff] %v7413_v19  ;;  %5933 = vrcp.f32 %v3282_v53  ;;  %v7416_v4 = vpop.eup %5927  ;;  %v912_v53 = vmul.f32 1.442695, %v7411_v33 }
 0x227   : > { %10334 = vst [vmem:[#allocation128_spill] sm:$0xff] %v7416_v4  ;;  %5935 = vrcp.f32 %v3283_v34  ;;  %v5930_v50 = vpop.eup %5929 }
 0x228   : > { %5937 = vrcp.f32 %v3280_v40  ;;  %v5932_v51 = vpop.eup %5931 }
 0x229   : > { %v7401_v5 = vpop.xlane.xlu2 %3686  ;;  %v3466_v15 = vpop.xlane.xlu1 %3465  ;;  %5939 = vrcp.f32 %v3281_v45  ;;  %v3197_v45 = vmul.f32 0.6931472, %v5930_v50 }
 0x22a   : > { %vm3688_vm10 = vcmp.eq.f32.partialorder %v7138_v59, %v7401_v5  ;;  %v2776_v59 = vxor.u32 %v5256_v3, %v2584_v43  ;;  %v3700_v3 = vcvt.s32.f32 %v3698_v26  ;;  %5941 = vlog2.f32 %v3092_v29 }
 0x22b   : > { %v3689_v46 = vsel %vm3688_vm10, %v3684_v39, inf  ;;  %v7422_v39 = vsub.f32 %v10335_v16, %v7181_v56  ;;  %vm3552_vm11 = vcmp.eq.f32.partialorder %v7081_v57, %v3466_v15  ;;  %5943 = vlog2.f32 %v3093_v25 }
 0x22c   : > { %3690 = vmin.xlane.f32.xlu2 %v3689_v46  ;;  %3486 = vmax.xlane.f32.xlu1 %v3485_v0  ;;  %v5320_v43 = vshrl.u32 %v2776_v59, 8  ;;  %v5934_v24 = vpop.eup %5933  ;;  %vm3553_vm12 = vcmp.eq.f32.partialorder %v7084_v58, %v3466_v15  ;;  %v3714_v29 = vand.u32 65535, %v7161_v38  ;;  %v2969_v16 = vcvt.s32.f32 %v5321_v1 }
 0x22d   : > { %10336 = vst [vmem:[#allocation47_spill] sm:$0xff] %v7422_v39  ;;  %v5936_v56 = vpop.eup %5935  ;;  %v3617_v27 = vsel %vm3553_vm12, %v10268_v48, 256  ;;  %5945 = vpow2.f32 %v910_v9  ;;  %v3286_v58 = vsub.f32 0.0, %v3197_v45 }
 0x22e   : > { %v5938_v26 = vpop.eup %5937  ;;  %v2968_v59 = vcvt.s32.f32 %v5320_v43  ;;  %v7452_v43 = vmul.f32 %v5934_v24, %v7397_v54  ;;  %v7455_v57 = vmul.f32 %v5936_v56, %v7413_v19  ;;  %5947 = vpow2.f32 %v912_v53 }
 0x22f   : > { %v3033_v24 = vmul.f32 5.9604645e-08, %v2969_v16 }
 0x230   : > { %10337 = vst [vmem:[#allocation129_spill] sm:$0xff] %v7455_v57  ;;  %v3491_v9 = vmax.f32 %v7452_v43, %v7455_v57 }
 0x231   : > { %v3469_v0 = vpop.xlane.xlu2 %3468  ;;  %v7426_v34 = vpop.xlane.xlu0 %3702 }
 0x232   : > { %vm3554_vm13 = vcmp.eq.f32.partialorder %v7131_v63, %v3469_v0  ;;  %vm3555_vm14 = vcmp.eq.f32.partialorder %v7136_v49, %v3469_v0  ;;  %vm3704_vm15 = vcmp.eq.f32.partialorder %v7156_v22, %v7426_v34  ;;  %v3199_v63 = vmul.f32 0.6931472, %v5932_v51  ;;  %v5940_v49 = vpop.eup %5939 }
 0x233   : > { %v3618_v40 = vsel %vm3554_vm13, %v6542_v10, 256  ;;  %v3619_v7 = vsel %vm3555_vm14, %v10268_v48, 256  ;;  %v3705_v46 = vsel %vm3704_vm15, %v3700_v3, inf  ;;  %v3616_v22 = vsel %vm3552_vm11, %v6542_v10, 256  ;;  %v5942_v50 = vpop.eup %5941 }
 0x234   : > { %3766 = vmin.xlane.f32.xlu2 %v7428_v30  ;;  %3706 = vmin.xlane.f32.xlu1 %v3705_v46  ;;  %vm3808_vm0 = vcmp.lt.s32.totalorder %v3618_v40, %v3619_v7  ;;  %v914_v3 = vmul.f32 1.442695, %v7422_v39  ;;  %v5944_v51 = vpop.eup %5943  ;;  %vm3792_vm2 = vcmp.lt.s32.totalorder %v3616_v22, %v3617_v27  ;;  %v3032_v0 = vmul.f32 5.9604645e-08, %v2968_v59 }
 0x235   : > { %v7445_v25 = vpop.xlane.xlu1 %3718  ;;  %v7447_v35 = vsel %vm3808_vm0, %v3618_v40, %v3619_v7  ;;  %v3716_v40 = vcvt.s32.f32 %v3714_v29  ;;  %v3287_v7 = vsub.f32 0.0, %v3199_v63  ;;  %v3193_v56 = vmul.f32 0.6931472, %v5942_v50  ;;  %v7476_v16 = vpop.eup %5945 }
 0x236   : > { %v3811_v38 = vshra.s32 %v7447_v35, 16  ;;  %vm3720_vm1 = vcmp.eq.f32.partialorder %v7178_v14, %v7445_v25  ;;  %5949 = vpow2.f32 %v914_v3  ;;  %v1887_v46 = vadd.s32 176, %v6544_v11  ;;  %10342 = vst [vmem:[#allocation134_spill] sm:$0xff] %v7476_v16 }
 0x237   : > { %v3721_v45 = vsel %vm3720_vm1, %v3716_v40, inf  ;;  %v3730_v14 = vand.u32 65535, %v7204_v32  ;;  %v3195_v53 = vmul.f32 0.6931472, %v5944_v51  ;;  %v7471_v29 = vmul.f32 %v5938_v26, %v7356_v20  ;;  %v7481_v26 = vpop.eup %5947 }
 0x238   : > { %v7457_v15 = vcvt.s32.f32 %v3811_v38  ;;  %v7467_v38 = vsel %vm3792_vm2, %v3616_v22, %v3617_v27  ;;  %v7474_v63 = vmul.f32 %v5940_v49, %v7388_v6  ;;  %5951 = vrcp.f32 %v3286_v58  ;;  %10343 = vst [vmem:[#allocation135_spill] sm:$0xff] %v7481_v26 }
 0x239   : > { %v7461_v1 = vpop.xlane.xlu2 %767  ;;  %10339 = vst [vmem:[#allocation131_spill] sm:$0xff] %v7467_v38  ;;  %v3096_v59 = vadd.f32 1e-09, %v3032_v0  ;;  %5953 = vrcp.f32 %v3287_v7  ;;  %v3097_v3 = vadd.f32 1e-09, %v3033_v24  ;;  %v3472_v22 = vpop.xlane.xlu0 %3471  ;;  %v3795_v32 = vshra.s32 %v7467_v38, 16 }
 0x23a   : > { %10338 = vst [vmem:[#allocation130_spill] sm:$0xff] %v7461_v1  ;;  %3814 = vmin.xlane.f32.xlu0 %v7457_v15  ;;  %v3284_v27 = vsub.f32 0.0, %v3193_v56  ;;  %v3285_v58 = vsub.f32 0.0, %v3195_v53  ;;  %v7486_v0 = vadd.s32 %v6547_v12, %v1887_v46  ;;  %vm3556_vm6 = vcmp.eq.f32.partialorder %v7159_v28, %v3472_v22 }
 0x23b   : > { %10340 = vst [vmem:[#allocation132_spill] sm:$0xff] %v7471_v29  ;;  %5955 = vlog2.f32 %v3096_v59  ;;  %vm3557_vm7 = vcmp.eq.f32.partialorder %v7164_v8, %v3472_v22  ;;  %v7498_v56 = vcvt.s32.f32 %v3795_v32  ;;  %v3620_v28 = vsel %vm3556_vm6, %v6542_v10, 256 }
 0x23c   : > { %3722 = vmin.xlane.f32.xlu2 %v3721_v45  ;;  %3492 = vmax.xlane.f32.xlu1 %v3491_v9  ;;  %10341 = vst [vmem:[#allocation133_spill] sm:$0xff] %v7474_v63  ;;  %v7488_v40 = vpop.eup %5949  ;;  %5957 = vlog2.f32 %v3097_v3  ;;  %v3621_v8 = vsel %vm3557_vm7, %v10268_v48, 256  ;;  %v3746_v59 = vand.u32 65535, %v7225_v47  ;;  %v1953_v3 = vmul.u32 2654435761, %v7486_v0  ;;  %v5571_v0 = vld [vmem:[%s9853_s4 + $0x30] sm:$0xff] }
 0x23d   : > { %v3475_v50 = vpop.xlane.xlu1 %3474  ;;  %10344 = vst [vmem:[#allocation136_spill] sm:$0xff] %v7488_v40  ;;  %5959 = vrcp.f32 %v3284_v27  ;;  %v1886_v47 = vadd.s32 168, %v6544_v11  ;;  %vm3824_vm9 = vcmp.lt.s32.totalorder %v3620_v28, %v3621_v8  ;;  %v1891_v38 = vadd.s32 208, %v6544_v11 }
 0x23e   : > { %vm3558_vm3 = vcmp.eq.f32.partialorder %v7194_v52, %v3475_v50  ;;  %vm3559_vm4 = vcmp.eq.f32.partialorder %v7197_v2, %v3475_v50  ;;  %v3488_v52 = vmax.f32 %v7471_v29, %v7474_v63  ;;  %v3732_v2 = vcvt.s32.f32 %v3730_v14  ;;  %v5952_v9 = vpop.eup %5951  ;;  %10346 = vst [vmem:[#allocation138_spill] sm:$0xff] %v7498_v56  ;;  %v5580_v50 = vld [vmem:[%s9853_s4 + $0x78] sm:$0xff] }
 0x23f   : > { %v3622_v49 = vsel %vm3558_vm3, %v6542_v10, 256  ;;  %v3623_v51 = vsel %vm3559_vm4, %v10268_v48, 256  ;;  %v5954_v46 = vpop.eup %5953  ;;  %5961 = vrcp.f32 %v3285_v58  ;;  %v7517_v27 = vmul.f32 %v5952_v9, %v7481_v26  ;;  %v10350_v58 = vld [vmem:[#allocation48_spill] sm:$0xff]  ;;  %4649 = vmatpush.bf16.msra.mxu3 %v5580_v50  ;;  %v10354_v50 = vld [vmem:[#allocation49_spill] sm:$0xff]  ;;  %v10408_v63 = vld [vmem:[#allocation62_spill] sm:$0xff] }
 0x240   : > { %vm3840_vm5 = vcmp.lt.s32.totalorder %v3622_v49, %v3623_v51  ;;  %v3748_v1 = vcvt.s32.f32 %v3746_v59  ;;  %v2009_v41 = vadd.s32 %v6558_v17, %v1953_v3  ;;  %v5570_v59 = vld [vmem:[%s9853_s4 + $0x28] sm:$0xff]  ;;  %vm1828_vm2 = vcmask 7168  }
 0x241   : > { %v7494_v7 = vpop.xlane.xlu2 %3734  ;;  %v7496_v24 = vsel %vm3840_vm5, %v3622_v49, %v3623_v51  ;;  %v5956_v22 = vpop.eup %5955  ;;  %10348 = vst [vmem:[#allocation140_spill] sm:$0xff] %v7517_v27  ;;  %v7520_v49 = vmul.f32 %v5954_v46, %v7488_v40 }
 0x242   : > { %10345 = vst [vmem:[#allocation137_spill] sm:$0xff] %v7496_v24  ;;  %3489 = vmax.xlane.f32.xlu0 %v3488_v52  ;;  %vm3736_vm8 = vcmp.eq.f32.partialorder %v7217_v23, %v7494_v7  ;;  %v3843_v14 = vshra.s32 %v7496_v24, 16  ;;  %v5572_v23 = vld [vmem:[%s9853_s4 + $0x38] sm:$0xff]  ;;  %v5958_v51 = vpop.eup %5957  ;;  %v7525_v52 = vsub.f32 %v10350_v58, %v7305_v55  ;;  %v7541_v58 = vsub.f32 %v10354_v50, %v7305_v55 }
 0x243   : > { %v3737_v45 = vsel %vm3736_vm8, %v3732_v2, inf  ;;  %10349 = vst [vmem:[#allocation141_spill] sm:$0xff] %v7520_v49  ;;  %4560 = vmatpush.bf16.msra.mxu2 %v5572_v23  ;;  %v5579_v2 = vld [vmem:[%s9853_s4 + $0x70] sm:$0xff]  ;;  %v5960_v9 = vpop.eup %5959  ;;  %v3201_v40 = vmul.f32 0.6931472, %v5956_v22  ;;  %v7551_v55 = vsel %vm3824_vm9, %v3620_v28, %v3621_v8  ;;  %v5578_v22 = vld [vmem:[%s9853_s4 + $0x68] sm:$0xff] }
 0x244   : > { %3798 = vmin.xlane.f32.xlu2 %v7498_v56  ;;  %3738 = vmin.xlane.f32.xlu1 %v3737_v45  ;;  %10351 = vst [vmem:[#allocation48_spill] sm:$0xff] %v7525_v52  ;;  %v7535_v46 = vcvt.s32.f32 %v3843_v14  ;;  %v10353_v45 = vld [vmem:[#allocation107_spill] sm:$0xff]  ;;  %v1920_v14 = vadd.s32 %v6547_v12, %v1886_v47  ;;  %v916_v47 = vmul.f32 1.442695, %v7525_v52  ;;  %v918_v28 = vmul.f32 1.442695, %v7541_v58 }
 0x245   : > { %v3481_v53 = vpop.xlane.xlu1 %3480  ;;  %v7514_v32 = vpop.xlane.xlu0 %3750  ;;  %10355 = vst [vmem:[#allocation107_spill] sm:$0xff] %v7541_v58  ;;  %4650 = vmatpush.bf16.msra.mxu3 %v5579_v2  ;;  %v10359_v8 = vld [vmem:[#allocation14_spill] sm:$0xff]  ;;  %v3827_v2 = vshra.s32 %v7551_v55, 16  ;;  %v3288_v50 = vsub.f32 0.0, %v3201_v40  ;;  %v10361_v40 = vld [vmem:[#allocation13_spill] sm:$0xff] }
 0x246   : > { %10347 = vst [vmem:[#allocation139_spill] sm:$0xff] %v7514_v32  ;;  %vm3562_vm10 = vcmp.eq.f32.partialorder %v7212_v31, %v3481_v53  ;;  %vm3563_vm11 = vcmp.eq.f32.partialorder %v7220_v61, %v3481_v53  ;;  %vm3752_vm12 = vcmp.eq.f32.partialorder %v10353_v45, %v7514_v32  ;;  %v5962_v23 = vpop.eup %5961  ;;  %v3497_v31 = vmax.f32 %v7517_v27, %v7520_v49  ;;  %v10363_v58 = vld [vmem:[#allocation109_spill] sm:$0xff]  ;;  %v10364_v52 = vld [vmem:[#allocation110_spill] sm:$0xff] }
 0x247   : > { %10352 = vst [vmem:[#allocation142_spill] sm:$0xff] %v7535_v46  ;;  %v3203_v61 = vmul.f32 0.6931472, %v5958_v51  ;;  %v3626_v53 = vsel %vm3562_vm10, %v6542_v10, 256  ;;  %v3627_v45 = vsel %vm3563_vm11, %v10268_v48, 256  ;;  %v3753_v39 = vsel %vm3752_vm12, %v3748_v1, inf  ;;  %4561 = vmatpush.bf16.msra.mxu2 %v5571_v0 }
 0x248   : > { %10356 = vst [vmem:[#allocation49_spill] sm:$0xff] %v7551_v55  ;;  %v7561_v51 = vmul.f32 %v5960_v9, %v7416_v4  ;;  %v7564_v1 = vmul.f32 %v5962_v23, %v7476_v16  ;;  %v2076_v0 = vadd.s32 %v10359_v8, %v2009_v41  ;;  %vm3872_vm13 = vcmp.lt.s32.totalorder %v3626_v53, %v3627_v45  ;;  %v5577_v9 = vld [vmem:[%s9853_s4 + $0x60] sm:$0xff] }
 0x249   : > { %v1952_v26 = vmul.u32 2654435761, %v1920_v14  ;;  %v3289_v33 = vsub.f32 0.0, %v3203_v61  ;;  %4651 = vmatpush.bf16.msra.mxu3 %v5578_v22  ;;  %5963 = vpow2.f32 %v916_v47  ;;  %v2010_v61 = vadd.s32 %v10361_v40, %v1953_v3  ;;  %v5576_v3 = vld [vmem:[%s9853_s4 + $0x58] sm:$0xff] }
 0x24a   : > { %3846 = vmin.xlane.f32.xlu0 %v7535_v46  ;;  %10357 = vst [vmem:[#allocation143_spill] sm:$0xff] %v7561_v51  ;;  %v3494_v41 = vmax.f32 %v7561_v51, %v7564_v1  ;;  %5965 = vpow2.f32 %v918_v28  ;;  %v7580_v14 = vcvt.s32.f32 %v3827_v2  ;;  %v10366_v2 = vld [vmem:[#allocation111_spill] sm:$0xff]  ;;  %v10399_v51 = vld [vmem:[#allocation58_spill] sm:$0xff]  ;;  %v10405_v46 = vld [vmem:[#allocation64_spill] sm:$0xff] }
 0x24b   : > { %10358 = vst [vmem:[#allocation144_spill] sm:$0xff] %v7564_v1  ;;  %4562 = vmatpush.bf16.msra.mxu2 %v5570_v59  ;;  %5967 = vrcp.f32 %v3288_v50  ;;  %v5132_v59 = vshrl.u32 %v2076_v0, 16  ;;  %v2007_v22 = vadd.s32 %v6558_v17, %v1952_v26  ;;  %v3778_v50 = vand.u32 65535, %v10366_v2  ;;  %v10398_v1 = vld [vmem:[#allocation50_spill] sm:$0xff] }
 0x24c   : > { %3498 = vmax.xlane.f32.xlu1 %v3497_v31  ;;  %3754 = vmin.xlane.f32.xlu2 %v3753_v39  ;;  %v5569_v39 = vld [vmem:[%s9853_s4 + $0x20] sm:$0xff]  ;;  %v7577_v31 = vsel %vm3872_vm13, %v3626_v53, %v3627_v45  ;;  %10362 = vst [vmem:[#allocation146_spill] sm:$0xff] %v7580_v14  ;;  %5969 = vrcp.f32 %v3289_v33  ;;  %v5568_v53 = vld [vmem:[%s9853_s4 + $0x18] sm:$0xff]  ;;  %v2008_v45 = vadd.s32 %v10361_v40, %v1952_v26 }
 0x24d   : > { %v3478_v23 = vpop.xlane.xlu0 %3477  ;;  %10360 = vst [vmem:[#allocation145_spill] sm:$0xff] %v7577_v31  ;;  %4652 = vmatpush.bf16.msra.mxu3 %v5577_v9  ;;  %v3875_v47 = vshra.s32 %v7577_v31, 16  ;;  %v2268_v26 = vxor.u32 %v5132_v59, %v2076_v0  ;;  %v3780_v2 = vcvt.s32.f32 %v3778_v50  ;;  %v7690_v55 = vmul.f32 %v10399_v51, %v10398_v1  ;;  %v10402_v1 = vld [vmem:[#allocation55_spill] sm:$0xff] }
 0x24e   : > { %vm3560_vm14 = vcmp.eq.f32.partialorder %v10363_v58, %v3478_v23  ;;  %vm3561_vm15 = vcmp.eq.f32.partialorder %v10364_v52, %v3478_v23  ;;  %v2077_v58 = vadd.s32 %v10359_v8, %v2010_v61  ;;  %v2075_v23 = vadd.s32 %v10359_v8, %v2008_v45 }
 0x24f   : > { %4563 = vmatpush.bf16.msra.mxu2 %v5569_v39  ;;  %v7595_v52 = vpop.eup %5963  ;;  %v3624_v33 = vsel %vm3560_vm14, %v6542_v10, 256  ;;  %v3625_v28 = vsel %vm3561_vm15, %v10268_v48, 256  ;;  %v2074_v39 = vadd.s32 %v10359_v8, %v2007_v22  ;;  %v7604_v16 = vcvt.s32.f32 %v3875_v47 }
 0x250   : > { %10365 = vst [vmem:[#allocation109_spill] sm:$0xff] %v7595_v52  ;;  %v7601_v9 = vpop.eup %5965  ;;  %vm3856_vm0 = vcmp.lt.s32.totalorder %v3624_v33, %v3625_v28  ;;  %v5133_v36 = vshrl.u32 %v2077_v58, 16  ;;  %v1888_v22 = vadd.s32 184, %v6544_v11  ;;  %v2332_v0 = vmul.u32 2146121005, %v2268_v26 }
 0x251   : > { %10367 = vst [vmem:[#allocation110_spill] sm:$0xff] %v7601_v9  ;;  %4653 = vmatpush.bf16.msra.mxu3 %v5576_v3  ;;  %v5130_v19 = vshrl.u32 %v2074_v39, 16  ;;  %v5131_v59 = vshrl.u32 %v2075_v23, 16  ;;  %v7618_v54 = vsel %vm3856_vm0, %v3624_v33, %v3625_v28 }
 0x252   : > { %3495 = vmax.xlane.f32.xlu0 %v3494_v41  ;;  %v5968_v41 = vpop.eup %5967  ;;  %10368 = vst [vmem:[#allocation111_spill] sm:$0xff] %v7604_v16  ;;  %v2269_v6 = vxor.u32 %v5133_v36, %v2077_v58  ;;  %v1922_v42 = vadd.s32 %v6547_v12, %v1888_v22  ;;  %v3859_v20 = vshra.s32 %v7618_v54, 16 }
 0x253   : > { %4564 = vmatpush.bf16.msra.mxu2 %v5568_v53  ;;  %v5970_v61 = vpop.eup %5969  ;;  %v10370_v53 = vld [vmem:[#allocation114_spill] sm:$0xff]  ;;  %v7613_v45 = vmul.f32 %v5968_v41, %v7595_v52  ;;  %10373 = vst [vmem:[#allocation149_spill] sm:$0xff] %v7618_v54  ;;  %v2266_v50 = vxor.u32 %v5130_v19, %v2074_v39 }
 0x254   : > { %3830 = vmin.xlane.f32.xlu2 %v7580_v14  ;;  %v7616_v47 = vmul.f32 %v5970_v61, %v7601_v9  ;;  %v2333_v44 = vmul.u32 2146121005, %v2269_v6  ;;  %v1954_v52 = vmul.u32 2654435761, %v1922_v42  ;;  %v7624_v61 = vcvt.s32.f32 %v3859_v20 }
 0x255   : > { %10371 = vst [vmem:[#allocation114_spill] sm:$0xff] %v7613_v45  ;;  %v2330_v41 = vmul.u32 2146121005, %v2266_v50  ;;  %v1889_v20 = vadd.s32 192, %v6544_v11 }
 0x256   : > { %10372 = vst [vmem:[#allocation148_spill] sm:$0xff] %v7616_v47  ;;  %v3500_v26 = vmax.f32 %v7613_v45, %v7616_v47  ;;  %v5197_v36 = vshrl.u32 %v2333_v44, 15  ;;  %v2011_v58 = vadd.s32 %v6558_v17, %v1954_v52  ;;  %v2012_v39 = vadd.s32 %v10361_v40, %v1954_v52 }
 0x257   : > { %10374 = vst [vmem:[#allocation150_spill] sm:$0xff] %v7624_v61  ;;  %v5194_v19 = vshrl.u32 %v2330_v41, 15  ;;  %v1923_v45 = vadd.s32 %v6547_v12, %v1889_v20 }
 0x258   : > { %v2525_v47 = vxor.u32 %v5197_v36, %v2333_v44  ;;  %v2078_v6 = vadd.s32 %v10359_v8, %v2011_v58  ;;  %v2079_v42 = vadd.s32 %v10359_v8, %v2012_v39 }
 0x259   : > { %v7606_v4 = vpop.xlane.xlu0 %3782  ;;  %v1955_v36 = vmul.u32 2654435761, %v1923_v45  ;;  %v10380_v45 = vld [vmem:[#allocation34_spill] sm:$0xff] }
 0x25a   : > { %10369 = vst [vmem:[#allocation147_spill] sm:$0xff] %v7606_v4  ;;  %3878 = vmin.xlane.f32.xlu0 %v7604_v16  ;;  %vm3784_vm1 = vcmp.eq.f32.partialorder %v10370_v53, %v7606_v4  ;;  %v5196_v53 = vshrl.u32 %v2332_v0, 15  ;;  %v2589_v50 = vmul.u32 2221713035, %v2525_v47  ;;  %v10394_v4 = vld [vmem:[#allocation53_spill] sm:$0xff] }
 0x25b   : > { %v3785_v3 = vsel %vm3784_vm1, %v3780_v2, inf  ;;  %v2267_v2 = vxor.u32 %v5131_v59, %v2075_v23  ;;  %v2522_v23 = vxor.u32 %v5194_v19, %v2330_v41  ;;  %v2013_v47 = vadd.s32 %v6558_v17, %v1955_v36 }
 0x25c   : > { %3786 = vmin.xlane.f32.xlu2 %v3785_v3  ;;  %v2524_v33 = vxor.u32 %v5196_v53, %v2332_v0  ;;  %v5134_v53 = vshrl.u32 %v2078_v6, 16 }
 0x25d   : > { %v2331_v28 = vmul.u32 2146121005, %v2267_v2  ;;  %v5135_v2 = vshrl.u32 %v2079_v42, 16 }
 0x25e   : > { %v2588_v22 = vmul.u32 2221713035, %v2524_v33  ;;  %v5261_v33 = vshrl.u32 %v2589_v50, 16  ;;  %v2270_v44 = vxor.u32 %v5134_v53, %v2078_v6  ;;  %v10378_v6 = vld [vmem:[#allocation29_spill] sm:$0xff] }
 0x25f   : > { %v5195_v3 = vshrl.u32 %v2331_v28, 15  ;;  %v2271_v41 = vxor.u32 %v5135_v2, %v2079_v42 }
 0x260   : > { %v5260_v0 = vshrl.u32 %v2588_v22, 16  ;;  %v2781_v39 = vxor.u32 %v5261_v33, %v2589_v50  ;;  %v2334_v54 = vmul.u32 2146121005, %v2270_v44  ;;  %v10383_v33 = vld [vmem:[#allocation32_spill] sm:$0xff] }
 0x261   : > { %v2523_v59 = vxor.u32 %v5195_v3, %v2331_v28  ;;  %v2335_v49 = vmul.u32 2146121005, %v2271_v41  ;;  %v10375_v28 = vld [vmem:[#allocation22_spill] sm:$0xff]  ;;  %v10376_v3 = vld [vmem:[#allocation28_spill] sm:$0xff] }
 0x262   : > { %3501 = vmax.xlane.f32.xlu0 %v3500_v26  ;;  %v2586_v26 = vmul.u32 2221713035, %v2522_v23  ;;  %v2780_v9 = vxor.u32 %v5260_v0, %v2588_v22  ;;  %v7636_v23 = vmul.f32 %v10376_v3, %v10375_v28  ;;  %v2014_v0 = vadd.s32 %v10361_v40, %v1955_v36  ;;  %v10384_v44 = vld [vmem:[#allocation40_spill] sm:$0xff]  ;;  %v10386_v28 = vld [vmem:[#allocation41_spill] sm:$0xff] }
 0x263   : > { %v2587_v52 = vmul.u32 2221713035, %v2523_v59  ;;  %v10377_v59 = vld [vmem:[#allocation23_spill] sm:$0xff]  ;;  %v5325_v2 = vshrl.u32 %v2781_v39, 8  ;;  %v7653_v41 = vmul.f32 %v10384_v44, %v10383_v33  ;;  %v1890_v36 = vadd.s32 200, %v6544_v11  ;;  %v5575_v33 = vld [vmem:[%s9853_s4 + $0x50] sm:$0xff] }
 0x264   : > { %3862 = vmin.xlane.f32.xlu2 %v7624_v61  ;;  %v5258_v62 = vshrl.u32 %v2586_v26, 16  ;;  %v5324_v19 = vshrl.u32 %v2780_v9, 8  ;;  %v7641_v42 = vmul.f32 %v10378_v6, %v10377_v59  ;;  %v10379_v9 = vld [vmem:[#allocation26_spill] sm:$0xff]  ;;  %v10389_v39 = vld [vmem:[#allocation39_spill] sm:$0xff]  ;;  %v10392_v44 = vld [vmem:[#allocation52_spill] sm:$0xff]  ;;  %4654 = vmatpush.bf16.msra.mxu3 %v5575_v33 }
 0x265   : > { %v5259_v58 = vshrl.u32 %v2587_v52, 16  ;;  %v7645_v50 = vmul.f32 %v10380_v45, %v10379_v9  ;;  %v10387_v6 = vld [vmem:[#allocation38_spill] sm:$0xff]  ;;  %v10388_v9 = vld [vmem:[#allocation44_spill] sm:$0xff]  ;;  %v5199_v45 = vshrl.u32 %v2335_v49, 15  ;;  %v2973_v14 = vcvt.s32.f32 %v5325_v2  ;;  %v10401_v2 = vld [vmem:[#allocation59_spill] sm:$0xff] }
 0x266   : > { %v2778_v61 = vxor.u32 %v5258_v62, %v2586_v26  ;;  %v2972_v20 = vcvt.s32.f32 %v5324_v19  ;;  %v10381_v62 = vld [vmem:[#allocation27_spill] sm:$0xff]  ;;  %v5198_v19 = vshrl.u32 %v2334_v54, 15  ;;  %v7662_v3 = vmul.f32 %v10388_v9, %v10387_v6  ;;  %v10391_v9 = vld [vmem:[#allocation42_spill] sm:$0xff] }
 0x267   : > { %v2779_v22 = vxor.u32 %v5259_v58, %v2587_v52  ;;  %v10382_v26 = vld [vmem:[#allocation35_spill] sm:$0xff]  ;;  %v10385_v58 = vld [vmem:[#allocation33_spill] sm:$0xff]  ;;  %v2081_v6 = vadd.s32 %v10359_v8, %v2014_v0  ;;  %v7678_v16 = vmul.f32 %v10392_v44, %v10391_v9  ;;  %v2527_v33 = vxor.u32 %v5199_v45, %v2335_v49  ;;  %v10404_v44 = vld [vmem:[#allocation56_spill] sm:$0xff] }
 0x268   : > { %v7649_v53 = vmul.f32 %v10382_v26, %v10381_v62  ;;  %v5322_v52 = vshrl.u32 %v2778_v61, 8  ;;  %v7658_v59 = vmul.f32 %v10386_v28, %v10385_v58  ;;  %v2080_v62 = vadd.s32 %v10359_v8, %v2013_v47  ;;  %v10390_v26 = vld [vmem:[#allocation45_spill] sm:$0xff]  ;;  %v10393_v47 = vld [vmem:[#allocation43_spill] sm:$0xff] }
 0x269   : > { %v7667_v27 = vmul.f32 %v10390_v26, %v10389_v39  ;;  %v5567_v61 = vld [vmem:[%s9853_s4 + $0x10] sm:$0xff]  ;;  %v3036_v58 = vmul.f32 5.9604645e-08, %v2972_v20  ;;  %v5323_v28 = vshrl.u32 %v2779_v22, 8  ;;  %v7682_v39 = vmul.f32 %v10394_v4, %v10393_v47  ;;  %v5566_v20 = vld [vmem:[%s9853_s4 + $0x8] sm:$0xff]  ;;  %v10400_v47 = vld [vmem:[#allocation51_spill] sm:$0xff] }
 0x26a   : > { %v10395_v26 = vld [vmem:[#allocation117_spill] sm:$0xff]  ;;  %4565 = vmatpush.bf16.msra.mxu2 %v5567_v61  ;;  %v5574_v22 = vld [vmem:[%s9853_s4 + $0x48] sm:$0xff]  ;;  %v2970_v0 = vcvt.s32.f32 %v5322_v52  ;;  %v2526_v9 = vxor.u32 %v5198_v19, %v2334_v54  ;;  %v7701_v4 = vmul.f32 %v10401_v2, %v10400_v47  ;;  %v5136_v51 = vshrl.u32 %v2080_v62, 16  ;;  %v10410_v49 = vld [vmem:[#allocation63_spill] sm:$0xff] }
 0x26b   : > { %v7686_v31 = vsub.f32 %v10396_v60, %v10395_v26  ;;  %v1924_v60 = vadd.s32 %v6547_v12, %v1890_v36  ;;  %v7705_v61 = vsub.f32 %v10402_v1, %v10395_v26  ;;  %v7709_v32 = vmul.f32 %v10405_v46, %v10404_v44  ;;  %v10406_v54 = vld [vmem:[#allocation57_spill] sm:$0xff]  ;;  %v10409_v47 = vld [vmem:[#allocation68_spill] sm:$0xff]  ;;  %v10411_v45 = vld [vmem:[#allocation71_spill] sm:$0xff]  ;;  %4655 = vmatpush.bf16.msra.mxu3 %v5574_v22 }
 0x26c   : > { %v3100_v24 = vadd.f32 1e-09, %v3036_v58  ;;  %v2971_v56 = vcvt.s32.f32 %v5323_v28  ;;  %v5137_v52 = vshrl.u32 %v2081_v6, 16  ;;  %v10407_v19 = vld [vmem:[#allocation65_spill] sm:$0xff]  ;;  %v7717_v2 = vmul.f32 %v10409_v47, %v10408_v63  ;;  %v10412_v63 = vld [vmem:[#allocation119_spill] sm:$0xff]  ;;  %v10413_v47 = vld [vmem:[#allocation60_spill] sm:$0xff] }
 0x26d   : > { %10397 = vst [vmem:[#allocation22_spill] sm:$0xff] %v7686_v31  ;;  %v7713_v36 = vmul.f32 %v10407_v19, %v10406_v54  ;;  %v920_v26 = vmul.f32 1.442695, %v7686_v31  ;;  %v3037_v1 = vmul.f32 5.9604645e-08, %v2973_v14  ;;  %v7722_v29 = vmul.f32 %v10411_v45, %v10410_v49  ;;  %v5565_v14 = vld [vmem:[%s9853_s4] sm:$0xff] }
 0x26e   : > { %10403 = vst [vmem:[#allocation23_spill] sm:$0xff] %v7705_v61  ;;  %4566 = vmatpush.bf16.msra.mxu2 %v5566_v20  ;;  %v3034_v44 = vmul.f32 5.9604645e-08, %v2970_v0  ;;  %v2590_v28 = vmul.u32 2221713035, %v2526_v9  ;;  %v1956_v58 = vmul.u32 2654435761, %v1924_v60  ;;  %v2272_v19 = vxor.u32 %v5136_v51, %v2080_v62 }
 0x26f   : > { %v922_v46 = vmul.f32 1.442695, %v7705_v61  ;;  %v2591_v54 = vmul.u32 2221713035, %v2527_v33  ;;  %v7728_v57 = vsub.f32 %v10413_v47, %v10412_v63  ;;  %v5573_v20 = vld [vmem:[%s9853_s4 + $0x40] sm:$0xff]  ;;  %5971 = vlog2.f32 %v3100_v24  ;;  %v10415_v9 = vld [vmem:[#allocation80_spill] sm:$0xff] }
 0x270   : > { %v3035_v22 = vmul.f32 5.9604645e-08, %v2971_v56  ;;  %v2273_v0 = vxor.u32 %v5137_v52, %v2081_v6  ;;  %v10416_v60 = vld [vmem:[#allocation88_spill] sm:$0xff]  ;;  %v10417_v62 = vld [vmem:[#allocation81_spill] sm:$0xff]  ;;  %v3101_v61 = vadd.f32 1e-09, %v3037_v1  ;;  %5973 = vpow2.f32 %v920_v26  ;;  %4656 = vmatpush.bf16.msra.mxu3 %v5573_v20 }
 0x271   : > { %10414 = vst [vmem:[#allocation26_spill] sm:$0xff] %v7728_v57  ;;  %v7738_v51 = vmul.f32 %v10416_v60, %v10415_v9  ;;  %v10418_v33 = vld [vmem:[#allocation89_spill] sm:$0xff]  ;;  %v3098_v31 = vadd.f32 1e-09, %v3034_v44  ;;  %v5262_v24 = vshrl.u32 %v2590_v28, 16  ;;  %v2015_v56 = vadd.s32 %v6558_v17, %v1956_v58  ;;  %v10421_v26 = vld [vmem:[#allocation108_spill] sm:$0xff] }
 0x272   : > { %v7742_v49 = vmul.f32 %v10418_v33, %v10417_v62  ;;  %v10419_v47 = vld [vmem:[#allocation61_spill] sm:$0xff]  ;;  %4567 = vmatpush.bf16.msra.mxu2 %v5565_v14  ;;  %v5263_v6 = vshrl.u32 %v2591_v54, 16  ;;  %v2336_v52 = vmul.u32 2146121005, %v2272_v19  ;;  %v2016_v9 = vadd.s32 %v10361_v40, %v1956_v58  ;;  %v10422_v14 = vld [vmem:[#allocation66_spill] sm:$0xff]  ;;  %v10423_v44 = vld [vmem:[#allocation67_spill] sm:$0xff] }
 0x273   : > { %v7746_v45 = vsub.f32 %v10419_v47, %v10412_v63  ;;  %v1925_v60 = vadd.s32 %v6547_v12, %v1891_v38  ;;  %5975 = vpow2.f32 %v922_v46  ;;  %v924_v62 = vmul.f32 1.442695, %v7728_v57 }
 0x274   : > { %v3099_v33 = vadd.f32 1e-09, %v3035_v22  ;;  %v2337_v63 = vmul.u32 2146121005, %v2273_v0  ;;  %v7755_v20 = vsub.f32 %v10422_v14, %v10421_v26  ;;  %v7759_v47 = vsub.f32 %v10423_v44, %v10421_v26 }
 0x275   : > { %10420 = vst [vmem:[#allocation27_spill] sm:$0xff] %v7746_v45  ;;  %v926_v1 = vmul.f32 1.442695, %v7746_v45  ;;  %5977 = vlog2.f32 %v3101_v61  ;;  %v5972_v19 = vpop.eup %5971  ;;  %v2782_v58 = vxor.u32 %v5262_v24, %v2590_v28  ;;  %v2082_v38 = vadd.s32 %v10359_v8, %v2015_v56  ;;  %v10427_v28 = vld [vmem:[#allocation84_spill] sm:$0xff] }
 0x276   : > { %5979 = vlog2.f32 %v3098_v31  ;;  %v7764_v46 = vadd.f32 %v7649_v53, %v7645_v50  ;;  %v2783_v22 = vxor.u32 %v5263_v6, %v2591_v54  ;;  %v5200_v0 = vshrl.u32 %v2336_v52, 15  ;;  %v7767_v57 = vpop.eup %5973  ;;  %v10428_v50 = vld [vmem:[#allocation92_spill] sm:$0xff] }
 0x277   : > { %v2083_v45 = vadd.s32 %v10359_v8, %v2016_v9  ;;  %v1957_v14 = vmul.u32 2654435761, %v1925_v60  ;;  %5981 = vlog2.f32 %v3099_v33  ;;  %v5201_v26 = vshrl.u32 %v2337_v63, 15 }
 0x278   : > { %10424 = vst [vmem:[#allocation32_spill] sm:$0xff] %v7764_v46  ;;  %v7771_v61 = vadd.f32 %v7658_v59, %v7653_v41  ;;  %v7775_v31 = vadd.f32 %v7682_v39, %v7678_v16  ;;  %v7779_v53 = vmul.f32 %v10428_v50, %v10427_v28  ;;  %5983 = vpow2.f32 %v924_v62  ;;  %v10433_v28 = vld [vmem:[#allocation93_spill] sm:$0xff] }
 0x279   : > { %v928_v54 = vmul.f32 1.442695, %v7755_v20  ;;  %v3209_v60 = vmul.f32 0.6931472, %v5972_v19  ;;  %v7782_v24 = vpop.eup %5975  ;;  %v5326_v33 = vshrl.u32 %v2782_v58, 8  ;;  %v5138_v56 = vshrl.u32 %v2082_v38, 16 }
 0x27a   : > { %10425 = vst [vmem:[#allocation33_spill] sm:$0xff] %v7771_v61  ;;  %v7786_v41 = vadd.f32 %v7701_v4, %v7690_v55  ;;  %v7790_v16 = vadd.f32 %v7641_v42, %v7636_v23  ;;  %v5327_v39 = vshrl.u32 %v2783_v22, 8  ;;  %v2528_v6 = vxor.u32 %v5200_v0, %v2336_v52  ;;  %v10432_v19 = vld [vmem:[#allocation85_spill] sm:$0xff] }
 0x27b   : > { %10426 = vst [vmem:[#allocation38_spill] sm:$0xff] %v7775_v31  ;;  %v5978_v59 = vpop.eup %5977  ;;  %v5139_v9 = vshrl.u32 %v2083_v45, 16  ;;  %v2017_v62 = vadd.s32 %v6558_v17, %v1957_v14  ;;  %v7795_v31 = vmul.f32 %v10433_v28, %v10432_v19  ;;  %5985 = vpow2.f32 %v926_v1 }
 0x27c   : > { %10429 = vst [vmem:[#allocation39_spill] sm:$0xff] %v7782_v24  ;;  %v5980_v44 = vpop.eup %5979  ;;  %v930_v58 = vmul.f32 1.442695, %v7759_v47  ;;  %v2529_v4 = vxor.u32 %v5201_v26, %v2337_v63  ;;  %5987 = vpow2.f32 %v928_v54  ;;  %v3677_v55 = vcvt.f32.s32 %v7372_v18  ;;  %v10436_v18 = vld [vmem:[#allocation90_spill] sm:$0xff] }
 0x27d   : > { %10430 = vst [vmem:[#allocation42_spill] sm:$0xff] %v7786_v41  ;;  %v3292_v23 = vsub.f32 0.0, %v3209_v60  ;;  %v2018_v42 = vadd.s32 %v10361_v40, %v1957_v14  ;;  %v5982_v22 = vpop.eup %5981  ;;  %v3211_v52 = vmul.f32 0.6931472, %v5978_v59  ;;  %v2974_v0 = vcvt.s32.f32 %v5326_v33  ;;  %v10437_v54 = vld [vmem:[#allocation94_spill] sm:$0xff] }
 0x27e   : > { %10431 = vst [vmem:[#allocation43_spill] sm:$0xff] %v7790_v16  ;;  %v2274_v16 = vxor.u32 %v5138_v56, %v2082_v38  ;;  %v7802_v41 = vadd.f32 %v7667_v27, %v7662_v3  ;;  %v7804_v19 = vpop.eup %5983  ;;  %v2975_v1 = vcvt.s32.f32 %v5327_v39  ;;  %v2592_v61 = vmul.u32 2221713035, %v2528_v6 }
 0x27f   : > { %10435 = vst [vmem:[#allocation54_spill] sm:$0xff] %v7804_v19  ;;  %v2275_v63 = vxor.u32 %v5139_v9, %v2083_v45  ;;  %v2084_v26 = vadd.s32 %v10359_v8, %v2017_v62  ;;  %v7809_v60 = vmul.f32 %v10437_v54, %v10436_v18  ;;  %5989 = vpow2.f32 %v930_v58 }
 0x280   : > { %10434 = vst [vmem:[#allocation117_spill] sm:$0xff] %v7802_v41  ;;  %v3205_v14 = vmul.f32 0.6931472, %v5980_v44  ;;  %v2593_v33 = vmul.u32 2221713035, %v2529_v4  ;;  %v3678_v38 = vshll.u32 %v3677_v55, 16  ;;  %5991 = vrcp.f32 %v3292_v23 }
 0x281   : > { %v3207_v56 = vmul.f32 0.6931472, %v5982_v22  ;;  %v2085_v27 = vadd.s32 %v10359_v8, %v2018_v42  ;;  %v7812_v3 = vpop.eup %5985  ;;  %v3693_v59 = vcvt.f32.s32 %v7401_v5  ;;  %v3293_v45 = vsub.f32 0.0, %v3211_v52 }
 0x282   : > { %10438 = vst [vmem:[#allocation50_spill] sm:$0xff] %v7812_v3  ;;  %v3038_v39 = vmul.f32 5.9604645e-08, %v2974_v0  ;;  %v2338_v6 = vmul.u32 2146121005, %v2274_v16  ;;  %v7816_v9 = vpop.eup %5987  ;;  %v3039_v58 = vmul.f32 5.9604645e-08, %v2975_v1  ;;  %v5264_v44 = vshrl.u32 %v2592_v61, 16 }
 0x283   : > { %10439 = vst [vmem:[#allocation51_spill] sm:$0xff] %v7816_v9  ;;  %v2339_v4 = vmul.u32 2146121005, %v2275_v63  ;;  %v5140_v55 = vshrl.u32 %v2084_v26, 16  ;;  %v3709_v23 = vcvt.f32.s32 %v7426_v34  ;;  %v3290_v42 = vsub.f32 0.0, %v3205_v14 }
 0x284   : > { %v5265_v18 = vshrl.u32 %v2593_v33, 16  ;;  %v3762_v5 = vand.u32 65535, %v7407_v37  ;;  %v3291_v16 = vsub.f32 0.0, %v3207_v56  ;;  %v5141_v52 = vshrl.u32 %v2085_v27, 16 }
 0x285   : > { %v7827_v0 = vpop.eup %5989  ;;  %5993 = vrcp.f32 %v3293_v45  ;;  %v3102_v34 = vadd.f32 1e-09, %v3038_v39  ;;  %v5202_v63 = vshrl.u32 %v2338_v6, 15  ;;  %v2784_v41 = vxor.u32 %v5264_v44, %v2592_v61  ;;  %v3484_v39 = vpop.xlane.xlu0 %3483 }
 0x286   : > { %10440 = vst [vmem:[#allocation55_spill] sm:$0xff] %v7827_v0  ;;  %v5992_v14 = vpop.eup %5991  ;;  %v5203_v46 = vshrl.u32 %v2339_v4, 15  ;;  %v7829_v54 = vxor.u32 %v5140_v55, %v2084_v26  ;;  %v3694_v28 = vshll.u32 %v3693_v59, 16  ;;  %v7831_v50 = vshll.u32 %v3709_v23, 16 }
 0x287   : > { %5995 = vrcp.f32 %v3290_v42  ;;  %v7835_v37 = vxor.u32 %v5265_v18, %v2593_v33  ;;  %v3725_v56 = vcvt.f32.s32 %v7445_v25  ;;  %v7840_v45 = vxor.u32 %v5141_v52, %v2085_v27  ;;  %v10442_v42 = vld [vmem:[#allocation115_spill] sm:$0xff] }
 0x288   : > { %5997 = vrcp.f32 %v3291_v16  ;;  %v7843_v61 = vmul.f32 %v5992_v14, %v7804_v19  ;;  %v7845_v26 = vxor.u32 %v5202_v63, %v2338_v6  ;;  %v7849_v59 = vadd.f32 %v7713_v36, %v7709_v32 }
 0x289   : > { %5999 = vlog2.f32 %v3102_v34  ;;  %v5328_v44 = vshrl.u32 %v2784_v41, 8  ;;  %v7851_v55 = vxor.u32 %v5203_v46, %v2339_v4  ;;  %v2340_v27 = vmul.u32 2146121005, %v7829_v54  ;;  %v10443_v4 = vld [vmem:[#allocation116_spill] sm:$0xff] }
 0x28a   : > { %10441 = vst [vmem:[#allocation56_spill] sm:$0xff] %v7849_v59  ;;  %v5329_v6 = vshrl.u32 %v7835_v37, 8  ;;  %vm3564_vm5 = vcmp.eq.f32.partialorder %v10442_v42, %v3484_v39  ;;  %v2341_v46 = vmul.u32 2146121005, %v7840_v45  ;;  %vm3565_vm6 = vcmp.eq.f32.partialorder %v10443_v4, %v3484_v39  ;;  %v10463_v59 = vld [vmem:[#allocation100_spill] sm:$0xff] }
 0x28b   : > { %v5994_v23 = vpop.eup %5993  ;;  %v5204_v16 = vshrl.u32 %v2340_v27, 15  ;;  %v10083_v37 = vmov 1.0|1.0   ;;  %v3810_v39 = vand.u32 65535, %v7447_v35 }
 0x28c   : > { %v7874_v63 = vmul.f32 %v5994_v23, %v7812_v3 }
 0x28d   : > { %v5996_v41 = vpop.eup %5995 }
 0x28e   : > { %v5998_v18 = vpop.eup %5997  ;;  %v7877_v14 = vmul.f32 %v5996_v41, %v7767_v57  ;;  %v3506_v35 = vmax.f32 %v7843_v61, %v7874_v63 }
 0x28f   : > { %v6000_v52 = vpop.eup %5999 }
 0x290   : > { %v3213_v41 = vmul.f32 0.6931472, %v6000_v52 }
 0x297   : > { %v3675_v62 = vpop.xlane.xlu1 %3674 }
 0x298   : > { %v3676_v22 = vcvt.f32.s32 %v3675_v62  ;;  %v3103_v62 = vadd.f32 1e-09, %v3039_v58 }
 0x29a   : > { %v3679_v1 = vadd.s32 %v3678_v38, %v3676_v22  ;;  %v7838_v38 = vcvt.s32.f32 %v3762_v5  ;;  %6001 = vlog2.f32 %v3103_v62  ;;  %v2595_v5 = vmul.u32 2221713035, %v7851_v55 }
 0x29b   : > { %v5205_v62 = vshrl.u32 %v2341_v46, 15  ;;  %v3629_v55 = vsel %vm3565_vm6, %v10268_v48, 256 }
 0x29c   : > { %4176 = vst.msk [vmem:[%s7824_s19] sm:$0xff] %vm1828_vm2, %v3679_v1  ;;  %vm4208_vm8 = vcmp.eq.s32.totalorder %v6542_v10, %v3679_v1  ;;  %vm4209_vm12 = vcmp.eq.s32.totalorder %v10268_v48, %v3679_v1  ;;  %v7887_v1 = vadd.f32 %v7722_v29, %v7717_v2  ;;  %v2977_v29 = vcvt.s32.f32 %v5329_v6 }
 0x29d   : > { %v5267_v2 = vshrl.u32 %v2595_v5, 16  ;;  %v2533_v4 = vxor.u32 %v5205_v62, %v2341_v46  ;;  %v3741_v6 = vcvt.f32.s32 %v7494_v7  ;;  %v3294_v62 = vsub.f32 0.0, %v3213_v41 }
 0x29e   : > { %10444 = vst [vmem:[#allocation57_spill] sm:$0xff] %v7887_v1  ;;  %v3041_v25 = vmul.f32 5.9604645e-08, %v2977_v29  ;;  %v10448_v29 = vld [vmem:[#allocation129_spill] sm:$0xff] }
 0x29f   : > { %v3691_v33 = vpop.xlane.xlu2 %3690  ;;  %v3487_v58 = vpop.xlane.xlu1 %3486  ;;  %6003 = vrcp.f32 %v3294_v62 }
 0x2a0   : > { %v3692_v22 = vcvt.f32.s32 %v3691_v33  ;;  %vm3566_vm3 = vcmp.eq.f32.partialorder %v7385_v13, %v3487_v58  ;;  %vm3567_vm4 = vcmp.eq.f32.partialorder %v7391_v21, %v3487_v58  ;;  %v2594_v13 = vmul.u32 2221713035, %v7845_v26  ;;  %v6002_v34 = vpop.eup %6001 }
 0x2a1   : > { %v3630_v32 = vsel %vm3566_vm3, %v6542_v10, 256  ;;  %v3631_v36 = vsel %vm3567_vm4, %v10268_v48, 256  ;;  %v7883_v26 = vmul.f32 %v5998_v18, %v7782_v24  ;;  %v2976_v33 = vcvt.s32.f32 %v5328_v44  ;;  %v10446_v18 = vld [vmem:[#allocation72_spill] sm:$0xff] }
 0x2a2   : > { %v3695_v54 = vadd.s32 %v3694_v28, %v3692_v22  ;;  %vm3904_vm7 = vcmp.lt.s32.totalorder %v3630_v32, %v3631_v36  ;;  %v3628_v58 = vsel %vm3564_vm5, %v6542_v10, 256 }
 0x2a3   : > { %v7863_v21 = vsel %vm3904_vm7, %v3630_v32, %v3631_v36  ;;  %v5266_v32 = vshrl.u32 %v2594_v13, 16  ;;  %v2532_v36 = vxor.u32 %v5204_v16, %v2340_v27  ;;  %v3215_v16 = vmul.f32 0.6931472, %v6002_v34 }
 0x2a4   : > { %4177 = vst.msk [vmem:[%s7824_s19 + $0x8] sm:$0xff] %vm1828_vm2, %v3695_v54  ;;  %vm4210_vm9 = vcmp.eq.s32.totalorder %v6542_v10, %v3695_v54  ;;  %vm4211_vm10 = vcmp.eq.s32.totalorder %v10268_v48, %v3695_v54  ;;  %v3907_v28 = vshra.s32 %v7863_v21, 16  ;;  %v10445_v54 = vld [vmem:[#allocation118_spill] sm:$0xff]  ;;  %vm3888_vm15 = vcmp.lt.s32.totalorder %v3628_v58, %v3629_v55 }
 0x2a5   : > { %vm5472_vm11 = vmpackc.low %vm4210_vm9, %vm4208_vm8  ;;  %v3503_v46 = vmax.f32 %v7877_v14, %v7883_v26  ;;  %v3812_v34 = vcvt.s32.f32 %v3810_v39  ;;  %v3295_v7 = vsub.f32 0.0, %v3215_v16 }
 0x2a6   : > { %5473 = vmatmul.msk.bf16.vlgmr.msra.gmra.mxu2 %vm5472_vm11, %v10083_v37  ;;  %vm5504_vm13 = vmpackc.low %vm4211_vm10, %vm4209_vm12  ;;  %v7880_v45 = vcvt.s32.f32 %v3907_v28  ;;  %v7905_v28 = vsub.f32 %v10446_v18, %v10445_v54 }
 0x2a7   : > { %5505 = vmatmul.msk.bf16.vlgmr.msra.gmra.mxu3 %vm5504_vm13, %v10083_v37  ;;  %v7896_v23 = vpop.xlane.xlu2 %3766  ;;  %v3707_v22 = vpop.xlane.xlu1 %3706  ;;  %v2786_v37 = vxor.u32 %v5266_v32, %v2594_v13  ;;  %6005 = vrcp.f32 %v3295_v7 }
 0x2a8   : > { %v3708_v44 = vcvt.f32.s32 %v3707_v22  ;;  %3910 = vmin.xlane.f32.xlu0 %v7880_v45  ;;  %vm3768_vm14 = vcmp.eq.f32.partialorder %v7428_v30, %v7896_v23  ;;  %v3040_v22 = vmul.f32 5.9604645e-08, %v2976_v33  ;;  %v3726_v30 = vshll.u32 %v3725_v56, 16 }
 0x2a9   : > { %v3769_v42 = vsel %vm3768_vm14, %v7838_v38, inf  ;;  %v2596_v38 = vmul.u32 2221713035, %v2532_v36  ;;  %v2597_v56 = vmul.u32 2221713035, %v2533_v4  ;;  %v7923_v33 = vadd.f32 %v7742_v49, %v7738_v51 }
 0x2aa   : > { %v3711_v27 = vadd.s32 %v7831_v50, %v3708_v44  ;;  %3770 = vmin.xlane.f32.xlu1 %v3769_v42  ;;  %v2787_v50 = vxor.u32 %v5267_v2, %v2595_v5  ;;  %v3104_v13 = vadd.f32 1e-09, %v3040_v22  ;;  %v7926_v5 = vsel %vm3888_vm15, %v3628_v58, %v3629_v55 }
 0x2ab   : > { %10447 = vst [vmem:[#allocation62_spill] sm:$0xff] %v7923_v33  ;;  %v5330_v2 = vshrl.u32 %v2786_v37, 8  ;;  %v5268_v42 = vshrl.u32 %v2596_v38, 16  ;;  %v5269_v41 = vshrl.u32 %v2597_v56, 16  ;;  %v3891_v37 = vshra.s32 %v7926_v5, 16 }
 0x2ac   : > { %4178 = vst.msk [vmem:[%s7824_s19 + $0x10] sm:$0xff] %vm1828_vm2, %v3711_v27  ;;  %vm4212_vm5 = vcmp.eq.s32.totalorder %v6542_v10, %v3711_v27  ;;  %vm4213_vm9 = vcmp.eq.s32.totalorder %v10268_v48, %v3711_v27  ;;  %6007 = vlog2.f32 %v3104_v13 }
 0x2ad   : > { %v7917_v52 = vpop.xlane.xlu0 %3814  ;;  %v2978_v18 = vcvt.s32.f32 %v5330_v2  ;;  %v2788_v16 = vxor.u32 %v5268_v42, %v2596_v38  ;;  %v10451_v38 = vld [vmem:[#allocation133_spill] sm:$0xff]  ;;  %v7948_v7 = vcvt.s32.f32 %v3891_v37  ;;  %v3742_v42 = vshll.u32 %v3741_v6, 16 }
 0x2ae   : > { %vm3816_vm0 = vcmp.eq.f32.partialorder %v7457_v15, %v7917_v52  ;;  %v5331_v15 = vshrl.u32 %v2787_v50, 8  ;;  %v10450_v50 = vld [vmem:[#allocation132_spill] sm:$0xff]  ;;  %v10459_v37 = vld [vmem:[#allocation137_spill] sm:$0xff] }
 0x2af   : > { %v3723_v32 = vpop.xlane.xlu2 %3722  ;;  %v3493_v36 = vpop.xlane.xlu1 %3492  ;;  %v3817_v44 = vsel %vm3816_vm0, %v3812_v34, inf  ;;  %v10452_v34 = vmov 1.0|1.0   ;;  %10454 = vst [vmem:[#allocation119_spill] sm:$0xff] %v7948_v7 }
 0x2b0   : > { %v3724_v39 = vcvt.f32.s32 %v3723_v32  ;;  %vm3570_vm1 = vcmp.eq.f32.partialorder %v7452_v43, %v3493_v36  ;;  %vm3571_vm3 = vcmp.eq.f32.partialorder %v10448_v29, %v3493_v36  ;;  %3507 = vmax.xlane.f32.xlu0 %v3506_v35  ;;  %3818 = vmin.xlane.f32.xlu2 %v3817_v44  ;;  %v10449_v43 = vld [vmem:[#allocation131_spill] sm:$0xff]  ;;  %v3105_v35 = vadd.f32 1e-09, %v3041_v25  ;;  %v6004_v32 = vpop.eup %6003 }
 0x2b1   : > { %v3634_v51 = vsel %vm3570_vm1, %v6542_v10, 256  ;;  %v3635_v49 = vsel %vm3571_vm3, %v10268_v48, 256  ;;  %v3794_v55 = vand.u32 65535, %v10449_v43  ;;  %v10455_v36 = vld [vmem:[#allocation91_spill] sm:$0xff]  ;;  %v2979_v13 = vcvt.s32.f32 %v5331_v15 }
 0x2b2   : > { %v3727_v4 = vadd.s32 %v3726_v30, %v3724_v39  ;;  %vm3936_vm4 = vcmp.lt.s32.totalorder %v3634_v51, %v3635_v49  ;;  %3504 = vmax.xlane.f32.xlu1 %v3503_v46  ;;  %v2789_v46 = vxor.u32 %v5269_v41, %v2597_v56  ;;  %v10456_v44 = vld [vmem:[#allocation11_spill] sm:$0xff]  ;;  %v6006_v39 = vpop.eup %6005  ;;  %v5332_v41 = vshrl.u32 %v2788_v16, 8 }
 0x2b3   : > { %v7933_v58 = vsel %vm3936_vm4, %v3634_v51, %v3635_v49  ;;  %v1081_v2 = vmul.f32 %v10456_v44, %v10455_v36  ;;  %v3796_v56 = vcvt.s32.f32 %v3794_v55  ;;  %v10458_v51 = vld [vmem:[#allocation138_spill] sm:$0xff]  ;;  %v3042_v49 = vmul.f32 5.9604645e-08, %v2978_v18  ;;  %v6008_v18 = vpop.eup %6007  ;;  %v10460_v16 = vld [vmem:[#allocation95_spill] sm:$0xff] }
 0x2b4   : > { %4179 = vst.msk [vmem:[%s7824_s19 + $0x18] sm:$0xff] %vm1828_vm2, %v3727_v4  ;;  %vm4214_vm6 = vcmp.eq.s32.totalorder %v6542_v10, %v3727_v4  ;;  %vm4215_vm7 = vcmp.eq.s32.totalorder %v10268_v48, %v3727_v4  ;;  %v3939_v22 = vshra.s32 %v7933_v58, 16  ;;  %v3842_v43 = vand.u32 65535, %v10459_v37  ;;  %v10490_v44 = vld [vmem:[#allocation103_spill] sm:$0xff] }
 0x2b5   : > { %v3490_v30 = vpop.xlane.xlu0 %3489  ;;  %vm5474_vm8 = vmpackc.low %vm4214_vm6, %vm4212_vm5  ;;  %v932_v55 = vmul.f32 1.442695, %v7905_v28  ;;  %6009 = vlog2.f32 %v3105_v35  ;;  %v5333_v36 = vshrl.u32 %v2789_v46, 8  ;;  %v7982_v35 = vmul.f32 %v6006_v39, %v7827_v0 }
 0x2b6   : > { %vm3568_vm10 = vcmp.eq.f32.partialorder %v10450_v50, %v3490_v30  ;;  %vm3569_vm11 = vcmp.eq.f32.partialorder %v10451_v38, %v3490_v30  ;;  %5475 = vmatmul.msk.bf16.gmra.mxu2 %vm5474_vm8, %v10452_v34  ;;  %vm5506_vm12 = vmpackc.low %vm4215_vm7, %vm4213_vm9  ;;  %v7946_v62 = vcvt.s32.f32 %v3939_v22  ;;  %v10462_v50 = vld [vmem:[#allocation96_spill] sm:$0xff]  ;;  %v10464_v30 = vld [vmem:[#allocation139_spill] sm:$0xff]  ;;  %v2980_v46 = vcvt.s32.f32 %v5332_v41 }
 0x2b7   : > { %5507 = vmatmul.msk.bf16.gmra.mxu3 %vm5506_vm12, %v10452_v34  ;;  %v7953_v27 = vpop.xlane.xlu2 %3798  ;;  %v3739_v25 = vpop.xlane.xlu1 %3738  ;;  %v3632_v6 = vsel %vm3568_vm10, %v6542_v10, 256  ;;  %v3633_v15 = vsel %vm3569_vm11, %v10268_v48, 256  ;;  %v7973_v33 = vmul.f32 %v10463_v59, %v10462_v50  ;;  %v3757_v38 = vcvt.f32.s32 %v10464_v30  ;;  %10466 = vst [vmem:[#allocation81_spill] sm:$0xff] %v7982_v35 }
 0x2b8   : > { %10453 = vst [vmem:[#allocation63_spill] sm:$0xff] %v7946_v62  ;;  %v3740_v29 = vcvt.f32.s32 %v3739_v25  ;;  %3942 = vmin.xlane.f32.xlu0 %v7946_v62  ;;  %3894 = vmin.xlane.f32.xlu2 %v7948_v7  ;;  %vm3800_vm13 = vcmp.eq.f32.partialorder %v10458_v51, %v7953_v27  ;;  %v10461_v25 = vld [vmem:[#allocation99_spill] sm:$0xff]  ;;  %vm3920_vm14 = vcmp.lt.s32.totalorder %v3632_v6, %v3633_v15  ;;  %v3106_v50 = vadd.f32 1e-09, %v3042_v49  ;;  %v10508_v7 = vld [vmem:[#allocation140_spill] sm:$0xff] }
 0x2b9   : > { %10457 = vst [vmem:[#allocation60_spill] sm:$0xff] %v7953_v27  ;;  %v3801_v4 = vsel %vm3800_vm13, %v3796_v56, inf  ;;  %v7969_v51 = vmul.f32 %v10461_v25, %v10460_v16  ;;  %v3043_v56 = vmul.f32 5.9604645e-08, %v2979_v13  ;;  %v3844_v16 = vcvt.s32.f32 %v3842_v43 }
 0x2ba   : > { %v3743_v22 = vadd.s32 %v3742_v42, %v3740_v29  ;;  %3802 = vmin.xlane.f32.xlu1 %v3801_v4  ;;  %v7979_v42 = vmul.f32 %v6004_v32, %v7816_v9  ;;  %v10467_v29 = vld [vmem:[#allocation73_spill] sm:$0xff]  ;;  %v7992_v13 = vadd.f32 %v7795_v31, %v7779_v53  ;;  %6011 = vpow2.f32 %v932_v55  ;;  %v10470_v32 = vld [vmem:[#allocation142_spill] sm:$0xff]  ;;  %v10473_v55 = vld [vmem:[#allocation15_spill] sm:$0xff] }
 0x2bb   : > { %v7986_v4 = vsub.f32 %v10467_v29, %v10445_v54  ;;  %v2981_v30 = vcvt.s32.f32 %v5333_v36  ;;  %v7997_v39 = vadd.f32 %v1081_v2, %v7809_v60  ;;  %v8000_v54 = vsel %vm3920_vm14, %v3632_v6, %v3633_v15  ;;  %v6010_v49 = vpop.eup %6009  ;;  %v10474_v36 = vld [vmem:[#allocation105_spill] sm:$0xff]  ;;  %v10476_v6 = vld [vmem:[#allocation74_spill] sm:$0xff] }
 0x2bc   : > { %4180 = vst.msk [vmem:[%s7824_s19 + $0x20] sm:$0xff] %vm1828_vm2, %v3743_v22  ;;  %v3217_v29 = vmul.f32 0.6931472, %v6008_v18  ;;  %v3107_v43 = vadd.f32 1e-09, %v3043_v56  ;;  %v3758_v59 = vshll.u32 %v3757_v38, 16  ;;  %v3509_v31 = vmax.f32 %v7979_v42, %v7982_v35 }
 0x2bd   : > { %10465 = vst [vmem:[#allocation80_spill] sm:$0xff] %v7979_v42  ;;  %v7988_v37 = vpop.xlane.xlu0 %3846  ;;  %v3044_v53 = vmul.f32 5.9604645e-08, %v2980_v46  ;;  %v8006_v60 = vmul.f32 %v10474_v36, %v10473_v55  ;;  %v934_v2 = vmul.f32 1.442695, %v7986_v4  ;;  %6013 = vlog2.f32 %v3106_v50  ;;  %v10480_v50 = vld [vmem:[#allocation106_spill] sm:$0xff]  ;;  %v10494_v35 = vld [vmem:[#allocation7_spill] sm:$0xff] }
 0x2be   : > { %10468 = vst [vmem:[#allocation61_spill] sm:$0xff] %v7988_v37  ;;  %vm3848_vm15 = vcmp.eq.f32.partialorder %v10470_v32, %v7988_v37  ;;  %v3045_v38 = vmul.f32 5.9604645e-08, %v2981_v30  ;;  %v1893_v56 = vadd.s32 224, %v6544_v11  ;;  %v10477_v32 = vld [vmem:[#allocation49_spill] sm:$0xff]  ;;  %6015 = vlog2.f32 %v3107_v43  ;;  %v10482_v43 = vld [vmem:[#allocation143_spill] sm:$0xff]  ;;  %v10489_v36 = vld [vmem:[#allocation98_spill] sm:$0xff] }
 0x2bf   : > { %10469 = vst [vmem:[#allocation108_spill] sm:$0xff] %v7992_v13  ;;  %v3755_v41 = vpop.xlane.xlu2 %3754  ;;  %v3849_v1 = vsel %vm3848_vm15, %v3844_v16, inf  ;;  %v10475_v16 = vld [vmem:[#allocation120_spill] sm:$0xff]  ;;  %v3826_v46 = vand.u32 65535, %v10477_v32  ;;  %v3296_v13 = vsub.f32 0.0, %v3217_v29  ;;  %vm4216_vm0 = vcmp.eq.s32.totalorder %v6542_v10, %v3743_v22  ;;  %v10501_v42 = vld [vmem:[#allocation147_spill] sm:$0xff] }
 0x2c0   : > { %10471 = vst [vmem:[#allocation66_spill] sm:$0xff] %v7997_v39  ;;  %v3756_v25 = vcvt.f32.s32 %v3755_v41  ;;  %3850 = vmin.xlane.f32.xlu2 %v3849_v1  ;;  %v8011_v15 = vsub.f32 %v10476_v6, %v10475_v16  ;;  %v3923_v1 = vshra.s32 %v8000_v54, 16  ;;  %v3219_v41 = vmul.f32 0.6931472, %v6010_v49  ;;  %v8016_v55 = vpop.eup %6011  ;;  %v10483_v6 = vld [vmem:[#allocation144_spill] sm:$0xff] }
 0x2c1   : > { %10472 = vst [vmem:[#allocation67_spill] sm:$0xff] %v8000_v54  ;;  %6017 = vpow2.f32 %v934_v2  ;;  %vm4217_vm5 = vcmp.eq.s32.totalorder %v10268_v48, %v3743_v22  ;;  %v8040_v22 = vadd.f32 %v7973_v33, %v7969_v51  ;;  %v3789_v37 = vcvt.f32.s32 %v10501_v42  ;;  %v10505_v42 = vld [vmem:[#allocation77_spill] sm:$0xff] }
 0x2c2   : > { %v3759_v18 = vadd.s32 %v3758_v59, %v3756_v25  ;;  %3510 = vmax.xlane.f32.xlu1 %v3509_v31  ;;  %10478 = vst [vmem:[#allocation84_spill] sm:$0xff] %v8016_v55  ;;  %v3108_v59 = vadd.f32 1e-09, %v3044_v53  ;;  %v10479_v25 = vld [vmem:[#allocation16_spill] sm:$0xff]  ;;  %v10481_v31 = vld [vmem:[#allocation75_spill] sm:$0xff]  ;;  %v8033_v53 = vcvt.s32.f32 %v3923_v1  ;;  %6019 = vrcp.f32 %v3296_v13  ;;  %v10487_v1 = vld [vmem:[#allocation146_spill] sm:$0xff] }
 0x2c3   : > { %v1085_v30 = vmul.f32 %v10480_v50, %v10479_v25  ;;  %v8027_v49 = vsub.f32 %v10481_v31, %v10475_v16  ;;  %v6014_v32 = vpop.eup %6013  ;;  %v3828_v16 = vcvt.s32.f32 %v3826_v46  ;;  %v3297_v25 = vsub.f32 0.0, %v3219_v41  ;;  %10486 = vst [vmem:[#allocation115_spill] sm:$0xff] %v8040_v22  ;;  %v584_v31 = vpop.f32.mrf.mxu0  ;;  %v10488_v41 = vld [vmem:[#allocation145_spill] sm:$0xff] }
 0x2c4   : > { %4181 = vst.msk [vmem:[%s7824_s19 + $0x28] sm:$0xff] %vm1828_vm2, %v3759_v18  ;;  %vm4218_vm1 = vcmp.eq.s32.totalorder %v6542_v10, %v3759_v18  ;;  %vm4219_vm3 = vcmp.eq.s32.totalorder %v10268_v48, %v3759_v18  ;;  %v3109_v18 = vadd.f32 1e-09, %v3045_v38  ;;  %v936_v39 = vmul.f32 1.442695, %v8011_v15  ;;  %v6016_v50 = vpop.eup %6015  ;;  %v673_v46 = vpop.f32.mrf.mxu1 }
 0x2c5   : > { %v3496_v29 = vpop.xlane.xlu0 %3495  ;;  %vm5476_vm4 = vmpackc.low %vm4218_vm1, %vm4216_vm0  ;;  %10484 = vst [vmem:[#allocation85_spill] sm:$0xff] %v8033_v53  ;;  %6021 = vlog2.f32 %v3108_v59  ;;  %v8047_v38 = vadd.s32 %v6547_v12, %v1893_v56  ;;  %v3874_v22 = vand.u32 65535, %v10488_v41  ;;  %v3221_v56 = vmul.f32 0.6931472, %v6014_v32  ;;  %v10498_v32 = vld [vmem:[#allocation69_spill] sm:$0xff] }
 0x2c6   : > { %vm3572_vm6 = vcmp.eq.f32.partialorder %v10482_v43, %v3496_v29  ;;  %vm3573_vm7 = vcmp.eq.f32.partialorder %v10483_v6, %v3496_v29  ;;  %5477 = vmatmul.msk.bf16.gmra.mxu2 %vm5476_vm4, %v10452_v34  ;;  %vm5508_vm8 = vmpackc.low %vm4219_vm3, %vm4217_vm5  ;;  %6023 = vlog2.f32 %v3109_v18  ;;  %v1892_v59 = vadd.s32 216, %v6544_v11  ;;  %v10492_v43 = vld [vmem:[#allocation17_spill] sm:$0xff] }
 0x2c7   : > { %5509 = vmatmul.msk.bf16.gmra.mxu3 %vm5508_vm8, %v10452_v34  ;;  %v8036_v2 = vpop.xlane.xlu2 %3830  ;;  %v3636_v13 = vsel %vm3572_vm6, %v6542_v10, 256  ;;  %v3637_v33 = vsel %vm3573_vm7, %v10268_v48, 256  ;;  %v8066_v29 = vadd.f32 %v584_v31, %v10494_v35  ;;  %v938_v6 = vmul.f32 1.442695, %v8027_v49 }
 0x2c8   : > { %10485 = vst [vmem:[#allocation90_spill] sm:$0xff] %v8036_v2  ;;  %3926 = vmin.xlane.f32.xlu2 %v8033_v53  ;;  %vm3832_vm9 = vcmp.eq.f32.partialorder %v10487_v1, %v8036_v2  ;;  %v8058_v1 = vmul.f32 %v10490_v44, %v10489_v36  ;;  %v8061_v53 = vpop.eup %6017  ;;  %v10493_v2 = vld [vmem:[#allocation104_spill] sm:$0xff]  ;;  %6025 = vrcp.f32 %v3297_v25  ;;  %vm3952_vm10 = vcmp.lt.s32.totalorder %v3636_v13, %v3637_v33 }
 0x2c9   : > { %v3833_v51 = vsel %vm3832_vm9, %v3828_v16, inf  ;;  %10491 = vst [vmem:[#allocation116_spill] sm:$0xff] %v8061_v53  ;;  %v1087_v54 = vmul.f32 %v10493_v2, %v10492_v43  ;;  %v10496_v16 = vld [vmem:[#allocation8_spill] sm:$0xff]  ;;  %6027 = vpow2.f32 %v936_v39  ;;  %v3223_v36 = vmul.f32 0.6931472, %v6016_v50  ;;  %v6020_v18 = vpop.eup %6019  ;;  %v3499_v43 = vpop.xlane.xlu1 %3498 }
 0x2ca   : > { %3834 = vmin.xlane.f32.xlu1 %v3833_v51  ;;  %10495 = vst [vmem:[#allocation118_spill] sm:$0xff] %v8066_v29  ;;  %v8070_v41 = vadd.f32 %v673_v46, %v10496_v16  ;;  %v10499_v51 = vld [vmem:[#allocation76_spill] sm:$0xff]  ;;  %v3876_v35 = vcvt.s32.f32 %v3874_v22  ;;  %v1959_v31 = vmul.u32 2654435761, %v8047_v38  ;;  %v10503_v46 = vld [vmem:[#allocation111_spill] sm:$0xff]  ;;  %v3298_v39 = vsub.f32 0.0, %v3221_v56 }
 0x2cb   : > { %v8074_v44 = vsub.f32 %v10499_v51, %v10498_v32  ;;  %v6022_v25 = vpop.eup %6021  ;;  %v8083_v50 = vadd.s32 %v6547_v12, %v1892_v59  ;;  %v8086_v16 = vadd.f32 %v1085_v30, %v8006_v60  ;;  %6029 = vpow2.f32 %v938_v6 }
 0x2cc   : > { %10497 = vst [vmem:[#allocation72_spill] sm:$0xff] %v8070_v41  ;;  %v8090_v51 = vsub.f32 %v10505_v42, %v10498_v32  ;;  %v8093_v22 = vsel %vm3952_vm10, %v3636_v13, %v3637_v33  ;;  %v6024_v38 = vpop.eup %6023  ;;  %vm3574_vm12 = vcmp.eq.f32.partialorder %v10508_v7, %v3499_v43  ;;  %v769_v60 = vmax.f32 %v8066_v29, %v8070_v41 }
 0x2cd   : > { %10500 = vst [vmem:[#allocation129_spill] sm:$0xff] %v8074_v44  ;;  %v8077_v2 = vpop.xlane.xlu0 %3878  ;;  %v3299_v30 = vsub.f32 0.0, %v3223_v36  ;;  %v940_v6 = vmul.f32 1.442695, %v8074_v44  ;;  %v3790_v32 = vshll.u32 %v3789_v37, 16  ;;  %v3955_v33 = vshra.s32 %v8093_v22, 16 }
 0x2ce   : > { %10502 = vst [vmem:[#allocation131_spill] sm:$0xff] %v8077_v2  ;;  %vm3880_vm11 = vcmp.eq.f32.partialorder %v10503_v46, %v8077_v2  ;;  %v10509_v46 = vld [vmem:[#allocation141_spill] sm:$0xff]  ;;  %v6026_v59 = vpop.eup %6025  ;;  %6031 = vrcp.f32 %v3298_v39  ;;  %v3638_v36 = vsel %vm3574_vm12, %v6542_v10, 256  ;;  %v3227_v41 = vmul.f32 0.6931472, %v6024_v38 }
 0x2cf   : > { %10504 = vst [vmem:[#allocation132_spill] sm:$0xff] %v8086_v16  ;;  %v3881_v62 = vsel %vm3880_vm11, %v3876_v35, inf  ;;  %vm3575_vm13 = vcmp.eq.f32.partialorder %v10509_v46, %v3499_v43  ;;  %v3787_v56 = vpop.xlane.xlu2 %3786  ;;  %v2021_v35 = vadd.s32 %v6558_v17, %v1959_v31  ;;  %v8101_v13 = vpop.eup %6027  ;;  %v3225_v16 = vmul.f32 0.6931472, %v6022_v25  ;;  %v10513_v25 = vld [vmem:[#allocation149_spill] sm:$0xff] }
 0x2d0   : > { %10506 = vst [vmem:[#allocation133_spill] sm:$0xff] %v8090_v51  ;;  %3882 = vmin.xlane.f32.xlu0 %v3881_v62  ;;  %v3788_v42 = vcvt.f32.s32 %v3787_v56  ;;  %v1958_v62 = vmul.u32 2654435761, %v8083_v50  ;;  %v3639_v37 = vsel %vm3575_vm13, %v10268_v48, 256  ;;  %v8114_v29 = vmul.f32 %v6020_v18, %v8016_v55 }
 0x2d1   : > { %10507 = vst [vmem:[#allocation91_spill] sm:$0xff] %v8093_v22  ;;  %v3858_v39 = vand.u32 65535, %v10513_v25  ;;  %6033 = vrcp.f32 %v3299_v30  ;;  %v8120_v50 = vpop.eup %6029  ;;  %v942_v7 = vmul.f32 1.442695, %v8090_v51  ;;  %v2022_v43 = vadd.s32 %v10361_v40, %v1959_v31  ;;  %v10522_v22 = vld [vmem:[#allocation19_spill] sm:$0xff] }
 0x2d2   : > { %10510 = vst [vmem:[#allocation138_spill] sm:$0xff] %v8101_v13  ;;  %770 = vmax.xlane.f32.xlu1 %v769_v60  ;;  %v8111_v56 = vadd.s32 %v3790_v32, %v3788_v42  ;;  %v8117_v60 = vmul.f32 %v6026_v59, %v8061_v53  ;;  %vm3968_vm14 = vcmp.lt.s32.totalorder %v3638_v36, %v3639_v37  ;;  %v8127_v38 = vcvt.s32.f32 %v3955_v33 }
 0x2d3   : > { %10511 = vst [vmem:[#allocation137_spill] sm:$0xff] %v8114_v29  ;;  %v3300_v18 = vsub.f32 0.0, %v3225_v16  ;;  %v8130_v46 = vadd.f32 %v1087_v54, %v8058_v1  ;;  %v3301_v59 = vsub.f32 0.0, %v3227_v41  ;;  %v2088_v32 = vadd.s32 %v10359_v8, %v2021_v35  ;;  %v10518_v16 = vld [vmem:[#allocation150_spill] sm:$0xff]  ;;  %v10521_v35 = vld [vmem:[#allocation112_spill] sm:$0xff] }
 0x2d4   : > { %10512 = vst [vmem:[#allocation95_spill] sm:$0xff] %v8117_v60  ;;  %v6032_v30 = vpop.eup %6031  ;;  %6035 = vpow2.f32 %v940_v6  ;;  %v3512_v25 = vmax.f32 %v8114_v29, %v8117_v60  ;;  %v3860_v31 = vcvt.s32.f32 %v3858_v39  ;;  %v2019_v33 = vadd.s32 %v6558_v17, %v1958_v62  ;;  %v10520_v6 = vld [vmem:[#allocation18_spill] sm:$0xff]  ;;  %v10530_v29 = vld [vmem:[#allocation20_spill] sm:$0xff] }
 0x2d5   : > { %10514 = vst [vmem:[#allocation96_spill] sm:$0xff] %v8120_v50  ;;  %6037 = vpow2.f32 %v942_v7  ;;  %v8141_v54 = vsel %vm3968_vm14, %v3638_v36, %v3639_v37  ;;  %v2089_v1 = vadd.s32 %v10359_v8, %v2022_v43  ;;  %v5144_v39 = vshrl.u32 %v2088_v32, 16 }
 0x2d6   : > { %4183 = vst.msk [vmem:[%s7824_s19 + $0x38] sm:$0xff] %vm1828_vm2, %v8111_v56  ;;  %6039 = vrcp.f32 %v3300_v18  ;;  %v2020_v7 = vadd.s32 %v10361_v40, %v1958_v62  ;;  %v3971_v36 = vshra.s32 %v8141_v54, 16  ;;  %v2086_v37 = vadd.s32 %v10359_v8, %v2019_v33 }
 0x2d7   : > { %10515 = vst [vmem:[#allocation139_spill] sm:$0xff] %v8127_v38  ;;  %v8133_v42 = vpop.xlane.xlu2 %3862  ;;  %v6034_v41 = vpop.eup %6033  ;;  %6041 = vrcp.f32 %v3301_v59  ;;  %v8152_v43 = vmul.f32 %v6032_v30, %v8101_v13  ;;  %v1894_v18 = vadd.s32 232, %v6544_v11  ;;  %v2280_v62 = vxor.u32 %v5144_v39, %v2088_v32 }
 0x2d8   : > { %10516 = vst [vmem:[#allocation73_spill] sm:$0xff] %v8130_v46  ;;  %3958 = vmin.xlane.f32.xlu0 %v8127_v38  ;;  %vm3864_vm15 = vcmp.eq.f32.partialorder %v10518_v16, %v8133_v42  ;;  %v1088_v46 = vmul.f32 %v10521_v35, %v10520_v6  ;;  %v10523_v38 = vld [vmem:[#allocation113_spill] sm:$0xff]  ;;  %v8155_v16 = vmul.f32 %v6034_v41, %v8120_v50  ;;  %v5145_v6 = vshrl.u32 %v2089_v1, 16 }
 0x2d9   : > { %10517 = vst [vmem:[#allocation142_spill] sm:$0xff] %v8133_v42  ;;  %v1089_v2 = vmul.f32 %v10523_v38, %v10522_v22  ;;  %v3865_v60 = vsel %vm3864_vm15, %v3860_v31, inf  ;;  %v8165_v33 = vcvt.s32.f32 %v3971_v36  ;;  %v5142_v30 = vshrl.u32 %v2086_v37, 16  ;;  %v10531_v42 = vld [vmem:[#allocation121_spill] sm:$0xff] }
 0x2da   : > { %10519 = vst [vmem:[#allocation15_spill] sm:$0xff] %v8141_v54  ;;  %3513 = vmax.xlane.f32.xlu1 %v3512_v25  ;;  %3866 = vmin.xlane.f32.xlu2 %v3865_v60  ;;  %v8157_v22 = vpop.eup %6035  ;;  %v2087_v25 = vadd.s32 %v10359_v8, %v2020_v7  ;;  %v1895_v38 = vadd.s32 240, %v6544_v11  ;;  %v3515_v35 = vmax.f32 %v8152_v43, %v8155_v16  ;;  %v2344_v39 = vmul.u32 2146121005, %v2280_v62 }
 0x2db   : > { %10524 = vst [vmem:[#allocation120_spill] sm:$0xff] %v8152_v43  ;;  %v8160_v60 = vadd.f32 %v1089_v2, %v1088_v46  ;;  %v8162_v59 = vpop.eup %6037  ;;  %v2281_v54 = vxor.u32 %v5145_v6, %v2089_v1  ;;  %v1090_v2 = vmul.f32 %v10531_v42, %v10530_v29  ;;  %v10532_v46 = vld [vmem:[#allocation21_spill] sm:$0xff]  ;;  %v1928_v32 = vadd.s32 %v6547_v12, %v1894_v18 }
 0x2dc   : > { %10525 = vst [vmem:[#allocation74_spill] sm:$0xff] %v8155_v16  ;;  %v6040_v31 = vpop.eup %6039  ;;  %v5143_v7 = vshrl.u32 %v2087_v25, 16  ;;  %v2278_v1 = vxor.u32 %v5142_v30, %v2086_v37  ;;  %v1929_v6 = vadd.s32 %v6547_v12, %v1895_v38  ;;  %vm4222_vm6 = vcmp.eq.s32.totalorder %v6542_v10, %v8111_v56 }
 0x2dd   : > { %10526 = vst [vmem:[#allocation49_spill] sm:$0xff] %v8157_v22  ;;  %v6042_v41 = vpop.eup %6041  ;;  %v8177_v36 = vmul.f32 %v6040_v31, %v8157_v22  ;;  %v2345_v29 = vmul.u32 2146121005, %v2281_v54  ;;  %v1960_v42 = vmul.u32 2654435761, %v1928_v32  ;;  %v10537_v31 = vld [vmem:[#allocation24_spill] sm:$0xff]  ;;  %vm4223_vm9 = vcmp.eq.s32.totalorder %v10268_v48, %v8111_v56 }
 0x2de   : > { %10527 = vst [vmem:[#allocation16_spill] sm:$0xff] %v8160_v60  ;;  %v10533_v60 = vld [vmem:[#allocation122_spill] sm:$0xff]  ;;  %v8180_v44 = vmul.f32 %v6042_v41, %v8162_v59  ;;  %v2342_v62 = vmul.u32 2146121005, %v2278_v1  ;;  %v10539_v41 = vld [vmem:[#allocation25_spill] sm:$0xff] }
 0x2df   : > { %10528 = vst [vmem:[#allocation75_spill] sm:$0xff] %v8162_v59  ;;  %v1091_v51 = vmul.f32 %v10533_v60, %v10532_v46  ;;  %v2279_v46 = vxor.u32 %v5143_v7, %v2087_v25  ;;  %v1961_v60 = vmul.u32 2654435761, %v1929_v6  ;;  %v5209_v43 = vshrl.u32 %v2345_v29, 15  ;;  %v10540_v59 = vld [vmem:[#allocation124_spill] sm:$0xff] }
 0x2e0   : > { %10529 = vst [vmem:[#allocation143_spill] sm:$0xff] %v8165_v33  ;;  %v3518_v18 = vmax.f32 %v8177_v36, %v8180_v44  ;;  %v1093_v37 = vmul.f32 %v10540_v59, %v10539_v41  ;;  %v2023_v38 = vadd.s32 %v6558_v17, %v1960_v42  ;;  %v5206_v30 = vshrl.u32 %v2342_v62, 15 }
 0x2e1   : > { %10534 = vst [vmem:[#allocation144_spill] sm:$0xff] %v8177_v36  ;;  %v8183_v16 = vadd.f32 %v1091_v51, %v1090_v2  ;;  %v2343_v54 = vmul.u32 2146121005, %v2279_v46  ;;  %v2024_v51 = vadd.s32 %v10361_v40, %v1960_v42  ;;  %v2025_v2 = vadd.s32 %v6558_v17, %v1961_v60  ;;  %v10547_v17 = vld [vmem:[#allocation36_spill] sm:$0xff] }
 0x2e2   : > { %3974 = vmin.xlane.f32.xlu1 %v8165_v33  ;;  %3516 = vmax.xlane.f32.xlu2 %v3515_v35  ;;  %10535 = vst [vmem:[#allocation146_spill] sm:$0xff] %v8180_v44  ;;  %v5208_v35 = vshrl.u32 %v2344_v39, 15  ;;  %v10538_v33 = vld [vmem:[#allocation123_spill] sm:$0xff]  ;;  %v2537_v32 = vxor.u32 %v5209_v43, %v2345_v29  ;;  %v2026_v7 = vadd.s32 %v10361_v40, %v1961_v60 }
 0x2e3   : > { %10536 = vst [vmem:[#allocation145_spill] sm:$0xff] %v8183_v16  ;;  %v1092_v22 = vmul.f32 %v10538_v33, %v10537_v31  ;;  %v2090_v1 = vadd.s32 %v10359_v8, %v2023_v38  ;;  %v5207_v31 = vshrl.u32 %v2343_v54, 15  ;;  %v2091_v41 = vadd.s32 %v10359_v8, %v2024_v51  ;;  %v10544_v43 = vld [vmem:[#allocation31_spill] sm:$0xff] }
 0x2e4   : > { %v2536_v25 = vxor.u32 %v5208_v35, %v2344_v39  ;;  %v2534_v16 = vxor.u32 %v5206_v30, %v2342_v62  ;;  %v2092_v46 = vadd.s32 %v10359_v8, %v2025_v2  ;;  %v2601_v59 = vmul.u32 2221713035, %v2537_v32  ;;  %v10542_v39 = vld [vmem:[#allocation97_spill] sm:$0xff]  ;;  %v10545_v29 = vld [vmem:[#allocation127_spill] sm:$0xff] }
 0x2e5   : > { %v8196_v6 = vadd.f32 %v1093_v37, %v1092_v22  ;;  %v2093_v42 = vadd.s32 %v10359_v8, %v2026_v7  ;;  %v10543_v35 = vld [vmem:[#allocation125_spill] sm:$0xff]  ;;  %v1095_v60 = vmul.f32 %v10545_v29, %v10544_v43  ;;  %v5146_v44 = vshrl.u32 %v2090_v1, 16  ;;  %v10548_v43 = vld [vmem:[#allocation128_spill] sm:$0xff] }
 0x2e6   : > { %v1094_v33 = vmul.f32 %v10543_v35, %v10542_v39  ;;  %v2535_v38 = vxor.u32 %v5207_v31, %v2343_v54  ;;  %v5147_v22 = vshrl.u32 %v2091_v41, 16  ;;  %v5148_v36 = vshrl.u32 %v2092_v46, 16  ;;  %v10549_v54 = vld [vmem:[#allocation37_spill] sm:$0xff]  ;;  %v10550_v31 = vld [vmem:[#allocation134_spill] sm:$0xff] }
 0x2e7   : > { %10541 = vst [vmem:[#allocation98_spill] sm:$0xff] %v8196_v6  ;;  %v2598_v6 = vmul.u32 2221713035, %v2534_v16  ;;  %v5273_v51 = vshrl.u32 %v2601_v59, 16  ;;  %v2282_v62 = vxor.u32 %v5146_v44, %v2090_v1  ;;  %v1096_v29 = vmul.f32 %v10548_v43, %v10547_v17 }
 0x2e8   : > { %v8205_v30 = vadd.f32 %v1095_v60, %v1094_v33  ;;  %v2599_v2 = vmul.u32 2221713035, %v2535_v38  ;;  %v2283_v32 = vxor.u32 %v5147_v22, %v2091_v41  ;;  %v2284_v40 = vxor.u32 %v5148_v36, %v2092_v46 }
 0x2e9   : > { %v5270_v8 = vshrl.u32 %v2598_v6, 16  ;;  %v2793_v39 = vxor.u32 %v5273_v51, %v2601_v59  ;;  %v1097_v12 = vmul.f32 %v10550_v31, %v10549_v54  ;;  %v2346_v16 = vmul.u32 2146121005, %v2282_v62  ;;  %v10552_v54 = vld [vmem:[#allocation46_spill] sm:$0xff] }
 0x2ea   : > { %3519 = vmax.xlane.f32.xlu1 %v3518_v18  ;;  %v2600_v18 = vmul.u32 2221713035, %v2536_v25  ;;  %v5149_v25 = vshrl.u32 %v2093_v42, 16  ;;  %10546 = vst [vmem:[#allocation17_spill] sm:$0xff] %v8205_v30  ;;  %v5271_v11 = vshrl.u32 %v2599_v2, 16  ;;  %v10566_v30 = vld [vmem:[#allocation26_spill] sm:$0xff] }
 0x2eb   : > { %v2347_v27 = vmul.u32 2146121005, %v2283_v32  ;;  %v2790_v44 = vxor.u32 %v5270_v8, %v2598_v6  ;;  %v2348_v33 = vmul.u32 2146121005, %v2284_v40  ;;  %v5337_v1 = vshrl.u32 %v2793_v39, 8 }
 0x2ec   : > { %v5272_v37 = vshrl.u32 %v2600_v18, 16  ;;  %v2285_v35 = vxor.u32 %v5149_v25, %v2093_v42  ;;  %v5210_v41 = vshrl.u32 %v2346_v16, 15  ;;  %v2791_v36 = vxor.u32 %v5271_v11, %v2599_v2 }
 0x2ed   : > { %v5211_v59 = vshrl.u32 %v2347_v27, 15  ;;  %v5334_v42 = vshrl.u32 %v2790_v44, 8  ;;  %v5212_v38 = vshrl.u32 %v2348_v33, 15  ;;  %v2985_v17 = vcvt.s32.f32 %v5337_v1  ;;  %v10553_v44 = vld [vmem:[#allocation135_spill] sm:$0xff] }
 0x2ee   : > { %v2792_v7 = vxor.u32 %v5272_v37, %v2600_v18  ;;  %v2349_v60 = vmul.u32 2146121005, %v2285_v35  ;;  %v8211_v18 = vadd.f32 %v1097_v12, %v1096_v29  ;;  %v2538_v37 = vxor.u32 %v5210_v41, %v2346_v16  ;;  %v10555_v16 = vld [vmem:[#allocation136_spill] sm:$0xff] }
 0x2ef   : > { %v5335_v51 = vshrl.u32 %v2791_v36, 8  ;;  %v2539_v25 = vxor.u32 %v5211_v59, %v2347_v27  ;;  %v2982_v32 = vcvt.s32.f32 %v5334_v42  ;;  %v3049_v8 = vmul.f32 5.9604645e-08, %v2985_v17  ;;  %v10558_v17 = vld [vmem:[#allocation107_spill] sm:$0xff] }
 0x2f0   : > { %v5336_v50 = vshrl.u32 %v2792_v7, 8  ;;  %10551 = vst [vmem:[#allocation7_spill] sm:$0xff] %v8211_v18  ;;  %v5213_v22 = vshrl.u32 %v2349_v60, 15  ;;  %v2540_v7 = vxor.u32 %v5212_v38, %v2348_v33  ;;  %v2602_v6 = vmul.u32 2221713035, %v2538_v37  ;;  %v10554_v18 = vld [vmem:[#allocation47_spill] sm:$0xff] }
 0x2f1   : > { %v2983_v35 = vcvt.s32.f32 %v5335_v51  ;;  %v2603_v39 = vmul.u32 2221713035, %v2539_v25  ;;  %v3046_v29 = vmul.f32 5.9604645e-08, %v2982_v32  ;;  %v3113_v2 = vadd.f32 1e-09, %v3049_v8  ;;  %v10556_v33 = vld [vmem:[#allocation48_spill] sm:$0xff] }
 0x2f2   : > { %v2984_v46 = vcvt.s32.f32 %v5336_v50  ;;  %v2541_v40 = vxor.u32 %v5213_v22, %v2349_v60  ;;  %v2604_v11 = vmul.u32 2221713035, %v2540_v7  ;;  %v1098_v1 = vmul.f32 %v10553_v44, %v10552_v54  ;;  %v10559_v22 = vld [vmem:[#allocation110_spill] sm:$0xff] }
 0x2f3   : > { %v1099_v41 = vmul.f32 %v10555_v16, %v10554_v18  ;;  %v5274_v27 = vshrl.u32 %v2602_v6, 16  ;;  %v3047_v36 = vmul.f32 5.9604645e-08, %v2983_v35  ;;  %v5275_v59 = vshrl.u32 %v2603_v39, 16  ;;  %v10560_v51 = vld [vmem:[#allocation70_spill] sm:$0xff]  ;;  %v10564_v35 = vld [vmem:[#allocation79_spill] sm:$0xff] }
 0x2f4   : > { %v3048_v62 = vmul.f32 5.9604645e-08, %v2984_v46  ;;  %v2605_v50 = vmul.u32 2221713035, %v2541_v40  ;;  %v10557_v46 = vld [vmem:[#allocation109_spill] sm:$0xff]  ;;  %v3110_v42 = vadd.f32 1e-09, %v3046_v29  ;;  %v1101_v37 = vmul.f32 %v10559_v22, %v10558_v17 }
 0x2f5   : > { %v1100_v60 = vmul.f32 %v10557_v46, %v10556_v33  ;;  %v5276_v38 = vshrl.u32 %v2604_v11, 16  ;;  %v10561_v25 = vld [vmem:[#allocation78_spill] sm:$0xff]  ;;  %v2794_v7 = vxor.u32 %v5274_v27, %v2602_v6  ;;  %v8225_v18 = vadd.f32 %v1099_v41, %v1098_v1  ;;  %v10565_v33 = vld [vmem:[#allocation23_spill] sm:$0xff] }
 0x2f6   : > { %v3112_v12 = vadd.f32 1e-09, %v3048_v62  ;;  %v8223_v62 = vsub.f32 %v10561_v25, %v10560_v51  ;;  %v5277_v32 = vshrl.u32 %v2605_v50, 16  ;;  %v10563_v8 = vld [vmem:[#allocation22_spill] sm:$0xff]  ;;  %v3111_v29 = vadd.f32 1e-09, %v3047_v36 }
 0x2f7   : > { %10562 = vst [vmem:[#allocation8_spill] sm:$0xff] %v8225_v18  ;;  %v1102_v40 = vmul.f32 %v7767_v57, %v10563_v8  ;;  %v2795_v54 = vxor.u32 %v5275_v59, %v2603_v39  ;;  %v1103_v17 = vmul.f32 %v7782_v24, %v10565_v33  ;;  %v8237_v25 = vmul.f32 %v7804_v19, %v10566_v30  ;;  %v10567_v1 = vld [vmem:[#allocation30_spill] sm:$0xff]  ;;  %v3502_v8 = vpop.xlane.xlu0 %3501  ;;  %v10570_v36 = vld [vmem:[#allocation27_spill] sm:$0xff] }
 0x2f8   : > { %6043 = vlog2.f32 %v3112_v12  ;;  %v8231_v12 = vsub.f32 %v10564_v35, %v10560_v51  ;;  %v2796_v6 = vxor.u32 %v5276_v38, %v2604_v11  ;;  %v10568_v41 = vld [vmem:[#allocation82_spill] sm:$0xff]  ;;  %v2797_v51 = vxor.u32 %v5277_v32, %v2605_v50  ;;  %v10571_v11 = vld [vmem:[#allocation83_spill] sm:$0xff] }
 0x2f9   : > { %6045 = vlog2.f32 %v3113_v2  ;;  %v944_v2 = vmul.f32 1.442695, %v8223_v62  ;;  %v8242_v27 = vsub.f32 %v10568_v41, %v10567_v1  ;;  %v8244_v35 = vadd.f32 %v1101_v37, %v1100_v60  ;;  %v10572_v32 = vld [vmem:[#allocation126_spill] sm:$0xff] }
 0x2fa   : > { %6047 = vlog2.f32 %v3110_v42  ;;  %v8248_v59 = vmul.f32 %v7812_v3, %v10570_v36  ;;  %v8252_v30 = vmul.f32 %v7816_v9, %v7755_v20  ;;  %v8256_v42 = vsub.f32 %v10571_v11, %v10567_v1  ;;  %v10573_v41 = vld [vmem:[#allocation86_spill] sm:$0xff] }
 0x2fb   : > { %10569 = vst [vmem:[#allocation69_spill] sm:$0xff] %v8244_v35  ;;  %v5338_v38 = vshrl.u32 %v2794_v7, 8  ;;  %v8260_v50 = vmul.f32 %v7827_v0, %v7759_v47  ;;  %v946_v60 = vmul.f32 1.442695, %v8231_v12  ;;  %6049 = vlog2.f32 %v3111_v29  ;;  %v10574_v20 = vld [vmem:[#allocation114_spill] sm:$0xff]  ;;  %v10575_v35 = vld [vmem:[#allocation148_spill] sm:$0xff] }
 0x2fc   : > { %v5339_v37 = vshrl.u32 %v2795_v54, 8  ;;  %v8265_v36 = vsub.f32 %v10573_v41, %v10572_v32  ;;  %vm3576_vm0 = vcmp.eq.f32.partialorder %v10574_v20, %v3502_v8  ;;  %vm3577_vm1 = vcmp.eq.f32.partialorder %v10575_v35, %v3502_v8 }
 0x2fd   : > { %v5340_v1 = vshrl.u32 %v2796_v6, 8  ;;  %v8271_v7 = vmul.f32 %v8016_v55, %v7905_v28  ;;  %6051 = vpow2.f32 %v944_v2  ;;  %v948_v47 = vmul.f32 1.442695, %v8242_v27 }
 0x2fe   : > { %v6044_v39 = vpop.eup %6043  ;;  %v5341_v11 = vshrl.u32 %v2797_v51, 8  ;;  %v950_v29 = vmul.f32 1.442695, %v8256_v42  ;;  %v2986_v41 = vcvt.s32.f32 %v5338_v38  ;;  %v3640_v9 = vsel %vm3576_vm0, %v6542_v10, 256 }
 0x2ff   : > { %v6046_v33 = vpop.eup %6045  ;;  %v3233_v54 = vmul.f32 0.6931472, %v6044_v39  ;;  %v3641_v20 = vsel %vm3577_vm1, %v10268_v48, 256  ;;  %v3906_v6 = vand.u32 65535, %v7863_v21  ;;  %v2987_v8 = vcvt.s32.f32 %v5339_v37 }
 0x300   : > { %v6048_v18 = vpop.eup %6047  ;;  %v3235_v0 = vmul.f32 0.6931472, %v6046_v33  ;;  %v8280_v28 = vmul.f32 %v8061_v53, %v7986_v4  ;;  %6053 = vpow2.f32 %v946_v60  ;;  %v952_v2 = vmul.f32 1.442695, %v8265_v36 }
 0x301   : > { %v2988_v51 = vcvt.s32.f32 %v5340_v1  ;;  %v6050_v35 = vpop.eup %6049  ;;  %6055 = vpow2.f32 %v948_v47  ;;  %v3229_v39 = vmul.f32 0.6931472, %v6048_v18  ;;  %v2989_v33 = vcvt.s32.f32 %v5341_v11 }
 0x302   : > { %v8283_v38 = vadd.f32 %v1103_v17, %v1102_v40  ;;  %v3773_v22 = vcvt.f32.s32 %v7896_v23  ;;  %vm3984_vm3 = vcmp.lt.s32.totalorder %v3640_v9, %v3641_v20  ;;  %v3304_v46 = vsub.f32 0.0, %v3233_v54 }
 0x303   : > { %v3050_v21 = vmul.f32 5.9604645e-08, %v2986_v41  ;;  %v8286_v37 = vpop.eup %6051  ;;  %6057 = vpow2.f32 %v950_v29  ;;  %v3908_v60 = vcvt.s32.f32 %v3906_v6  ;;  %v3305_v53 = vsub.f32 0.0, %v3235_v0 }
 0x304   : > { %10576 = vst [vmem:[#allocation76_spill] sm:$0xff] %v8283_v38  ;;  %v3051_v55 = vmul.f32 5.9604645e-08, %v2987_v8  ;;  %6059 = vpow2.f32 %v952_v2  ;;  %v3231_v18 = vmul.f32 0.6931472, %v6050_v35  ;;  %v3052_v40 = vmul.f32 5.9604645e-08, %v2988_v51  ;;  %v10579_v8 = vld [vmem:[#allocation87_spill] sm:$0xff] }
 0x305   : > { %10577 = vst [vmem:[#allocation147_spill] sm:$0xff] %v8286_v37  ;;  %v8292_v23 = vsel %vm3984_vm3, %v3640_v9, %v3641_v20  ;;  %v3302_v47 = vsub.f32 0.0, %v3229_v39  ;;  %v3053_v11 = vmul.f32 5.9604645e-08, %v2989_v33  ;;  %v3774_v29 = vshll.u32 %v3773_v22, 16 }
 0x306   : > { %v8294_v54 = vpop.eup %6053  ;;  %6061 = vrcp.f32 %v3304_v46  ;;  %v3114_v0 = vadd.f32 1e-09, %v3050_v21  ;;  %v8304_v9 = vsub.f32 %v10579_v8, %v10572_v32  ;;  %v3115_v20 = vadd.f32 1e-09, %v3051_v55  ;;  %v10581_v55 = vld [vmem:[#allocation130_spill] sm:$0xff] }
 0x307   : > { %10578 = vst [vmem:[#allocation111_spill] sm:$0xff] %v8294_v54  ;;  %v8296_v6 = vpop.eup %6055  ;;  %6063 = vrcp.f32 %v3305_v53  ;;  %v3821_v2 = vcvt.f32.s32 %v7917_v52  ;;  %v3987_v51 = vshra.s32 %v8292_v23, 16  ;;  %v3116_v46 = vadd.f32 1e-09, %v3052_v40  ;;  %v10582_v53 = vld [vmem:[#allocation101_spill] sm:$0xff] }
 0x308   : > { %v3303_v39 = vsub.f32 0.0, %v3231_v18  ;;  %6065 = vrcp.f32 %v3302_v47  ;;  %v3117_v33 = vadd.f32 1e-09, %v3053_v11  ;;  %v954_v52 = vmul.f32 1.442695, %v8304_v9  ;;  %v10583_v47 = vld [vmem:[#allocation102_spill] sm:$0xff] }
 0x309   : > { %v8308_v35 = vpop.eup %6057  ;;  %6067 = vlog2.f32 %v3114_v0  ;;  %v8325_v32 = vsub.f32 %v10582_v53, %v10581_v55  ;;  %v3822_v18 = vshll.u32 %v3821_v2, 16  ;;  %v8334_v11 = vsub.f32 %v10583_v47, %v10581_v55 }
 0x30a   : > { %v8314_v21 = vpop.eup %6059  ;;  %6069 = vlog2.f32 %v3115_v20  ;;  %v3890_v20 = vand.u32 65535, %v7926_v5  ;;  %v8349_v2 = vadd.f32 %v8260_v50, %v8252_v30  ;;  %v10586_v50 = vld [vmem:[#allocation60_spill] sm:$0xff] }
 0x30b   : > { %6071 = vlog2.f32 %v3116_v46  ;;  %v10585_v46 = vld [vmem:[#allocation96_spill] sm:$0xff]  ;;  %v956_v53 = vmul.f32 1.442695, %v8325_v32 }
 0x30c   : > { %6073 = vlog2.f32 %v3117_v33  ;;  %10584 = vst [vmem:[#allocation140_spill] sm:$0xff] %v8349_v2  ;;  %v8363_v30 = vmul.f32 %v10585_v46, %v8027_v49 }
 0x30d   : > { %6075 = vrcp.f32 %v3303_v39  ;;  %v3805_v39 = vcvt.f32.s32 %v10586_v50  ;;  %v10587_v50 = vld [vmem:[#allocation119_spill] sm:$0xff] }
 0x30e   : > { %6077 = vpow2.f32 %v954_v52 }
 0x30f   : > { %v3806_v2 = vshll.u32 %v3805_v39, 16  ;;  %6079 = vpow2.f32 %v956_v53 }
 0x31b   : > { %v8288_v4 = vpop.xlane.xlu0 %3910 }
 0x31c   : > { %vm3912_vm4 = vcmp.eq.f32.partialorder %v7880_v45, %v8288_v4  ;;  %v8300_v45 = vmul.f32 %v8101_v13, %v8011_v15  ;;  %v8312_v15 = vadd.f32 %v8248_v59, %v8237_v25  ;;  %v10588_v13 = vld [vmem:[#allocation63_spill] sm:$0xff] }
 0x31d   : > { %v3771_v17 = vpop.xlane.xlu1 %3770  ;;  %v3913_v1 = vsel %vm3912_vm4, %v3908_v60, inf  ;;  %v6062_v60 = vpop.eup %6061 }
 0x31e   : > { %v3772_v41 = vcvt.f32.s32 %v3771_v17  ;;  %3914 = vmin.xlane.f32.xlu0 %v3913_v1  ;;  %10580 = vst [vmem:[#allocation77_spill] sm:$0xff] %v8312_v15  ;;  %v8330_v17 = vcvt.s32.f32 %v3987_v51  ;;  %v6064_v1 = vpop.eup %6063  ;;  %v3938_v51 = vand.u32 65535, %v7933_v58  ;;  %v8372_v58 = vmul.f32 %v6062_v60, %v8296_v6 }
 0x31f   : > { %v8379_v47 = vmul.f32 %v6064_v1, %v8308_v35 }
 0x320   : > { %v3775_v22 = vadd.s32 %v3774_v29, %v3772_v41  ;;  %v6066_v41 = vpop.eup %6065  ;;  %v3940_v60 = vcvt.s32.f32 %v3938_v51 }
 0x322   : > { %4182 = vst.msk [vmem:[%s7824_s19 + $0x30] sm:$0xff] %vm1828_vm2, %v3775_v22  ;;  %vm4220_vm5 = vcmp.eq.s32.totalorder %v6542_v10, %v3775_v22  ;;  %vm4221_vm7 = vcmp.eq.s32.totalorder %v10268_v48, %v3775_v22  ;;  %v6068_v22 = vpop.eup %6067 }
 0x323   : > { %v3819_v25 = vpop.xlane.xlu2 %3818  ;;  %v3508_v59 = vpop.xlane.xlu0 %3507  ;;  %vm5478_vm8 = vmpackc.low %vm4222_vm6, %vm4220_vm5 }
 0x324   : > { %v3820_v40 = vcvt.f32.s32 %v3819_v25  ;;  %5479 = vmatmul.msk.bf16.gmra.mxu2 %vm5478_vm8, %v10452_v34  ;;  %vm5510_vm10 = vmpackc.low %vm4223_vm9, %vm4221_vm7  ;;  %vm3580_vm11 = vcmp.eq.f32.partialorder %v7843_v61, %v3508_v59  ;;  %vm3581_vm12 = vcmp.eq.f32.partialorder %v7874_v63, %v3508_v59  ;;  %v6070_v5 = vpop.eup %6069  ;;  %v958_v63 = vmul.f32 1.442695, %v8334_v11 }
 0x325   : > { %5511 = vmatmul.msk.bf16.gmra.mxu3 %vm5510_vm10, %v10452_v34  ;;  %v3505_v56 = vpop.xlane.xlu1 %3504  ;;  %v6072_v61 = vpop.eup %6071  ;;  %v3239_v38 = vmul.f32 0.6931472, %v6070_v5  ;;  %v8395_v5 = vmul.f32 %v6066_v41, %v8286_v37  ;;  %v3524_v41 = vmax.f32 %v8372_v58, %v8379_v47 }
 0x326   : > { %v8339_v29 = vadd.s32 %v3822_v18, %v3820_v40  ;;  %vm3578_vm13 = vcmp.eq.f32.partialorder %v7877_v14, %v3505_v56  ;;  %vm3579_vm14 = vcmp.eq.f32.partialorder %v7883_v26, %v3505_v56  ;;  %3990 = vmin.xlane.f32.xlu0 %v8330_v17  ;;  %v3644_v14 = vsel %vm3580_vm11, %v6542_v10, 256  ;;  %v6074_v18 = vpop.eup %6073 }
 0x327   : > { %v3642_v0 = vsel %vm3578_vm13, %v6542_v10, 256  ;;  %v3643_v8 = vsel %vm3579_vm14, %v10268_v48, 256  ;;  %v3645_v26 = vsel %vm3581_vm12, %v10268_v48, 256  ;;  %v3892_v40 = vcvt.s32.f32 %v3890_v20 }
 0x328   : > { %4185 = vst.msk [vmem:[%s7824_s19 + $0x48] sm:$0xff] %vm1828_vm2, %v8339_v29  ;;  %vm4000_vm15 = vcmp.lt.s32.totalorder %v3642_v0, %v3643_v8  ;;  %vm4016_vm0 = vcmp.lt.s32.totalorder %v3644_v14, %v3645_v26  ;;  %v3237_v56 = vmul.f32 0.6931472, %v6068_v22  ;;  %v3241_v20 = vmul.f32 0.6931472, %v6072_v61 }
 0x329   : > { %v4569_v33 = vpop.f32.mrf.mxu2  ;;  %v8366_v55 = vsel %vm4000_vm15, %v3642_v0, %v3643_v8  ;;  %v6076_v0 = vpop.eup %6075  ;;  %v8390_v22 = vsel %vm4016_vm0, %v3644_v14, %v3645_v26  ;;  %v3307_v26 = vsub.f32 0.0, %v3239_v38  ;;  %6081 = vpow2.f32 %v958_v63 }
 0x32a   : > { %v4658_v25 = vpop.f32.mrf.mxu3  ;;  %v4003_v59 = vshra.s32 %v8366_v55, 16  ;;  %v8392_v51 = vpop.eup %6077  ;;  %v8403_v14 = vmul.f32 %v6076_v0, %v8294_v54  ;;  %v4019_v53 = vshra.s32 %v8390_v22, 16  ;;  %vm4226_vm5 = vcmp.eq.s32.totalorder %v6542_v10, %v8339_v29 }
 0x32b   : > { %v8374_v49 = vpop.xlane.xlu2 %3894  ;;  %v8376_v52 = vpop.xlane.xlu0 %3942  ;;  %vm4227_vm8 = vcmp.eq.s32.totalorder %v10268_v48, %v8339_v29 }
 0x32c   : > { %v8381_v8 = vcvt.s32.f32 %v4003_v59  ;;  %vm3896_vm1 = vcmp.eq.f32.partialorder %v10587_v50, %v8374_v49  ;;  %vm3944_vm3 = vcmp.eq.f32.partialorder %v10588_v13, %v8376_v52  ;;  %v3243_v59 = vmul.f32 0.6931472, %v6074_v18  ;;  %v8423_v50 = vpop.eup %6079 }
 0x32d   : > { %v3803_v15 = vpop.xlane.xlu1 %3802  ;;  %v3897_v46 = vsel %vm3896_vm1, %v3892_v40, inf  ;;  %v3945_v1 = vsel %vm3944_vm3, %v3940_v60, inf  ;;  %v3306_v13 = vsub.f32 0.0, %v3237_v56  ;;  %v3308_v40 = vsub.f32 0.0, %v3241_v20  ;;  %v10591_v20 = vld [vmem:[#allocation80_spill] sm:$0xff] }
 0x32e   : > { %v3804_v3 = vcvt.f32.s32 %v3803_v15  ;;  %4006 = vmin.xlane.f32.xlu1 %v8381_v8  ;;  %3898 = vmin.xlane.f32.xlu2 %v3897_v46  ;;  %v8399_v15 = vadd.f32 %v8280_v28, %v8271_v7  ;;  %v10590_v46 = vld [vmem:[#allocation61_spill] sm:$0xff]  ;;  %v4659_v28 = vadd.f32 %v4658_v25, %v4569_v33  ;;  %v3521_v0 = vmax.f32 %v8395_v5, %v8403_v14 }
 0x32f   : > { %3946 = vmin.xlane.f32.xlu0 %v3945_v1  ;;  %v3853_v39 = vcvt.f32.s32 %v10590_v46  ;;  %6083 = vrcp.f32 %v3306_v13  ;;  %v8426_v60 = vcvt.s32.f32 %v4019_v53  ;;  %v10592_v1 = vld [vmem:[#allocation81_spill] sm:$0xff] }
 0x330   : > { %10589 = vst [vmem:[#allocation141_spill] sm:$0xff] %v8399_v15  ;;  %v3807_v61 = vadd.s32 %v3806_v2, %v3804_v3  ;;  %v3309_v3 = vsub.f32 0.0, %v3243_v59  ;;  %6085 = vrcp.f32 %v3307_v26  ;;  %v8432_v59 = vpop.eup %6081  ;;  %v8444_v26 = vadd.f32 %v8363_v30, %v8300_v45 }
 0x331   : > { %v4571_v18 = vpop.f32.mrf.mxu2  ;;  %v3854_v63 = vshll.u32 %v3853_v39, 16  ;;  %6087 = vrcp.f32 %v3308_v40  ;;  %v10593_v39 = vld [vmem:[#allocation67_spill] sm:$0xff]  ;;  %v10595_v40 = vld [vmem:[#allocation9_spill] sm:$0xff] }
 0x332   : > { %4184 = vst.msk [vmem:[%s7824_s19 + $0x40] sm:$0xff] %vm1828_vm2, %v3807_v61  ;;  %v4660_v7 = vpop.f32.mrf.mxu3  ;;  %vm4224_vm4 = vcmp.eq.s32.totalorder %v6542_v10, %v3807_v61  ;;  %vm4225_vm6 = vcmp.eq.s32.totalorder %v10268_v48, %v3807_v61  ;;  %6089 = vrcp.f32 %v3309_v3  ;;  %v3922_v61 = vand.u32 65535, %v10593_v39 }
 0x333   : > { %v4661_v38 = vadd.f32 %v4660_v7, %v4571_v18  ;;  %v3851_v2 = vpop.xlane.xlu2 %3850  ;;  %vm5480_vm7 = vmpackc.low %vm4226_vm5, %vm4224_vm4  ;;  %10594 = vst [vmem:[#allocation149_spill] sm:$0xff] %v8444_v26  ;;  %v1896_v7 = vadd.s32 248, %v10595_v40  ;;  %v10602_v26 = vld [vmem:[#allocation85_spill] sm:$0xff] }
 0x334   : > { %v3852_v56 = vcvt.f32.s32 %v3851_v2  ;;  %5481 = vmatmul.msk.bf16.gmra.mxu2 %vm5480_vm7, %v10452_v34  ;;  %vm5512_vm9 = vmpackc.low %vm4227_vm8, %vm4225_vm6  ;;  %v3924_v39 = vcvt.s32.f32 %v3922_v61 }
 0x335   : > { %v5585_v33 = vpack.c.bf16 %v4661_v38, %v4659_v28  ;;  %5513 = vmatmul.msk.bf16.gmra.mxu3 %vm5512_vm9, %v10452_v34  ;;  %v3511_v25 = vpop.xlane.xlu1 %3510  ;;  %v6084_v18 = vpop.eup %6083  ;;  %v10596_v28 = vld [vmem:[#allocation129_spill] sm:$0xff] }
 0x336   : > { %v8428_v29 = vadd.s32 %v3854_v63, %v3852_v56  ;;  %vm3582_vm10 = vcmp.eq.f32.partialorder %v10591_v20, %v3511_v25  ;;  %vm3583_vm11 = vcmp.eq.f32.partialorder %v10592_v1, %v3511_v25  ;;  %3525 = vmax.xlane.f32.xlu1 %v3524_v41  ;;  %3522 = vmax.xlane.f32.xlu2 %v3521_v0  ;;  %v6086_v3 = vpop.eup %6085  ;;  %v10597_v38 = vld [vmem:[#allocation49_spill] sm:$0xff]  ;;  %v10599_v56 = vld [vmem:[#allocation75_spill] sm:$0xff] }
 0x337   : > { %5586 = vst [vmem:[%s8435_s22] sm:$0xff] %v5585_v33   ;;  %v3646_v13 = vsel %vm3582_vm10, %v6542_v10, 256  ;;  %v3647_v46 = vsel %vm3583_vm11, %v10268_v48, 256  ;;  %4022 = vmin.xlane.f32.xlu0 %v8426_v60  ;;  %v1112_v2 = vmul.f32 %v10597_v38, %v10596_v28  ;;  %v10598_v63 = vld [vmem:[#allocation133_spill] sm:$0xff]  ;;  %v10600_v33 = vld [vmem:[#allocation90_spill] sm:$0xff]  ;;  %v6088_v20 = vpop.eup %6087  ;;  %v8469_v61 = vmul.f32 %v6084_v18, %v8314_v21 }
 0x338   : > { %4187 = vst.msk [vmem:[%s7824_s19 + $0x58] sm:$0xff] %vm1828_vm2, %v8428_v29  ;;  %vm4032_vm12 = vcmp.lt.s32.totalorder %v3646_v13, %v3647_v46  ;;  %v1113_v0 = vmul.f32 %v10599_v56, %v10598_v63  ;;  %v3837_v45 = vcvt.f32.s32 %v10600_v33  ;;  %v6090_v15 = vpop.eup %6089  ;;  %v1114_v18 = vmul.f32 %v8286_v37, %v8223_v62 }
 0x339   : > { %v4574_v41 = vpop.f32.mrf.mxu2  ;;  %v8449_v53 = vsel %vm4032_vm12, %v3646_v13, %v3647_v46  ;;  %v10601_v13 = vld [vmem:[#allocation10_spill] sm:$0xff]  ;;  %vm4230_vm15 = vcmp.eq.s32.totalorder %v6542_v10, %v8428_v29  ;;  %vm4231_vm1 = vcmp.eq.s32.totalorder %v10268_v48, %v8428_v29  ;;  %v1116_v37 = vmul.f32 %v8296_v6, %v8242_v27  ;;  %v10612_v27 = vld [vmem:[#allocation137_spill] sm:$0xff] }
 0x33a   : > { %v4663_v30 = vpop.f32.mrf.mxu3  ;;  %v4035_v25 = vshra.s32 %v8449_v53, 16  ;;  %v1930_v46 = vadd.s32 %v10601_v13, %v1896_v7  ;;  %v3838_v56 = vshll.u32 %v3837_v45, 16  ;;  %v8466_v19 = vadd.f32 %v1113_v0, %v1112_v2  ;;  %v10607_v0 = vld [vmem:[#allocation14_spill] sm:$0xff] }
 0x33b   : > { %v8458_v1 = vpop.xlane.xlu2 %3926  ;;  %v8472_v7 = vmul.f32 %v6086_v3, %v8392_v51  ;;  %v1115_v3 = vmul.f32 %v8294_v54, %v8231_v12  ;;  %v4664_v62 = vadd.f32 %v4663_v30, %v4574_v41 }
 0x33c   : > { %v8461_v40 = vcvt.s32.f32 %v4035_v25  ;;  %vm3928_vm13 = vcmp.eq.f32.partialorder %v10602_v26, %v8458_v1  ;;  %v1962_v63 = vmul.u32 2654435761, %v1930_v46  ;;  %10603 = vst [vmem:[#allocation150_spill] sm:$0xff] %v8466_v19  ;;  %v10604_v25 = vld [vmem:[#allocation12_spill] sm:$0xff]  ;;  %v10605_v26 = vld [vmem:[#allocation13_spill] sm:$0xff] }
 0x33d   : > { %v3835_v28 = vpop.xlane.xlu1 %3834  ;;  %v3929_v38 = vsel %vm3928_vm13, %v3924_v39, inf  ;;  %v10606_v39 = vld [vmem:[#allocation131_spill] sm:$0xff]  ;;  %v8507_v19 = vadd.f32 %v1115_v3, %v1114_v18 }
 0x33e   : > { %v3836_v33 = vcvt.f32.s32 %v3835_v28  ;;  %4038 = vmin.xlane.f32.xlu1 %v8461_v40  ;;  %3930 = vmin.xlane.f32.xlu2 %v3929_v38  ;;  %v2027_v13 = vadd.s32 %v10604_v25, %v1962_v63  ;;  %v2028_v24 = vadd.s32 %v10605_v26, %v1962_v63  ;;  %v3885_v46 = vcvt.f32.s32 %v10606_v39  ;;  %v10611_v3 = vld [vmem:[#allocation139_spill] sm:$0xff] }
 0x33f   : > { %v8478_v28 = vmul.f32 %v6088_v20, %v8423_v50  ;;  %v8481_v38 = vmul.f32 %v6090_v15, %v8432_v59  ;;  %v3527_v39 = vmax.f32 %v8469_v61, %v8472_v7  ;;  %10609 = vst [vmem:[#allocation18_spill] sm:$0xff] %v8507_v19  ;;  %v10613_v19 = vld [vmem:[#allocation95_spill] sm:$0xff] }
 0x340   : > { %v3839_v45 = vadd.s32 %v3838_v56, %v3836_v33  ;;  %v2094_v25 = vadd.s32 %v10607_v0, %v2027_v13  ;;  %v2095_v63 = vadd.s32 %v10607_v0, %v2028_v24  ;;  %v3886_v33 = vshll.u32 %v3885_v46, 16  ;;  %v10608_v46 = vld [vmem:[#allocation91_spill] sm:$0xff] }
 0x341   : > { %v4576_v2 = vpop.f32.mrf.mxu2  ;;  %v3530_v26 = vmax.f32 %v8478_v28, %v8481_v38  ;;  %v3954_v0 = vand.u32 65535, %v10608_v46 }
 0x342   : > { %4186 = vst.msk [vmem:[%s7824_s19 + $0x50] sm:$0xff] %vm1828_vm2, %v3839_v45  ;;  %v4665_v56 = vpop.f32.mrf.mxu3  ;;  %vm4228_vm14 = vcmp.eq.s32.totalorder %v6542_v10, %v3839_v45  ;;  %vm4229_vm0 = vcmp.eq.s32.totalorder %v10268_v48, %v3839_v45  ;;  %v5150_v20 = vshrl.u32 %v2094_v25, 16  ;;  %v5151_v24 = vshrl.u32 %v2095_v63, 16 }
 0x343   : > { %v4666_v12 = vadd.f32 %v4665_v56, %v4576_v2  ;;  %v3883_v15 = vpop.xlane.xlu0 %3882  ;;  %vm5482_vm3 = vmpackc.low %vm4230_vm15, %vm4228_vm14 }
 0x344   : > { %v3884_v13 = vcvt.f32.s32 %v3883_v15  ;;  %5483 = vmatmul.msk.bf16.gmra.mxu2 %vm5482_vm3, %v10452_v34  ;;  %vm5514_vm4 = vmpackc.low %vm4231_vm1, %vm4229_vm0  ;;  %v2286_v30 = vxor.u32 %v5150_v20, %v2094_v25  ;;  %v2287_v45 = vxor.u32 %v5151_v24, %v2095_v63  ;;  %v1117_v25 = vmul.f32 %v8308_v35, %v8256_v42  ;;  %v10610_v63 = vld [vmem:[#allocation142_spill] sm:$0xff] }
 0x345   : > { %v5590_v29 = vpack.c.bf16 %v4666_v12, %v4664_v62  ;;  %5515 = vmatmul.msk.bf16.gmra.mxu3 %vm5514_vm4, %v10452_v34  ;;  %v8503_v41 = vpop.xlane.xlu1 %770  ;;  %v3869_v20 = vcvt.f32.s32 %v10610_v63 }
 0x346   : > { %v3887_v2 = vadd.s32 %v3886_v33, %v3884_v13  ;;  %3531 = vmax.xlane.f32.xlu1 %v3530_v26  ;;  %3528 = vmax.xlane.f32.xlu2 %v3527_v39  ;;  %v2350_v56 = vmul.u32 2146121005, %v2286_v30  ;;  %v2351_v15 = vmul.u32 2146121005, %v2287_v45  ;;  %v3956_v13 = vcvt.s32.f32 %v3954_v0 }
 0x347   : > { %5662 = vst [vmem:[%s8435_s22 + $0x8] sm:$0xff] %v5590_v29   ;;  %v3870_v46 = vshll.u32 %v3869_v20, 16  ;;  %v8522_v63 = vadd.f32 %v1117_v25, %v1116_v37  ;;  %v10614_v20 = vld [vmem:[#allocation15_spill] sm:$0xff] }
 0x348   : > { %4189 = vst.msk [vmem:[%s7824_s19 + $0x68] sm:$0xff] %vm1828_vm2, %v3887_v2  ;;  %v5214_v62 = vshrl.u32 %v2350_v56, 15  ;;  %v5215_v12 = vshrl.u32 %v2351_v15, 15  ;;  %vm4234_vm9 = vcmp.eq.s32.totalorder %v6542_v10, %v3887_v2  ;;  %vm4235_vm13 = vcmp.eq.s32.totalorder %v10268_v48, %v3887_v2 }
 0x349   : > { %v4579_v54 = vpop.f32.mrf.mxu2 }
 0x34a   : > { %v4668_v24 = vpop.f32.mrf.mxu3  ;;  %v2542_v26 = vxor.u32 %v5214_v62, %v2350_v56  ;;  %v2543_v18 = vxor.u32 %v5215_v12, %v2351_v15 }
 0x34b   : > { %v8516_v33 = vpop.xlane.xlu0 %3958 }
 0x34c   : > { %vm3960_vm5 = vcmp.eq.f32.partialorder %v10611_v3, %v8516_v33  ;;  %v2606_v30 = vmul.u32 2221713035, %v2542_v26  ;;  %v2607_v45 = vmul.u32 2221713035, %v2543_v18  ;;  %v3970_v3 = vand.u32 65535, %v10614_v20 }
 0x34d   : > { %v3514_v39 = vpop.xlane.xlu1 %3513  ;;  %v3961_v29 = vsel %vm3960_vm5, %v3956_v13, inf  ;;  %v3867_v42 = vpop.xlane.xlu2 %3866 }
 0x34e   : > { %vm3584_vm6 = vcmp.eq.f32.partialorder %v10612_v27, %v3514_v39  ;;  %vm3585_vm7 = vcmp.eq.f32.partialorder %v10613_v19, %v3514_v39  ;;  %3962 = vmin.xlane.f32.xlu2 %v3961_v29  ;;  %v3868_v15 = vcvt.f32.s32 %v3867_v42  ;;  %v5278_v62 = vshrl.u32 %v2606_v30, 16 }
 0x34f   : > { %v3648_v0 = vsel %vm3584_vm6, %v6542_v10, 256  ;;  %v3649_v56 = vsel %vm3585_vm7, %v10268_v48, 256  ;;  %v5279_v12 = vshrl.u32 %v2607_v45, 16  ;;  %v4669_v27 = vadd.f32 %v4668_v24, %v4579_v54 }
 0x350   : > { %v3871_v13 = vadd.s32 %v3870_v46, %v3868_v15  ;;  %v2798_v18 = vxor.u32 %v5278_v62, %v2606_v30  ;;  %vm4048_vm8 = vcmp.lt.s32.totalorder %v3648_v0, %v3649_v56  ;;  %v1118_v29 = vmul.f32 %v8314_v21, %v8265_v36  ;;  %v10615_v62 = vld [vmem:[#allocation143_spill] sm:$0xff] }
 0x351   : > { %v4581_v26 = vpop.f32.mrf.mxu2  ;;  %v2799_v39 = vxor.u32 %v5279_v12, %v2607_v45  ;;  %v1119_v24 = vmul.f32 %v8392_v51, %v8304_v9  ;;  %v3972_v42 = vcvt.s32.f32 %v3970_v3  ;;  %v8544_v2 = vsel %vm4048_vm8, %v3648_v0, %v3649_v56  ;;  %v10616_v9 = vld [vmem:[#allocation120_spill] sm:$0xff]  ;;  %v10617_v12 = vld [vmem:[#allocation74_spill] sm:$0xff] }
 0x352   : > { %v4670_v19 = vpop.f32.mrf.mxu3  ;;  %4188 = vst.msk [vmem:[%s7824_s19 + $0x60] sm:$0xff] %vm1828_vm2, %v3871_v13  ;;  %vm4232_vm10 = vcmp.eq.s32.totalorder %v6542_v10, %v3871_v13  ;;  %vm4233_vm11 = vcmp.eq.s32.totalorder %v10268_v48, %v3871_v13  ;;  %v5342_v25 = vshrl.u32 %v2798_v18, 8  ;;  %v4051_v56 = vshra.s32 %v8544_v2, 16 }
 0x353   : > { %v4671_v37 = vadd.f32 %v4670_v19, %v4581_v26  ;;  %vm5484_vm12 = vmpackc.low %vm4234_vm9, %vm4232_vm10  ;;  %v5343_v54 = vshrl.u32 %v2799_v39, 8  ;;  %v8551_v19 = vadd.f32 %v1119_v24, %v1118_v29  ;;  %v10620_v24 = vld [vmem:[#allocation144_spill] sm:$0xff] }
 0x354   : > { %5485 = vmatmul.msk.bf16.gmra.mxu2 %vm5484_vm12, %v10452_v34  ;;  %vm5516_vm14 = vmpackc.low %vm4235_vm13, %vm4233_vm11  ;;  %v2990_v46 = vcvt.s32.f32 %v5342_v25  ;;  %v10618_v25 = vld [vmem:[#allocation118_spill] sm:$0xff] }
 0x355   : > { %v5595_v30 = vpack.c.bf16 %v4671_v37, %v4669_v27  ;;  %v8538_v45 = vpop.xlane.xlu1 %3974  ;;  %5517 = vmatmul.msk.bf16.gmra.mxu3 %vm5516_vm14, %v10452_v34  ;;  %v3517_v15 = vpop.xlane.xlu2 %3516  ;;  %v2991_v36 = vcvt.s32.f32 %v5343_v54  ;;  %v8559_v54 = vsub.f32 %v10618_v25, %v8503_v41 }
 0x356   : > { %vm3976_vm15 = vcmp.eq.f32.partialorder %v10615_v62, %v8538_v45  ;;  %vm3586_vm0 = vcmp.eq.f32.partialorder %v10616_v9, %v3517_v15  ;;  %vm3587_vm1 = vcmp.eq.f32.partialorder %v10617_v12, %v3517_v15  ;;  %v3054_v13 = vmul.f32 5.9604645e-08, %v2990_v46  ;;  %v10621_v15 = vld [vmem:[#allocation146_spill] sm:$0xff] }
 0x357   : > { %5663 = vst [vmem:[%s8435_s22 + $0x10] sm:$0xff] %v5595_v30   ;;  %v3977_v26 = vsel %vm3976_vm15, %v3972_v42, inf  ;;  %v3650_v18 = vsel %vm3586_vm0, %v6542_v10, 256  ;;  %v3651_v20 = vsel %vm3587_vm1, %v10268_v48, 256  ;;  %v3055_v3 = vmul.f32 5.9604645e-08, %v2991_v36  ;;  %v10619_v30 = vld [vmem:[#allocation72_spill] sm:$0xff] }
 0x358   : > { %3978 = vmin.xlane.f32.xlu0 %v3977_v26  ;;  %vm4064_vm3 = vcmp.lt.s32.totalorder %v3650_v18, %v3651_v20  ;;  %v3118_v27 = vadd.f32 1e-09, %v3054_v13  ;;  %v8563_v46 = vsub.f32 %v10619_v30, %v8503_v41  ;;  %v8569_v36 = vcvt.s32.f32 %v4051_v56 }
 0x359   : > { %v3119_v39 = vadd.f32 1e-09, %v3055_v3  ;;  %v8553_v0 = vsel %vm4064_vm3, %v3650_v18, %v3651_v20  ;;  %v960_v12 = vmul.f32 1.442695, %v8559_v54 }
 0x35a   : > { %6091 = vlog2.f32 %v3118_v27  ;;  %v4067_v37 = vshra.s32 %v8553_v0, 16  ;;  %v962_v13 = vmul.f32 1.442695, %v8563_v46 }
 0x35b   : > { %6093 = vlog2.f32 %v3119_v39 }
 0x35c   : > { %v8565_v29 = vcvt.s32.f32 %v4067_v37  ;;  %6095 = vpow2.f32 %v960_v12  ;;  %v1120_v12 = vmul.f32 %v8423_v50, %v8325_v32 }
 0x35d   : > { %v3520_v42 = vpop.xlane.xlu1 %3519  ;;  %6097 = vpow2.f32 %v962_v13 }
 0x35e   : > { %vm3588_vm4 = vcmp.eq.f32.partialorder %v10620_v24, %v3520_v42  ;;  %vm3589_vm5 = vcmp.eq.f32.partialorder %v10621_v15, %v3520_v42  ;;  %4070 = vmin.xlane.f32.xlu1 %v8565_v29 }
 0x35f   : > { %v3652_v62 = vsel %vm3588_vm4, %v6542_v10, 256  ;;  %v3653_v9 = vsel %vm3589_vm5, %v10268_v48, 256 }
 0x360   : > { %vm4080_vm6 = vcmp.lt.s32.totalorder %v3652_v62, %v3653_v9  ;;  %4054 = vmin.xlane.f32.xlu0 %v8569_v36  ;;  %v6092_v41 = vpop.eup %6091 }
 0x361   : > { %v8577_v26 = vsel %vm4080_vm6, %v3652_v62, %v3653_v9  ;;  %v6094_v18 = vpop.eup %6093  ;;  %v3245_v20 = vmul.f32 0.6931472, %v6092_v41  ;;  %v1121_v41 = vmul.f32 %v8432_v59, %v8334_v11  ;;  %v4002_v11 = vand.u32 65535, %v8366_v55 }
 0x362   : > { %v4083_v3 = vshra.s32 %v8577_v26, 16  ;;  %v3247_v27 = vmul.f32 0.6931472, %v6094_v18  ;;  %v8583_v25 = vpop.eup %6095  ;;  %v3917_v18 = vcvt.f32.s32 %v8288_v4  ;;  %v3901_v4 = vcvt.f32.s32 %v8374_v49 }
 0x363   : > { %v3310_v39 = vsub.f32 0.0, %v3245_v20  ;;  %v8585_v30 = vpop.eup %6097  ;;  %v8599_v13 = vadd.f32 %v1121_v41, %v1120_v12  ;;  %v4004_v41 = vcvt.s32.f32 %v4002_v11 }
 0x364   : > { %v8580_v56 = vcvt.s32.f32 %v4083_v3  ;;  %v3311_v37 = vsub.f32 0.0, %v3247_v27  ;;  %v3918_v3 = vshll.u32 %v3917_v18, 16  ;;  %v3902_v18 = vshll.u32 %v3901_v4, 16 }
 0x365   : > { %6099 = vrcp.f32 %v3310_v39 }
 0x366   : > { %6101 = vrcp.f32 %v3311_v37  ;;  %4086 = vmin.xlane.f32.xlu1 %v8580_v56  ;;  %v3986_v37 = vand.u32 65535, %v8292_v23 }
 0x36b   : > { %v6100_v42 = vpop.eup %6099 }
 0x36c   : > { %v6102_v24 = vpop.eup %6101  ;;  %v8588_v15 = vmul.f32 %v6100_v42, %v8583_v25 }
 0x36d   : > { %v8591_v62 = vmul.f32 %v6102_v24, %v8585_v30  ;;  %v3988_v24 = vcvt.s32.f32 %v3986_v37 }
 0x36f   : > { %v3533_v9 = vmax.f32 %v8588_v15, %v8591_v62 }
 0x371   : > { %3534 = vmax.xlane.f32.xlu2 %v3533_v9  ;;  %v3949_v9 = vcvt.f32.s32 %v8376_v52  ;;  %v4018_v52 = vand.u32 65535, %v8390_v22 }
 0x373   : > { %v4020_v11 = vcvt.s32.f32 %v4018_v52 }
 0x391   : > { %v3915_v20 = vpop.xlane.xlu0 %3914 }
 0x392   : > { %v3916_v27 = vcvt.f32.s32 %v3915_v20 }
 0x394   : > { %v3919_v39 = vadd.s32 %v3918_v3, %v3916_v27 }
 0x396   : > { %4191 = vst.msk [vmem:[%s7824_s19 + $0x78] sm:$0xff] %vm1828_vm2, %v3919_v39  ;;  %vm4238_vm10 = vcmp.eq.s32.totalorder %v6542_v10, %v3919_v39  ;;  %vm4239_vm13 = vcmp.eq.s32.totalorder %v10268_v48, %v3919_v39 }
 0x399   : > { %v8605_v42 = vpop.xlane.xlu0 %3990 }
 0x39a   : > { %vm3992_vm7 = vcmp.eq.f32.partialorder %v8330_v17, %v8605_v42  ;;  %v3950_v17 = vshll.u32 %v3949_v9, 16 }
 0x39b   : > { %v3993_v32 = vsel %vm3992_vm7, %v3988_v24, inf }
 0x39c   : > { %3994 = vmin.xlane.f32.xlu2 %v3993_v32 }
 0x3a1   : > { %v8612_v12 = vpop.xlane.xlu1 %4006  ;;  %v3899_v23 = vpop.xlane.xlu2 %3898 }
 0x3a2   : > { %v3900_v20 = vcvt.f32.s32 %v3899_v23  ;;  %v3947_v3 = vpop.xlane.xlu0 %3946  ;;  %vm4008_vm8 = vcmp.eq.f32.partialorder %v8381_v8, %v8612_v12 }
 0x3a3   : > { %v3948_v27 = vcvt.f32.s32 %v3947_v3  ;;  %v4009_v37 = vsel %vm4008_vm8, %v4004_v41, inf }
 0x3a4   : > { %v3903_v55 = vadd.s32 %v3902_v18, %v3900_v20  ;;  %4010 = vmin.xlane.f32.xlu0 %v4009_v37 }
 0x3a5   : > { %v8616_v49 = vadd.s32 %v3950_v17, %v3948_v27 }
 0x3a6   : > { %4190 = vst.msk [vmem:[%s7824_s19 + $0x70] sm:$0xff] %vm1828_vm2, %v3903_v55  ;;  %vm4236_vm9 = vcmp.eq.s32.totalorder %v6542_v10, %v3903_v55  ;;  %vm4237_vm11 = vcmp.eq.s32.totalorder %v10268_v48, %v3903_v55 }
 0x3a7   : > { %4193 = vst.msk [vmem:[%s7824_s19 + $0x88] sm:$0xff] %vm1828_vm2, %v8616_v49  ;;  %v4584_v8 = vpop.f32.mrf.mxu2  ;;  %vm5486_vm12 = vmpackc.low %vm4238_vm10, %vm4236_vm9  ;;  %vm4242_vm9 = vcmp.eq.s32.totalorder %v6542_v10, %v8616_v49 }
 0x3a8   : > { %v4673_v24 = vpop.f32.mrf.mxu3  ;;  %5487 = vmatmul.msk.bf16.gmra.mxu2 %vm5486_vm12, %v10452_v34  ;;  %vm5518_vm14 = vmpackc.low %vm4239_vm13, %vm4237_vm11  ;;  %vm4243_vm12 = vcmp.eq.s32.totalorder %v10268_v48, %v8616_v49 }
 0x3a9   : > { %5519 = vmatmul.msk.bf16.gmra.mxu3 %vm5518_vm14, %v10452_v34  ;;  %v3526_v22 = vpop.xlane.xlu1 %3525  ;;  %v3523_v32 = vpop.xlane.xlu2 %3522  ;;  %v4674_v27 = vadd.f32 %v4673_v24, %v4584_v8 }
 0x3aa   : > { %vm3592_vm15 = vcmp.eq.f32.partialorder %v8372_v58, %v3526_v22  ;;  %vm3593_vm0 = vcmp.eq.f32.partialorder %v8379_v47, %v3526_v22  ;;  %vm3590_vm1 = vcmp.eq.f32.partialorder %v8395_v5, %v3523_v32  ;;  %vm3591_vm3 = vcmp.eq.f32.partialorder %v8403_v14, %v3523_v32  ;;  %v8634_v4 = vpop.xlane.xlu0 %4022 }
 0x3ab   : > { %v3656_v39 = vsel %vm3592_vm15, %v6542_v10, 256  ;;  %v3657_v9 = vsel %vm3593_vm0, %v10268_v48, 256  ;;  %v3654_v23 = vsel %vm3590_vm1, %v6542_v10, 256  ;;  %v3655_v41 = vsel %vm3591_vm3, %v10268_v48, 256 }
 0x3ac   : > { %vm4096_vm4 = vcmp.lt.s32.totalorder %v3654_v23, %v3655_v41  ;;  %vm4024_vm5 = vcmp.eq.f32.partialorder %v8426_v60, %v8634_v4  ;;  %v4034_v5 = vand.u32 65535, %v8449_v53  ;;  %v3933_v14 = vcvt.f32.s32 %v8458_v1 }
 0x3ad   : > { %v4025_v58 = vsel %vm4024_vm5, %v4020_v11, inf  ;;  %v8642_v47 = vsel %vm4096_vm4, %v3654_v23, %v3655_v41  ;;  %vm4112_vm6 = vcmp.lt.s32.totalorder %v3656_v39, %v3657_v9 }
 0x3ae   : > { %4026 = vmin.xlane.f32.xlu0 %v4025_v58  ;;  %v4099_v18 = vshra.s32 %v8642_v47, 16  ;;  %v4036_v52 = vcvt.s32.f32 %v4034_v5  ;;  %v8651_v22 = vsel %vm4112_vm6, %v3656_v39, %v3657_v9  ;;  %v3934_v53 = vshll.u32 %v3933_v14, 16 }
 0x3af   : > { %v4586_v20 = vpop.f32.mrf.mxu2  ;;  %v4115_v8 = vshra.s32 %v8651_v22, 16  ;;  %v3965_v14 = vcvt.f32.s32 %v8516_v33 }
 0x3b0   : > { %v4675_v3 = vpop.f32.mrf.mxu3  ;;  %v8647_v17 = vcvt.s32.f32 %v4099_v18 }
 0x3b1   : > { %v4676_v37 = vadd.f32 %v4675_v3, %v4586_v20  ;;  %v8649_v60 = vpop.xlane.xlu1 %4038  ;;  %v3931_v55 = vpop.xlane.xlu2 %3930  ;;  %v8667_v39 = vcvt.s32.f32 %v4115_v8 }
 0x3b2   : > { %v3932_v1 = vcvt.f32.s32 %v3931_v55  ;;  %4102 = vmin.xlane.f32.xlu2 %v8647_v17  ;;  %vm4040_vm7 = vcmp.eq.f32.partialorder %v8461_v40, %v8649_v60  ;;  %v3966_v55 = vshll.u32 %v3965_v14, 16 }
 0x3b3   : > { %v5600_v32 = vpack.c.bf16 %v4676_v37, %v4674_v27  ;;  %v4041_v11 = vsel %vm4040_vm7, %v4036_v52, inf }
 0x3b4   : > { %v3935_v23 = vadd.s32 %v3934_v53, %v3932_v1  ;;  %4042 = vmin.xlane.f32.xlu1 %v4041_v11 }
 0x3b5   : > { %5664 = vst [vmem:[%s8435_s22 + $0x18] sm:$0xff] %v5600_v32   ;;  %v3981_v32 = vcvt.f32.s32 %v8538_v45 }
 0x3b6   : > { %4192 = vst.msk [vmem:[%s7824_s19 + $0x80] sm:$0xff] %vm1828_vm2, %v3935_v23  ;;  %vm4240_vm8 = vcmp.eq.s32.totalorder %v6542_v10, %v3935_v23  ;;  %vm4241_vm10 = vcmp.eq.s32.totalorder %v10268_v48, %v3935_v23 }
 0x3b7   : > { %v4589_v24 = vpop.f32.mrf.mxu2  ;;  %vm5488_vm11 = vmpackc.low %vm4242_vm9, %vm4240_vm8 }
 0x3b8   : > { %v4678_v40 = vpop.f32.mrf.mxu3  ;;  %5489 = vmatmul.msk.bf16.gmra.mxu2 %vm5488_vm11, %v10452_v34  ;;  %vm5520_vm13 = vmpackc.low %vm4243_vm12, %vm4241_vm10 }
 0x3b9   : > { %5521 = vmatmul.msk.bf16.gmra.mxu3 %vm5520_vm13, %v10452_v34  ;;  %v3529_v9 = vpop.xlane.xlu2 %3528  ;;  %v3532_v49 = vpop.xlane.xlu1 %3531  ;;  %v4679_v3 = vadd.f32 %v4678_v40, %v4589_v24 }
 0x3ba   : > { %vm3594_vm14 = vcmp.eq.f32.partialorder %v8469_v61, %v3529_v9  ;;  %vm3595_vm15 = vcmp.eq.f32.partialorder %v8472_v7, %v3529_v9  ;;  %4118 = vmin.xlane.f32.xlu2 %v8667_v39  ;;  %vm3596_vm1 = vcmp.eq.f32.partialorder %v8478_v28, %v3532_v49  ;;  %vm3597_vm3 = vcmp.eq.f32.partialorder %v8481_v38, %v3532_v49 }
 0x3bb   : > { %v3658_v41 = vsel %vm3594_vm14, %v6542_v10, 256  ;;  %v3659_v58 = vsel %vm3595_vm15, %v10268_v48, 256  ;;  %v3660_v52 = vsel %vm3596_vm1, %v6542_v10, 256  ;;  %v3661_v33 = vsel %vm3597_vm3, %v10268_v48, 256 }
 0x3bc   : > { %vm4128_vm0 = vcmp.lt.s32.totalorder %v3658_v41, %v3659_v58  ;;  %vm4144_vm4 = vcmp.lt.s32.totalorder %v3660_v52, %v3661_v33  ;;  %v3982_v9 = vshll.u32 %v3981_v32, 16  ;;  %v4066_v49 = vand.u32 65535, %v8553_v0 }
 0x3bd   : > { %v8675_v5 = vsel %vm4128_vm0, %v3658_v41, %v3659_v58  ;;  %v8690_v23 = vsel %vm4144_vm4, %v3660_v52, %v3661_v33  ;;  %v4082_v33 = vand.u32 65535, %v8577_v26 }
 0x3be   : > { %v4131_v18 = vshra.s32 %v8675_v5, 16  ;;  %v4147_v8 = vshra.s32 %v8690_v23, 16 }
 0x3bf   : > { %v4591_v61 = vpop.f32.mrf.mxu2 }
 0x3c0   : > { %v4680_v7 = vpop.f32.mrf.mxu3  ;;  %v8681_v20 = vcvt.s32.f32 %v4131_v18  ;;  %v8693_v24 = vcvt.s32.f32 %v4147_v8  ;;  %v4050_v18 = vand.u32 65535, %v8544_v2  ;;  %v4068_v2 = vcvt.s32.f32 %v4066_v49 }
 0x3c1   : > { %v4681_v27 = vadd.f32 %v4680_v7, %v4591_v61  ;;  %v3963_v37 = vpop.xlane.xlu2 %3962 }
 0x3c2   : > { %v3964_v53 = vcvt.f32.s32 %v3963_v37  ;;  %4134 = vmin.xlane.f32.xlu0 %v8681_v20  ;;  %v4052_v37 = vcvt.s32.f32 %v4050_v18 }
 0x3c3   : > { %v5605_v28 = vpack.c.bf16 %v4681_v27, %v4679_v3 }
 0x3c4   : > { %v3967_v1 = vadd.s32 %v3966_v55, %v3964_v53 }
 0x3c5   : > { %5665 = vst [vmem:[%s8435_s22 + $0x20] sm:$0xff] %v5605_v28  }
 0x3c6   : > { %4194 = vst.msk [vmem:[%s7824_s19 + $0x90] sm:$0xff] %vm1828_vm2, %v3967_v1  ;;  %vm4244_vm5 = vcmp.eq.s32.totalorder %v6542_v10, %v3967_v1  ;;  %vm4245_vm9 = vcmp.eq.s32.totalorder %v10268_v48, %v3967_v1 }
 0x3c7   : > { %v4594_v38 = vpop.f32.mrf.mxu2 }
 0x3c8   : > { %v4683_v11 = vpop.f32.mrf.mxu3 }
 0x3c9   : > { %v4684_v61 = vadd.f32 %v4683_v11, %v4594_v38  ;;  %v4084_v38 = vcvt.s32.f32 %v4082_v33 }
 0x3ca   : > { %4150 = vmin.xlane.f32.xlu0 %v8693_v24 }
 0x3cb   : > { %v3979_v40 = vpop.xlane.xlu0 %3978 }
 0x3cc   : > { %v3980_v41 = vcvt.f32.s32 %v3979_v40  ;;  %v10622_v40 = vld [vmem:[#allocation40_spill] sm:$0xff] }
 0x3ce   : > { %v3983_v58 = vadd.s32 %v3982_v9, %v3980_v41  ;;  %v10623_v9 = vld [vmem:[#allocation41_spill] sm:$0xff] }
 0x3cf   : > { %v4596_v14 = vpop.f32.mrf.mxu2  ;;  %v970_v41 = vadd.f32 %v10623_v9, %v10622_v40 }
 0x3d0   : > { %4195 = vst.msk [vmem:[%s7824_s19 + $0x98] sm:$0xff] %vm1828_vm2, %v3983_v58  ;;  %v4685_v45 = vpop.f32.mrf.mxu3  ;;  %vm4246_vm6 = vcmp.eq.s32.totalorder %v6542_v10, %v3983_v58  ;;  %vm4247_vm7 = vcmp.eq.s32.totalorder %v10268_v48, %v3983_v58 }
 0x3d1   : > { %v4686_v7 = vadd.f32 %v4685_v45, %v4596_v14  ;;  %vm5490_vm8 = vmpackc.low %vm4246_vm6, %vm4244_vm5  ;;  %v8704_v3 = vpop.xlane.xlu1 %4070 }
 0x3d2   : > { %5491 = vmatmul.msk.bf16.gmra.mxu2 %vm5490_vm8, %v10452_v34  ;;  %vm5522_vm10 = vmpackc.low %vm4247_vm7, %vm4245_vm9  ;;  %vm4072_vm11 = vcmp.eq.f32.partialorder %v8565_v29, %v8704_v3 }
 0x3d3   : > { %v5610_v0 = vpack.c.bf16 %v4686_v7, %v4684_v61  ;;  %5523 = vmatmul.msk.bf16.gmra.mxu3 %vm5522_vm10, %v10452_v34  ;;  %v8708_v27 = vpop.xlane.xlu0 %4054  ;;  %v4073_v55 = vsel %vm4072_vm11, %v4068_v2, inf  ;;  %v10624_v61 = vld [vmem:[#allocation34_spill] sm:$0xff] }
 0x3d4   : > { %vm4056_vm12 = vcmp.eq.f32.partialorder %v8569_v36, %v8708_v27  ;;  %4074 = vmin.xlane.f32.xlu2 %v4073_v55 }
 0x3d5   : > { %5666 = vst [vmem:[%s8435_s22 + $0x28] sm:$0xff] %v5610_v0   ;;  %v4057_v52 = vsel %vm4056_vm12, %v4052_v37, inf }
 0x3d6   : > { %4058 = vmin.xlane.f32.xlu1 %v4057_v52  ;;  %v4013_v52 = vcvt.f32.s32 %v8612_v12 }
 0x3d7   : > { %v4599_v53 = vpop.f32.mrf.mxu2 }
 0x3d8   : > { %v4688_v28 = vpop.f32.mrf.mxu3 }
 0x3d9   : > { %v8716_v1 = vpop.xlane.xlu1 %4086  ;;  %v4689_v36 = vadd.f32 %v4688_v28, %v4599_v53  ;;  %v4014_v53 = vshll.u32 %v4013_v52, 16 }
 0x3da   : > { %vm4088_vm13 = vcmp.eq.f32.partialorder %v8580_v56, %v8716_v1 }
 0x3db   : > { %v4089_v29 = vsel %vm4088_vm13, %v4084_v38, inf }
 0x3dc   : > { %4090 = vmin.xlane.f32.xlu2 %v4089_v29  ;;  %v4098_v29 = vand.u32 65535, %v8642_v47  ;;  %v4114_v47 = vand.u32 65535, %v8651_v22  ;;  %v10626_v22 = vld [vmem:[#allocation28_spill] sm:$0xff] }
 0x3de   : > { %v4100_v9 = vcvt.s32.f32 %v4098_v29 }
 0x3df   : > { %v4601_v32 = vpop.f32.mrf.mxu2 }
 0x3e0   : > { %v4690_v11 = vpop.f32.mrf.mxu3 }
 0x3e1   : > { %v4691_v8 = vadd.f32 %v4690_v11, %v4601_v32 }
 0x3e3   : > { %v5615_v58 = vpack.c.bf16 %v4691_v8, %v4689_v36  ;;  %v4045_v36 = vcvt.f32.s32 %v8649_v60 }
 0x3e4   : > { %v3535_v26 = vpop.xlane.xlu2 %3534  ;;  %971 = vadd.xlane.f32.xlu2 %v970_v41 }
 0x3e5   : > { %vm3598_vm14 = vcmp.eq.f32.partialorder %v8588_v15, %v3535_v26  ;;  %vm3599_vm15 = vcmp.eq.f32.partialorder %v8591_v62, %v3535_v26  ;;  %5667 = vst [vmem:[%s8435_s22 + $0x30] sm:$0xff] %v5615_v58   ;;  %v10625_v15 = vld [vmem:[#allocation35_spill] sm:$0xff]  ;;  %v3997_v62 = vcvt.f32.s32 %v8605_v42  ;;  %v4029_v42 = vcvt.f32.s32 %v8634_v4 }
 0x3e6   : > { %v3662_v56 = vsel %vm3598_vm14, %v6542_v10, 256  ;;  %v3663_v49 = vsel %vm3599_vm15, %v10268_v48, 256  ;;  %v967_v7 = vadd.f32 %v10625_v15, %v10624_v61  ;;  %v4046_v58 = vshll.u32 %v4045_v36, 16  ;;  %v10627_v61 = vld [vmem:[#allocation29_spill] sm:$0xff] }
 0x3e7   : > { %vm4160_vm0 = vcmp.lt.s32.totalorder %v3662_v56, %v3663_v49  ;;  %v3998_v0 = vshll.u32 %v3997_v62, 16  ;;  %v4030_v32 = vshll.u32 %v4029_v42, 16  ;;  %v964_v15 = vadd.f32 %v10627_v61, %v10626_v22  ;;  %v10630_v42 = vld [vmem:[#allocation58_spill] sm:$0xff]  ;;  %v10634_v22 = vld [vmem:[#allocation64_spill] sm:$0xff]  ;;  %v10635_v61 = vld [vmem:[#allocation65_spill] sm:$0xff] }
 0x3e8   : > { %v8727_v14 = vsel %vm4160_vm0, %v3662_v56, %v3663_v49  ;;  %v4130_v62 = vand.u32 65535, %v8675_v5  ;;  %v4146_v36 = vand.u32 65535, %v8690_v23  ;;  %v4061_v23 = vcvt.f32.s32 %v8708_v27 }
 0x3e9   : > { %v4163_v18 = vshra.s32 %v8727_v14, 16 }
 0x3eb   : > { %v8730_v45 = vcvt.s32.f32 %v4163_v18 }
 0x3ed   : > { %4166 = vmin.xlane.f32.xlu1 %v8730_v45 }
 0x3f5   : > { %968 = vadd.xlane.f32.xlu1 %v967_v7 }
 0x40f   : > { %v3995_v2 = vpop.xlane.xlu2 %3994 }
 0x410   : > { %v3996_v37 = vcvt.f32.s32 %v3995_v2 }
 0x412   : > { %v3999_v55 = vadd.s32 %v3998_v0, %v3996_v37 }
 0x414   : > { %4196 = vst.msk [vmem:[%s7824_s19 + $0xa0] sm:$0xff] %vm1828_vm2, %v3999_v55  ;;  %vm4248_vm1 = vcmp.eq.s32.totalorder %v6542_v10, %v3999_v55  ;;  %vm4249_vm6 = vcmp.eq.s32.totalorder %v10268_v48, %v3999_v55 }
 0x417   : > { %v4011_v33 = vpop.xlane.xlu0 %4010 }
 0x418   : > { %v4012_v28 = vcvt.f32.s32 %v4011_v33  ;;  %v4132_v33 = vcvt.s32.f32 %v4130_v62 }
 0x41a   : > { %v4015_v38 = vadd.s32 %v4014_v53, %v4012_v28  ;;  %v10628_v53 = vld [vmem:[#allocation52_spill] sm:$0xff]  ;;  %v10629_v28 = vld [vmem:[#allocation53_spill] sm:$0xff] }
 0x41c   : > { %4197 = vst.msk [vmem:[%s7824_s19 + $0xa8] sm:$0xff] %vm1828_vm2, %v4015_v38  ;;  %vm4250_vm3 = vcmp.eq.s32.totalorder %v6542_v10, %v4015_v38  ;;  %vm4251_vm4 = vcmp.eq.s32.totalorder %v10268_v48, %v4015_v38  ;;  %v976_v38 = vadd.f32 %v10629_v28, %v10628_v53  ;;  %v4093_v28 = vcvt.f32.s32 %v8716_v1 }
 0x41d   : > { %vm5492_vm5 = vmpackc.low %vm4250_vm3, %vm4248_vm1 }
 0x41e   : > { %5493 = vmatmul.msk.bf16.gmra.mxu2 %vm5492_vm5, %v10452_v34  ;;  %vm5524_vm7 = vmpackc.low %vm4251_vm4, %vm4249_vm6  ;;  %v4094_v1 = vshll.u32 %v4093_v28, 16 }
 0x41f   : > { %5525 = vmatmul.msk.bf16.gmra.mxu3 %vm5524_vm7, %v10452_v34 }
 0x421   : > { %v4027_v12 = vpop.xlane.xlu0 %4026 }
 0x422   : > { %v4028_v11 = vcvt.f32.s32 %v4027_v12 }
 0x424   : > { %v4031_v8 = vadd.s32 %v4030_v32, %v4028_v11 }
 0x425   : > { %v8750_v40 = vpop.xlane.xlu2 %4102 }
 0x426   : > { %4198 = vst.msk [vmem:[%s7824_s19 + $0xb0] sm:$0xff] %vm1828_vm2, %v4031_v8  ;;  %vm4104_vm8 = vcmp.eq.f32.partialorder %v8647_v17, %v8750_v40  ;;  %vm4252_vm9 = vcmp.eq.s32.totalorder %v6542_v10, %v4031_v8  ;;  %vm4253_vm13 = vcmp.eq.s32.totalorder %v10268_v48, %v4031_v8  ;;  %v4116_v17 = vcvt.s32.f32 %v4114_v47  ;;  %v10632_v8 = vld [vmem:[#allocation44_spill] sm:$0xff] }
 0x427   : > { %v4043_v4 = vpop.xlane.xlu1 %4042  ;;  %v4105_v41 = vsel %vm4104_vm8, %v4100_v9, inf  ;;  %v10633_v9 = vld [vmem:[#allocation45_spill] sm:$0xff] }
 0x428   : > { %v4044_v26 = vcvt.f32.s32 %v4043_v4  ;;  %4106 = vmin.xlane.f32.xlu0 %v4105_v41  ;;  %v973_v4 = vadd.f32 %v10633_v9, %v10632_v8 }
 0x42a   : > { %v4047_v56 = vadd.s32 %v4046_v58, %v4044_v26  ;;  %v4148_v58 = vcvt.s32.f32 %v4146_v36 }
 0x42b   : > { %v4604_v49 = vpop.f32.mrf.mxu2 }
 0x42c   : > { %4199 = vst.msk [vmem:[%s7824_s19 + $0xb8] sm:$0xff] %vm1828_vm2, %v4047_v56  ;;  %v4693_v60 = vpop.f32.mrf.mxu3  ;;  %vm4254_vm10 = vcmp.eq.s32.totalorder %v6542_v10, %v4047_v56  ;;  %vm4255_vm11 = vcmp.eq.s32.totalorder %v10268_v48, %v4047_v56  ;;  %v4077_v56 = vcvt.f32.s32 %v8704_v3  ;;  %v4062_v3 = vshll.u32 %v4061_v23, 16 }
 0x42d   : > { %v8762_v18 = vpop.xlane.xlu2 %4118  ;;  %vm5494_vm12 = vmpackc.low %vm4254_vm10, %vm4252_vm9  ;;  %v4694_v37 = vadd.f32 %v4693_v60, %v4604_v49 }
 0x42e   : > { %5495 = vmatmul.msk.bf16.gmra.mxu2 %vm5494_vm12, %v10452_v34  ;;  %vm5526_vm14 = vmpackc.low %vm4255_vm11, %vm4253_vm13  ;;  %vm4120_vm15 = vcmp.eq.f32.partialorder %v8667_v39, %v8762_v18  ;;  %v10631_v39 = vld [vmem:[#allocation59_spill] sm:$0xff]  ;;  %v4078_v62 = vshll.u32 %v4077_v56, 16 }
 0x42f   : > { %5527 = vmatmul.msk.bf16.gmra.mxu3 %vm5526_vm14, %v10452_v34  ;;  %v4121_v7 = vsel %vm4120_vm15, %v4116_v17, inf  ;;  %v979_v12 = vadd.f32 %v10631_v39, %v10630_v42  ;;  %v10639_v42 = vld [vmem:[#allocation93_spill] sm:$0xff] }
 0x430   : > { %965 = vadd.xlane.f32.xlu0 %v964_v15  ;;  %4122 = vmin.xlane.f32.xlu1 %v4121_v7  ;;  %v982_v15 = vadd.f32 %v10635_v61, %v10634_v22  ;;  %v10646_v61 = vld [vmem:[#allocation121_spill] sm:$0xff] }
 0x433   : > { %v4606_v2 = vpop.f32.mrf.mxu2 }
 0x434   : > { %v4695_v0 = vpop.f32.mrf.mxu3 }
 0x435   : > { %v4696_v55 = vadd.f32 %v4695_v0, %v4606_v2  ;;  %v8772_v52 = vpop.xlane.xlu0 %4134  ;;  %v10636_v2 = vld [vmem:[#allocation68_spill] sm:$0xff]  ;;  %v10637_v0 = vld [vmem:[#allocation71_spill] sm:$0xff] }
 0x436   : > { %vm4136_vm0 = vcmp.eq.f32.partialorder %v8681_v20, %v8772_v52 }
 0x437   : > { %v5620_v29 = vpack.c.bf16 %v4696_v55, %v4694_v37  ;;  %v4137_v32 = vsel %vm4136_vm0, %v4132_v33, inf  ;;  %v985_v37 = vadd.f32 %v10637_v0, %v10636_v2  ;;  %v10648_v0 = vld [vmem:[#allocation123_spill] sm:$0xff] }
 0x438   : > { %977 = vadd.xlane.f32.xlu0 %v976_v38  ;;  %980 = vadd.xlane.f32.xlu1 %v979_v12  ;;  %v10638_v38 = vld [vmem:[#allocation92_spill] sm:$0xff] }
 0x439   : > { %5668 = vst [vmem:[%s8435_s22 + $0x38] sm:$0xff] %v5620_v29   ;;  %4138 = vmin.xlane.f32.xlu2 %v4137_v32  ;;  %v991_v39 = vadd.f32 %v10639_v42, %v10638_v38  ;;  %v10640_v32 = vld [vmem:[#allocation94_spill] sm:$0xff]  ;;  %v10652_v38 = vld [vmem:[#allocation39_spill] sm:$0xff] }
 0x43a   : > { %v1027_v42 = vadd.f32 %v10652_v38, %v7767_v57  ;;  %v10663_v57 = vld [vmem:[#allocation147_spill] sm:$0xff] }
 0x43b   : > { %v4609_v5 = vpop.f32.mrf.mxu2 }
 0x43c   : > { %v4698_v11 = vpop.f32.mrf.mxu3 }
 0x43d   : > { %v8784_v41 = vpop.xlane.xlu0 %4150  ;;  %v4699_v49 = vadd.f32 %v4698_v11, %v4609_v5  ;;  %v10641_v5 = vld [vmem:[#allocation11_spill] sm:$0xff] }
 0x43e   : > { %vm4152_vm1 = vcmp.eq.f32.partialorder %v8693_v24, %v8784_v41  ;;  %v994_v11 = vadd.f32 %v10641_v5, %v10640_v32  ;;  %v10660_v5 = vld [vmem:[#allocation96_spill] sm:$0xff] }
 0x43f   : > { %v4153_v20 = vsel %vm4152_vm1, %v4148_v58, inf  ;;  %v10643_v58 = vld [vmem:[#allocation106_spill] sm:$0xff] }
 0x440   : > { %4154 = vmin.xlane.f32.xlu0 %v4153_v20 }
 0x441   : > { %974 = vadd.xlane.f32.xlu2 %v973_v4  ;;  %v10642_v4 = vld [vmem:[#allocation105_spill] sm:$0xff] }
 0x442   : > { %v1000_v20 = vadd.f32 %v10643_v58, %v10642_v4  ;;  %v10664_v58 = vld [vmem:[#allocation111_spill] sm:$0xff] }
 0x443   : > { %v4611_v26 = vpop.f32.mrf.mxu2 }
 0x444   : > { %v4700_v47 = vpop.f32.mrf.mxu3 }
 0x445   : > { %v4701_v60 = vadd.f32 %v4700_v47, %v4611_v26  ;;  %v10644_v26 = vld [vmem:[#allocation103_spill] sm:$0xff]  ;;  %v10645_v47 = vld [vmem:[#allocation104_spill] sm:$0xff] }
 0x446   : > { %v1003_v56 = vadd.f32 %v10645_v47, %v10644_v26  ;;  %v1048_v26 = vadd.f32 %v8308_v35, %v8296_v6  ;;  %v10665_v47 = vld [vmem:[#allocation125_spill] sm:$0xff]  ;;  %v1122_v6 = vmul.f32 %v8583_v25, %v8559_v54  ;;  %v1123_v35 = vmul.f32 %v8585_v30, %v8563_v46 }
 0x447   : > { %v5625_v17 = vpack.c.bf16 %v4701_v60, %v4699_v49  ;;  %v4075_v7 = vpop.xlane.xlu2 %4074  ;;  %v4162_v49 = vand.u32 65535, %v8727_v14  ;;  %v1018_v14 = vadd.f32 %v10550_v31, %v10548_v43  ;;  %v10657_v43 = vld [vmem:[#allocation84_spill] sm:$0xff] }
 0x448   : > { %v4076_v24 = vcvt.f32.s32 %v4075_v7  ;;  %986 = vadd.xlane.f32.xlu0 %v985_v37  ;;  %v10649_v37 = vld [vmem:[#allocation124_spill] sm:$0xff] }
 0x449   : > { %5669 = vst [vmem:[%s8435_s22 + $0x40] sm:$0xff] %v5625_v17   ;;  %983 = vadd.xlane.f32.xlu2 %v982_v15  ;;  %v4059_v55 = vpop.xlane.xlu1 %4058  ;;  %v10647_v15 = vld [vmem:[#allocation122_spill] sm:$0xff]  ;;  %v10658_v31 = vld [vmem:[#allocation116_spill] sm:$0xff] }
 0x44a   : > { %v4060_v33 = vcvt.f32.s32 %v4059_v55  ;;  %v4079_v53 = vadd.s32 %v4078_v62, %v4076_v24  ;;  %v1009_v7 = vadd.f32 %v10647_v15, %v10646_v61  ;;  %v4164_v24 = vcvt.s32.f32 %v4162_v49  ;;  %v10669_v15 = vld [vmem:[#allocation32_spill] sm:$0xff] }
 0x44b   : > { %v1012_v55 = vadd.f32 %v10649_v37, %v10648_v0  ;;  %v4109_v0 = vcvt.f32.s32 %v8750_v40  ;;  %v10673_v37 = vld [vmem:[#allocation38_spill] sm:$0xff]  ;;  %v10677_v40 = vld [vmem:[#allocation57_spill] sm:$0xff] }
 0x44c   : > { %v4063_v27 = vadd.s32 %v4062_v3, %v4060_v33  ;;  %4201 = vst.msk [vmem:[%s7824_s19 + $0xc8] sm:$0xff] %vm1828_vm2, %v4079_v53  ;;  %vm4258_vm4 = vcmp.eq.s32.totalorder %v6542_v10, %v4079_v53  ;;  %vm4259_vm7 = vcmp.eq.s32.totalorder %v10268_v48, %v4079_v53  ;;  %v1021_v33 = vadd.f32 %v10555_v16, %v10553_v44  ;;  %v10650_v53 = vld [vmem:[#allocation88_spill] sm:$0xff]  ;;  %v10659_v16 = vld [vmem:[#allocation138_spill] sm:$0xff] }
 0x44d   : > { %v1036_v44 = vadd.f32 %v10658_v31, %v10657_v43 }
 0x44e   : > { %4200 = vst.msk [vmem:[%s7824_s19 + $0xc0] sm:$0xff] %vm1828_vm2, %v4063_v27  ;;  %vm4256_vm3 = vcmp.eq.s32.totalorder %v6542_v10, %v4063_v27  ;;  %vm4257_vm5 = vcmp.eq.s32.totalorder %v10268_v48, %v4063_v27  ;;  %v10651_v27 = vld [vmem:[#allocation89_spill] sm:$0xff] }
 0x44f   : > { %vm5496_vm6 = vmpackc.low %vm4258_vm4, %vm4256_vm3  ;;  %v4091_v12 = vpop.xlane.xlu2 %4090  ;;  %v988_v28 = vadd.f32 %v10651_v27, %v10650_v53  ;;  %v4125_v27 = vcvt.f32.s32 %v8762_v18  ;;  %v1051_v18 = vadd.f32 %v8392_v51, %v8314_v21  ;;  %v4141_v21 = vcvt.f32.s32 %v8772_v52  ;;  %v10679_v51 = vld [vmem:[#allocation66_spill] sm:$0xff]  ;;  %v10682_v52 = vld [vmem:[#allocation73_spill] sm:$0xff] }
 0x450   : > { %5497 = vmatmul.msk.bf16.gmra.mxu2 %vm5496_vm6, %v10452_v34  ;;  %vm5528_vm8 = vmpackc.low %vm4259_vm7, %vm4257_vm5  ;;  %v4092_v29 = vcvt.f32.s32 %v4091_v12  ;;  %995 = vadd.xlane.f32.xlu0 %v994_v11  ;;  %v1039_v11 = vadd.f32 %v10660_v5, %v10659_v16  ;;  %v10681_v5 = vld [vmem:[#allocation43_spill] sm:$0xff] }
 0x451   : > { %5529 = vmatmul.msk.bf16.gmra.mxu3 %vm5528_vm8, %v10452_v34  ;;  %992 = vadd.xlane.f32.xlu2 %v991_v39  ;;  %v10654_v39 = vld [vmem:[#allocation50_spill] sm:$0xff] }
 0x452   : > { %v8810_v36 = vadd.s32 %v4094_v1, %v4092_v29  ;;  %v10655_v1 = vld [vmem:[#allocation99_spill] sm:$0xff]  ;;  %v10656_v29 = vld [vmem:[#allocation100_spill] sm:$0xff] }
 0x453   : > { %v997_v32 = vadd.f32 %v10656_v29, %v10655_v1 }
 0x454   : > { %4202 = vst.msk [vmem:[%s7824_s19 + $0xd0] sm:$0xff] %vm1828_vm2, %v8810_v36  ;;  %vm4260_vm10 = vcmp.eq.s32.totalorder %v6542_v10, %v8810_v36  ;;  %vm4261_vm14 = vcmp.eq.s32.totalorder %v10268_v48, %v8810_v36 }
 0x455   : > { %v4614_v8 = vpop.f32.mrf.mxu2 }
 0x456   : > { %v4703_v9 = vpop.f32.mrf.mxu3 }
 0x457   : > { %v4704_v17 = vadd.f32 %v4703_v9, %v4614_v8  ;;  %v10661_v8 = vld [vmem:[#allocation112_spill] sm:$0xff]  ;;  %v10662_v9 = vld [vmem:[#allocation113_spill] sm:$0xff]  ;;  %v8893_v1 = vpop.xlane.xlu2 %971 }
 0x458   : > { %1004 = vadd.xlane.f32.xlu0 %v1003_v56  ;;  %v1006_v4 = vadd.f32 %v10662_v9, %v10661_v8  ;;  %v10666_v56 = vld [vmem:[#allocation127_spill] sm:$0xff]  ;;  %v4142_v9 = vshll.u32 %v4141_v21, 16  ;;  %6103 = vrcp.f32 %v8893_v1 }
 0x459   : > { %1001 = vadd.xlane.f32.xlu2 %v1000_v20  ;;  %v1045_v20 = vadd.f32 %v10664_v58, %v10663_v57  ;;  %v1015_v49 = vadd.f32 %v10666_v56, %v10665_v47  ;;  %v4157_v47 = vcvt.f32.s32 %v8784_v41  ;;  %v10683_v56 = vld [vmem:[#allocation16_spill] sm:$0xff] }
 0x45d   : > { %v4616_v60 = vpop.f32.mrf.mxu2 }
 0x45e   : > { %v4705_v23 = vpop.f32.mrf.mxu3 }
 0x45f   : > { %v4706_v22 = vadd.f32 %v4705_v23, %v4616_v60  ;;  %v1054_v60 = vadd.f32 %v8432_v59, %v8423_v50  ;;  %v1057_v23 = vadd.f32 %v8585_v30, %v8583_v25  ;;  %v10672_v59 = vld [vmem:[#allocation33_spill] sm:$0xff]  ;;  %v10676_v25 = vld [vmem:[#allocation42_spill] sm:$0xff]  ;;  %v4110_v30 = vshll.u32 %v4109_v0, 16 }
 0x460   : > { %v8822_v62 = vpop.xlane.xlu1 %4166  ;;  %1013 = vadd.xlane.f32.xlu0 %v1012_v55  ;;  %v10674_v55 = vld [vmem:[#allocation49_spill] sm:$0xff] }
 0x461   : > { %v5630_v2 = vpack.c.bf16 %v4706_v22, %v4704_v17  ;;  %1010 = vadd.xlane.f32.xlu2 %v1009_v7  ;;  %vm4168_vm9 = vcmp.eq.f32.partialorder %v8730_v45, %v8822_v62  ;;  %v10653_v45 = vld [vmem:[#allocation54_spill] sm:$0xff]  ;;  %v10667_v17 = vld [vmem:[#allocation109_spill] sm:$0xff]  ;;  %v10670_v7 = vld [vmem:[#allocation51_spill] sm:$0xff] }
 0x462   : > { %v4169_v3 = vsel %vm4168_vm9, %v4164_v24, inf  ;;  %v1030_v12 = vadd.f32 %v10654_v39, %v10653_v45  ;;  %v10668_v22 = vld [vmem:[#allocation110_spill] sm:$0xff]  ;;  %v10671_v24 = vld [vmem:[#allocation55_spill] sm:$0xff] }
 0x463   : > { %5670 = vst [vmem:[%s8435_s22 + $0x48] sm:$0xff] %v5630_v2   ;;  %4170 = vmin.xlane.f32.xlu1 %v4169_v3  ;;  %v1024_v61 = vadd.f32 %v10668_v22, %v10667_v17  ;;  %v1033_v50 = vadd.f32 %v10671_v24, %v10670_v7  ;;  %v8867_v2 = vadd.f32 %v1123_v35, %v1122_v6  ;;  %v10675_v3 = vld [vmem:[#allocation75_spill] sm:$0xff]  ;;  %v4158_v17 = vshll.u32 %v4157_v47, 16  ;;  %v10686_v7 = vld [vmem:[#allocation17_spill] sm:$0xff] }
 0x468   : > { %1022 = vadd.xlane.f32.xlu0 %v1021_v33  ;;  %v8873_v54 = vpop.xlane.xlu1 %968 }
 0x469   : > { %1019 = vadd.xlane.f32.xlu2 %v1018_v14  ;;  %v1042_v14 = vadd.f32 %v10675_v3, %v10674_v55  ;;  %v10688_v55 = vld [vmem:[#allocation8_spill] sm:$0xff]  ;;  %v10689_v3 = vld [vmem:[#allocation69_spill] sm:$0xff]  ;;  %6105 = vrcp.f32 %v8873_v54 }
 0x46b   : > { %989 = vadd.xlane.f32.xlu1 %v988_v28 }
 0x470   : > { %1031 = vadd.xlane.f32.xlu0 %v1030_v12  ;;  %v4126_v12 = vshll.u32 %v4125_v27, 16 }
 0x471   : > { %1028 = vadd.xlane.f32.xlu2 %v1027_v42  ;;  %v10678_v42 = vld [vmem:[#allocation62_spill] sm:$0xff] }
 0x473   : > { %998 = vadd.xlane.f32.xlu1 %v997_v32 }
 0x478   : > { %1040 = vadd.xlane.f32.xlu0 %v1039_v11 }
 0x479   : > { %1037 = vadd.xlane.f32.xlu2 %v1036_v44  ;;  %v10680_v44 = vld [vmem:[#allocation115_spill] sm:$0xff] }
 0x47b   : > { %1007 = vadd.xlane.f32.xlu1 %v1006_v4 }
 0x480   : > { %1049 = vadd.xlane.f32.xlu0 %v1048_v26 }
 0x481   : > { %1046 = vadd.xlane.f32.xlu2 %v1045_v20 }
 0x483   : > { %1016 = vadd.xlane.f32.xlu1 %v1015_v49  ;;  %v10684_v49 = vld [vmem:[#allocation117_spill] sm:$0xff] }
 0x488   : > { %1058 = vadd.xlane.f32.xlu0 %v1057_v23 }
 0x489   : > { %1055 = vadd.xlane.f32.xlu2 %v1054_v60 }
 0x48b   : > { %1025 = vadd.xlane.f32.xlu1 %v1024_v61 }
 0x490   : > { %1131 = vadd.xlane.f32.xlu0 %v10672_v59 }
 0x491   : > { %1128 = vadd.xlane.f32.xlu2 %v10669_v15  ;;  %v10685_v15 = vld [vmem:[#allocation98_spill] sm:$0xff] }
 0x493   : > { %1034 = vadd.xlane.f32.xlu1 %v1033_v50  ;;  %v10687_v50 = vld [vmem:[#allocation56_spill] sm:$0xff] }
 0x498   : > { %1140 = vadd.xlane.f32.xlu0 %v10676_v25 }
 0x499   : > { %1137 = vadd.xlane.f32.xlu2 %v10673_v37 }
 0x49b   : > { %v4107_v46 = vpop.xlane.xlu0 %4106  ;;  %1043 = vadd.xlane.f32.xlu1 %v1042_v14  ;;  %v10690_v14 = vld [vmem:[#allocation108_spill] sm:$0xff] }
 0x49c   : > { %v4108_v33 = vcvt.f32.s32 %v4107_v46 }
 0x49e   : > { %v4111_v53 = vadd.s32 %v4110_v30, %v4108_v33  ;;  %v10691_v30 = vld [vmem:[#allocation77_spill] sm:$0xff]  ;;  %v10692_v33 = vld [vmem:[#allocation140_spill] sm:$0xff] }
 0x4a0   : > { %4203 = vst.msk [vmem:[%s7824_s19 + $0xd8] sm:$0xff] %vm1828_vm2, %v4111_v53  ;;  %vm4262_vm11 = vcmp.eq.s32.totalorder %v6542_v10, %v4111_v53  ;;  %vm4263_vm12 = vcmp.eq.s32.totalorder %v10268_v48, %v4111_v53  ;;  %1149 = vadd.xlane.f32.xlu0 %v10678_v42  ;;  %v10693_v53 = vld [vmem:[#allocation132_spill] sm:$0xff] }
 0x4a1   : > { %1146 = vadd.xlane.f32.xlu2 %v10677_v40  ;;  %v4619_v28 = vpop.f32.mrf.mxu2  ;;  %vm5498_vm13 = vmpackc.low %vm4262_vm11, %vm4260_vm10 }
 0x4a2   : > { %v4708_v38 = vpop.f32.mrf.mxu3  ;;  %5499 = vmatmul.msk.bf16.gmra.mxu2 %vm5498_vm13, %v10452_v34  ;;  %vm5530_vm15 = vmpackc.low %vm4263_vm12, %vm4261_vm14  ;;  %vm1240_vm14 = vweird.f32 %v8873_v54 }
 0x4a3   : > { %5531 = vmatmul.msk.bf16.gmra.mxu3 %vm5530_vm15, %v10452_v34  ;;  %v4123_v45 = vpop.xlane.xlu1 %4122  ;;  %v8891_v39 = vpop.xlane.xlu0 %965  ;;  %1052 = vadd.xlane.f32.xlu1 %v1051_v18  ;;  %v4709_v31 = vadd.f32 %v4708_v38, %v4619_v28  ;;  %v10695_v18 = vld [vmem:[#allocation149_spill] sm:$0xff]  ;;  %v10696_v38 = vld [vmem:[#allocation150_spill] sm:$0xff] }
 0x4a4   : > { %v4124_v29 = vcvt.f32.s32 %v4123_v45  ;;  %v4173_v45 = vcvt.f32.s32 %v8822_v62  ;;  %v10699_v62 = vld [vmem:[#allocation7_spill] sm:$0xff]  ;;  %6107 = vrcp.f32 %v8891_v39 }
 0x4a6   : > { %v4127_v36 = vadd.s32 %v4126_v12, %v4124_v29  ;;  %v10697_v12 = vld [vmem:[#allocation145_spill] sm:$0xff] }
 0x4a8   : > { %4204 = vst.msk [vmem:[%s7824_s19 + $0xe0] sm:$0xff] %vm1828_vm2, %v4127_v36  ;;  %1158 = vadd.xlane.f32.xlu0 %v10680_v44  ;;  %vm4264_vm0 = vcmp.eq.s32.totalorder %v6542_v10, %v4127_v36  ;;  %vm4265_vm5 = vcmp.eq.s32.totalorder %v10268_v48, %v4127_v36 }
 0x4a9   : > { %1155 = vadd.xlane.f32.xlu2 %v10679_v51  ;;  %v4621_v32 = vpop.f32.mrf.mxu2 }
 0x4aa   : > { %v4710_v43 = vpop.f32.mrf.mxu3 }
 0x4ab   : > { %v4711_v16 = vadd.f32 %v4710_v43, %v4621_v32  ;;  %1125 = vadd.xlane.f32.xlu1 %v10681_v5  ;;  %v8901_v8 = vpop.xlane.xlu0 %977  ;;  %v8942_v28 = vpop.xlane.xlu1 %980  ;;  %v4174_v32 = vshll.u32 %v4173_v45, 16 }
 0x4ac   : > { %v4139_v11 = vpop.xlane.xlu2 %4138  ;;  %6109 = vrcp.f32 %v8942_v28 }
 0x4ad   : > { %v5635_v4 = vpack.c.bf16 %v4711_v16, %v4709_v31  ;;  %v4140_v57 = vcvt.f32.s32 %v4139_v11  ;;  %6111 = vrcp.f32 %v8901_v8 }
 0x4af   : > { %5671 = vst [vmem:[%s8435_s22 + $0x50] sm:$0xff] %v5635_v4   ;;  %v4143_v58 = vadd.s32 %v4142_v9, %v4140_v57 }
 0x4b0   : > { %1167 = vadd.xlane.f32.xlu0 %v10683_v56 }
 0x4b1   : > { %4205 = vst.msk [vmem:[%s7824_s19 + $0xe8] sm:$0xff] %vm1828_vm2, %v4143_v58  ;;  %1164 = vadd.xlane.f32.xlu2 %v10682_v52  ;;  %v4624_v20 = vpop.f32.mrf.mxu2  ;;  %vm4266_vm1 = vcmp.eq.s32.totalorder %v6542_v10, %v4143_v58  ;;  %vm4267_vm3 = vcmp.eq.s32.totalorder %v10268_v48, %v4143_v58 }
 0x4b2   : > { %v4713_v26 = vpop.f32.mrf.mxu3  ;;  %vm5500_vm4 = vmpackc.low %vm4266_vm1, %vm4264_vm0 }
 0x4b3   : > { %5501 = vmatmul.msk.bf16.gmra.mxu2 %vm5500_vm4, %v10452_v34  ;;  %vm5532_vm6 = vmpackc.low %vm4267_vm3, %vm4265_vm5  ;;  %1134 = vadd.xlane.f32.xlu1 %v10684_v49  ;;  %v4155_v23 = vpop.xlane.xlu0 %4154  ;;  %v4714_v35 = vadd.f32 %v4713_v26, %v4624_v20  ;;  %vm1255_vm3 = vweird.f32 %v8893_v1 }
 0x4b4   : > { %5533 = vmatmul.msk.bf16.gmra.mxu3 %vm5532_vm6, %v10452_v34  ;;  %v8916_v60 = vpop.xlane.xlu2 %974  ;;  %v4156_v22 = vcvt.f32.s32 %v4155_v23 }
 0x4b5   : > { %6113 = vrcp.f32 %v8916_v60 }
 0x4b6   : > { %v4159_v61 = vadd.s32 %v4158_v17, %v4156_v22 }
 0x4b8   : > { %4206 = vst.msk [vmem:[%s7824_s19 + $0xf0] sm:$0xff] %vm1828_vm2, %v4159_v61  ;;  %1176 = vadd.xlane.f32.xlu0 %v10686_v7  ;;  %vm4268_vm7 = vcmp.eq.s32.totalorder %v6542_v10, %v4159_v61  ;;  %vm4269_vm11 = vcmp.eq.s32.totalorder %v10268_v48, %v4159_v61  ;;  %v10706_v61 = vld [vmem:[#allocation141_spill] sm:$0xff] }
 0x4b9   : > { %1173 = vadd.xlane.f32.xlu2 %v10685_v15  ;;  %v4626_v6 = vpop.f32.mrf.mxu2 }
 0x4ba   : > { %v4715_v41 = vpop.f32.mrf.mxu3 }
 0x4bb   : > { %v4716_v24 = vadd.f32 %v4715_v41, %v4626_v6  ;;  %1143 = vadd.xlane.f32.xlu1 %v10687_v50  ;;  %v8925_v37 = vpop.xlane.xlu0 %986 }
 0x4bc   : > { %v8923_v59 = vpop.xlane.xlu2 %983 }
 0x4bd   : > { %v5640_v0 = vpack.c.bf16 %v4716_v24, %v4714_v35  ;;  %6115 = vrcp.f32 %v8923_v59 }
 0x4be   : > { %6117 = vrcp.f32 %v8925_v37 }
 0x4bf   : > { %5672 = vst [vmem:[%s8435_s22 + $0x58] sm:$0xff] %v5640_v0  }
 0x4c0   : > { %1185 = vadd.xlane.f32.xlu0 %v10689_v3 }
 0x4c1   : > { %1182 = vadd.xlane.f32.xlu2 %v10688_v55 }
 0x4c3   : > { %1152 = vadd.xlane.f32.xlu1 %v10690_v14  ;;  %v8933_v46 = vpop.xlane.xlu0 %995 }
 0x4c4   : > { %v8931_v25 = vpop.xlane.xlu2 %992 }
 0x4c5   : > { %6119 = vrcp.f32 %v8931_v25 }
 0x4c6   : > { %6121 = vrcp.f32 %v8933_v46 }
 0x4c8   : > { %1194 = vadd.xlane.f32.xlu0 %v10692_v33 }
 0x4c9   : > { %1191 = vadd.xlane.f32.xlu2 %v10691_v30 }
 0x4cb   : > { %1161 = vadd.xlane.f32.xlu1 %v10693_v53  ;;  %v8940_v40 = vpop.xlane.xlu0 %1004 }
 0x4cc   : > { %v8938_v27 = vpop.xlane.xlu2 %1001 }
 0x4cd   : > { %10694 = vst [vmem:[#allocation19_spill] sm:$0xff] %v8938_v27  ;;  %6123 = vrcp.f32 %v8938_v27 }
 0x4ce   : > { %6125 = vrcp.f32 %v8940_v40 }
 0x4d0   : > { %1203 = vadd.xlane.f32.xlu0 %v10696_v38 }
 0x4d1   : > { %1200 = vadd.xlane.f32.xlu2 %v10695_v18 }
 0x4d3   : > { %v4629_v42 = vpop.f32.mrf.mxu2  ;;  %1170 = vadd.xlane.f32.xlu1 %v10697_v12  ;;  %v8950_v21 = vpop.xlane.xlu0 %1013 }
 0x4d4   : > { %v4718_v29 = vpop.f32.mrf.mxu3  ;;  %v8948_v36 = vpop.xlane.xlu2 %1010 }
 0x4d5   : > { %10698 = vst [vmem:[#allocation20_spill] sm:$0xff] %v8948_v36  ;;  %6127 = vrcp.f32 %v8948_v36 }
 0x4d6   : > { %v4171_v51 = vpop.xlane.xlu1 %4170  ;;  %6129 = vrcp.f32 %v8950_v21 }
 0x4d7   : > { %v4172_v43 = vcvt.f32.s32 %v4171_v51 }
 0x4d8   : > { %1212 = vadd.xlane.f32.xlu0 %v8551_v19 }
 0x4d9   : > { %1209 = vadd.xlane.f32.xlu2 %v8522_v63  ;;  %v4175_v31 = vadd.s32 %v4174_v32, %v4172_v43  ;;  %v4719_v63 = vadd.f32 %v4718_v29, %v4629_v42  ;;  %v10714_v32 = vld [vmem:[#allocation18_spill] sm:$0xff] }
 0x4db   : > { %v4631_v44 = vpop.f32.mrf.mxu2  ;;  %4207 = vst.msk [vmem:[%s7824_s19 + $0xf8] sm:$0xff] %vm1828_vm2, %v4175_v31  ;;  %1179 = vadd.xlane.f32.xlu1 %v10699_v62  ;;  %vm4270_vm8 = vcmp.eq.s32.totalorder %v6542_v10, %v4175_v31  ;;  %vm4271_vm9 = vcmp.eq.s32.totalorder %v10268_v48, %v4175_v31  ;;  %v8967_v11 = vpop.xlane.xlu0 %1022 }
 0x4dc   : > { %v4720_v16 = vpop.f32.mrf.mxu3  ;;  %v8961_v5 = vpop.xlane.xlu2 %1019  ;;  %vm5502_vm10 = vmpackc.low %vm4270_vm8, %vm4268_vm7  ;;  %10701 = vst [vmem:[#allocation24_spill] sm:$0xff] %v8967_v11  ;;  %vm1285_vm7 = vweird.f32 %v8901_v8 }
 0x4dd   : > { %10700 = vst [vmem:[#allocation21_spill] sm:$0xff] %v8961_v5  ;;  %v4721_v19 = vadd.f32 %v4720_v16, %v4631_v44  ;;  %5503 = vmatmul.msk.bf16.gmra.mxu2 %vm5502_vm10, %v10452_v34  ;;  %vm5534_vm12 = vmpackc.low %vm4271_vm9, %vm4269_vm11  ;;  %v8977_v48 = vpop.eup %6103  ;;  %6131 = vrcp.f32 %v8961_v5  ;;  %vm1300_vm9 = vweird.f32 %v8942_v28 }
 0x4de   : > { %5535 = vmatmul.msk.bf16.gmra.mxu3 %vm5534_vm12, %v10452_v34  ;;  %v8971_v10 = vpop.xlane.xlu1 %989  ;;  %v8980_v4 = vpop.eup %6105  ;;  %v10702_v34 = vld [vmem:[#allocation76_spill] sm:$0xff]  ;;  %6133 = vrcp.f32 %v8967_v11  ;;  %v1251_v3 = vmul.f32 %v8977_v48, %v8893_v1  ;;  %vm1256_vm15 = vweird.f32 %v8977_v48 }
 0x4df   : > { %v5645_v9 = vpack.c.bf16 %v4721_v19, %v4719_v63  ;;  %v8983_v57 = vpop.eup %6107  ;;  %6135 = vrcp.f32 %v8971_v10  ;;  %v1236_v14 = vmul.f32 %v8980_v4, %v8873_v54  ;;  %vm1241_vm13 = vweird.f32 %v8980_v4  ;;  %vm1257_vm4 = vmor %vm1255_vm3, %vm1256_vm15 }
 0x4e0   : > { %v8989_v52 = vpop.eup %6109  ;;  %v9046_v30 = vmul.f32 %v8983_v57, %v8891_v39  ;;  %vm9171_vm0 = vmor %vm1240_vm14, %vm1241_vm13  ;;  %vm1225_vm14 = vweird.f32 %v8891_v39  ;;  %vm1226_vm15 = vweird.f32 %v8983_v57 }
 0x4e1   : > { %5673 = vst [vmem:[%s8435_s22 + $0x60] sm:$0xff] %v5645_v9   ;;  %1218 = vadd.xlane.f32.xlu2 %v8867_v2  ;;  %v8992_v2 = vpop.eup %6111  ;;  %v9053_v53 = vmul.f32 %v8989_v52, %v8942_v28  ;;  %vm1301_vm11 = vweird.f32 %v8989_v52 }
 0x4e2   : > { %v8997_v26 = vpop.eup %6113  ;;  %v9057_v18 = vmul.f32 %v8992_v2, %v8901_v8  ;;  %vm1286_vm6 = vweird.f32 %v8992_v2  ;;  %vm9260_vm12 = vmor %vm1300_vm9, %vm1301_vm11 }
 0x4e3   : > { %1188 = vadd.xlane.f32.xlu1 %v10702_v34  ;;  %v8995_v20 = vpop.xlane.xlu0 %1031  ;;  %v9002_v56 = vpop.eup %6115  ;;  %v9061_v38 = vmul.f32 %v8997_v26, %v8916_v60  ;;  %vm1287_vm10 = vmor %vm1285_vm7, %vm1286_vm6  ;;  %vm1345_vm7 = vweird.f32 %v8971_v10 }
 0x4e4   : > { %v8987_v58 = vpop.xlane.xlu2 %1028  ;;  %10704 = vst [vmem:[#allocation97_spill] sm:$0xff] %v8995_v20  ;;  %v9005_v49 = vpop.eup %6117  ;;  %v9068_v45 = vmul.f32 %v9002_v56, %v8923_v59 }
 0x4e5   : > { %10703 = vst [vmem:[#allocation25_spill] sm:$0xff] %v8987_v58  ;;  %v9008_v23 = vpop.eup %6119  ;;  %6137 = vrcp.f32 %v8987_v58  ;;  %v9072_v12 = vmul.f32 %v9005_v49, %v8925_v37  ;;  %vm1331_vm3 = vweird.f32 %v9005_v49 }
 0x4e6   : > { %v9000_v47 = vpop.xlane.xlu1 %998  ;;  %v9011_v17 = vpop.eup %6121  ;;  %6139 = vrcp.f32 %v8995_v20  ;;  %v9076_v29 = vmul.f32 %v9008_v23, %v8931_v25 }
 0x4e7   : > { %v9014_v22 = vpop.eup %6123  ;;  %6141 = vrcp.f32 %v9000_v47  ;;  %v9080_v51 = vmul.f32 %v9011_v17, %v8933_v46 }
 0x4e8   : > { %10705 = vst [vmem:[#allocation31_spill] sm:$0xff] %v9014_v22  ;;  %v9020_v6 = vpop.eup %6125  ;;  %v9089_v44 = vmul.f32 %v9014_v22, %v8938_v27 }
 0x4e9   : > { %v9023_v41 = vpop.eup %6127  ;;  %v9093_v62 = vmul.f32 %v9020_v6, %v8940_v40 }
 0x4ea   : > { %10708 = vst [vmem:[#allocation128_spill] sm:$0xff] %v9023_v41  ;;  %v9028_v7 = vpop.eup %6129  ;;  %v9097_v16 = vmul.f32 %v9023_v41, %v8948_v36 }
 0x4eb   : > { %1197 = vadd.xlane.f32.xlu1 %v10706_v61  ;;  %v9026_v35 = vpop.xlane.xlu0 %1040  ;;  %v9033_v50 = vpop.eup %6131  ;;  %v9106_v19 = vmul.f32 %v9028_v7, %v8950_v21 }
 0x4ec   : > { %v9018_v15 = vpop.xlane.xlu2 %1037  ;;  %10709 = vst [vmem:[#allocation37_spill] sm:$0xff] %v9026_v35  ;;  %v9035_v0 = vpop.eup %6133  ;;  %v9110_v9 = vmul.f32 %v9033_v50, %v8961_v5 }
 0x4ed   : > { %10707 = vst [vmem:[#allocation36_spill] sm:$0xff] %v9018_v15  ;;  %6143 = vrcp.f32 %v9018_v15  ;;  %v9038_v55 = vpop.eup %6135  ;;  %v9114_v34 = vmul.f32 %v9035_v0, %v8967_v11 }
 0x4ee   : > { %v9031_v24 = vpop.xlane.xlu1 %1007  ;;  %10710 = vst [vmem:[#allocation134_spill] sm:$0xff] %v9033_v50  ;;  %6145 = vrcp.f32 %v9026_v35  ;;  %v9049_v33 = vpop.eup %6137  ;;  %v9102_v63 = vmul.f32 %v9038_v55, %v8971_v10  ;;  %v1237_v50 = vsub.f32 1.0, %v1236_v14  ;;  %v1252_v14 = vsub.f32 1.0, %v1251_v3 }
 0x4ef   : > { %10711 = vst [vmem:[#allocation46_spill] sm:$0xff] %v9035_v0  ;;  %6147 = vrcp.f32 %v9031_v24  ;;  %v9064_v42 = vpop.eup %6139  ;;  %v9122_v41 = vmul.f32 %v9049_v33, %v8987_v58  ;;  %v1244_v58 = vand.u32 2147483647, %v8873_v54 }
 0x4f0   : > { %10712 = vst [vmem:[#allocation135_spill] sm:$0xff] %v9049_v33  ;;  %v9085_v31 = vpop.eup %6141  ;;  %v9126_v36 = vmul.f32 %v9064_v42, %v8995_v20 }
 0x4f1   : > { %10713 = vst [vmem:[#allocation47_spill] sm:$0xff] %v9064_v42  ;;  %v1246_v42 = vand.u32 2147483648, %v8873_v54  ;;  %vm9175_vm1 = vcmp.eq.f32.partialorder %v1244_v58, 8.507059e+37 }
 0x4f2   : > { %10716 = vst [vmem:[#allocation48_spill] sm:$0xff] %v9097_v16 }
 0x4f3   : > { %1206 = vadd.xlane.f32.xlu1 %v10714_v32  ;;  %10717 = vst [vmem:[#allocation107_spill] sm:$0xff] %v9110_v9  ;;  %v9116_v61 = vpop.xlane.xlu0 %1049  ;;  %v9118_v32 = vpop.eup %6143  ;;  %v9135_v9 = vmul.f32 %v9085_v31, %v9000_v47 }
 0x4f4   : > { %v9083_v43 = vpop.xlane.xlu2 %1046  ;;  %10718 = vst [vmem:[#allocation70_spill] sm:$0xff] %v9114_v34  ;;  %v9131_v5 = vpop.eup %6145  ;;  %v9147_v20 = vmul.f32 %v9118_v32, %v9018_v15  ;;  %v1261_v34 = vand.u32 2147483648, %v8893_v1 }
 0x4f5   : > { %10715 = vst [vmem:[#allocation136_spill] sm:$0xff] %v9083_v43  ;;  %6149 = vrcp.f32 %v9083_v43  ;;  %v9140_v33 = vpop.eup %6147 }
 0x4f6   : > { %10719 = vst [vmem:[#allocation78_spill] sm:$0xff] %v9116_v61  ;;  %v9128_v16 = vpop.xlane.xlu1 %1016  ;;  %6151 = vrcp.f32 %v9116_v61  ;;  %v9160_v3 = vmul.f32 %v9140_v33, %v9031_v24 }
 0x4f7   : > { %10720 = vst [vmem:[#allocation22_spill] sm:$0xff] %v9118_v32  ;;  %6153 = vrcp.f32 %v9128_v16 }
 0x4f8   : > { %10721 = vst [vmem:[#allocation79_spill] sm:$0xff] %v9122_v41  ;;  %v1238_v41 = vmul.f32 %v8980_v4, %v1237_v50  ;;  %6155 = vlog2.f32 %v8873_v54  ;;  %v1253_v50 = vmul.f32 %v8977_v48, %v1252_v14  ;;  %v9164_v54 = vmul.f32 %v9131_v5, %v9026_v35 }
 0x4f9   : > { %10722 = vst [vmem:[#allocation23_spill] sm:$0xff] %v9126_v36  ;;  %v1259_v36 = vand.u32 2147483647, %v8893_v1  ;;  %6157 = vlog2.f32 %v8893_v1  ;;  %v1289_v14 = vand.u32 2147483647, %v8901_v8 }
 0x4fa   : > { %10723 = vst [vmem:[#allocation26_spill] sm:$0xff] %v9131_v5  ;;  %v1239_v11 = vadd.f32 %v8980_v4, %v1238_v41  ;;  %v1254_v5 = vadd.f32 %v8977_v48, %v1253_v50 }
 0x4fb   : > { %10724 = vst [vmem:[#allocation30_spill] sm:$0xff] %v9147_v20  ;;  %v9152_v0 = vpop.eup %6149  ;;  %1215 = vadd.xlane.f32.xlu1 %v8599_v13  ;;  %v1247_v20 = vor.u32 1.1754944e-38, %v1246_v42  ;;  %vm1260_vm5 = vcmp.eq.f32.partialorder %v1259_v36, 8.507059e+37  ;;  %vm9223_vm8 = vcmp.eq.f32.partialorder %v1289_v14, 8.507059e+37 }
 0x4fc   : > { %10725 = vst [vmem:[#allocation82_spill] sm:$0xff] %v9152_v0  ;;  %v9167_v15 = vpop.xlane.xlu2 %1055  ;;  %v9180_v32 = vpop.eup %6151  ;;  %v1243_v13 = vsel %vm9171_vm0, %v8980_v4, %v1239_v11  ;;  %v9191_v58 = vmul.f32 %v9152_v0, %v9083_v43  ;;  %v1262_v11 = vor.u32 1.1754944e-38, %v1261_v34  ;;  %v1258_v41 = vsel %vm1257_vm4, %v8977_v48, %v1254_v5  ;;  %vm9289_vm0 = vmor %vm1225_vm14, %vm1226_vm15 }
 0x4fd   : > { %10726 = vst [vmem:[#allocation27_spill] sm:$0xff] %v9164_v54  ;;  %6159 = vrcp.f32 %v9167_v15  ;;  %v9187_v35 = vpop.eup %6153  ;;  %v9195_v1 = vmul.f32 %v9180_v32, %v9116_v61  ;;  %v9197_v54 = vpop.xlane.xlu0 %1058  ;;  %v1248_v50 = vsel %vm9175_vm1, %v1247_v20, %v1243_v13  ;;  %v1282_v43 = vsub.f32 1.0, %v9057_v18 }
 0x4fe   : > { %10727 = vst [vmem:[#allocation83_spill] sm:$0xff] %v9167_v15  ;;  %v6156_v4 = vpop.eup %6155  ;;  %v9201_v42 = vpop.xlane.xlu1 %1025  ;;  %6161 = vrcp.f32 %v9197_v54  ;;  %v9210_v0 = vmul.f32 %v9187_v35, %v9128_v16  ;;  %v1263_v34 = vsel %vm1260_vm5, %v1262_v11, %v1258_v41  ;;  %v1291_v20 = vand.u32 2147483648, %v8901_v8 }
 0x4ff   : > { %10732 = vst [vmem:[#allocation126_spill] sm:$0xff] %v9180_v32  ;;  %6163 = vrcp.f32 %v9201_v42  ;;  %v1703_v36 = vmul.f32 0.6931472, %v6156_v4  ;;  %v1283_v61 = vmul.f32 %v8992_v2, %v1282_v43  ;;  %v1297_v48 = vsub.f32 1.0, %v9053_v53 }
 0x500   : > { %10733 = vst [vmem:[#allocation86_spill] sm:$0xff] %v9191_v58  ;;  %v6158_v58 = vpop.eup %6157  ;;  %6165 = vlog2.f32 %v8901_v8  ;;  %v1292_v43 = vor.u32 1.1754944e-38, %v1291_v20  ;;  %v1304_v8 = vand.u32 2147483647, %v8942_v28  ;;  %v1306_v53 = vand.u32 2147483648, %v8942_v28 }
 0x501   : > { %10734 = vst [vmem:[#allocation114_spill] sm:$0xff] %v9195_v1  ;;  %v1705_v5 = vmul.f32 0.6931472, %v6158_v58  ;;  %v1284_v13 = vadd.f32 %v8992_v2, %v1283_v61  ;;  %v1298_v58 = vmul.f32 %v8989_v52, %v1297_v48  ;;  %6167 = vlog2.f32 %v8942_v28 }
 0x502   : > { %v1222_v20 = vsub.f32 1.0, %v9046_v30  ;;  %vm9264_vm13 = vcmp.eq.f32.partialorder %v1304_v8, 8.507059e+37  ;;  %vm1330_vm1 = vweird.f32 %v8925_v37  ;;  %vm1376_vm15 = vweird.f32 %v9011_v17 }
 0x503   : > { %v9220_v18 = vpop.eup %6159  ;;  %v1288_v14 = vsel %vm1287_vm10, %v8992_v2, %v1284_v13  ;;  %v1299_v2 = vadd.f32 %v8989_v52, %v1298_v58  ;;  %vm9323_vm5 = vmor %vm1330_vm1, %vm1331_vm3  ;;  %vm1271_vm10 = vweird.f32 %v8997_v26 }
 0x504   : > { %10735 = vst [vmem:[#allocation148_spill] sm:$0xff] %v9220_v18  ;;  %v1129_v4 = vpop.xlane.xlu2 %1128  ;;  %v9232_v41 = vpop.eup %6161  ;;  %v9241_v48 = vmul.f32 %v9220_v18, %v9167_v15  ;;  %v1231_v18 = vand.u32 2147483648, %v8891_v39 }
 0x505   : > { %v1249_v61 = vmul.f32 %v1248_v50, %v1129_v4  ;;  %v9237_v32 = vpop.eup %6163  ;;  %v9245_v1 = vmul.f32 %v9232_v41, %v9197_v54  ;;  %v1132_v22 = vpop.xlane.xlu0 %1131  ;;  %v1293_v50 = vsel %vm9223_vm8, %v1292_v43, %v1288_v14  ;;  %v1303_v28 = vsel %vm9260_vm12, %v8989_v52, %v1299_v2 }
 0x506   : > { %v9252_v13 = vmul.f32 %v9237_v32, %v9201_v42  ;;  %v9254_v30 = vpop.xlane.xlu1 %1034  ;;  %v1264_v27 = vmul.f32 %v1263_v34, %v1132_v22  ;;  %v6166_v43 = vpop.eup %6165  ;;  %v1307_v22 = vor.u32 1.1754944e-38, %v1306_v53  ;;  %v1229_v14 = vand.u32 2147483647, %v8891_v39 }
 0x507   : > { %v1765_v4 = vsub.f32 %v1249_v61, %v1703_v36  ;;  %6169 = vrcp.f32 %v9254_v30  ;;  %v1223_v36 = vmul.f32 %v8983_v57, %v1222_v20  ;;  %v1709_v8 = vmul.f32 0.6931472, %v6166_v43  ;;  %v6168_v15 = vpop.eup %6167 }
 0x508   : > { %v1766_v58 = vsub.f32 %v1264_v27, %v1705_v5  ;;  %v1308_v53 = vsel %vm9264_vm13, %v1307_v22, %v1303_v28  ;;  %6171 = vlog2.f32 %v8891_v39  ;;  %v1327_v5 = vsub.f32 1.0, %v9072_v12 }
 0x509   : > { %v1797_v34 = vadd.f32 5.5451775, %v1765_v4  ;;  %v1224_v61 = vadd.f32 %v8983_v57, %v1223_v36  ;;  %v1711_v2 = vmul.f32 0.6931472, %v6168_v15  ;;  %v1232_v43 = vor.u32 1.1754944e-38, %v1231_v18 }
 0x50a   : > { %v1798_v52 = vadd.f32 5.5451775, %v1766_v58  ;;  %v1328_v28 = vmul.f32 %v9005_v49, %v1327_v5  ;;  %v1334_v39 = vand.u32 2147483647, %v8925_v37  ;;  %vm1230_vm4 = vcmp.eq.f32.partialorder %v1229_v14, 8.507059e+37 }
 0x50b   : > { %1830 = vst.msk [vmem:[%s9274_s30 + $0x8] sm:$0xff] %vm1828_vm2, %v1797_v34  ;;  %v1228_v4 = vsel %vm9289_vm0, %v8983_v57, %v1224_v61  ;;  %v1336_v36 = vand.u32 2147483648, %v8925_v37  ;;  %6173 = vlog2.f32 %v8925_v37  ;;  %v1342_v57 = vsub.f32 1.0, %v9102_v63 }
 0x50c   : > { %v1138_v20 = vpop.xlane.xlu2 %1137  ;;  %1831 = vst.msk [vmem:[%s9274_s30 + $0x10] sm:$0xff] %vm1828_vm2, %v1798_v52  ;;  %v9311_v58 = vsel %vm1230_vm4, %v1232_v43, %v1228_v4  ;;  %v1329_v61 = vadd.f32 %v9005_v49, %v1328_v28  ;;  %vm9327_vm6 = vcmp.eq.f32.partialorder %v1334_v39, 8.507059e+37  ;;  %vm1346_vm8 = vweird.f32 %v9038_v55 }
 0x50d   : > { %v1294_v11 = vmul.f32 %v1293_v50, %v1138_v20  ;;  %v9304_v22 = vpop.eup %6169  ;;  %v1141_v12 = vpop.xlane.xlu0 %1140  ;;  %v1343_v14 = vmul.f32 %v9038_v55, %v1342_v57  ;;  %v1337_v20 = vor.u32 1.1754944e-38, %v1336_v36  ;;  %vm9342_vm9 = vmor %vm1345_vm7, %vm1346_vm8  ;;  %v1267_v57 = vsub.f32 1.0, %v9061_v38 }
 0x50e   : > { %v9309_v18 = vpop.xlane.xlu1 %1043  ;;  %v1309_v50 = vmul.f32 %v1308_v53, %v1141_v12  ;;  %v9316_v15 = vmul.f32 %v9304_v22, %v9254_v30  ;;  %v6172_v52 = vpop.eup %6171  ;;  %v1333_v5 = vsel %vm9323_vm5, %v9005_v49, %v1329_v61  ;;  %v1351_v49 = vand.u32 2147483648, %v8971_v10 }
 0x50f   : > { %v1768_v34 = vsub.f32 %v1294_v11, %v1709_v8  ;;  %6175 = vrcp.f32 %v9309_v18  ;;  %v9335_v4 = vmul.f32 0.6931472, %v6172_v52  ;;  %v1344_v37 = vadd.f32 %v9038_v55, %v1343_v14 }
 0x510   : > { %v1769_v27 = vsub.f32 %v1309_v50, %v1711_v2  ;;  %v1349_v2 = vand.u32 2147483647, %v8971_v10  ;;  %6177 = vlog2.f32 %v8971_v10  ;;  %v1338_v12 = vsel %vm9327_vm6, %v1337_v20, %v1333_v5 }
 0x511   : > { %v1800_v53 = vadd.f32 5.5451775, %v1768_v34  ;;  %v6174_v28 = vpop.eup %6173  ;;  %v1348_v36 = vsel %vm9342_vm9, %v9038_v55, %v1344_v37  ;;  %v1352_v61 = vor.u32 1.1754944e-38, %v1351_v49  ;;  %v1268_v8 = vmul.f32 %v8997_v26, %v1267_v57 }
 0x512   : > { %v1801_v43 = vadd.f32 5.5451775, %v1769_v27  ;;  %v1715_v50 = vmul.f32 0.6931472, %v6174_v28  ;;  %vm1350_vm11 = vcmp.eq.f32.partialorder %v1349_v2, 8.507059e+37  ;;  %v1276_v52 = vand.u32 2147483648, %v8916_v60 }
 0x513   : > { %1833 = vst.msk [vmem:[%s9274_s30 + $0x20] sm:$0xff] %vm1828_vm2, %v1800_v53  ;;  %v1274_v14 = vand.u32 2147483647, %v8916_v60  ;;  %6179 = vlog2.f32 %v8916_v60  ;;  %v1353_v53 = vsel %vm1350_vm11, %v1352_v61, %v1348_v36  ;;  %vm1270_vm12 = vweird.f32 %v8916_v60 }
 0x514   : > { %v1147_v39 = vpop.xlane.xlu2 %1146  ;;  %1834 = vst.msk [vmem:[%s9274_s30 + $0x28] sm:$0xff] %vm1828_vm2, %v1801_v43  ;;  %v1372_v27 = vsub.f32 1.0, %v9080_v51  ;;  %v1269_v37 = vadd.f32 %v8997_v26, %v1268_v8  ;;  %vm9376_vm13 = vmor %vm1270_vm12, %vm1271_vm10  ;;  %v1277_v60 = vor.u32 1.1754944e-38, %v1276_v52  ;;  %vm1375_vm0 = vweird.f32 %v8933_v46 }
 0x515   : > { %v1339_v34 = vmul.f32 %v1338_v12, %v1147_v39  ;;  %v9358_v10 = vpop.eup %6175  ;;  %v1150_v63 = vpop.xlane.xlu0 %1149  ;;  %vm1275_vm14 = vcmp.eq.f32.partialorder %v1274_v14, 8.507059e+37  ;;  %v1379_v39 = vand.u32 2147483647, %v8933_v46  ;;  %v1381_v36 = vand.u32 2147483648, %v8933_v46  ;;  %vm9392_vm1 = vmor %vm1375_vm0, %vm1376_vm15 }
 0x516   : > { %v9364_v55 = vpop.xlane.xlu1 %1052  ;;  %v9370_v5 = vmul.f32 %v9358_v10, %v9309_v18  ;;  %v1354_v20 = vmul.f32 %v1353_v53, %v1150_v63  ;;  %v6178_v43 = vpop.eup %6177  ;;  %v1373_v51 = vmul.f32 %v9011_v17, %v1372_v27  ;;  %v1273_v28 = vsel %vm9376_vm13, %v8997_v26, %v1269_v37 }
 0x517   : > { %v1771_v38 = vsub.f32 %v1339_v34, %v1715_v50  ;;  %6181 = vrcp.f32 %v9364_v55  ;;  %v1717_v49 = vmul.f32 0.6931472, %v6178_v43  ;;  %v1278_v50 = vsel %vm1275_vm14, %v1277_v60, %v1273_v28 }
 0x518   : > { %v1374_v12 = vadd.f32 %v9011_v17, %v1373_v51  ;;  %6183 = vlog2.f32 %v8933_v46  ;;  %vm1380_vm3 = vcmp.eq.f32.partialorder %v1379_v39, 8.507059e+37  ;;  %v1387_v26 = vsub.f32 1.0, %v9135_v9 }
 0x519   : > { %v1803_v11 = vadd.f32 5.5451775, %v1771_v38  ;;  %v6180_v57 = vpop.eup %6179  ;;  %v1772_v34 = vsub.f32 %v1354_v20, %v1717_v49  ;;  %v1382_v14 = vor.u32 1.1754944e-38, %v1381_v36  ;;  %vm1390_vm4 = vweird.f32 %v9000_v47 }
 0x51a   : > { %v1378_v8 = vsel %vm9392_vm1, %v9011_v17, %v1374_v12  ;;  %vm1391_vm5 = vweird.f32 %v9085_v31  ;;  %v1388_v38 = vmul.f32 %v9085_v31, %v1387_v26  ;;  %v1394_v53 = vand.u32 2147483647, %v9000_v47 }
 0x51b   : > { %1836 = vst.msk [vmem:[%s9274_s30 + $0x38] sm:$0xff] %vm1828_vm2, %v1803_v11  ;;  %v1804_v52 = vadd.f32 5.5451775, %v1772_v34  ;;  %v1396_v9 = vand.u32 2147483648, %v9000_v47  ;;  %v9407_v20 = vmul.f32 0.6931472, %v6180_v57  ;;  %v1383_v37 = vsel %vm1380_vm3, %v1382_v14, %v1378_v8  ;;  %vm1392_vm7 = vmor %vm1390_vm4, %vm1391_vm5 }
 0x51c   : > { %v1156_v63 = vpop.xlane.xlu2 %1155  ;;  %6185 = vlog2.f32 %v9000_v47  ;;  %v1312_v17 = vsub.f32 1.0, %v9068_v45  ;;  %v1389_v2 = vadd.f32 %v9085_v31, %v1388_v38  ;;  %vm1395_vm6 = vcmp.eq.f32.partialorder %v1394_v53, 8.507059e+37 }
 0x51d   : > { %v9402_v46 = vpop.eup %6181  ;;  %1837 = vst.msk [vmem:[%s9274_s30 + $0x40] sm:$0xff] %vm1828_vm2, %v1804_v52  ;;  %v1384_v11 = vmul.f32 %v1383_v37, %v1156_v63  ;;  %v1397_v51 = vor.u32 1.1754944e-38, %v1396_v9  ;;  %v1159_v49 = vpop.xlane.xlu0 %1158  ;;  %vm1315_vm8 = vweird.f32 %v8923_v59  ;;  %vm1316_vm9 = vweird.f32 %v9002_v56 }
 0x51e   : > { %v1126_v27 = vpop.xlane.xlu1 %1125  ;;  %v6184_v60 = vpop.eup %6183  ;;  %v1313_v28 = vmul.f32 %v9002_v56, %v1312_v17  ;;  %v1393_v39 = vsel %vm1392_vm7, %v9085_v31, %v1389_v2  ;;  %v1319_v12 = vand.u32 2147483647, %v8923_v59  ;;  %v1321_v57 = vand.u32 2147483648, %v8923_v59  ;;  %vm1317_vm10 = vmor %vm1315_vm8, %vm1316_vm9 }
 0x51f   : > { %v1234_v43 = vmul.f32 %v9311_v58, %v1126_v27  ;;  %v1721_v58 = vmul.f32 0.6931472, %v6184_v60  ;;  %v1398_v36 = vsel %vm1395_vm6, %v1397_v51, %v1393_v39  ;;  %6187 = vlog2.f32 %v8923_v59 }
 0x520   : > { %v1314_v47 = vadd.f32 %v9002_v56, %v1313_v28  ;;  %v1399_v26 = vmul.f32 %v1398_v36, %v1159_v49  ;;  %vm1320_vm11 = vcmp.eq.f32.partialorder %v1319_v12, 8.507059e+37  ;;  %v1322_v31 = vor.u32 1.1754944e-38, %v1321_v57 }
 0x521   : > { %v1764_v45 = vsub.f32 %v1234_v43, %v9335_v4  ;;  %v1774_v61 = vsub.f32 %v1384_v11, %v1721_v58  ;;  %v1417_v8 = vsub.f32 1.0, %v9093_v62  ;;  %vm1420_vm12 = vweird.f32 %v8940_v40 }
 0x522   : > { %v6186_v63 = vpop.eup %6185  ;;  %v1318_v4 = vsel %vm1317_vm10, %v9002_v56, %v1314_v47  ;;  %vm1421_vm13 = vweird.f32 %v9020_v6  ;;  %v1426_v59 = vand.u32 2147483648, %v8940_v40  ;;  %v1424_v27 = vand.u32 2147483647, %v8940_v40 }
 0x523   : > { %v1796_v34 = vadd.f32 5.5451775, %v1764_v45  ;;  %v1806_v14 = vadd.f32 5.5451775, %v1774_v61  ;;  %v1723_v52 = vmul.f32 0.6931472, %v6186_v63  ;;  %v1323_v53 = vsel %vm1320_vm11, %v1322_v31, %v1318_v4  ;;  %vm1422_vm1 = vmor %vm1420_vm12, %vm1421_vm13 }
 0x524   : > { %v1418_v9 = vmul.f32 %v9020_v6, %v1417_v8  ;;  %6189 = vlog2.f32 %v8940_v40  ;;  %v1427_v37 = vor.u32 1.1754944e-38, %v1426_v59  ;;  %v1432_v17 = vsub.f32 1.0, %v9160_v3  ;;  %v1165_v45 = vpop.xlane.xlu2 %1164 }
 0x525   : > { %1829 = vst.msk [vmem:[%s9274_s30] sm:$0xff] %vm1828_vm2, %v1796_v34  ;;  %v1775_v62 = vsub.f32 %v1399_v26, %v1723_v52  ;;  %v6188_v43 = vpop.eup %6187  ;;  %vm9442_vm14 = vcmp.eq.f32.partialorder %v1424_v27, 8.507059e+37  ;;  %vm1435_vm15 = vweird.f32 %v9031_v24  ;;  %vm1436_vm0 = vweird.f32 %v9140_v33  ;;  %v4634_v60 = vpop.f32.mrf.mxu2 }
 0x526   : > { %v1135_v38 = vpop.xlane.xlu1 %1134  ;;  %1839 = vst.msk [vmem:[%s9274_s30 + $0x50] sm:$0xff] %vm1828_vm2, %v1806_v14  ;;  %v1419_v11 = vadd.f32 %v9020_v6, %v1418_v9  ;;  %v1713_v28 = vmul.f32 0.6931472, %v6188_v43  ;;  %v1433_v3 = vmul.f32 %v9140_v33, %v1432_v17  ;;  %v1439_v39 = vand.u32 2147483647, %v9031_v24  ;;  %vm1437_vm3 = vmor %vm1435_vm15, %vm1436_vm0  ;;  %v1168_v61 = vpop.xlane.xlu0 %1167 }
 0x527   : > { %v1279_v56 = vmul.f32 %v1278_v50, %v1135_v38  ;;  %v4723_v50 = vpop.f32.mrf.mxu3  ;;  %v1807_v49 = vadd.f32 5.5451775, %v1775_v62  ;;  %v1441_v12 = vand.u32 2147483648, %v9031_v24  ;;  %6191 = vlog2.f32 %v9031_v24 }
 0x528   : > { %v1423_v58 = vsel %vm1422_vm1, %v9020_v6, %v1419_v11  ;;  %v1434_v40 = vadd.f32 %v9140_v33, %v1433_v3  ;;  %v9463_v47 = vadd.f32 %v4723_v50, %v4634_v60  ;;  %vm1440_vm4 = vcmp.eq.f32.partialorder %v1439_v39, 8.507059e+37 }
 0x529   : > { %v1767_v51 = vsub.f32 %v1279_v56, %v9407_v20  ;;  %1840 = vst.msk [vmem:[%s9274_s30 + $0x58] sm:$0xff] %vm1828_vm2, %v1807_v49  ;;  %v1428_v36 = vsel %vm9442_vm14, %v1427_v37, %v1423_v58  ;;  %v1442_v6 = vor.u32 1.1754944e-38, %v1441_v12  ;;  %v1357_v26 = vsub.f32 1.0, %v9076_v29 }
 0x52a   : > { %v6190_v57 = vpop.eup %6189  ;;  %v1429_v34 = vmul.f32 %v1428_v36, %v1165_v45  ;;  %v1438_v4 = vsel %vm1437_vm3, %v9140_v33, %v1434_v40  ;;  %vm1360_vm5 = vweird.f32 %v8931_v25  ;;  %vm1361_vm6 = vweird.f32 %v9008_v23 }
 0x52b   : > { %v1799_v20 = vadd.f32 5.5451775, %v1767_v51  ;;  %v1727_v63 = vmul.f32 0.6931472, %v6190_v57  ;;  %v1443_v8 = vsel %vm1440_vm4, %v1442_v6, %v1438_v4  ;;  %v1358_v14 = vmul.f32 %v9008_v23, %v1357_v26  ;;  %vm1362_vm8 = vmor %vm1360_vm5, %vm1361_vm6 }
 0x52c   : > { %v1364_v24 = vand.u32 2147483647, %v8931_v25  ;;  %v1366_v52 = vand.u32 2147483648, %v8931_v25  ;;  %v1444_v29 = vmul.f32 %v1443_v8, %v1168_v61  ;;  %6193 = vlog2.f32 %v8931_v25  ;;  %v1174_v25 = vpop.xlane.xlu2 %1173  ;;  %v10758_v8 = vld [vmem:[#allocation19_spill] sm:$0xff] }
 0x52d   : > { %1832 = vst.msk [vmem:[%s9274_s30 + $0x18] sm:$0xff] %vm1828_vm2, %v1799_v20  ;;  %v1777_v38 = vsub.f32 %v1429_v34, %v1727_v63  ;;  %v6192_v9 = vpop.eup %6191  ;;  %v1359_v33 = vadd.f32 %v9008_v23, %v1358_v14  ;;  %v1462_v56 = vsub.f32 1.0, %v9106_v19  ;;  %vm1465_vm9 = vweird.f32 %v8950_v21  ;;  %v4636_v58 = vpop.f32.mrf.mxu2 }
 0x52e   : > { %v1144_v31 = vpop.xlane.xlu1 %1143  ;;  %vm1365_vm7 = vcmp.eq.f32.partialorder %v1364_v24, 8.507059e+37  ;;  %v1367_v27 = vor.u32 1.1754944e-38, %v1366_v52  ;;  %v1729_v17 = vmul.f32 0.6931472, %v6192_v9  ;;  %vm1466_vm10 = vweird.f32 %v9028_v7  ;;  %v1177_v4 = vpop.xlane.xlu0 %1176 }
 0x52f   : > { %v1324_v59 = vmul.f32 %v1323_v53, %v1144_v31  ;;  %v1809_v37 = vadd.f32 5.5451775, %v1777_v38  ;;  %v1363_v53 = vsel %vm1362_vm8, %v9008_v23, %v1359_v33  ;;  %v1463_v43 = vmul.f32 %v9028_v7, %v1462_v56  ;;  %vm1467_vm12 = vmor %vm1465_vm9, %vm1466_vm10  ;;  %v4725_v39 = vpop.f32.mrf.mxu3 }
 0x530   : > { %v1469_v11 = vand.u32 2147483647, %v8950_v21  ;;  %v1778_v2 = vsub.f32 %v1444_v29, %v1729_v17  ;;  %v1368_v60 = vsel %vm1365_vm7, %v1367_v27, %v1363_v53  ;;  %v1471_v50 = vand.u32 2147483648, %v8950_v21  ;;  %v10763_v53 = vld [vmem:[#allocation24_spill] sm:$0xff] }
 0x531   : > { %v1770_v62 = vsub.f32 %v1324_v59, %v1713_v28  ;;  %1842 = vst.msk [vmem:[%s9274_s30 + $0x68] sm:$0xff] %vm1828_vm2, %v1809_v37  ;;  %v1464_v51 = vadd.f32 %v9028_v7, %v1463_v43  ;;  %6195 = vlog2.f32 %v8950_v21  ;;  %v1477_v23 = vsub.f32 1.0, %v9210_v0  ;;  %v10759_v59 = vld [vmem:[#allocation31_spill] sm:$0xff]  ;;  %v10762_v37 = vld [vmem:[#allocation70_spill] sm:$0xff] }
 0x532   : > { %vm9494_vm11 = vcmp.eq.f32.partialorder %v1469_v11, 8.507059e+37  ;;  %v6194_v28 = vpop.eup %6193  ;;  %v1810_v45 = vadd.f32 5.5451775, %v1778_v2  ;;  %v1472_v3 = vor.u32 1.1754944e-38, %v1471_v50  ;;  %vm1480_vm13 = vweird.f32 %v9128_v16  ;;  %v10764_v2 = vld [vmem:[#allocation46_spill] sm:$0xff] }
 0x533   : > { %v1802_v19 = vadd.f32 5.5451775, %v1770_v62  ;;  %vm1481_vm14 = vweird.f32 %v9187_v35  ;;  %v1719_v20 = vmul.f32 0.6931472, %v6194_v28  ;;  %v1468_v0 = vsel %vm1467_vm12, %v9028_v7, %v1464_v51 }
 0x534   : > { %v1478_v36 = vmul.f32 %v9187_v35, %v1477_v23  ;;  %v1484_v40 = vand.u32 2147483647, %v9128_v16  ;;  %1843 = vst.msk [vmem:[%s9274_s30 + $0x70] sm:$0xff] %vm1828_vm2, %v1810_v45  ;;  %v1473_v21 = vsel %vm9494_vm11, %v1472_v3, %v1468_v0  ;;  %v1486_v34 = vand.u32 2147483648, %v9128_v16  ;;  %vm1482_vm0 = vmor %vm1480_vm13, %vm1481_vm14 }
 0x535   : > { %1835 = vst.msk [vmem:[%s9274_s30 + $0x30] sm:$0xff] %vm1828_vm2, %v1802_v19  ;;  %6197 = vlog2.f32 %v9128_v16  ;;  %v1474_v6 = vmul.f32 %v1473_v21, %v1174_v25  ;;  %v4726_v26 = vadd.f32 %v4725_v39, %v4636_v58  ;;  %v1402_v31 = vsub.f32 1.0, %v9089_v44 }
 0x536   : > { %v1153_v12 = vpop.xlane.xlu1 %1152  ;;  %v1479_v61 = vadd.f32 %v9187_v35, %v1478_v36  ;;  %vm1485_vm15 = vcmp.eq.f32.partialorder %v1484_v40, 8.507059e+37  ;;  %v1487_v63 = vor.u32 1.1754944e-38, %v1486_v34  ;;  %vm1405_vm1 = vweird.f32 %v10758_v8 }
 0x537   : > { %v1369_v57 = vmul.f32 %v1368_v60, %v1153_v12  ;;  %v6196_v14 = vpop.eup %6195  ;;  %v5650_v52 = vpack.c.bf16 %v4726_v26, %v9463_v47  ;;  %vm1406_vm3 = vweird.f32 %v10759_v59  ;;  %v1409_v38 = vand.u32 2147483647, %v10758_v8  ;;  %v4728_v0 = vpop.f32.mrf.mxu3 }
 0x538   : > { %v1483_v24 = vsel %vm1482_vm0, %v9187_v35, %v1479_v61  ;;  %v1733_v16 = vmul.f32 0.6931472, %v6196_v14  ;;  %v1403_v33 = vmul.f32 %v10759_v59, %v1402_v31  ;;  %v1411_v56 = vand.u32 2147483648, %v10758_v8  ;;  %vm1407_vm6 = vmor %vm1405_vm1, %vm1406_vm3 }
 0x539   : > { %v1773_v7 = vsub.f32 %v1369_v57, %v1719_v20  ;;  %v1488_v9 = vsel %vm1485_vm15, %v1487_v63, %v1483_v24  ;;  %5674 = vst [vmem:[%s8435_s22 + $0x68] sm:$0xff] %v5650_v52   ;;  %vm9530_vm4 = vcmp.eq.f32.partialorder %v1409_v38, 8.507059e+37  ;;  %6199 = vlog2.f32 %v10758_v8  ;;  %v4639_v20 = vpop.f32.mrf.mxu2  ;;  %v1183_v57 = vpop.xlane.xlu2 %1182 }
 0x53a   : > { %v1489_v27 = vmul.f32 %v1488_v9, %v1177_v4  ;;  %v1780_v47 = vsub.f32 %v1474_v6, %v1733_v16  ;;  %v1404_v62 = vadd.f32 %v10759_v59, %v1403_v33  ;;  %v1507_v17 = vsub.f32 1.0, %v10762_v37  ;;  %v1186_v52 = vpop.xlane.xlu0 %1185  ;;  %v10771_v16 = vld [vmem:[#allocation128_spill] sm:$0xff] }
 0x53b   : > { %v1805_v29 = vadd.f32 5.5451775, %v1773_v7  ;;  %v6198_v35 = vpop.eup %6197  ;;  %vm1510_vm5 = vweird.f32 %v10763_v53  ;;  %v1412_v19 = vor.u32 1.1754944e-38, %v1411_v56  ;;  %vm1511_vm7 = vweird.f32 %v10764_v2 }
 0x53c   : > { %v1735_v43 = vmul.f32 0.6931472, %v6198_v35  ;;  %v1514_v60 = vand.u32 2147483647, %v10763_v53  ;;  %v1812_v50 = vadd.f32 5.5451775, %v1780_v47  ;;  %v1408_v25 = vsel %vm1407_vm6, %v10759_v59, %v1404_v62  ;;  %vm1512_vm9 = vmor %vm1510_vm5, %vm1511_vm7 }
 0x53d   : > { %1838 = vst.msk [vmem:[%s9274_s30 + $0x48] sm:$0xff] %vm1828_vm2, %v1805_v29  ;;  %v1508_v51 = vmul.f32 %v10764_v2, %v1507_v17  ;;  %v1516_v49 = vand.u32 2147483648, %v10763_v53  ;;  %v1413_v28 = vsel %vm9530_vm4, %v1412_v19, %v1408_v25  ;;  %6201 = vlog2.f32 %v10763_v53  ;;  %v10769_v59 = vld [vmem:[#allocation48_spill] sm:$0xff] }
 0x53e   : > { %v1162_v11 = vpop.xlane.xlu1 %1161  ;;  %v1781_v23 = vsub.f32 %v1489_v27, %v1735_v43  ;;  %vm9552_vm8 = vcmp.eq.f32.partialorder %v1514_v60, 8.507059e+37  ;;  %1845 = vst.msk [vmem:[%s9274_s30 + $0x80] sm:$0xff] %vm1828_vm2, %v1812_v50  ;;  %v1522_v12 = vsub.f32 1.0, %v9252_v13  ;;  %vm1525_vm10 = vweird.f32 %v9201_v42  ;;  %v10770_v29 = vld [vmem:[#allocation20_spill] sm:$0xff]  ;;  %v10776_v60 = vld [vmem:[#allocation47_spill] sm:$0xff] }
 0x53f   : > { %v1414_v3 = vmul.f32 %v1413_v28, %v1162_v11  ;;  %v1509_v58 = vadd.f32 %v10764_v2, %v1508_v51  ;;  %v1517_v39 = vor.u32 1.1754944e-38, %v1516_v49  ;;  %v6200_v36 = vpop.eup %6199  ;;  %vm1526_vm11 = vweird.f32 %v9237_v32 }
 0x540   : > { %v1813_v40 = vadd.f32 5.5451775, %v1781_v23  ;;  %v1529_v21 = vand.u32 2147483647, %v9201_v42  ;;  %v1725_v34 = vmul.f32 0.6931472, %v6200_v36  ;;  %v1523_v13 = vmul.f32 %v9237_v32, %v1522_v12  ;;  %vm1527_vm13 = vmor %vm1525_vm10, %vm1526_vm11 }
 0x541   : > { %v1513_v6 = vsel %vm1512_vm9, %v10764_v2, %v1509_v58  ;;  %v1531_v61 = vand.u32 2147483648, %v9201_v42  ;;  %6203 = vlog2.f32 %v9201_v42  ;;  %v9580_v63 = vadd.f32 %v4728_v0, %v4639_v20  ;;  %v10775_v2 = vld [vmem:[#allocation97_spill] sm:$0xff]  ;;  %v1192_v12 = vpop.xlane.xlu2 %1191 }
 0x542   : > { %1846 = vst.msk [vmem:[%s9274_s30 + $0x88] sm:$0xff] %vm1828_vm2, %v1813_v40  ;;  %v1518_v26 = vsel %vm9552_vm8, %v1517_v39, %v1513_v6  ;;  %vm9575_vm12 = vcmp.eq.f32.partialorder %v1529_v21, 8.507059e+37  ;;  %v1776_v4 = vsub.f32 %v1414_v3, %v1725_v34  ;;  %v1524_v8 = vadd.f32 %v9237_v32, %v1523_v13  ;;  %v4730_v21 = vpop.f32.mrf.mxu3 }
 0x543   : > { %v1519_v31 = vmul.f32 %v1518_v26, %v1183_v57  ;;  %v1532_v14 = vor.u32 1.1754944e-38, %v1531_v61  ;;  %v6202_v24 = vpop.eup %6201  ;;  %v1447_v38 = vsub.f32 1.0, %v10769_v59  ;;  %vm1450_vm14 = vweird.f32 %v10770_v29  ;;  %v4641_v57 = vpop.f32.mrf.mxu2 }
 0x544   : > { %vm1451_vm15 = vweird.f32 %v10771_v16  ;;  %v1454_v9 = vand.u32 2147483647, %v10770_v29  ;;  %v1808_v33 = vadd.f32 5.5451775, %v1776_v4  ;;  %v1739_v27 = vmul.f32 0.6931472, %v6202_v24 }
 0x545   : > { %v1528_v44 = vsel %vm1527_vm13, %v9237_v32, %v1524_v8  ;;  %v1456_v56 = vand.u32 2147483648, %v10770_v29  ;;  %v1448_v42 = vmul.f32 %v10771_v16, %v1447_v38  ;;  %6205 = vlog2.f32 %v10770_v29  ;;  %v10774_v32 = vld [vmem:[#allocation23_spill] sm:$0xff]  ;;  %vm1452_vm4 = vmor %vm1450_vm14, %vm1451_vm15  ;;  %v1195_v38 = vpop.xlane.xlu0 %1194 }
 0x546   : > { %v1533_v35 = vsel %vm9575_vm12, %v1532_v14, %v1528_v44  ;;  %vm9596_vm0 = vcmp.eq.f32.partialorder %v1454_v9, 8.507059e+37  ;;  %1841 = vst.msk [vmem:[%s9274_s30 + $0x60] sm:$0xff] %vm1828_vm2, %v1808_v33  ;;  %v1783_v62 = vsub.f32 %v1519_v31, %v1739_v27  ;;  %v1171_v17 = vpop.xlane.xlu1 %1170  ;;  %v1552_v43 = vsub.f32 1.0, %v10774_v32  ;;  %v10779_v29 = vld [vmem:[#allocation107_spill] sm:$0xff]  ;;  %v10780_v9 = vld [vmem:[#allocation21_spill] sm:$0xff] }
 0x547   : > { %v1534_v37 = vmul.f32 %v1533_v35, %v1186_v52  ;;  %v1457_v53 = vor.u32 1.1754944e-38, %v1456_v56  ;;  %v6204_v11 = vpop.eup %6203  ;;  %v1449_v19 = vadd.f32 %v10771_v16, %v1448_v42  ;;  %vm1555_vm1 = vweird.f32 %v10775_v2 }
 0x548   : > { %vm1556_vm3 = vweird.f32 %v10776_v60  ;;  %v1559_v50 = vand.u32 2147483647, %v10775_v2  ;;  %v1815_v25 = vadd.f32 5.5451775, %v1783_v62  ;;  %v1741_v51 = vmul.f32 0.6931472, %v6204_v11 }
 0x549   : > { %v1553_v49 = vmul.f32 %v10776_v60, %v1552_v43  ;;  %v1561_v23 = vand.u32 2147483648, %v10775_v2  ;;  %v1453_v28 = vsel %vm1452_vm4, %v10771_v16, %v1449_v19  ;;  %6207 = vlog2.f32 %v10775_v2  ;;  %vm1557_vm6 = vmor %vm1555_vm1, %vm1556_vm3  ;;  %v10783_v11 = vld [vmem:[#allocation37_spill] sm:$0xff] }
 0x54a   : > { %vm9615_vm5 = vcmp.eq.f32.partialorder %v1559_v50, 8.507059e+37  ;;  %v1567_v3 = vsub.f32 1.0, %v9316_v15  ;;  %1848 = vst.msk [vmem:[%s9274_s30 + $0x98] sm:$0xff] %vm1828_vm2, %v1815_v25  ;;  %v1784_v58 = vsub.f32 %v1534_v37, %v1741_v51  ;;  %v1458_v39 = vsel %vm9596_vm0, %v1457_v53, %v1453_v28 }
 0x54b   : > { %v1554_v20 = vadd.f32 %v10776_v60, %v1553_v49  ;;  %v1562_v0 = vor.u32 1.1754944e-38, %v1561_v23  ;;  %v6206_v36 = vpop.eup %6205  ;;  %v1459_v40 = vmul.f32 %v1458_v39, %v1171_v17  ;;  %vm1570_vm7 = vweird.f32 %v9254_v30  ;;  %v10782_v17 = vld [vmem:[#allocation27_spill] sm:$0xff]  ;;  %v1201_v39 = vpop.xlane.xlu2 %1200 }
 0x54c   : > { %v1568_v15 = vmul.f32 %v9304_v22, %v1567_v3  ;;  %vm1571_vm8 = vweird.f32 %v9304_v22  ;;  %v1816_v34 = vadd.f32 5.5451775, %v1784_v58  ;;  %v1731_v6 = vmul.f32 0.6931472, %v6206_v36 }
 0x54d   : > { %v1558_v13 = vsel %vm1557_vm6, %v10776_v60, %v1554_v20  ;;  %v1574_v61 = vand.u32 2147483647, %v9254_v30  ;;  %v1576_v4 = vand.u32 2147483648, %v9254_v30  ;;  %6209 = vlog2.f32 %v9254_v30  ;;  %vm1572_vm9 = vmor %vm1570_vm7, %vm1571_vm8  ;;  %v10781_v30 = vld [vmem:[#allocation134_spill] sm:$0xff] }
 0x54e   : > { %v1563_v26 = vsel %vm9615_vm5, %v1562_v0, %v1558_v13  ;;  %v1569_v7 = vadd.f32 %v9304_v22, %v1568_v15  ;;  %1849 = vst.msk [vmem:[%s9274_s30 + $0xa0] sm:$0xff] %vm1828_vm2, %v1816_v34  ;;  %v1779_v31 = vsub.f32 %v1459_v40, %v1731_v6  ;;  %v4731_v14 = vadd.f32 %v4730_v21, %v4641_v57  ;;  %v1180_v56 = vpop.xlane.xlu1 %1179  ;;  %v10784_v60 = vld [vmem:[#allocation26_spill] sm:$0xff] }
 0x54f   : > { %v1564_v8 = vmul.f32 %v1563_v26, %v1192_v12  ;;  %vm1575_vm10 = vcmp.eq.f32.partialorder %v1574_v61, 8.507059e+37  ;;  %v6208_v24 = vpop.eup %6207  ;;  %v1577_v59 = vor.u32 1.1754944e-38, %v1576_v4  ;;  %v1492_v16 = vsub.f32 1.0, %v10779_v29  ;;  %v10785_v61 = vld [vmem:[#allocation79_spill] sm:$0xff] }
 0x550   : > { %v1573_v52 = vsel %vm1572_vm9, %v9304_v22, %v1569_v7  ;;  %vm1495_vm11 = vweird.f32 %v10780_v9  ;;  %v1811_v33 = vadd.f32 5.5451775, %v1779_v31  ;;  %v1745_v27 = vmul.f32 0.6931472, %v6208_v24 }
 0x551   : > { %v5655_v44 = vpack.c.bf16 %v4731_v14, %v9580_v63  ;;  %vm1496_vm12 = vweird.f32 %v10781_v30  ;;  %v1578_v35 = vsel %vm1575_vm10, %v1577_v59, %v1573_v52  ;;  %v1493_v42 = vmul.f32 %v10781_v30, %v1492_v16  ;;  %v1204_v52 = vpop.xlane.xlu0 %1203  ;;  %v10786_v59 = vld [vmem:[#allocation135_spill] sm:$0xff]  ;;  %v10787_v16 = vld [vmem:[#allocation25_spill] sm:$0xff] }
 0x552   : > { %v1499_v47 = vand.u32 2147483647, %v10780_v9  ;;  %v1501_v22 = vand.u32 2147483648, %v10780_v9  ;;  %1844 = vst.msk [vmem:[%s9274_s30 + $0x78] sm:$0xff] %vm1828_vm2, %v1811_v33  ;;  %v1786_v62 = vsub.f32 %v1564_v8, %v1745_v27  ;;  %v1579_v37 = vmul.f32 %v1578_v35, %v1195_v38  ;;  %vm1497_vm15 = vmor %vm1495_vm11, %vm1496_vm12 }
 0x553   : > { %6211 = vlog2.f32 %v10780_v9  ;;  %v1597_v53 = vsub.f32 1.0, %v10782_v17  ;;  %v6210_v63 = vpop.eup %6209  ;;  %5675 = vst [vmem:[%s8435_s22 + $0x70] sm:$0xff] %v5655_v44   ;;  %v1494_v32 = vadd.f32 %v10781_v30, %v1493_v42  ;;  %vm1600_vm14 = vweird.f32 %v10783_v11 }
 0x554   : > { %vm1500_vm13 = vcmp.eq.f32.partialorder %v1499_v47, 8.507059e+37  ;;  %v1502_v43 = vor.u32 1.1754944e-38, %v1501_v22  ;;  %v1818_v19 = vadd.f32 5.5451775, %v1786_v62  ;;  %v1747_v2 = vmul.f32 0.6931472, %v6210_v63 }
 0x555   : > { %v1598_v50 = vmul.f32 %v10784_v60, %v1597_v53  ;;  %vm1601_vm0 = vweird.f32 %v10784_v60  ;;  %v1498_v25 = vsel %vm1497_vm15, %v10781_v30, %v1494_v32  ;;  %v1604_v51 = vand.u32 2147483647, %v10783_v11  ;;  %v10788_v30 = vld [vmem:[#allocation114_spill] sm:$0xff] }
 0x556   : > { %v1606_v49 = vand.u32 2147483648, %v10783_v11  ;;  %6213 = vlog2.f32 %v10783_v11  ;;  %1851 = vst.msk [vmem:[%s9274_s30 + $0xb0] sm:$0xff] %vm1828_vm2, %v1818_v19  ;;  %v1787_v23 = vsub.f32 %v1579_v37, %v1747_v2  ;;  %v1503_v28 = vsel %vm1500_vm13, %v1502_v43, %v1498_v25  ;;  %vm1602_vm1 = vmor %vm1600_vm14, %vm1601_vm0  ;;  %v1189_v13 = vpop.xlane.xlu1 %1188  ;;  %v10789_v62 = vld [vmem:[#allocation126_spill] sm:$0xff] }
 0x557   : > { %v1599_v45 = vadd.f32 %v10784_v60, %v1598_v50  ;;  %v1612_v3 = vsub.f32 1.0, %v9370_v5  ;;  %v1504_v58 = vmul.f32 %v1503_v28, %v1180_v56  ;;  %vm1605_vm3 = vcmp.eq.f32.partialorder %v1604_v51, 8.507059e+37  ;;  %v10790_v37 = vld [vmem:[#allocation78_spill] sm:$0xff] }
 0x558   : > { %v1607_v12 = vor.u32 1.1754944e-38, %v1606_v49  ;;  %vm1615_vm4 = vweird.f32 %v9309_v18  ;;  %v1819_v0 = vadd.f32 5.5451775, %v1787_v23  ;;  %vm1616_vm5 = vweird.f32 %v9358_v10  ;;  %v1210_v49 = vpop.xlane.xlu2 %1209 }
 0x559   : > { %v6212_v20 = vpop.eup %6211  ;;  %v1603_v36 = vsel %vm1602_vm1, %v10784_v60, %v1599_v45  ;;  %v1613_v40 = vmul.f32 %v9358_v10, %v1612_v3  ;;  %v1619_v57 = vand.u32 2147483647, %v9309_v18  ;;  %v1621_v21 = vand.u32 2147483648, %v9309_v18  ;;  %vm1617_vm6 = vmor %vm1615_vm4, %vm1616_vm5 }
 0x55a   : > { %v1737_v15 = vmul.f32 0.6931472, %v6212_v20  ;;  %v1608_v5 = vsel %vm1605_vm3, %v1607_v12, %v1603_v36  ;;  %1852 = vst.msk [vmem:[%s9274_s30 + $0xb8] sm:$0xff] %vm1828_vm2, %v1819_v0  ;;  %6215 = vlog2.f32 %v9309_v18  ;;  %v1537_v26 = vsub.f32 1.0, %v10785_v61 }
 0x55b   : > { %v1609_v34 = vmul.f32 %v1608_v5, %v1201_v39  ;;  %v1614_v6 = vadd.f32 %v9358_v10, %v1613_v40  ;;  %v1656_v4 = vmul.f32 %v9402_v46, %v9364_v55  ;;  %vm1620_vm7 = vcmp.eq.f32.partialorder %v1619_v57, 8.507059e+37 }
 0x55c   : > { %v6214_v7 = vpop.eup %6213  ;;  %v1782_v31 = vsub.f32 %v1504_v58, %v1737_v15  ;;  %v1622_v8 = vor.u32 1.1754944e-38, %v1621_v21  ;;  %v1538_v38 = vmul.f32 %v10786_v59, %v1537_v26  ;;  %vm1541_vm8 = vweird.f32 %v10786_v59  ;;  %v1213_v21 = vpop.xlane.xlu0 %1212  ;;  %v10794_v26 = vld [vmem:[#allocation22_spill] sm:$0xff] }
 0x55d   : > { %v1751_v14 = vmul.f32 0.6931472, %v6214_v7  ;;  %v1618_v24 = vsel %vm1617_vm6, %v9358_v10, %v1614_v6  ;;  %vm1540_vm9 = vweird.f32 %v10787_v16  ;;  %v1544_v9 = vand.u32 2147483647, %v10787_v16  ;;  %v10795_v7 = vld [vmem:[#allocation36_spill] sm:$0xff] }
 0x55e   : > { %v1814_v29 = vadd.f32 5.5451775, %v1782_v31  ;;  %v1546_v33 = vand.u32 2147483648, %v10787_v16  ;;  %v1623_v27 = vsel %vm1620_vm7, %v1622_v8, %v1618_v24  ;;  %v1539_v44 = vadd.f32 %v10786_v59, %v1538_v38  ;;  %vm1542_vm10 = vmor %vm1540_vm9, %vm1541_vm8  ;;  %v1198_v3 = vpop.xlane.xlu1 %1197 }
 0x55f   : > { %v1789_v18 = vsub.f32 %v1609_v34, %v1751_v14  ;;  %6217 = vlog2.f32 %v10787_v16  ;;  %v1624_v10 = vmul.f32 %v1623_v27, %v1204_v52  ;;  %vm1545_vm11 = vcmp.eq.f32.partialorder %v1544_v9, 8.507059e+37  ;;  %v10793_v34 = vld [vmem:[#allocation30_spill] sm:$0xff] }
 0x560   : > { %1847 = vst.msk [vmem:[%s9274_s30 + $0x90] sm:$0xff] %vm1828_vm2, %v1814_v29  ;;  %v1547_v56 = vor.u32 1.1754944e-38, %v1546_v33  ;;  %v1642_v35 = vsub.f32 1.0, %v10788_v30  ;;  %v6216_v42 = vpop.eup %6215  ;;  %v1543_v22 = vsel %vm1542_vm10, %v10786_v59, %v1539_v44  ;;  %vm1646_vm12 = vweird.f32 %v10789_v62  ;;  %v4644_v20 = vpop.f32.mrf.mxu2 }
 0x561   : > { %v1821_v47 = vadd.f32 5.5451775, %v1789_v18  ;;  %v1649_v17 = vand.u32 2147483647, %v10790_v37  ;;  %v1753_v53 = vmul.f32 0.6931472, %v6216_v42  ;;  %vm1645_vm13 = vweird.f32 %v10790_v37  ;;  %v4733_v0 = vpop.f32.mrf.mxu3 }
 0x562   : > { %v1548_v63 = vsel %vm1545_vm11, %v1547_v56, %v1543_v22  ;;  %v1643_v32 = vmul.f32 %v10789_v62, %v1642_v35  ;;  %v1651_v43 = vand.u32 2147483648, %v10790_v37  ;;  %6219 = vlog2.f32 %v10790_v37  ;;  %vm1647_vm15 = vmor %vm1645_vm13, %vm1646_vm12  ;;  %v10800_v37 = vld [vmem:[#allocation86_spill] sm:$0xff] }
 0x563   : > { %1854 = vst.msk [vmem:[%s9274_s30 + $0xc8] sm:$0xff] %vm1828_vm2, %v1821_v47  ;;  %v1549_v11 = vmul.f32 %v1548_v63, %v1189_v13  ;;  %v1657_v19 = vsub.f32 1.0, %v1656_v4  ;;  %v1790_v2 = vsub.f32 %v1624_v10, %v1753_v53  ;;  %vm9711_vm14 = vcmp.eq.f32.partialorder %v1649_v17, 8.507059e+37 }
 0x564   : > { %v1644_v60 = vadd.f32 %v10789_v62, %v1643_v32  ;;  %v1652_v25 = vor.u32 1.1754944e-38, %v1651_v43  ;;  %vm1661_vm0 = vweird.f32 %v9402_v46  ;;  %v1664_v28 = vand.u32 2147483647, %v9364_v55  ;;  %v1219_v43 = vpop.xlane.xlu2 %1218 }
 0x565   : > { %v6218_v51 = vpop.eup %6217  ;;  %v1658_v23 = vmul.f32 %v9402_v46, %v1657_v19  ;;  %v1666_v45 = vand.u32 2147483648, %v9364_v55  ;;  %v1822_v58 = vadd.f32 5.5451775, %v1790_v2  ;;  %6221 = vlog2.f32 %v9364_v55  ;;  %v10801_v19 = vld [vmem:[#allocation82_spill] sm:$0xff]  ;;  %v10802_v2 = vld [vmem:[#allocation136_spill] sm:$0xff] }
 0x566   : > { %v1743_v39 = vmul.f32 0.6931472, %v6218_v51  ;;  %v1648_v12 = vsel %vm1647_vm15, %v10789_v62, %v1644_v60  ;;  %vm1660_vm1 = vweird.f32 %v9364_v55  ;;  %vm1665_vm3 = vcmp.eq.f32.partialorder %v1664_v28, 8.507059e+37  ;;  %v1207_v42 = vpop.xlane.xlu1 %1206 }
 0x567   : > { %v1653_v36 = vsel %vm9711_vm14, %v1652_v25, %v1648_v12  ;;  %v1659_v40 = vadd.f32 %v9402_v46, %v1658_v23  ;;  %1855 = vst.msk [vmem:[%s9274_s30 + $0xd0] sm:$0xff] %vm1828_vm2, %v1822_v58  ;;  %vm1662_vm4 = vmor %vm1660_vm1, %vm1661_vm0  ;;  %v1667_v57 = vor.u32 1.1754944e-38, %v1666_v45  ;;  %v1582_v6 = vsub.f32 1.0, %v10793_v34 }
 0x568   : > { %v1785_v15 = vsub.f32 %v1549_v11, %v1743_v39  ;;  %v1654_v5 = vmul.f32 %v1653_v36, %v1210_v49  ;;  %v6220_v13 = vpop.eup %6219  ;;  %vm1586_vm5 = vweird.f32 %v10794_v26  ;;  %v1589_v55 = vand.u32 2147483647, %v10795_v7  ;;  %v4646_v53 = vpop.f32.mrf.mxu2 }
 0x569   : > { %v1663_v61 = vsel %vm1662_vm4, %v9402_v46, %v1659_v40  ;;  %v1591_v4 = vand.u32 2147483648, %v10795_v7  ;;  %v1757_v8 = vmul.f32 0.6931472, %v6220_v13  ;;  %v1583_v24 = vmul.f32 %v10794_v26, %v1582_v6  ;;  %v4735_v63 = vpop.f32.mrf.mxu3 }
 0x56a   : > { %v1817_v31 = vadd.f32 5.5451775, %v1785_v15  ;;  %v1668_v14 = vsel %vm1665_vm3, %v1667_v57, %v1663_v61  ;;  %vm1585_vm6 = vweird.f32 %v10795_v7  ;;  %vm9738_vm7 = vcmp.eq.f32.partialorder %v1589_v55, 8.507059e+37 }
 0x56b   : > { %v1669_v52 = vmul.f32 %v1668_v14, %v1213_v21  ;;  %6223 = vlog2.f32 %v10795_v7  ;;  %v6222_v46 = vpop.eup %6221  ;;  %v1792_v38 = vsub.f32 %v1654_v5, %v1757_v8  ;;  %v1584_v29 = vadd.f32 %v10794_v26, %v1583_v24  ;;  %vm1587_vm8 = vmor %vm1585_vm6, %vm1586_vm5  ;;  %v10804_v5 = vld [vmem:[#allocation83_spill] sm:$0xff] }
 0x56c   : > { %1850 = vst.msk [vmem:[%s9274_s30 + $0xa8] sm:$0xff] %vm1828_vm2, %v1817_v31  ;;  %v1592_v16 = vor.u32 1.1754944e-38, %v1591_v4  ;;  %v1687_v9 = vsub.f32 1.0, %v9245_v1  ;;  %v1759_v33 = vmul.f32 0.6931472, %v6222_v46  ;;  %v4734_v18 = vadd.f32 %v4733_v0, %v4644_v20  ;;  %v10803_v0 = vld [vmem:[#allocation148_spill] sm:$0xff] }
 0x56d   : > { %vm1691_vm9 = vweird.f32 %v9232_v41  ;;  %v1694_v27 = vand.u32 2147483647, %v9197_v54  ;;  %v1824_v44 = vadd.f32 5.5451775, %v1792_v38  ;;  %v1588_v10 = vsel %vm1587_vm8, %v10794_v26, %v1584_v29 }
 0x56e   : > { %v1688_v56 = vmul.f32 %v9232_v41, %v1687_v9  ;;  %v1696_v30 = vand.u32 2147483648, %v9197_v54  ;;  %v1793_v35 = vsub.f32 %v1669_v52, %v1759_v33  ;;  %v1593_v1 = vsel %vm9738_vm7, %v1592_v16, %v1588_v10 }
 0x56f   : > { %vm1690_vm10 = vweird.f32 %v9197_v54  ;;  %6225 = vlog2.f32 %v9197_v54  ;;  %1857 = vst.msk [vmem:[%s9274_s30 + $0xe0] sm:$0xff] %vm1828_vm2, %v1824_v44  ;;  %v1594_v47 = vmul.f32 %v1593_v1, %v1198_v3  ;;  %vm9762_vm11 = vcmp.eq.f32.partialorder %v1694_v27, 8.507059e+37 }
 0x570   : > { %v1689_v22 = vadd.f32 %v9232_v41, %v1688_v56  ;;  %v1627_v17 = vsub.f32 1.0, %v10800_v37  ;;  %v1825_v32 = vadd.f32 5.5451775, %v1793_v35  ;;  %vm1692_vm12 = vmor %vm1690_vm10, %vm1691_vm9  ;;  %v1697_v11 = vor.u32 1.1754944e-38, %v1696_v30 }
 0x571   : > { %v6224_v54 = vpop.eup %6223  ;;  %vm1631_vm13 = vweird.f32 %v10801_v19  ;;  %v1634_v60 = vand.u32 2147483647, %v10802_v2  ;;  %v1636_v49 = vand.u32 2147483648, %v10802_v2  ;;  %vm1630_vm14 = vweird.f32 %v10802_v2 }
 0x572   : > { %v1749_v50 = vmul.f32 0.6931472, %v6224_v54  ;;  %v1693_v25 = vsel %vm1692_vm12, %v9232_v41, %v1689_v22  ;;  %v1628_v51 = vmul.f32 %v10801_v19, %v1627_v17  ;;  %1858 = vst.msk [vmem:[%s9274_s30 + $0xe8] sm:$0xff] %vm1828_vm2, %v1825_v32  ;;  %6227 = vlog2.f32 %v10802_v2  ;;  %vm1632_vm0 = vmor %vm1630_vm14, %vm1631_vm13 }
 0x573   : > { %v1698_v23 = vsel %vm9762_vm11, %v1697_v11, %v1693_v25  ;;  %v4736_v28 = vadd.f32 %v4735_v63, %v4646_v53  ;;  %vm1635_vm15 = vcmp.eq.f32.partialorder %v1634_v60, 8.507059e+37  ;;  %v1637_v39 = vor.u32 1.1754944e-38, %v1636_v49 }
 0x574   : > { %v1788_v45 = vsub.f32 %v1594_v47, %v1749_v50  ;;  %v1699_v3 = vmul.f32 %v1698_v23, %v1219_v43  ;;  %v1629_v41 = vadd.f32 %v10801_v19, %v1628_v51  ;;  %v1672_v20 = vsub.f32 1.0, %v9241_v48 }
 0x575   : > { %v6226_v58 = vpop.eup %6225  ;;  %v5660_v12 = vpack.c.bf16 %v4736_v28, %v4734_v18  ;;  %vm1676_vm1 = vweird.f32 %v10803_v0  ;;  %v1679_v57 = vand.u32 2147483647, %v10804_v5  ;;  %v1681_v48 = vand.u32 2147483648, %v10804_v5 }
 0x576   : > { %v1820_v36 = vadd.f32 5.5451775, %v1788_v45  ;;  %v1763_v40 = vmul.f32 0.6931472, %v6226_v58  ;;  %v1633_v15 = vsel %vm1632_vm0, %v10801_v19, %v1629_v41  ;;  %v1673_v34 = vmul.f32 %v10803_v0, %v1672_v20 }
 0x577   : > { %v1638_v21 = vsel %vm1635_vm15, %v1637_v39, %v1633_v15  ;;  %5676 = vst [vmem:[%s8435_s22 + $0x78] sm:$0xff] %v5660_v12   ;;  %6229 = vlog2.f32 %v10804_v5  ;;  %vm1675_vm3 = vweird.f32 %v10804_v5  ;;  %s6251_s22 = scalar_lea.hbm %s9854_s5, 256 }
 0x578   : > { %1853 = vst.msk [vmem:[%s9274_s30 + $0xc0] sm:$0xff] %vm1828_vm2, %v1820_v36  ;;  %v1795_v6 = vsub.f32 %v1699_v3, %v1763_v40  ;;  %v1639_v13 = vmul.f32 %v1638_v21, %v1207_v42  ;;  %v6228_v61 = vpop.eup %6227  ;;  %v1674_v26 = vadd.f32 %v10803_v0, %v1673_v34  ;;  %p6253_p1 = scmp.lt.s32.totalorder %s6251_s22, %s6247_s18 }
 0x57a   : > { %p6254_p2 = por %p6253_p1, %p6252_p0 }
 0x57c   : > { %p6255_p3 = pnand %p6254_p2, %p6250_p13 }
 0x57e   : > { %6258 = shalt.err (!%p6255_p3)
}
 0x57f   : > { %s6296_s20 = smov 64   ;;  %s6297_s23 = smov 4   ;;  %v1827_v7 = vadd.f32 5.5451775, %v1795_v6  ;;  %v1755_v55 = vmul.f32 0.6931472, %v6228_v61  ;;  %v1216_v4 = vpop.xlane.xlu1 %1215  ;;  %vm1677_vm4 = vmor %vm1675_vm3, %vm1676_vm1  ;;  %v6230_v52 = vpop.eup %6229 }
 0x580   : > { %5677 = dma.vmem_to_hbm [thread:$0]  (%p6379_p5), %s9794_s14, 2048, %s9796_s15, %s4803_s16, %s6296_s20, %s6296_s20, %s6297_s23   ;;  %v1682_v31 = vor.u32 1.1754944e-38, %v1681_v48  ;;  %v1678_v8 = vsel %vm1677_vm4, %v10803_v0, %v1674_v26  ;;  %vm1680_vm5 = vcmp.eq.f32.partialorder %v1679_v57, 8.507059e+37  ;;  %v1761_v38 = vmul.f32 0.6931472, %v6230_v52 }
 0x581   : > { %1860 = vst.msk [vmem:[%s9274_s30 + $0xf8] sm:$0xff] %vm1828_vm2, %v1827_v7  ;;  %v1791_v14 = vsub.f32 %v1639_v13, %v1755_v55 }
 0x582   : > { %v1683_v24 = vsel %vm1680_vm5, %v1682_v31, %v1678_v8 }
 0x583   : > { %v1684_v59 = vmul.f32 %v1683_v24, %v1216_v4  ;;  %v1823_v46 = vadd.f32 5.5451775, %v1791_v14 }
 0x585   : > { %1856 = vst.msk [vmem:[%s9274_s30 + $0xd8] sm:$0xff] %vm1828_vm2, %v1823_v46  ;;  %v1794_v29 = vsub.f32 %v1684_v59, %v1761_v38 }
 0x587   : > { %v1826_v16 = vadd.f32 5.5451775, %v1794_v29 }
 0x589   : > { %1859 = vst.msk [vmem:[%s9274_s30 + $0xf0] sm:$0xff] %vm1828_vm2, %v1826_v16 }
 0x58a PF: > { %p5683_p4 = scmp.ge.s32.totalorder %s6293_s29, 2  ;;  %s4850_s12 = sand.u32 1, %s6281_s26  }
 0x58b   : > { %s4851_s0 = scalar_lea.sflag [#allocation5], %s4850_s12 }
 0x58c   : > { %p5680_p5 = pnand %p5683_p4, %p6383_p6 }
 0x58e   : > { %p5681_p7 = pneg %p5680_p5 }
 0x590   : > { %6276 = dma.done.wait (%p5681_p7), %s4851_s0, 2048  }
 0x591   : > { %6278 = vsyncadd (%p5681_p7), %s4851_s0, 4294965248  ;;  %p19_p8 = scmp.ge.s32.totalorder %s6366_s8, 4   ;;  %s10805_s26 = smov %s6285_s27 }
 0x592   : > { %s10806_s27 = smov %s6289_s28  ;;  %s10807_s28 = smov %s6377_s11 }
 0x593   : > { %s10808_s29 = smov %s6366_s8  ;;  %21 = sbr.rel (!%p19_p8) target bundleno = 5 (0x5), region = 95 }
 0x598   :  { %4873 = vsyncpa [#allocation5], 1 }
 0x599   :  { %4875 = vsyncpa [#allocation5 + $0x1], 1 }

</bundles_post_ra>
